<compile_context>
chip_gen: v5e
topology: v5e:2x2
jax: 0.10.0
libtpu: 0.0.40
codegen_flags: <defaults>
</compile_context>

<pallas_src>
import functools

import jax
import jax.numpy as jnp
from jax import lax
from jax.experimental import pallas as pl
from jax.experimental.pallas import tpu as pltpu


# ----------------------------------------------------------------------------
# Helpers: lane-aligned (padded) gate layout
# ----------------------------------------------------------------------------
def _round_up(x, m):
    return (x + m - 1) // m * m


def _pad_gate_cols(w, h, hp):
    """Pad last dim from 4*h to 4*hp; gate k's block is placed at [k*hp, k*hp+h)."""
    lead = w.shape[:-1]
    out = jnp.zeros(lead + (4 * hp,), w.dtype)
    for k in range(4):
        out = out.at[..., k * hp:k * hp + h].set(w[..., k * h:(k + 1) * h])
    return out


def _pad_rows(w, r, rp):
    """Zero-pad leading (row) dim of a 2-D weight from r to rp."""
    return jnp.pad(w, ((0, rp - r), (0, 0)))


# ----------------------------------------------------------------------------
# Fused 2-layer LSTM encoder kernel.
#   gx1_ref : (T, Bb, 4*H1p)  precomputed layer-1 input projection (+ bias), f32
#   w_hh1   : (H1p, 4*H1p)    layer-1 recurrent weights
#   w2      : (H1p+H2p, 4*H2p) stacked [W_ih2; W_hh2] for layer 2
#   b2      : (1, 4*H2p)       layer-2 combined bias, f32
#   out_ref : (Bb, H2p)        h2 at the LAST time step only
# Scratch: h1, c1, h2, c2 in VMEM (f32). Recurrence = in-kernel fori_loop.
# ----------------------------------------------------------------------------
def _fused_encoder_kernel(gx1_ref, w_hh1_ref, w2_ref, b2_ref, out_ref,
                          h1_sc, c1_sc, h2_sc, c2_sc, *, unroll):
    T = gx1_ref.shape[0]
    H1 = h1_sc.shape[-1]
    H2 = h2_sc.shape[-1]

    # Re-initialize state every invocation (each batch block is independent).
    h1_sc[...] = jnp.zeros_like(h1_sc)
    c1_sc[...] = jnp.zeros_like(c1_sc)
    h2_sc[...] = jnp.zeros_like(h2_sc)
    c2_sc[...] = jnp.zeros_like(c2_sc)

    # Grid-invariant weights: load once, keep vreg/VMEM resident.
    w_hh1 = w_hh1_ref[...]
    w2 = w2_ref[...]
    b2 = b2_ref[...]
    cdt = w_hh1.dtype  # compute dtype for the MXU (f32 or bf16)

    def sigmoid(x):
        # single EUP push instead of exp + reciprocal
        return 0.5 * jnp.tanh(0.5 * x) + 0.5

    def cell(gates, c, H):
        # lane-aligned slices: H is a multiple of 128
        i = sigmoid(gates[:, 0 * H:1 * H])
        f = sigmoid(gates[:, 1 * H:2 * H])
        g = jnp.tanh(gates[:, 2 * H:3 * H])
        o = sigmoid(gates[:, 3 * H:4 * H])
        c_new = f * c + i * g                 # f32 cell state
        h_new = o * jnp.tanh(c_new)
        return h_new, c_new

    def step(t, carry):
        # ---- layer 1: input projection already hoisted; one recurrent matmul
        g1 = gx1_ref[t] + jnp.dot(h1_sc[...].astype(cdt), w_hh1,
                                  preferred_element_type=jnp.float32)
        h1, c1 = cell(g1, c1_sc[...], H1)
        h1_sc[...] = h1
        c1_sc[...] = c1

        # ---- layer 2: single matmul for [x=h1, h_prev] @ [W_ih2; W_hh2]
        xh = jnp.concatenate([h1, h2_sc[...]], axis=-1).astype(cdt)
        g2 = jnp.dot(xh, w2, preferred_element_type=jnp.float32) + b2
        h2, c2 = cell(g2, c2_sc[...], H2)
        h2_sc[...] = h2
        c2_sc[...] = c2
        return carry

    lax.fori_loop(0, T, step, 0, unroll=unroll)

    # Only the last time step of layer 2 is consumed by the module.
    out_ref[...] = h2_sc[...]


# ----------------------------------------------------------------------------
# Encoder wrapper (equivalent of Encoder.forward)
# ----------------------------------------------------------------------------
def encoder_forward(x_btd, params, *, compute_dtype=jnp.float32):
    """x_btd: (B, T, n_features)  ->  (B, embedding_dim)."""
    B, T, D = x_btd.shape
    H1 = params["w_hh1"].shape[0]          # hidden_dim = 2 * embedding_dim
    H2 = params["w_hh2"].shape[0]          # embedding_dim

    # Lane/sublane-aligned padded sizes.
    H1p = _round_up(H1, 128)
    H2p = _round_up(H2, 128)
    Bp = _round_up(B, 8)
    G1 = 4 * H1p
    G2 = 4 * H2p

    # Batch blocking: split across a "parallel" grid axis (v7x second core)
    # when the padded batch allows two sublane-aligned blocks.
    Bb = Bp // 2 if Bp % 16 == 0 else Bp
    n_bblk = Bp // Bb

    # ---- pad weights into the lane-aligned gate layout (zero padding is exact)
    w_ih1_p = _pad_gate_cols(params["w_ih1"], H1, H1p)                       # (D, G1)
    b1_p = _pad_gate_cols(params["b1"], H1, H1p)                             # (1, G1)
    w_hh1_p = _pad_rows(_pad_gate_cols(params["w_hh1"], H1, H1p), H1, H1p)   # (H1p, G1)
    w_ih2_p = _pad_rows(_pad_gate_cols(params["w_ih2"], H2, H2p), H1, H1p)   # (H1p, G2)
    w_hh2_p = _pad_rows(_pad_gate_cols(params["w_hh2"], H2, H2p), H2, H2p)   # (H2p, G2)
    w2_p = jnp.concatenate([w_ih2_p, w_hh2_p], axis=0)                       # (H1p+H2p, G2)
    b2_p = _pad_gate_cols(params["b2"], H2, H2p)                             # (1, G2)

    # ---- time-major input, batch padded to sublane multiple
    x_tm = jnp.transpose(x_btd, (1, 0, 2))                                   # (T, B, D)
    x_tm = jnp.pad(x_tm, ((0, 0), (0, Bp - B), (0, 0)))                      # (T, Bp, D)

    # ---- hoisted layer-1 input projection: ONE large matmul over all T (XLA)
    gx1 = jnp.einsum("tbd,dg->tbg", x_tm, w_ih1_p) + b1_p                    # (T, Bp, G1) f32

    # Matmul operands in compute dtype (bf16 option); accumulation stays f32.
    w_hh1_c = w_hh1_p.astype(compute_dtype)
    w2_c = w2_p.astype(compute_dtype)

    kernel = functools.partial(_fused_encoder_kernel, unroll=bool(T <= 32))

    out = pl.pallas_call(
        kernel,
        out_shape=jax.ShapeDtypeStruct((Bp, H2p), jnp.float32),
        grid=(n_bblk,),
        in_specs=[
            pl.BlockSpec((T, Bb, G1), lambda b: (0, b, 0)),        # gx1 (batch block)
            pl.BlockSpec((H1p, G1), lambda b: (0, 0)),             # W_hh1 (resident)
            pl.BlockSpec((H1p + H2p, G2), lambda b: (0, 0)),       # [W_ih2; W_hh2]
            pl.BlockSpec((1, G2), lambda b: (0, 0)),               # b2
        ],
        out_specs=pl.BlockSpec((Bb, H2p), lambda b: (b, 0)),
        scratch_shapes=[
            pltpu.VMEM((Bb, H1p), jnp.float32),   # h1
            pltpu.VMEM((Bb, H1p), jnp.float32),   # c1
            pltpu.VMEM((Bb, H2p), jnp.float32),   # h2
            pltpu.VMEM((Bb, H2p), jnp.float32),   # c2
        ],
        compiler_params=pltpu.CompilerParams(
            dimension_semantics=("parallel",)),   # batch blocks are independent
    )(gx1, w_hh1_c, w2_c, b2_p)

    return out[:B, :H2]


# ----------------------------------------------------------------------------
# Deterministic parameter init (PyTorch-style uniform(-1/sqrt(H), 1/sqrt(H)))
# ----------------------------------------------------------------------------
def init_encoder_params(key, n_features, embedding_dim):
    hidden_dim = 2 * embedding_dim

    def init_layer(k, d_in, h):
        k1, k2, k3, k4 = jax.random.split(k, 4)
        bound = 1.0 / jnp.sqrt(jnp.float32(h))
        w_ih = jax.random.uniform(k1, (d_in, 4 * h), jnp.float32, -bound, bound)
        w_hh = jax.random.uniform(k2, (h, 4 * h), jnp.float32, -bound, bound)
        b_ih = jax.random.uniform(k3, (4 * h,), jnp.float32, -bound, bound)
        b_hh = jax.random.uniform(k4, (4 * h,), jnp.float32, -bound, bound)
        return w_ih, w_hh, (b_ih + b_hh).reshape(1, 4 * h)

    k1, k2 = jax.random.split(key)
    w_ih1, w_hh1, b1 = init_layer(k1, n_features, hidden_dim)
    w_ih2, w_hh2, b2 = init_layer(k2, hidden_dim, embedding_dim)
    return dict(w_ih1=w_ih1, w_hh1=w_hh1, b1=b1,
                w_ih2=w_ih2, w_hh2=w_hh2, b2=b2)


# ----------------------------------------------------------------------------
# Pure-JAX reference (lax.scan) used to sanity-check the Pallas kernel
# ----------------------------------------------------------------------------
def _lstm_layer_ref(x_tm, w_ih, w_hh, bias):
    T, B, D = x_tm.shape
    H = w_hh.shape[0]

    def step(carry, x_t):
        h, c = carry
        gates = x_t @ w_ih + h @ w_hh + bias
        i = jax.nn.sigmoid(gates[:, 0 * H:1 * H])
        f = jax.nn.sigmoid(gates[:, 1 * H:2 * H])
        g = jnp.tanh(gates[:, 2 * H:3 * H])
        o = jax.nn.sigmoid(gates[:, 3 * H:4 * H])
        c = f * c + i * g
        h = o * jnp.tanh(c)
        return (h, c), h

    init = (jnp.zeros((B, H), jnp.float32), jnp.zeros((B, H), jnp.float32))
    _, hs = lax.scan(step, init, x_tm)
    return hs


def encoder_forward_ref(x_btd, params):
    x_tm = jnp.transpose(x_btd, (1, 0, 2))
    h1 = _lstm_layer_ref(x_tm, params["w_ih1"], params["w_hh1"], params["b1"])
    h2 = _lstm_layer_ref(h1, params["w_ih2"], params["w_hh2"], params["b2"])
    return h2[-1]


# ----------------------------------------------------------------------------
if __name__ == "__main__":
    batch, seq_len, n_features, embedding_dim = 2, 8, 4, 8

    key = jax.random.PRNGKey(0)
    k_x, k_p, k_x2 = jax.random.split(key, 3)
    x = jax.random.normal(k_x, (batch, seq_len, n_features), jnp.float32)
    params = init_encoder_params(k_p, n_features, embedding_dim)

    fwd = jax.jit(encoder_forward)

    out = jax.block_until_ready(fwd(x, params))
    ref = encoder_forward_ref(x, params)
    assert out.shape == (batch, embedding_dim), out.shape
    assert jnp.allclose(out, ref, atol=1e-4, rtol=1e-4), (out, ref)

    # Larger batch exercises the batch-blocked ("parallel") grid path.
    x2 = jax.random.normal(k_x2, (16, seq_len, n_features), jnp.float32)
    out2 = jax.block_until_ready(fwd(x2, params))
    ref2 = encoder_forward_ref(x2, params)
    assert out2.shape == (16, embedding_dim), out2.shape
    assert jnp.allclose(out2, ref2, atol=1e-4, rtol=1e-4), (out2, ref2)

    print("KERNEL_OK")
</pallas_src>

<mosaic_0001>
module attributes {stable_mosaic.version = 11 : i64} {
  func.func @_fused_encoder_kernel(%arg0: i32, %arg1: memref<8x8x512xf32, #tpu.memory_space<vmem>>, %arg2: memref<128x512xf32, #tpu.memory_space<vmem>>, %arg3: memref<256x512xf32, #tpu.memory_space<vmem>>, %arg4: memref<1x512xf32, #tpu.memory_space<vmem>>, %arg5: memref<8x128xf32, #tpu.memory_space<vmem>>, %arg6: memref<8x128xf32, #tpu.memory_space<vmem>>, %arg7: memref<8x128xf32, #tpu.memory_space<vmem>>, %arg8: memref<8x128xf32, #tpu.memory_space<vmem>>, %arg9: memref<8x128xf32, #tpu.memory_space<vmem>>) attributes {dimension_semantics = [#tpu.dimension_semantics<parallel>], iteration_bounds = array<i64: 1>, scalar_prefetch = 0 : i64, scratch_operands = 4 : i64, tpu.core_type = #tpu.core_type<tc>, window_params = [{transform_indices = @transform_0, window_bounds = array<i64: 8, 8, 512>}, {pipeline_mode = #tpu.pipeline_mode<synchronous>, transform_indices = @transform_1, window_bounds = array<i64: 128, 512>}, {pipeline_mode = #tpu.pipeline_mode<synchronous>, transform_indices = @transform_2, window_bounds = array<i64: 256, 512>}, {pipeline_mode = #tpu.pipeline_mode<synchronous>, transform_indices = @transform_3, window_bounds = array<i64: 1, 512>}, {transform_indices = @transform_4, window_bounds = array<i64: 8, 128>}]} {
    %cst = arith.constant 0.000000e+00 : f32
    %0 = vector.broadcast %cst : f32 to vector<8x128xf32>
    %c0 = arith.constant 0 : index
    %c0_0 = arith.constant 0 : index
    %1 = vector.load %arg6[%c0, %c0_0] : memref<8x128xf32, #tpu.memory_space<vmem>>, vector<8x128xf32>
    tpu.vector_store %arg6[%c0, %c0_0], %0 {strides = array<i32>} : memref<8x128xf32, #tpu.memory_space<vmem>>, vector<8x128xf32>,
    %cst_1 = arith.constant 0.000000e+00 : f32
    %2 = vector.broadcast %cst_1 : f32 to vector<8x128xf32>
    %c0_2 = arith.constant 0 : index
    %c0_3 = arith.constant 0 : index
    %3 = vector.load %arg7[%c0_2, %c0_3] : memref<8x128xf32, #tpu.memory_space<vmem>>, vector<8x128xf32>
    tpu.vector_store %arg7[%c0_2, %c0_3], %2 {strides = array<i32>} : memref<8x128xf32, #tpu.memory_space<vmem>>, vector<8x128xf32>,
    %cst_4 = arith.constant 0.000000e+00 : f32
    %4 = vector.broadcast %cst_4 : f32 to vector<8x128xf32>
    %c0_5 = arith.constant 0 : index
    %c0_6 = arith.constant 0 : index
    %5 = vector.load %arg8[%c0_5, %c0_6] : memref<8x128xf32, #tpu.memory_space<vmem>>, vector<8x128xf32>
    tpu.vector_store %arg8[%c0_5, %c0_6], %4 {strides = array<i32>} : memref<8x128xf32, #tpu.memory_space<vmem>>, vector<8x128xf32>,
    %cst_7 = arith.constant 0.000000e+00 : f32
    %6 = vector.broadcast %cst_7 : f32 to vector<8x128xf32>
    %c0_8 = arith.constant 0 : index
    %c0_9 = arith.constant 0 : index
    %7 = vector.load %arg9[%c0_8, %c0_9] : memref<8x128xf32, #tpu.memory_space<vmem>>, vector<8x128xf32>
    tpu.vector_store %arg9[%c0_8, %c0_9], %6 {strides = array<i32>} : memref<8x128xf32, #tpu.memory_space<vmem>>, vector<8x128xf32>,
    %c0_10 = arith.constant 0 : index
    %c0_11 = arith.constant 0 : index
    %8 = vector.load %arg2[%c0_10, %c0_11] : memref<128x512xf32, #tpu.memory_space<vmem>>, vector<128x512xf32>
    %c0_12 = arith.constant 0 : index
    %c0_13 = arith.constant 0 : index
    %9 = vector.load %arg3[%c0_12, %c0_13] : memref<256x512xf32, #tpu.memory_space<vmem>>, vector<256x512xf32>
    %c0_14 = arith.constant 0 : index
    %c0_15 = arith.constant 0 : index
    %10 = vector.load %arg4[%c0_14, %c0_15] : memref<1x512xf32, #tpu.memory_space<vmem>>, vector<1x512xf32>
    %c0_i32 = arith.constant 0 : i32
    %11 = arith.index_cast %c0_i32 : i32 to index
    %c0_16 = arith.constant 0 : index
    %c0_17 = arith.constant 0 : index
    %12 = vector.load %arg1[%11, %c0_16, %c0_17] : memref<8x8x512xf32, #tpu.memory_space<vmem>>, vector<1x8x512xf32>
    %13 = vector.shape_cast %12 : vector<1x8x512xf32> to vector<8x512xf32>
    %c0_18 = arith.constant 0 : index
    %c0_19 = arith.constant 0 : index
    %14 = vector.load %arg6[%c0_18, %c0_19] : memref<8x128xf32, #tpu.memory_space<vmem>>, vector<8x128xf32>
    %cst_20 = arith.constant dense<0.000000e+00> : vector<8x512xf32>
    %15 = tpu.matmul %14, %8, %cst_20 {dimension_numbers = #tpu.dot_dimension_numbers<[1], [0], [0], [1], [0, 0, 1, 1], [], []>} : vector<8x128xf32>, vector<128x512xf32>, vector<8x512xf32> -> vector<8x512xf32>
    %16 = arith.addf %13, %15 : vector<8x512xf32>
    %c0_21 = arith.constant 0 : index
    %c0_22 = arith.constant 0 : index
    %17 = vector.load %arg7[%c0_21, %c0_22] : memref<8x128xf32, #tpu.memory_space<vmem>>, vector<8x128xf32>
    %18 = vector.extract_strided_slice %16 {offsets = [0, 0], sizes = [8, 128], strides = [1, 1]} : vector<8x512xf32> to vector<8x128xf32>
    %cst_23 = arith.constant 5.000000e-01 : f32
    %19 = vector.broadcast %cst_23 : f32 to vector<8x128xf32>
    %20 = arith.mulf %19, %18 : vector<8x128xf32>
    %21 = math.tanh %20 : vector<8x128xf32>
    %cst_24 = arith.constant 5.000000e-01 : f32
    %22 = vector.broadcast %cst_24 : f32 to vector<8x128xf32>
    %23 = arith.mulf %22, %21 : vector<8x128xf32>
    %cst_25 = arith.constant 5.000000e-01 : f32
    %24 = vector.broadcast %cst_25 : f32 to vector<8x128xf32>
    %25 = arith.addf %23, %24 : vector<8x128xf32>
    %26 = vector.extract_strided_slice %16 {offsets = [0, 128], sizes = [8, 128], strides = [1, 1]} : vector<8x512xf32> to vector<8x128xf32>
    %cst_26 = arith.constant 5.000000e-01 : f32
    %27 = vector.broadcast %cst_26 : f32 to vector<8x128xf32>
    %28 = arith.mulf %27, %26 : vector<8x128xf32>
    %29 = math.tanh %28 : vector<8x128xf32>
    %cst_27 = arith.constant 5.000000e-01 : f32
    %30 = vector.broadcast %cst_27 : f32 to vector<8x128xf32>
    %31 = arith.mulf %30, %29 : vector<8x128xf32>
    %cst_28 = arith.constant 5.000000e-01 : f32
    %32 = vector.broadcast %cst_28 : f32 to vector<8x128xf32>
    %33 = arith.addf %31, %32 : vector<8x128xf32>
    %34 = vector.extract_strided_slice %16 {offsets = [0, 256], sizes = [8, 128], strides = [1, 1]} : vector<8x512xf32> to vector<8x128xf32>
    %35 = math.tanh %34 : vector<8x128xf32>
    %36 = vector.extract_strided_slice %16 {offsets = [0, 384], sizes = [8, 128], strides = [1, 1]} : vector<8x512xf32> to vector<8x128xf32>
    %cst_29 = arith.constant 5.000000e-01 : f32
    %37 = vector.broadcast %cst_29 : f32 to vector<8x128xf32>
    %38 = arith.mulf %37, %36 : vector<8x128xf32>
    %39 = math.tanh %38 : vector<8x128xf32>
    %cst_30 = arith.constant 5.000000e-01 : f32
    %40 = vector.broadcast %cst_30 : f32 to vector<8x128xf32>
    %41 = arith.mulf %40, %39 : vector<8x128xf32>
    %cst_31 = arith.constant 5.000000e-01 : f32
    %42 = vector.broadcast %cst_31 : f32 to vector<8x128xf32>
    %43 = arith.addf %41, %42 : vector<8x128xf32>
    %44 = arith.mulf %33, %17 : vector<8x128xf32>
    %45 = arith.mulf %25, %35 : vector<8x128xf32>
    %46 = arith.addf %44, %45 : vector<8x128xf32>
    %47 = math.tanh %46 : vector<8x128xf32>
    %48 = arith.mulf %43, %47 : vector<8x128xf32>
    %c0_32 = arith.constant 0 : index
    %c0_33 = arith.constant 0 : index
    %49 = vector.load %arg6[%c0_32, %c0_33] : memref<8x128xf32, #tpu.memory_space<vmem>>, vector<8x128xf32>
    tpu.vector_store %arg6[%c0_32, %c0_33], %48 {strides = array<i32>} : memref<8x128xf32, #tpu.memory_space<vmem>>, vector<8x128xf32>,
    %c0_34 = arith.constant 0 : index
    %c0_35 = arith.constant 0 : index
    %50 = vector.load %arg7[%c0_34, %c0_35] : memref<8x128xf32, #tpu.memory_space<vmem>>, vector<8x128xf32>
    tpu.vector_store %arg7[%c0_34, %c0_35], %46 {strides = array<i32>} : memref<8x128xf32, #tpu.memory_space<vmem>>, vector<8x128xf32>,
    %c0_36 = arith.constant 0 : index
    %c0_37 = arith.constant 0 : index
    %51 = vector.load %arg8[%c0_36, %c0_37] : memref<8x128xf32, #tpu.memory_space<vmem>>, vector<8x128xf32>
    %52 = tpu.concatenate %48, %51 in 1 : vector<8x128xf32>, vector<8x128xf32> -> vector<8x256xf32>
    %cst_38 = arith.constant dense<0.000000e+00> : vector<8x512xf32>
    %53 = tpu.matmul %52, %9, %cst_38 {dimension_numbers = #tpu.dot_dimension_numbers<[1], [0], [0], [1], [0, 0, 1, 1], [], []>} : vector<8x256xf32>, vector<256x512xf32>, vector<8x512xf32> -> vector<8x512xf32>
    %54 = vector.broadcast %10 : vector<1x512xf32> to vector<8x512xf32>
    %55 = arith.addf %53, %54 : vector<8x512xf32>
    %c0_39 = arith.constant 0 : index
    %c0_40 = arith.constant 0 : index
    %56 = vector.load %arg9[%c0_39, %c0_40] : memref<8x128xf32, #tpu.memory_space<vmem>>, vector<8x128xf32>
    %57 = vector.extract_strided_slice %55 {offsets = [0, 0], sizes = [8, 128], strides = [1, 1]} : vector<8x512xf32> to vector<8x128xf32>
    %cst_41 = arith.constant 5.000000e-01 : f32
    %58 = vector.broadcast %cst_41 : f32 to vector<8x128xf32>
    %59 = arith.mulf %58, %57 : vector<8x128xf32>
    %60 = math.tanh %59 : vector<8x128xf32>
    %cst_42 = arith.constant 5.000000e-01 : f32
    %61 = vector.broadcast %cst_42 : f32 to vector<8x128xf32>
    %62 = arith.mulf %61, %60 : vector<8x128xf32>
    %cst_43 = arith.constant 5.000000e-01 : f32
    %63 = vector.broadcast %cst_43 : f32 to vector<8x128xf32>
    %64 = arith.addf %62, %63 : vector<8x128xf32>
    %65 = vector.extract_strided_slice %55 {offsets = [0, 128], sizes = [8, 128], strides = [1, 1]} : vector<8x512xf32> to vector<8x128xf32>
    %cst_44 = arith.constant 5.000000e-01 : f32
    %66 = vector.broadcast %cst_44 : f32 to vector<8x128xf32>
    %67 = arith.mulf %66, %65 : vector<8x128xf32>
    %68 = math.tanh %67 : vector<8x128xf32>
    %cst_45 = arith.constant 5.000000e-01 : f32
    %69 = vector.broadcast %cst_45 : f32 to vector<8x128xf32>
    %70 = arith.mulf %69, %68 : vector<8x128xf32>
    %cst_46 = arith.constant 5.000000e-01 : f32
    %71 = vector.broadcast %cst_46 : f32 to vector<8x128xf32>
    %72 = arith.addf %70, %71 : vector<8x128xf32>
    %73 = vector.extract_strided_slice %55 {offsets = [0, 256], sizes = [8, 128], strides = [1, 1]} : vector<8x512xf32> to vector<8x128xf32>
    %74 = math.tanh %73 : vector<8x128xf32>
    %75 = vector.extract_strided_slice %55 {offsets = [0, 384], sizes = [8, 128], strides = [1, 1]} : vector<8x512xf32> to vector<8x128xf32>
    %cst_47 = arith.constant 5.000000e-01 : f32
    %76 = vector.broadcast %cst_47 : f32 to vector<8x128xf32>
    %77 = arith.mulf %76, %75 : vector<8x128xf32>
    %78 = math.tanh %77 : vector<8x128xf32>
    %cst_48 = arith.constant 5.000000e-01 : f32
    %79 = vector.broadcast %cst_48 : f32 to vector<8x128xf32>
    %80 = arith.mulf %79, %78 : vector<8x128xf32>
    %cst_49 = arith.constant 5.000000e-01 : f32
    %81 = vector.broadcast %cst_49 : f32 to vector<8x128xf32>
    %82 = arith.addf %80, %81 : vector<8x128xf32>
    %83 = arith.mulf %72, %56 : vector<8x128xf32>
    %84 = arith.mulf %64, %74 : vector<8x128xf32>
    %85 = arith.addf %83, %84 : vector<8x128xf32>
    %86 = math.tanh %85 : vector<8x128xf32>
    %87 = arith.mulf %82, %86 : vector<8x128xf32>
    %c0_50 = arith.constant 0 : index
    %c0_51 = arith.constant 0 : index
    %88 = vector.load %arg8[%c0_50, %c0_51] : memref<8x128xf32, #tpu.memory_space<vmem>>, vector<8x128xf32>
    tpu.vector_store %arg8[%c0_50, %c0_51], %87 {strides = array<i32>} : memref<8x128xf32, #tpu.memory_space<vmem>>, vector<8x128xf32>,
    %c0_52 = arith.constant 0 : index
    %c0_53 = arith.constant 0 : index
    %89 = vector.load %arg9[%c0_52, %c0_53] : memref<8x128xf32, #tpu.memory_space<vmem>>, vector<8x128xf32>
    tpu.vector_store %arg9[%c0_52, %c0_53], %85 {strides = array<i32>} : memref<8x128xf32, #tpu.memory_space<vmem>>, vector<8x128xf32>,
    %c1_i32 = arith.constant 1 : i32
    %90 = arith.index_cast %c1_i32 : i32 to index
    %c0_54 = arith.constant 0 : index
    %c0_55 = arith.constant 0 : index
    %91 = vector.load %arg1[%90, %c0_54, %c0_55] : memref<8x8x512xf32, #tpu.memory_space<vmem>>, vector<1x8x512xf32>
    %92 = vector.shape_cast %91 : vector<1x8x512xf32> to vector<8x512xf32>
    %c0_56 = arith.constant 0 : index
    %c0_57 = arith.constant 0 : index
    %93 = vector.load %arg6[%c0_56, %c0_57] : memref<8x128xf32, #tpu.memory_space<vmem>>, vector<8x128xf32>
    %cst_58 = arith.constant dense<0.000000e+00> : vector<8x512xf32>
    %94 = tpu.matmul %93, %8, %cst_58 {dimension_numbers = #tpu.dot_dimension_numbers<[1], [0], [0], [1], [0, 0, 1, 1], [], []>} : vector<8x128xf32>, vector<128x512xf32>, vector<8x512xf32> -> vector<8x512xf32>
    %95 = arith.addf %92, %94 : vector<8x512xf32>
    %c0_59 = arith.constant 0 : index
    %c0_60 = arith.constant 0 : index
    %96 = vector.load %arg7[%c0_59, %c0_60] : memref<8x128xf32, #tpu.memory_space<vmem>>, vector<8x128xf32>
    %97 = vector.extract_strided_slice %95 {offsets = [0, 0], sizes = [8, 128], strides = [1, 1]} : vector<8x512xf32> to vector<8x128xf32>
    %cst_61 = arith.constant 5.000000e-01 : f32
    %98 = vector.broadcast %cst_61 : f32 to vector<8x128xf32>
    %99 = arith.mulf %98, %97 : vector<8x128xf32>
    %100 = math.tanh %99 : vector<8x128xf32>
    %cst_62 = arith.constant 5.000000e-01 : f32
    %101 = vector.broadcast %cst_62 : f32 to vector<8x128xf32>
    %102 = arith.mulf %101, %100 : vector<8x128xf32>
    %cst_63 = arith.constant 5.000000e-01 : f32
    %103 = vector.broadcast %cst_63 : f32 to vector<8x128xf32>
    %104 = arith.addf %102, %103 : vector<8x128xf32>
    %105 = vector.extract_strided_slice %95 {offsets = [0, 128], sizes = [8, 128], strides = [1, 1]} : vector<8x512xf32> to vector<8x128xf32>
    %cst_64 = arith.constant 5.000000e-01 : f32
    %106 = vector.broadcast %cst_64 : f32 to vector<8x128xf32>
    %107 = arith.mulf %106, %105 : vector<8x128xf32>
    %108 = math.tanh %107 : vector<8x128xf32>
    %cst_65 = arith.constant 5.000000e-01 : f32
    %109 = vector.broadcast %cst_65 : f32 to vector<8x128xf32>
    %110 = arith.mulf %109, %108 : vector<8x128xf32>
    %cst_66 = arith.constant 5.000000e-01 : f32
    %111 = vector.broadcast %cst_66 : f32 to vector<8x128xf32>
    %112 = arith.addf %110, %111 : vector<8x128xf32>
    %113 = vector.extract_strided_slice %95 {offsets = [0, 256], sizes = [8, 128], strides = [1, 1]} : vector<8x512xf32> to vector<8x128xf32>
    %114 = math.tanh %113 : vector<8x128xf32>
    %115 = vector.extract_strided_slice %95 {offsets = [0, 384], sizes = [8, 128], strides = [1, 1]} : vector<8x512xf32> to vector<8x128xf32>
    %cst_67 = arith.constant 5.000000e-01 : f32
    %116 = vector.broadcast %cst_67 : f32 to vector<8x128xf32>
    %117 = arith.mulf %116, %115 : vector<8x128xf32>
    %118 = math.tanh %117 : vector<8x128xf32>
    %cst_68 = arith.constant 5.000000e-01 : f32
    %119 = vector.broadcast %cst_68 : f32 to vector<8x128xf32>
    %120 = arith.mulf %119, %118 : vector<8x128xf32>
    %cst_69 = arith.constant 5.000000e-01 : f32
    %121 = vector.broadcast %cst_69 : f32 to vector<8x128xf32>
    %122 = arith.addf %120, %121 : vector<8x128xf32>
    %123 = arith.mulf %112, %96 : vector<8x128xf32>
    %124 = arith.mulf %104, %114 : vector<8x128xf32>
    %125 = arith.addf %123, %124 : vector<8x128xf32>
    %126 = math.tanh %125 : vector<8x128xf32>
    %127 = arith.mulf %122, %126 : vector<8x128xf32>
    %c0_70 = arith.constant 0 : index
    %c0_71 = arith.constant 0 : index
    %128 = vector.load %arg6[%c0_70, %c0_71] : memref<8x128xf32, #tpu.memory_space<vmem>>, vector<8x128xf32>
    tpu.vector_store %arg6[%c0_70, %c0_71], %127 {strides = array<i32>} : memref<8x128xf32, #tpu.memory_space<vmem>>, vector<8x128xf32>,
    %c0_72 = arith.constant 0 : index
    %c0_73 = arith.constant 0 : index
    %129 = vector.load %arg7[%c0_72, %c0_73] : memref<8x128xf32, #tpu.memory_space<vmem>>, vector<8x128xf32>
    tpu.vector_store %arg7[%c0_72, %c0_73], %125 {strides = array<i32>} : memref<8x128xf32, #tpu.memory_space<vmem>>, vector<8x128xf32>,
    %c0_74 = arith.constant 0 : index
    %c0_75 = arith.constant 0 : index
    %130 = vector.load %arg8[%c0_74, %c0_75] : memref<8x128xf32, #tpu.memory_space<vmem>>, vector<8x128xf32>
    %131 = tpu.concatenate %127, %130 in 1 : vector<8x128xf32>, vector<8x128xf32> -> vector<8x256xf32>
    %cst_76 = arith.constant dense<0.000000e+00> : vector<8x512xf32>
    %132 = tpu.matmul %131, %9, %cst_76 {dimension_numbers = #tpu.dot_dimension_numbers<[1], [0], [0], [1], [0, 0, 1, 1], [], []>} : vector<8x256xf32>, vector<256x512xf32>, vector<8x512xf32> -> vector<8x512xf32>
    %133 = vector.broadcast %10 : vector<1x512xf32> to vector<8x512xf32>
    %134 = arith.addf %132, %133 : vector<8x512xf32>
    %c0_77 = arith.constant 0 : index
    %c0_78 = arith.constant 0 : index
    %135 = vector.load %arg9[%c0_77, %c0_78] : memref<8x128xf32, #tpu.memory_space<vmem>>, vector<8x128xf32>
    %136 = vector.extract_strided_slice %134 {offsets = [0, 0], sizes = [8, 128], strides = [1, 1]} : vector<8x512xf32> to vector<8x128xf32>
    %cst_79 = arith.constant 5.000000e-01 : f32
    %137 = vector.broadcast %cst_79 : f32 to vector<8x128xf32>
    %138 = arith.mulf %137, %136 : vector<8x128xf32>
    %139 = math.tanh %138 : vector<8x128xf32>
    %cst_80 = arith.constant 5.000000e-01 : f32
    %140 = vector.broadcast %cst_80 : f32 to vector<8x128xf32>
    %141 = arith.mulf %140, %139 : vector<8x128xf32>
    %cst_81 = arith.constant 5.000000e-01 : f32
    %142 = vector.broadcast %cst_81 : f32 to vector<8x128xf32>
    %143 = arith.addf %141, %142 : vector<8x128xf32>
    %144 = vector.extract_strided_slice %134 {offsets = [0, 128], sizes = [8, 128], strides = [1, 1]} : vector<8x512xf32> to vector<8x128xf32>
    %cst_82 = arith.constant 5.000000e-01 : f32
    %145 = vector.broadcast %cst_82 : f32 to vector<8x128xf32>
    %146 = arith.mulf %145, %144 : vector<8x128xf32>
    %147 = math.tanh %146 : vector<8x128xf32>
    %cst_83 = arith.constant 5.000000e-01 : f32
    %148 = vector.broadcast %cst_83 : f32 to vector<8x128xf32>
    %149 = arith.mulf %148, %147 : vector<8x128xf32>
    %cst_84 = arith.constant 5.000000e-01 : f32
    %150 = vector.broadcast %cst_84 : f32 to vector<8x128xf32>
    %151 = arith.addf %149, %150 : vector<8x128xf32>
    %152 = vector.extract_strided_slice %134 {offsets = [0, 256], sizes = [8, 128], strides = [1, 1]} : vector<8x512xf32> to vector<8x128xf32>
    %153 = math.tanh %152 : vector<8x128xf32>
    %154 = vector.extract_strided_slice %134 {offsets = [0, 384], sizes = [8, 128], strides = [1, 1]} : vector<8x512xf32> to vector<8x128xf32>
    %cst_85 = arith.constant 5.000000e-01 : f32
    %155 = vector.broadcast %cst_85 : f32 to vector<8x128xf32>
    %156 = arith.mulf %155, %154 : vector<8x128xf32>
    %157 = math.tanh %156 : vector<8x128xf32>
    %cst_86 = arith.constant 5.000000e-01 : f32
    %158 = vector.broadcast %cst_86 : f32 to vector<8x128xf32>
    %159 = arith.mulf %158, %157 : vector<8x128xf32>
    %cst_87 = arith.constant 5.000000e-01 : f32
    %160 = vector.broadcast %cst_87 : f32 to vector<8x128xf32>
    %161 = arith.addf %159, %160 : vector<8x128xf32>
    %162 = arith.mulf %151, %135 : vector<8x128xf32>
    %163 = arith.mulf %143, %153 : vector<8x128xf32>
    %164 = arith.addf %162, %163 : vector<8x128xf32>
    %165 = math.tanh %164 : vector<8x128xf32>
    %166 = arith.mulf %161, %165 : vector<8x128xf32>
    %c0_88 = arith.constant 0 : index
    %c0_89 = arith.constant 0 : index
    %167 = vector.load %arg8[%c0_88, %c0_89] : memref<8x128xf32, #tpu.memory_space<vmem>>, vector<8x128xf32>
    tpu.vector_store %arg8[%c0_88, %c0_89], %166 {strides = array<i32>} : memref<8x128xf32, #tpu.memory_space<vmem>>, vector<8x128xf32>,
    %c0_90 = arith.constant 0 : index
    %c0_91 = arith.constant 0 : index
    %168 = vector.load %arg9[%c0_90, %c0_91] : memref<8x128xf32, #tpu.memory_space<vmem>>, vector<8x128xf32>
    tpu.vector_store %arg9[%c0_90, %c0_91], %164 {strides = array<i32>} : memref<8x128xf32, #tpu.memory_space<vmem>>, vector<8x128xf32>,
    %c2_i32 = arith.constant 2 : i32
    %169 = arith.index_cast %c2_i32 : i32 to index
    %c0_92 = arith.constant 0 : index
    %c0_93 = arith.constant 0 : index
    %170 = vector.load %arg1[%169, %c0_92, %c0_93] : memref<8x8x512xf32, #tpu.memory_space<vmem>>, vector<1x8x512xf32>
    %171 = vector.shape_cast %170 : vector<1x8x512xf32> to vector<8x512xf32>
    %c0_94 = arith.constant 0 : index
    %c0_95 = arith.constant 0 : index
    %172 = vector.load %arg6[%c0_94, %c0_95] : memref<8x128xf32, #tpu.memory_space<vmem>>, vector<8x128xf32>
    %cst_96 = arith.constant dense<0.000000e+00> : vector<8x512xf32>
    %173 = tpu.matmul %172, %8, %cst_96 {dimension_numbers = #tpu.dot_dimension_numbers<[1], [0], [0], [1], [0, 0, 1, 1], [], []>} : vector<8x128xf32>, vector<128x512xf32>, vector<8x512xf32> -> vector<8x512xf32>
    %174 = arith.addf %171, %173 : vector<8x512xf32>
    %c0_97 = arith.constant 0 : index
    %c0_98 = arith.constant 0 : index
    %175 = vector.load %arg7[%c0_97, %c0_98] : memref<8x128xf32, #tpu.memory_space<vmem>>, vector<8x128xf32>
    %176 = vector.extract_strided_slice %174 {offsets = [0, 0], sizes = [8, 128], strides = [1, 1]} : vector<8x512xf32> to vector<8x128xf32>
    %cst_99 = arith.constant 5.000000e-01 : f32
    %177 = vector.broadcast %cst_99 : f32 to vector<8x128xf32>
    %178 = arith.mulf %177, %176 : vector<8x128xf32>
    %179 = math.tanh %178 : vector<8x128xf32>
    %cst_100 = arith.constant 5.000000e-01 : f32
    %180 = vector.broadcast %cst_100 : f32 to vector<8x128xf32>
    %181 = arith.mulf %180, %179 : vector<8x128xf32>
    %cst_101 = arith.constant 5.000000e-01 : f32
    %182 = vector.broadcast %cst_101 : f32 to vector<8x128xf32>
    %183 = arith.addf %181, %182 : vector<8x128xf32>
    %184 = vector.extract_strided_slice %174 {offsets = [0, 128], sizes = [8, 128], strides = [1, 1]} : vector<8x512xf32> to vector<8x128xf32>
    %cst_102 = arith.constant 5.000000e-01 : f32
    %185 = vector.broadcast %cst_102 : f32 to vector<8x128xf32>
    %186 = arith.mulf %185, %184 : vector<8x128xf32>
    %187 = math.tanh %186 : vector<8x128xf32>
    %cst_103 = arith.constant 5.000000e-01 : f32
    %188 = vector.broadcast %cst_103 : f32 to vector<8x128xf32>
    %189 = arith.mulf %188, %187 : vector<8x128xf32>
    %cst_104 = arith.constant 5.000000e-01 : f32
    %190 = vector.broadcast %cst_104 : f32 to vector<8x128xf32>
    %191 = arith.addf %189, %190 : vector<8x128xf32>
    %192 = vector.extract_strided_slice %174 {offsets = [0, 256], sizes = [8, 128], strides = [1, 1]} : vector<8x512xf32> to vector<8x128xf32>
    %193 = math.tanh %192 : vector<8x128xf32>
    %194 = vector.extract_strided_slice %174 {offsets = [0, 384], sizes = [8, 128], strides = [1, 1]} : vector<8x512xf32> to vector<8x128xf32>
    %cst_105 = arith.constant 5.000000e-01 : f32
    %195 = vector.broadcast %cst_105 : f32 to vector<8x128xf32>
    %196 = arith.mulf %195, %194 : vector<8x128xf32>
    %197 = math.tanh %196 : vector<8x128xf32>
    %cst_106 = arith.constant 5.000000e-01 : f32
    %198 = vector.broadcast %cst_106 : f32 to vector<8x128xf32>
    %199 = arith.mulf %198, %197 : vector<8x128xf32>
    %cst_107 = arith.constant 5.000000e-01 : f32
    %200 = vector.broadcast %cst_107 : f32 to vector<8x128xf32>
    %201 = arith.addf %199, %200 : vector<8x128xf32>
    %202 = arith.mulf %191, %175 : vector<8x128xf32>
    %203 = arith.mulf %183, %193 : vector<8x128xf32>
    %204 = arith.addf %202, %203 : vector<8x128xf32>
    %205 = math.tanh %204 : vector<8x128xf32>
    %206 = arith.mulf %201, %205 : vector<8x128xf32>
    %c0_108 = arith.constant 0 : index
    %c0_109 = arith.constant 0 : index
    %207 = vector.load %arg6[%c0_108, %c0_109] : memref<8x128xf32, #tpu.memory_space<vmem>>, vector<8x128xf32>
    tpu.vector_store %arg6[%c0_108, %c0_109], %206 {strides = array<i32>} : memref<8x128xf32, #tpu.memory_space<vmem>>, vector<8x128xf32>,
    %c0_110 = arith.constant 0 : index
    %c0_111 = arith.constant 0 : index
    %208 = vector.load %arg7[%c0_110, %c0_111] : memref<8x128xf32, #tpu.memory_space<vmem>>, vector<8x128xf32>
    tpu.vector_store %arg7[%c0_110, %c0_111], %204 {strides = array<i32>} : memref<8x128xf32, #tpu.memory_space<vmem>>, vector<8x128xf32>,
    %c0_112 = arith.constant 0 : index
    %c0_113 = arith.constant 0 : index
    %209 = vector.load %arg8[%c0_112, %c0_113] : memref<8x128xf32, #tpu.memory_space<vmem>>, vector<8x128xf32>
    %210 = tpu.concatenate %206, %209 in 1 : vector<8x128xf32>, vector<8x128xf32> -> vector<8x256xf32>
    %cst_114 = arith.constant dense<0.000000e+00> : vector<8x512xf32>
    %211 = tpu.matmul %210, %9, %cst_114 {dimension_numbers = #tpu.dot_dimension_numbers<[1], [0], [0], [1], [0, 0, 1, 1], [], []>} : vector<8x256xf32>, vector<256x512xf32>, vector<8x512xf32> -> vector<8x512xf32>
    %212 = vector.broadcast %10 : vector<1x512xf32> to vector<8x512xf32>
    %213 = arith.addf %211, %212 : vector<8x512xf32>
    %c0_115 = arith.constant 0 : index
    %c0_116 = arith.constant 0 : index
    %214 = vector.load %arg9[%c0_115, %c0_116] : memref<8x128xf32, #tpu.memory_space<vmem>>, vector<8x128xf32>
    %215 = vector.extract_strided_slice %213 {offsets = [0, 0], sizes = [8, 128], strides = [1, 1]} : vector<8x512xf32> to vector<8x128xf32>
    %cst_117 = arith.constant 5.000000e-01 : f32
    %216 = vector.broadcast %cst_117 : f32 to vector<8x128xf32>
    %217 = arith.mulf %216, %215 : vector<8x128xf32>
    %218 = math.tanh %217 : vector<8x128xf32>
    %cst_118 = arith.constant 5.000000e-01 : f32
    %219 = vector.broadcast %cst_118 : f32 to vector<8x128xf32>
    %220 = arith.mulf %219, %218 : vector<8x128xf32>
    %cst_119 = arith.constant 5.000000e-01 : f32
    %221 = vector.broadcast %cst_119 : f32 to vector<8x128xf32>
    %222 = arith.addf %220, %221 : vector<8x128xf32>
    %223 = vector.extract_strided_slice %213 {offsets = [0, 128], sizes = [8, 128], strides = [1, 1]} : vector<8x512xf32> to vector<8x128xf32>
    %cst_120 = arith.constant 5.000000e-01 : f32
    %224 = vector.broadcast %cst_120 : f32 to vector<8x128xf32>
    %225 = arith.mulf %224, %223 : vector<8x128xf32>
    %226 = math.tanh %225 : vector<8x128xf32>
    %cst_121 = arith.constant 5.000000e-01 : f32
    %227 = vector.broadcast %cst_121 : f32 to vector<8x128xf32>
    %228 = arith.mulf %227, %226 : vector<8x128xf32>
    %cst_122 = arith.constant 5.000000e-01 : f32
    %229 = vector.broadcast %cst_122 : f32 to vector<8x128xf32>
    %230 = arith.addf %228, %229 : vector<8x128xf32>
    %231 = vector.extract_strided_slice %213 {offsets = [0, 256], sizes = [8, 128], strides = [1, 1]} : vector<8x512xf32> to vector<8x128xf32>
    %232 = math.tanh %231 : vector<8x128xf32>
    %233 = vector.extract_strided_slice %213 {offsets = [0, 384], sizes = [8, 128], strides = [1, 1]} : vector<8x512xf32> to vector<8x128xf32>
    %cst_123 = arith.constant 5.000000e-01 : f32
    %234 = vector.broadcast %cst_123 : f32 to vector<8x128xf32>
    %235 = arith.mulf %234, %233 : vector<8x128xf32>
    %236 = math.tanh %235 : vector<8x128xf32>
    %cst_124 = arith.constant 5.000000e-01 : f32
    %237 = vector.broadcast %cst_124 : f32 to vector<8x128xf32>
    %238 = arith.mulf %237, %236 : vector<8x128xf32>
    %cst_125 = arith.constant 5.000000e-01 : f32
    %239 = vector.broadcast %cst_125 : f32 to vector<8x128xf32>
    %240 = arith.addf %238, %239 : vector<8x128xf32>
    %241 = arith.mulf %230, %214 : vector<8x128xf32>
    %242 = arith.mulf %222, %232 : vector<8x128xf32>
    %243 = arith.addf %241, %242 : vector<8x128xf32>
    %244 = math.tanh %243 : vector<8x128xf32>
    %245 = arith.mulf %240, %244 : vector<8x128xf32>
    %c0_126 = arith.constant 0 : index
    %c0_127 = arith.constant 0 : index
    %246 = vector.load %arg8[%c0_126, %c0_127] : memref<8x128xf32, #tpu.memory_space<vmem>>, vector<8x128xf32>
    tpu.vector_store %arg8[%c0_126, %c0_127], %245 {strides = array<i32>} : memref<8x128xf32, #tpu.memory_space<vmem>>, vector<8x128xf32>,
    %c0_128 = arith.constant 0 : index
    %c0_129 = arith.constant 0 : index
    %247 = vector.load %arg9[%c0_128, %c0_129] : memref<8x128xf32, #tpu.memory_space<vmem>>, vector<8x128xf32>
    tpu.vector_store %arg9[%c0_128, %c0_129], %243 {strides = array<i32>} : memref<8x128xf32, #tpu.memory_space<vmem>>, vector<8x128xf32>,
    %c3_i32 = arith.constant 3 : i32
    %248 = arith.index_cast %c3_i32 : i32 to index
    %c0_130 = arith.constant 0 : index
    %c0_131 = arith.constant 0 : index
    %249 = vector.load %arg1[%248, %c0_130, %c0_131] : memref<8x8x512xf32, #tpu.memory_space<vmem>>, vector<1x8x512xf32>
    %250 = vector.shape_cast %249 : vector<1x8x512xf32> to vector<8x512xf32>
    %c0_132 = arith.constant 0 : index
    %c0_133 = arith.constant 0 : index
    %251 = vector.load %arg6[%c0_132, %c0_133] : memref<8x128xf32, #tpu.memory_space<vmem>>, vector<8x128xf32>
    %cst_134 = arith.constant dense<0.000000e+00> : vector<8x512xf32>
    %252 = tpu.matmul %251, %8, %cst_134 {dimension_numbers = #tpu.dot_dimension_numbers<[1], [0], [0], [1], [0, 0, 1, 1], [], []>} : vector<8x128xf32>, vector<128x512xf32>, vector<8x512xf32> -> vector<8x512xf32>
    %253 = arith.addf %250, %252 : vector<8x512xf32>
    %c0_135 = arith.constant 0 : index
    %c0_136 = arith.constant 0 : index
    %254 = vector.load %arg7[%c0_135, %c0_136] : memref<8x128xf32, #tpu.memory_space<vmem>>, vector<8x128xf32>
    %255 = vector.extract_strided_slice %253 {offsets = [0, 0], sizes = [8, 128], strides = [1, 1]} : vector<8x512xf32> to vector<8x128xf32>
    %cst_137 = arith.constant 5.000000e-01 : f32
    %256 = vector.broadcast %cst_137 : f32 to vector<8x128xf32>
    %257 = arith.mulf %256, %255 : vector<8x128xf32>
    %258 = math.tanh %257 : vector<8x128xf32>
    %cst_138 = arith.constant 5.000000e-01 : f32
    %259 = vector.broadcast %cst_138 : f32 to vector<8x128xf32>
    %260 = arith.mulf %259, %258 : vector<8x128xf32>
    %cst_139 = arith.constant 5.000000e-01 : f32
    %261 = vector.broadcast %cst_139 : f32 to vector<8x128xf32>
    %262 = arith.addf %260, %261 : vector<8x128xf32>
    %263 = vector.extract_strided_slice %253 {offsets = [0, 128], sizes = [8, 128], strides = [1, 1]} : vector<8x512xf32> to vector<8x128xf32>
    %cst_140 = arith.constant 5.000000e-01 : f32
    %264 = vector.broadcast %cst_140 : f32 to vector<8x128xf32>
    %265 = arith.mulf %264, %263 : vector<8x128xf32>
    %266 = math.tanh %265 : vector<8x128xf32>
    %cst_141 = arith.constant 5.000000e-01 : f32
    %267 = vector.broadcast %cst_141 : f32 to vector<8x128xf32>
    %268 = arith.mulf %267, %266 : vector<8x128xf32>
    %cst_142 = arith.constant 5.000000e-01 : f32
    %269 = vector.broadcast %cst_142 : f32 to vector<8x128xf32>
    %270 = arith.addf %268, %269 : vector<8x128xf32>
    %271 = vector.extract_strided_slice %253 {offsets = [0, 256], sizes = [8, 128], strides = [1, 1]} : vector<8x512xf32> to vector<8x128xf32>
    %272 = math.tanh %271 : vector<8x128xf32>
    %273 = vector.extract_strided_slice %253 {offsets = [0, 384], sizes = [8, 128], strides = [1, 1]} : vector<8x512xf32> to vector<8x128xf32>
    %cst_143 = arith.constant 5.000000e-01 : f32
    %274 = vector.broadcast %cst_143 : f32 to vector<8x128xf32>
    %275 = arith.mulf %274, %273 : vector<8x128xf32>
    %276 = math.tanh %275 : vector<8x128xf32>
    %cst_144 = arith.constant 5.000000e-01 : f32
    %277 = vector.broadcast %cst_144 : f32 to vector<8x128xf32>
    %278 = arith.mulf %277, %276 : vector<8x128xf32>
    %cst_145 = arith.constant 5.000000e-01 : f32
    %279 = vector.broadcast %cst_145 : f32 to vector<8x128xf32>
    %280 = arith.addf %278, %279 : vector<8x128xf32>
    %281 = arith.mulf %270, %254 : vector<8x128xf32>
    %282 = arith.mulf %262, %272 : vector<8x128xf32>
    %283 = arith.addf %281, %282 : vector<8x128xf32>
    %284 = math.tanh %283 : vector<8x128xf32>
    %285 = arith.mulf %280, %284 : vector<8x128xf32>
    %c0_146 = arith.constant 0 : index
    %c0_147 = arith.constant 0 : index
    %286 = vector.load %arg6[%c0_146, %c0_147] : memref<8x128xf32, #tpu.memory_space<vmem>>, vector<8x128xf32>
    tpu.vector_store %arg6[%c0_146, %c0_147], %285 {strides = array<i32>} : memref<8x128xf32, #tpu.memory_space<vmem>>, vector<8x128xf32>,
    %c0_148 = arith.constant 0 : index
    %c0_149 = arith.constant 0 : index
    %287 = vector.load %arg7[%c0_148, %c0_149] : memref<8x128xf32, #tpu.memory_space<vmem>>, vector<8x128xf32>
    tpu.vector_store %arg7[%c0_148, %c0_149], %283 {strides = array<i32>} : memref<8x128xf32, #tpu.memory_space<vmem>>, vector<8x128xf32>,
    %c0_150 = arith.constant 0 : index
    %c0_151 = arith.constant 0 : index
    %288 = vector.load %arg8[%c0_150, %c0_151] : memref<8x128xf32, #tpu.memory_space<vmem>>, vector<8x128xf32>
    %289 = tpu.concatenate %285, %288 in 1 : vector<8x128xf32>, vector<8x128xf32> -> vector<8x256xf32>
    %cst_152 = arith.constant dense<0.000000e+00> : vector<8x512xf32>
    %290 = tpu.matmul %289, %9, %cst_152 {dimension_numbers = #tpu.dot_dimension_numbers<[1], [0], [0], [1], [0, 0, 1, 1], [], []>} : vector<8x256xf32>, vector<256x512xf32>, vector<8x512xf32> -> vector<8x512xf32>
    %291 = vector.broadcast %10 : vector<1x512xf32> to vector<8x512xf32>
    %292 = arith.addf %290, %291 : vector<8x512xf32>
    %c0_153 = arith.constant 0 : index
    %c0_154 = arith.constant 0 : index
    %293 = vector.load %arg9[%c0_153, %c0_154] : memref<8x128xf32, #tpu.memory_space<vmem>>, vector<8x128xf32>
    %294 = vector.extract_strided_slice %292 {offsets = [0, 0], sizes = [8, 128], strides = [1, 1]} : vector<8x512xf32> to vector<8x128xf32>
    %cst_155 = arith.constant 5.000000e-01 : f32
    %295 = vector.broadcast %cst_155 : f32 to vector<8x128xf32>
    %296 = arith.mulf %295, %294 : vector<8x128xf32>
    %297 = math.tanh %296 : vector<8x128xf32>
    %cst_156 = arith.constant 5.000000e-01 : f32
    %298 = vector.broadcast %cst_156 : f32 to vector<8x128xf32>
    %299 = arith.mulf %298, %297 : vector<8x128xf32>
    %cst_157 = arith.constant 5.000000e-01 : f32
    %300 = vector.broadcast %cst_157 : f32 to vector<8x128xf32>
    %301 = arith.addf %299, %300 : vector<8x128xf32>
    %302 = vector.extract_strided_slice %292 {offsets = [0, 128], sizes = [8, 128], strides = [1, 1]} : vector<8x512xf32> to vector<8x128xf32>
    %cst_158 = arith.constant 5.000000e-01 : f32
    %303 = vector.broadcast %cst_158 : f32 to vector<8x128xf32>
    %304 = arith.mulf %303, %302 : vector<8x128xf32>
    %305 = math.tanh %304 : vector<8x128xf32>
    %cst_159 = arith.constant 5.000000e-01 : f32
    %306 = vector.broadcast %cst_159 : f32 to vector<8x128xf32>
    %307 = arith.mulf %306, %305 : vector<8x128xf32>
    %cst_160 = arith.constant 5.000000e-01 : f32
    %308 = vector.broadcast %cst_160 : f32 to vector<8x128xf32>
    %309 = arith.addf %307, %308 : vector<8x128xf32>
    %310 = vector.extract_strided_slice %292 {offsets = [0, 256], sizes = [8, 128], strides = [1, 1]} : vector<8x512xf32> to vector<8x128xf32>
    %311 = math.tanh %310 : vector<8x128xf32>
    %312 = vector.extract_strided_slice %292 {offsets = [0, 384], sizes = [8, 128], strides = [1, 1]} : vector<8x512xf32> to vector<8x128xf32>
    %cst_161 = arith.constant 5.000000e-01 : f32
    %313 = vector.broadcast %cst_161 : f32 to vector<8x128xf32>
    %314 = arith.mulf %313, %312 : vector<8x128xf32>
    %315 = math.tanh %314 : vector<8x128xf32>
    %cst_162 = arith.constant 5.000000e-01 : f32
    %316 = vector.broadcast %cst_162 : f32 to vector<8x128xf32>
    %317 = arith.mulf %316, %315 : vector<8x128xf32>
    %cst_163 = arith.constant 5.000000e-01 : f32
    %318 = vector.broadcast %cst_163 : f32 to vector<8x128xf32>
    %319 = arith.addf %317, %318 : vector<8x128xf32>
    %320 = arith.mulf %309, %293 : vector<8x128xf32>
    %321 = arith.mulf %301, %311 : vector<8x128xf32>
    %322 = arith.addf %320, %321 : vector<8x128xf32>
    %323 = math.tanh %322 : vector<8x128xf32>
    %324 = arith.mulf %319, %323 : vector<8x128xf32>
    %c0_164 = arith.constant 0 : index
    %c0_165 = arith.constant 0 : index
    %325 = vector.load %arg8[%c0_164, %c0_165] : memref<8x128xf32, #tpu.memory_space<vmem>>, vector<8x128xf32>
    tpu.vector_store %arg8[%c0_164, %c0_165], %324 {strides = array<i32>} : memref<8x128xf32, #tpu.memory_space<vmem>>, vector<8x128xf32>,
    %c0_166 = arith.constant 0 : index
    %c0_167 = arith.constant 0 : index
    %326 = vector.load %arg9[%c0_166, %c0_167] : memref<8x128xf32, #tpu.memory_space<vmem>>, vector<8x128xf32>
    tpu.vector_store %arg9[%c0_166, %c0_167], %322 {strides = array<i32>} : memref<8x128xf32, #tpu.memory_space<vmem>>, vector<8x128xf32>,
    %c4_i32 = arith.constant 4 : i32
    %327 = arith.index_cast %c4_i32 : i32 to index
    %c0_168 = arith.constant 0 : index
    %c0_169 = arith.constant 0 : index
    %328 = vector.load %arg1[%327, %c0_168, %c0_169] : memref<8x8x512xf32, #tpu.memory_space<vmem>>, vector<1x8x512xf32>
    %329 = vector.shape_cast %328 : vector<1x8x512xf32> to vector<8x512xf32>
    %c0_170 = arith.constant 0 : index
    %c0_171 = arith.constant 0 : index
    %330 = vector.load %arg6[%c0_170, %c0_171] : memref<8x128xf32, #tpu.memory_space<vmem>>, vector<8x128xf32>
    %cst_172 = arith.constant dense<0.000000e+00> : vector<8x512xf32>
    %331 = tpu.matmul %330, %8, %cst_172 {dimension_numbers = #tpu.dot_dimension_numbers<[1], [0], [0], [1], [0, 0, 1, 1], [], []>} : vector<8x128xf32>, vector<128x512xf32>, vector<8x512xf32> -> vector<8x512xf32>
    %332 = arith.addf %329, %331 : vector<8x512xf32>
    %c0_173 = arith.constant 0 : index
    %c0_174 = arith.constant 0 : index
    %333 = vector.load %arg7[%c0_173, %c0_174] : memref<8x128xf32, #tpu.memory_space<vmem>>, vector<8x128xf32>
    %334 = vector.extract_strided_slice %332 {offsets = [0, 0], sizes = [8, 128], strides = [1, 1]} : vector<8x512xf32> to vector<8x128xf32>
    %cst_175 = arith.constant 5.000000e-01 : f32
    %335 = vector.broadcast %cst_175 : f32 to vector<8x128xf32>
    %336 = arith.mulf %335, %334 : vector<8x128xf32>
    %337 = math.tanh %336 : vector<8x128xf32>
    %cst_176 = arith.constant 5.000000e-01 : f32
    %338 = vector.broadcast %cst_176 : f32 to vector<8x128xf32>
    %339 = arith.mulf %338, %337 : vector<8x128xf32>
    %cst_177 = arith.constant 5.000000e-01 : f32
    %340 = vector.broadcast %cst_177 : f32 to vector<8x128xf32>
    %341 = arith.addf %339, %340 : vector<8x128xf32>
    %342 = vector.extract_strided_slice %332 {offsets = [0, 128], sizes = [8, 128], strides = [1, 1]} : vector<8x512xf32> to vector<8x128xf32>
    %cst_178 = arith.constant 5.000000e-01 : f32
    %343 = vector.broadcast %cst_178 : f32 to vector<8x128xf32>
    %344 = arith.mulf %343, %342 : vector<8x128xf32>
    %345 = math.tanh %344 : vector<8x128xf32>
    %cst_179 = arith.constant 5.000000e-01 : f32
    %346 = vector.broadcast %cst_179 : f32 to vector<8x128xf32>
    %347 = arith.mulf %346, %345 : vector<8x128xf32>
    %cst_180 = arith.constant 5.000000e-01 : f32
    %348 = vector.broadcast %cst_180 : f32 to vector<8x128xf32>
    %349 = arith.addf %347, %348 : vector<8x128xf32>
    %350 = vector.extract_strided_slice %332 {offsets = [0, 256], sizes = [8, 128], strides = [1, 1]} : vector<8x512xf32> to vector<8x128xf32>
    %351 = math.tanh %350 : vector<8x128xf32>
    %352 = vector.extract_strided_slice %332 {offsets = [0, 384], sizes = [8, 128], strides = [1, 1]} : vector<8x512xf32> to vector<8x128xf32>
    %cst_181 = arith.constant 5.000000e-01 : f32
    %353 = vector.broadcast %cst_181 : f32 to vector<8x128xf32>
    %354 = arith.mulf %353, %352 : vector<8x128xf32>
    %355 = math.tanh %354 : vector<8x128xf32>
    %cst_182 = arith.constant 5.000000e-01 : f32
    %356 = vector.broadcast %cst_182 : f32 to vector<8x128xf32>
    %357 = arith.mulf %356, %355 : vector<8x128xf32>
    %cst_183 = arith.constant 5.000000e-01 : f32
    %358 = vector.broadcast %cst_183 : f32 to vector<8x128xf32>
    %359 = arith.addf %357, %358 : vector<8x128xf32>
    %360 = arith.mulf %349, %333 : vector<8x128xf32>
    %361 = arith.mulf %341, %351 : vector<8x128xf32>
    %362 = arith.addf %360, %361 : vector<8x128xf32>
    %363 = math.tanh %362 : vector<8x128xf32>
    %364 = arith.mulf %359, %363 : vector<8x128xf32>
    %c0_184 = arith.constant 0 : index
    %c0_185 = arith.constant 0 : index
    %365 = vector.load %arg6[%c0_184, %c0_185] : memref<8x128xf32, #tpu.memory_space<vmem>>, vector<8x128xf32>
    tpu.vector_store %arg6[%c0_184, %c0_185], %364 {strides = array<i32>} : memref<8x128xf32, #tpu.memory_space<vmem>>, vector<8x128xf32>,
    %c0_186 = arith.constant 0 : index
    %c0_187 = arith.constant 0 : index
    %366 = vector.load %arg7[%c0_186, %c0_187] : memref<8x128xf32, #tpu.memory_space<vmem>>, vector<8x128xf32>
    tpu.vector_store %arg7[%c0_186, %c0_187], %362 {strides = array<i32>} : memref<8x128xf32, #tpu.memory_space<vmem>>, vector<8x128xf32>,
    %c0_188 = arith.constant 0 : index
    %c0_189 = arith.constant 0 : index
    %367 = vector.load %arg8[%c0_188, %c0_189] : memref<8x128xf32, #tpu.memory_space<vmem>>, vector<8x128xf32>
    %368 = tpu.concatenate %364, %367 in 1 : vector<8x128xf32>, vector<8x128xf32> -> vector<8x256xf32>
    %cst_190 = arith.constant dense<0.000000e+00> : vector<8x512xf32>
    %369 = tpu.matmul %368, %9, %cst_190 {dimension_numbers = #tpu.dot_dimension_numbers<[1], [0], [0], [1], [0, 0, 1, 1], [], []>} : vector<8x256xf32>, vector<256x512xf32>, vector<8x512xf32> -> vector<8x512xf32>
    %370 = vector.broadcast %10 : vector<1x512xf32> to vector<8x512xf32>
    %371 = arith.addf %369, %370 : vector<8x512xf32>
    %c0_191 = arith.constant 0 : index
    %c0_192 = arith.constant 0 : index
    %372 = vector.load %arg9[%c0_191, %c0_192] : memref<8x128xf32, #tpu.memory_space<vmem>>, vector<8x128xf32>
    %373 = vector.extract_strided_slice %371 {offsets = [0, 0], sizes = [8, 128], strides = [1, 1]} : vector<8x512xf32> to vector<8x128xf32>
    %cst_193 = arith.constant 5.000000e-01 : f32
    %374 = vector.broadcast %cst_193 : f32 to vector<8x128xf32>
    %375 = arith.mulf %374, %373 : vector<8x128xf32>
    %376 = math.tanh %375 : vector<8x128xf32>
    %cst_194 = arith.constant 5.000000e-01 : f32
    %377 = vector.broadcast %cst_194 : f32 to vector<8x128xf32>
    %378 = arith.mulf %377, %376 : vector<8x128xf32>
    %cst_195 = arith.constant 5.000000e-01 : f32
    %379 = vector.broadcast %cst_195 : f32 to vector<8x128xf32>
    %380 = arith.addf %378, %379 : vector<8x128xf32>
    %381 = vector.extract_strided_slice %371 {offsets = [0, 128], sizes = [8, 128], strides = [1, 1]} : vector<8x512xf32> to vector<8x128xf32>
    %cst_196 = arith.constant 5.000000e-01 : f32
    %382 = vector.broadcast %cst_196 : f32 to vector<8x128xf32>
    %383 = arith.mulf %382, %381 : vector<8x128xf32>
    %384 = math.tanh %383 : vector<8x128xf32>
    %cst_197 = arith.constant 5.000000e-01 : f32
    %385 = vector.broadcast %cst_197 : f32 to vector<8x128xf32>
    %386 = arith.mulf %385, %384 : vector<8x128xf32>
    %cst_198 = arith.constant 5.000000e-01 : f32
    %387 = vector.broadcast %cst_198 : f32 to vector<8x128xf32>
    %388 = arith.addf %386, %387 : vector<8x128xf32>
    %389 = vector.extract_strided_slice %371 {offsets = [0, 256], sizes = [8, 128], strides = [1, 1]} : vector<8x512xf32> to vector<8x128xf32>
    %390 = math.tanh %389 : vector<8x128xf32>
    %391 = vector.extract_strided_slice %371 {offsets = [0, 384], sizes = [8, 128], strides = [1, 1]} : vector<8x512xf32> to vector<8x128xf32>
    %cst_199 = arith.constant 5.000000e-01 : f32
    %392 = vector.broadcast %cst_199 : f32 to vector<8x128xf32>
    %393 = arith.mulf %392, %391 : vector<8x128xf32>
    %394 = math.tanh %393 : vector<8x128xf32>
    %cst_200 = arith.constant 5.000000e-01 : f32
    %395 = vector.broadcast %cst_200 : f32 to vector<8x128xf32>
    %396 = arith.mulf %395, %394 : vector<8x128xf32>
    %cst_201 = arith.constant 5.000000e-01 : f32
    %397 = vector.broadcast %cst_201 : f32 to vector<8x128xf32>
    %398 = arith.addf %396, %397 : vector<8x128xf32>
    %399 = arith.mulf %388, %372 : vector<8x128xf32>
    %400 = arith.mulf %380, %390 : vector<8x128xf32>
    %401 = arith.addf %399, %400 : vector<8x128xf32>
    %402 = math.tanh %401 : vector<8x128xf32>
    %403 = arith.mulf %398, %402 : vector<8x128xf32>
    %c0_202 = arith.constant 0 : index
    %c0_203 = arith.constant 0 : index
    %404 = vector.load %arg8[%c0_202, %c0_203] : memref<8x128xf32, #tpu.memory_space<vmem>>, vector<8x128xf32>
    tpu.vector_store %arg8[%c0_202, %c0_203], %403 {strides = array<i32>} : memref<8x128xf32, #tpu.memory_space<vmem>>, vector<8x128xf32>,
    %c0_204 = arith.constant 0 : index
    %c0_205 = arith.constant 0 : index
    %405 = vector.load %arg9[%c0_204, %c0_205] : memref<8x128xf32, #tpu.memory_space<vmem>>, vector<8x128xf32>
    tpu.vector_store %arg9[%c0_204, %c0_205], %401 {strides = array<i32>} : memref<8x128xf32, #tpu.memory_space<vmem>>, vector<8x128xf32>,
    %c5_i32 = arith.constant 5 : i32
    %406 = arith.index_cast %c5_i32 : i32 to index
    %c0_206 = arith.constant 0 : index
    %c0_207 = arith.constant 0 : index
    %407 = vector.load %arg1[%406, %c0_206, %c0_207] : memref<8x8x512xf32, #tpu.memory_space<vmem>>, vector<1x8x512xf32>
    %408 = vector.shape_cast %407 : vector<1x8x512xf32> to vector<8x512xf32>
    %c0_208 = arith.constant 0 : index
    %c0_209 = arith.constant 0 : index
    %409 = vector.load %arg6[%c0_208, %c0_209] : memref<8x128xf32, #tpu.memory_space<vmem>>, vector<8x128xf32>
    %cst_210 = arith.constant dense<0.000000e+00> : vector<8x512xf32>
    %410 = tpu.matmul %409, %8, %cst_210 {dimension_numbers = #tpu.dot_dimension_numbers<[1], [0], [0], [1], [0, 0, 1, 1], [], []>} : vector<8x128xf32>, vector<128x512xf32>, vector<8x512xf32> -> vector<8x512xf32>
    %411 = arith.addf %408, %410 : vector<8x512xf32>
    %c0_211 = arith.constant 0 : index
    %c0_212 = arith.constant 0 : index
    %412 = vector.load %arg7[%c0_211, %c0_212] : memref<8x128xf32, #tpu.memory_space<vmem>>, vector<8x128xf32>
    %413 = vector.extract_strided_slice %411 {offsets = [0, 0], sizes = [8, 128], strides = [1, 1]} : vector<8x512xf32> to vector<8x128xf32>
    %cst_213 = arith.constant 5.000000e-01 : f32
    %414 = vector.broadcast %cst_213 : f32 to vector<8x128xf32>
    %415 = arith.mulf %414, %413 : vector<8x128xf32>
    %416 = math.tanh %415 : vector<8x128xf32>
    %cst_214 = arith.constant 5.000000e-01 : f32
    %417 = vector.broadcast %cst_214 : f32 to vector<8x128xf32>
    %418 = arith.mulf %417, %416 : vector<8x128xf32>
    %cst_215 = arith.constant 5.000000e-01 : f32
    %419 = vector.broadcast %cst_215 : f32 to vector<8x128xf32>
    %420 = arith.addf %418, %419 : vector<8x128xf32>
    %421 = vector.extract_strided_slice %411 {offsets = [0, 128], sizes = [8, 128], strides = [1, 1]} : vector<8x512xf32> to vector<8x128xf32>
    %cst_216 = arith.constant 5.000000e-01 : f32
    %422 = vector.broadcast %cst_216 : f32 to vector<8x128xf32>
    %423 = arith.mulf %422, %421 : vector<8x128xf32>
    %424 = math.tanh %423 : vector<8x128xf32>
    %cst_217 = arith.constant 5.000000e-01 : f32
    %425 = vector.broadcast %cst_217 : f32 to vector<8x128xf32>
    %426 = arith.mulf %425, %424 : vector<8x128xf32>
    %cst_218 = arith.constant 5.000000e-01 : f32
    %427 = vector.broadcast %cst_218 : f32 to vector<8x128xf32>
    %428 = arith.addf %426, %427 : vector<8x128xf32>
    %429 = vector.extract_strided_slice %411 {offsets = [0, 256], sizes = [8, 128], strides = [1, 1]} : vector<8x512xf32> to vector<8x128xf32>
    %430 = math.tanh %429 : vector<8x128xf32>
    %431 = vector.extract_strided_slice %411 {offsets = [0, 384], sizes = [8, 128], strides = [1, 1]} : vector<8x512xf32> to vector<8x128xf32>
    %cst_219 = arith.constant 5.000000e-01 : f32
    %432 = vector.broadcast %cst_219 : f32 to vector<8x128xf32>
    %433 = arith.mulf %432, %431 : vector<8x128xf32>
    %434 = math.tanh %433 : vector<8x128xf32>
    %cst_220 = arith.constant 5.000000e-01 : f32
    %435 = vector.broadcast %cst_220 : f32 to vector<8x128xf32>
    %436 = arith.mulf %435, %434 : vector<8x128xf32>
    %cst_221 = arith.constant 5.000000e-01 : f32
    %437 = vector.broadcast %cst_221 : f32 to vector<8x128xf32>
    %438 = arith.addf %436, %437 : vector<8x128xf32>
    %439 = arith.mulf %428, %412 : vector<8x128xf32>
    %440 = arith.mulf %420, %430 : vector<8x128xf32>
    %441 = arith.addf %439, %440 : vector<8x128xf32>
    %442 = math.tanh %441 : vector<8x128xf32>
    %443 = arith.mulf %438, %442 : vector<8x128xf32>
    %c0_222 = arith.constant 0 : index
    %c0_223 = arith.constant 0 : index
    %444 = vector.load %arg6[%c0_222, %c0_223] : memref<8x128xf32, #tpu.memory_space<vmem>>, vector<8x128xf32>
    tpu.vector_store %arg6[%c0_222, %c0_223], %443 {strides = array<i32>} : memref<8x128xf32, #tpu.memory_space<vmem>>, vector<8x128xf32>,
    %c0_224 = arith.constant 0 : index
    %c0_225 = arith.constant 0 : index
    %445 = vector.load %arg7[%c0_224, %c0_225] : memref<8x128xf32, #tpu.memory_space<vmem>>, vector<8x128xf32>
    tpu.vector_store %arg7[%c0_224, %c0_225], %441 {strides = array<i32>} : memref<8x128xf32, #tpu.memory_space<vmem>>, vector<8x128xf32>,
    %c0_226 = arith.constant 0 : index
    %c0_227 = arith.constant 0 : index
    %446 = vector.load %arg8[%c0_226, %c0_227] : memref<8x128xf32, #tpu.memory_space<vmem>>, vector<8x128xf32>
    %447 = tpu.concatenate %443, %446 in 1 : vector<8x128xf32>, vector<8x128xf32> -> vector<8x256xf32>
    %cst_228 = arith.constant dense<0.000000e+00> : vector<8x512xf32>
    %448 = tpu.matmul %447, %9, %cst_228 {dimension_numbers = #tpu.dot_dimension_numbers<[1], [0], [0], [1], [0, 0, 1, 1], [], []>} : vector<8x256xf32>, vector<256x512xf32>, vector<8x512xf32> -> vector<8x512xf32>
    %449 = vector.broadcast %10 : vector<1x512xf32> to vector<8x512xf32>
    %450 = arith.addf %448, %449 : vector<8x512xf32>
    %c0_229 = arith.constant 0 : index
    %c0_230 = arith.constant 0 : index
    %451 = vector.load %arg9[%c0_229, %c0_230] : memref<8x128xf32, #tpu.memory_space<vmem>>, vector<8x128xf32>
    %452 = vector.extract_strided_slice %450 {offsets = [0, 0], sizes = [8, 128], strides = [1, 1]} : vector<8x512xf32> to vector<8x128xf32>
    %cst_231 = arith.constant 5.000000e-01 : f32
    %453 = vector.broadcast %cst_231 : f32 to vector<8x128xf32>
    %454 = arith.mulf %453, %452 : vector<8x128xf32>
    %455 = math.tanh %454 : vector<8x128xf32>
    %cst_232 = arith.constant 5.000000e-01 : f32
    %456 = vector.broadcast %cst_232 : f32 to vector<8x128xf32>
    %457 = arith.mulf %456, %455 : vector<8x128xf32>
    %cst_233 = arith.constant 5.000000e-01 : f32
    %458 = vector.broadcast %cst_233 : f32 to vector<8x128xf32>
    %459 = arith.addf %457, %458 : vector<8x128xf32>
    %460 = vector.extract_strided_slice %450 {offsets = [0, 128], sizes = [8, 128], strides = [1, 1]} : vector<8x512xf32> to vector<8x128xf32>
    %cst_234 = arith.constant 5.000000e-01 : f32
    %461 = vector.broadcast %cst_234 : f32 to vector<8x128xf32>
    %462 = arith.mulf %461, %460 : vector<8x128xf32>
    %463 = math.tanh %462 : vector<8x128xf32>
    %cst_235 = arith.constant 5.000000e-01 : f32
    %464 = vector.broadcast %cst_235 : f32 to vector<8x128xf32>
    %465 = arith.mulf %464, %463 : vector<8x128xf32>
    %cst_236 = arith.constant 5.000000e-01 : f32
    %466 = vector.broadcast %cst_236 : f32 to vector<8x128xf32>
    %467 = arith.addf %465, %466 : vector<8x128xf32>
    %468 = vector.extract_strided_slice %450 {offsets = [0, 256], sizes = [8, 128], strides = [1, 1]} : vector<8x512xf32> to vector<8x128xf32>
    %469 = math.tanh %468 : vector<8x128xf32>
    %470 = vector.extract_strided_slice %450 {offsets = [0, 384], sizes = [8, 128], strides = [1, 1]} : vector<8x512xf32> to vector<8x128xf32>
    %cst_237 = arith.constant 5.000000e-01 : f32
    %471 = vector.broadcast %cst_237 : f32 to vector<8x128xf32>
    %472 = arith.mulf %471, %470 : vector<8x128xf32>
    %473 = math.tanh %472 : vector<8x128xf32>
    %cst_238 = arith.constant 5.000000e-01 : f32
    %474 = vector.broadcast %cst_238 : f32 to vector<8x128xf32>
    %475 = arith.mulf %474, %473 : vector<8x128xf32>
    %cst_239 = arith.constant 5.000000e-01 : f32
    %476 = vector.broadcast %cst_239 : f32 to vector<8x128xf32>
    %477 = arith.addf %475, %476 : vector<8x128xf32>
    %478 = arith.mulf %467, %451 : vector<8x128xf32>
    %479 = arith.mulf %459, %469 : vector<8x128xf32>
    %480 = arith.addf %478, %479 : vector<8x128xf32>
    %481 = math.tanh %480 : vector<8x128xf32>
    %482 = arith.mulf %477, %481 : vector<8x128xf32>
    %c0_240 = arith.constant 0 : index
    %c0_241 = arith.constant 0 : index
    %483 = vector.load %arg8[%c0_240, %c0_241] : memref<8x128xf32, #tpu.memory_space<vmem>>, vector<8x128xf32>
    tpu.vector_store %arg8[%c0_240, %c0_241], %482 {strides = array<i32>} : memref<8x128xf32, #tpu.memory_space<vmem>>, vector<8x128xf32>,
    %c0_242 = arith.constant 0 : index
    %c0_243 = arith.constant 0 : index
    %484 = vector.load %arg9[%c0_242, %c0_243] : memref<8x128xf32, #tpu.memory_space<vmem>>, vector<8x128xf32>
    tpu.vector_store %arg9[%c0_242, %c0_243], %480 {strides = array<i32>} : memref<8x128xf32, #tpu.memory_space<vmem>>, vector<8x128xf32>,
    %c6_i32 = arith.constant 6 : i32
    %485 = arith.index_cast %c6_i32 : i32 to index
    %c0_244 = arith.constant 0 : index
    %c0_245 = arith.constant 0 : index
    %486 = vector.load %arg1[%485, %c0_244, %c0_245] : memref<8x8x512xf32, #tpu.memory_space<vmem>>, vector<1x8x512xf32>
    %487 = vector.shape_cast %486 : vector<1x8x512xf32> to vector<8x512xf32>
    %c0_246 = arith.constant 0 : index
    %c0_247 = arith.constant 0 : index
    %488 = vector.load %arg6[%c0_246, %c0_247] : memref<8x128xf32, #tpu.memory_space<vmem>>, vector<8x128xf32>
    %cst_248 = arith.constant dense<0.000000e+00> : vector<8x512xf32>
    %489 = tpu.matmul %488, %8, %cst_248 {dimension_numbers = #tpu.dot_dimension_numbers<[1], [0], [0], [1], [0, 0, 1, 1], [], []>} : vector<8x128xf32>, vector<128x512xf32>, vector<8x512xf32> -> vector<8x512xf32>
    %490 = arith.addf %487, %489 : vector<8x512xf32>
    %c0_249 = arith.constant 0 : index
    %c0_250 = arith.constant 0 : index
    %491 = vector.load %arg7[%c0_249, %c0_250] : memref<8x128xf32, #tpu.memory_space<vmem>>, vector<8x128xf32>
    %492 = vector.extract_strided_slice %490 {offsets = [0, 0], sizes = [8, 128], strides = [1, 1]} : vector<8x512xf32> to vector<8x128xf32>
    %cst_251 = arith.constant 5.000000e-01 : f32
    %493 = vector.broadcast %cst_251 : f32 to vector<8x128xf32>
    %494 = arith.mulf %493, %492 : vector<8x128xf32>
    %495 = math.tanh %494 : vector<8x128xf32>
    %cst_252 = arith.constant 5.000000e-01 : f32
    %496 = vector.broadcast %cst_252 : f32 to vector<8x128xf32>
    %497 = arith.mulf %496, %495 : vector<8x128xf32>
    %cst_253 = arith.constant 5.000000e-01 : f32
    %498 = vector.broadcast %cst_253 : f32 to vector<8x128xf32>
    %499 = arith.addf %497, %498 : vector<8x128xf32>
    %500 = vector.extract_strided_slice %490 {offsets = [0, 128], sizes = [8, 128], strides = [1, 1]} : vector<8x512xf32> to vector<8x128xf32>
    %cst_254 = arith.constant 5.000000e-01 : f32
    %501 = vector.broadcast %cst_254 : f32 to vector<8x128xf32>
    %502 = arith.mulf %501, %500 : vector<8x128xf32>
    %503 = math.tanh %502 : vector<8x128xf32>
    %cst_255 = arith.constant 5.000000e-01 : f32
    %504 = vector.broadcast %cst_255 : f32 to vector<8x128xf32>
    %505 = arith.mulf %504, %503 : vector<8x128xf32>
    %cst_256 = arith.constant 5.000000e-01 : f32
    %506 = vector.broadcast %cst_256 : f32 to vector<8x128xf32>
    %507 = arith.addf %505, %506 : vector<8x128xf32>
    %508 = vector.extract_strided_slice %490 {offsets = [0, 256], sizes = [8, 128], strides = [1, 1]} : vector<8x512xf32> to vector<8x128xf32>
    %509 = math.tanh %508 : vector<8x128xf32>
    %510 = vector.extract_strided_slice %490 {offsets = [0, 384], sizes = [8, 128], strides = [1, 1]} : vector<8x512xf32> to vector<8x128xf32>
    %cst_257 = arith.constant 5.000000e-01 : f32
    %511 = vector.broadcast %cst_257 : f32 to vector<8x128xf32>
    %512 = arith.mulf %511, %510 : vector<8x128xf32>
    %513 = math.tanh %512 : vector<8x128xf32>
    %cst_258 = arith.constant 5.000000e-01 : f32
    %514 = vector.broadcast %cst_258 : f32 to vector<8x128xf32>
    %515 = arith.mulf %514, %513 : vector<8x128xf32>
    %cst_259 = arith.constant 5.000000e-01 : f32
    %516 = vector.broadcast %cst_259 : f32 to vector<8x128xf32>
    %517 = arith.addf %515, %516 : vector<8x128xf32>
    %518 = arith.mulf %507, %491 : vector<8x128xf32>
    %519 = arith.mulf %499, %509 : vector<8x128xf32>
    %520 = arith.addf %518, %519 : vector<8x128xf32>
    %521 = math.tanh %520 : vector<8x128xf32>
    %522 = arith.mulf %517, %521 : vector<8x128xf32>
    %c0_260 = arith.constant 0 : index
    %c0_261 = arith.constant 0 : index
    %523 = vector.load %arg6[%c0_260, %c0_261] : memref<8x128xf32, #tpu.memory_space<vmem>>, vector<8x128xf32>
    tpu.vector_store %arg6[%c0_260, %c0_261], %522 {strides = array<i32>} : memref<8x128xf32, #tpu.memory_space<vmem>>, vector<8x128xf32>,
    %c0_262 = arith.constant 0 : index
    %c0_263 = arith.constant 0 : index
    %524 = vector.load %arg7[%c0_262, %c0_263] : memref<8x128xf32, #tpu.memory_space<vmem>>, vector<8x128xf32>
    tpu.vector_store %arg7[%c0_262, %c0_263], %520 {strides = array<i32>} : memref<8x128xf32, #tpu.memory_space<vmem>>, vector<8x128xf32>,
    %c0_264 = arith.constant 0 : index
    %c0_265 = arith.constant 0 : index
    %525 = vector.load %arg8[%c0_264, %c0_265] : memref<8x128xf32, #tpu.memory_space<vmem>>, vector<8x128xf32>
    %526 = tpu.concatenate %522, %525 in 1 : vector<8x128xf32>, vector<8x128xf32> -> vector<8x256xf32>
    %cst_266 = arith.constant dense<0.000000e+00> : vector<8x512xf32>
    %527 = tpu.matmul %526, %9, %cst_266 {dimension_numbers = #tpu.dot_dimension_numbers<[1], [0], [0], [1], [0, 0, 1, 1], [], []>} : vector<8x256xf32>, vector<256x512xf32>, vector<8x512xf32> -> vector<8x512xf32>
    %528 = vector.broadcast %10 : vector<1x512xf32> to vector<8x512xf32>
    %529 = arith.addf %527, %528 : vector<8x512xf32>
    %c0_267 = arith.constant 0 : index
    %c0_268 = arith.constant 0 : index
    %530 = vector.load %arg9[%c0_267, %c0_268] : memref<8x128xf32, #tpu.memory_space<vmem>>, vector<8x128xf32>
    %531 = vector.extract_strided_slice %529 {offsets = [0, 0], sizes = [8, 128], strides = [1, 1]} : vector<8x512xf32> to vector<8x128xf32>
    %cst_269 = arith.constant 5.000000e-01 : f32
    %532 = vector.broadcast %cst_269 : f32 to vector<8x128xf32>
    %533 = arith.mulf %532, %531 : vector<8x128xf32>
    %534 = math.tanh %533 : vector<8x128xf32>
    %cst_270 = arith.constant 5.000000e-01 : f32
    %535 = vector.broadcast %cst_270 : f32 to vector<8x128xf32>
    %536 = arith.mulf %535, %534 : vector<8x128xf32>
    %cst_271 = arith.constant 5.000000e-01 : f32
    %537 = vector.broadcast %cst_271 : f32 to vector<8x128xf32>
    %538 = arith.addf %536, %537 : vector<8x128xf32>
    %539 = vector.extract_strided_slice %529 {offsets = [0, 128], sizes = [8, 128], strides = [1, 1]} : vector<8x512xf32> to vector<8x128xf32>
    %cst_272 = arith.constant 5.000000e-01 : f32
    %540 = vector.broadcast %cst_272 : f32 to vector<8x128xf32>
    %541 = arith.mulf %540, %539 : vector<8x128xf32>
    %542 = math.tanh %541 : vector<8x128xf32>
    %cst_273 = arith.constant 5.000000e-01 : f32
    %543 = vector.broadcast %cst_273 : f32 to vector<8x128xf32>
    %544 = arith.mulf %543, %542 : vector<8x128xf32>
    %cst_274 = arith.constant 5.000000e-01 : f32
    %545 = vector.broadcast %cst_274 : f32 to vector<8x128xf32>
    %546 = arith.addf %544, %545 : vector<8x128xf32>
    %547 = vector.extract_strided_slice %529 {offsets = [0, 256], sizes = [8, 128], strides = [1, 1]} : vector<8x512xf32> to vector<8x128xf32>
    %548 = math.tanh %547 : vector<8x128xf32>
    %549 = vector.extract_strided_slice %529 {offsets = [0, 384], sizes = [8, 128], strides = [1, 1]} : vector<8x512xf32> to vector<8x128xf32>
    %cst_275 = arith.constant 5.000000e-01 : f32
    %550 = vector.broadcast %cst_275 : f32 to vector<8x128xf32>
    %551 = arith.mulf %550, %549 : vector<8x128xf32>
    %552 = math.tanh %551 : vector<8x128xf32>
    %cst_276 = arith.constant 5.000000e-01 : f32
    %553 = vector.broadcast %cst_276 : f32 to vector<8x128xf32>
    %554 = arith.mulf %553, %552 : vector<8x128xf32>
    %cst_277 = arith.constant 5.000000e-01 : f32
    %555 = vector.broadcast %cst_277 : f32 to vector<8x128xf32>
    %556 = arith.addf %554, %555 : vector<8x128xf32>
    %557 = arith.mulf %546, %530 : vector<8x128xf32>
    %558 = arith.mulf %538, %548 : vector<8x128xf32>
    %559 = arith.addf %557, %558 : vector<8x128xf32>
    %560 = math.tanh %559 : vector<8x128xf32>
    %561 = arith.mulf %556, %560 : vector<8x128xf32>
    %c0_278 = arith.constant 0 : index
    %c0_279 = arith.constant 0 : index
    %562 = vector.load %arg8[%c0_278, %c0_279] : memref<8x128xf32, #tpu.memory_space<vmem>>, vector<8x128xf32>
    tpu.vector_store %arg8[%c0_278, %c0_279], %561 {strides = array<i32>} : memref<8x128xf32, #tpu.memory_space<vmem>>, vector<8x128xf32>,
    %c0_280 = arith.constant 0 : index
    %c0_281 = arith.constant 0 : index
    %563 = vector.load %arg9[%c0_280, %c0_281] : memref<8x128xf32, #tpu.memory_space<vmem>>, vector<8x128xf32>
    tpu.vector_store %arg9[%c0_280, %c0_281], %559 {strides = array<i32>} : memref<8x128xf32, #tpu.memory_space<vmem>>, vector<8x128xf32>,
    %c7_i32 = arith.constant 7 : i32
    %564 = arith.index_cast %c7_i32 : i32 to index
    %c0_282 = arith.constant 0 : index
    %c0_283 = arith.constant 0 : index
    %565 = vector.load %arg1[%564, %c0_282, %c0_283] : memref<8x8x512xf32, #tpu.memory_space<vmem>>, vector<1x8x512xf32>
    %566 = vector.shape_cast %565 : vector<1x8x512xf32> to vector<8x512xf32>
    %c0_284 = arith.constant 0 : index
    %c0_285 = arith.constant 0 : index
    %567 = vector.load %arg6[%c0_284, %c0_285] : memref<8x128xf32, #tpu.memory_space<vmem>>, vector<8x128xf32>
    %cst_286 = arith.constant dense<0.000000e+00> : vector<8x512xf32>
    %568 = tpu.matmul %567, %8, %cst_286 {dimension_numbers = #tpu.dot_dimension_numbers<[1], [0], [0], [1], [0, 0, 1, 1], [], []>} : vector<8x128xf32>, vector<128x512xf32>, vector<8x512xf32> -> vector<8x512xf32>
    %569 = arith.addf %566, %568 : vector<8x512xf32>
    %c0_287 = arith.constant 0 : index
    %c0_288 = arith.constant 0 : index
    %570 = vector.load %arg7[%c0_287, %c0_288] : memref<8x128xf32, #tpu.memory_space<vmem>>, vector<8x128xf32>
    %571 = vector.extract_strided_slice %569 {offsets = [0, 0], sizes = [8, 128], strides = [1, 1]} : vector<8x512xf32> to vector<8x128xf32>
    %cst_289 = arith.constant 5.000000e-01 : f32
    %572 = vector.broadcast %cst_289 : f32 to vector<8x128xf32>
    %573 = arith.mulf %572, %571 : vector<8x128xf32>
    %574 = math.tanh %573 : vector<8x128xf32>
    %cst_290 = arith.constant 5.000000e-01 : f32
    %575 = vector.broadcast %cst_290 : f32 to vector<8x128xf32>
    %576 = arith.mulf %575, %574 : vector<8x128xf32>
    %cst_291 = arith.constant 5.000000e-01 : f32
    %577 = vector.broadcast %cst_291 : f32 to vector<8x128xf32>
    %578 = arith.addf %576, %577 : vector<8x128xf32>
    %579 = vector.extract_strided_slice %569 {offsets = [0, 128], sizes = [8, 128], strides = [1, 1]} : vector<8x512xf32> to vector<8x128xf32>
    %cst_292 = arith.constant 5.000000e-01 : f32
    %580 = vector.broadcast %cst_292 : f32 to vector<8x128xf32>
    %581 = arith.mulf %580, %579 : vector<8x128xf32>
    %582 = math.tanh %581 : vector<8x128xf32>
    %cst_293 = arith.constant 5.000000e-01 : f32
    %583 = vector.broadcast %cst_293 : f32 to vector<8x128xf32>
    %584 = arith.mulf %583, %582 : vector<8x128xf32>
    %cst_294 = arith.constant 5.000000e-01 : f32
    %585 = vector.broadcast %cst_294 : f32 to vector<8x128xf32>
    %586 = arith.addf %584, %585 : vector<8x128xf32>
    %587 = vector.extract_strided_slice %569 {offsets = [0, 256], sizes = [8, 128], strides = [1, 1]} : vector<8x512xf32> to vector<8x128xf32>
    %588 = math.tanh %587 : vector<8x128xf32>
    %589 = vector.extract_strided_slice %569 {offsets = [0, 384], sizes = [8, 128], strides = [1, 1]} : vector<8x512xf32> to vector<8x128xf32>
    %cst_295 = arith.constant 5.000000e-01 : f32
    %590 = vector.broadcast %cst_295 : f32 to vector<8x128xf32>
    %591 = arith.mulf %590, %589 : vector<8x128xf32>
    %592 = math.tanh %591 : vector<8x128xf32>
    %cst_296 = arith.constant 5.000000e-01 : f32
    %593 = vector.broadcast %cst_296 : f32 to vector<8x128xf32>
    %594 = arith.mulf %593, %592 : vector<8x128xf32>
    %cst_297 = arith.constant 5.000000e-01 : f32
    %595 = vector.broadcast %cst_297 : f32 to vector<8x128xf32>
    %596 = arith.addf %594, %595 : vector<8x128xf32>
    %597 = arith.mulf %586, %570 : vector<8x128xf32>
    %598 = arith.mulf %578, %588 : vector<8x128xf32>
    %599 = arith.addf %597, %598 : vector<8x128xf32>
    %600 = math.tanh %599 : vector<8x128xf32>
    %601 = arith.mulf %596, %600 : vector<8x128xf32>
    %c0_298 = arith.constant 0 : index
    %c0_299 = arith.constant 0 : index
    %602 = vector.load %arg6[%c0_298, %c0_299] : memref<8x128xf32, #tpu.memory_space<vmem>>, vector<8x128xf32>
    tpu.vector_store %arg6[%c0_298, %c0_299], %601 {strides = array<i32>} : memref<8x128xf32, #tpu.memory_space<vmem>>, vector<8x128xf32>,
    %c0_300 = arith.constant 0 : index
    %c0_301 = arith.constant 0 : index
    %603 = vector.load %arg7[%c0_300, %c0_301] : memref<8x128xf32, #tpu.memory_space<vmem>>, vector<8x128xf32>
    tpu.vector_store %arg7[%c0_300, %c0_301], %599 {strides = array<i32>} : memref<8x128xf32, #tpu.memory_space<vmem>>, vector<8x128xf32>,
    %c0_302 = arith.constant 0 : index
    %c0_303 = arith.constant 0 : index
    %604 = vector.load %arg8[%c0_302, %c0_303] : memref<8x128xf32, #tpu.memory_space<vmem>>, vector<8x128xf32>
    %605 = tpu.concatenate %601, %604 in 1 : vector<8x128xf32>, vector<8x128xf32> -> vector<8x256xf32>
    %cst_304 = arith.constant dense<0.000000e+00> : vector<8x512xf32>
    %606 = tpu.matmul %605, %9, %cst_304 {dimension_numbers = #tpu.dot_dimension_numbers<[1], [0], [0], [1], [0, 0, 1, 1], [], []>} : vector<8x256xf32>, vector<256x512xf32>, vector<8x512xf32> -> vector<8x512xf32>
    %607 = vector.broadcast %10 : vector<1x512xf32> to vector<8x512xf32>
    %608 = arith.addf %606, %607 : vector<8x512xf32>
    %c0_305 = arith.constant 0 : index
    %c0_306 = arith.constant 0 : index
    %609 = vector.load %arg9[%c0_305, %c0_306] : memref<8x128xf32, #tpu.memory_space<vmem>>, vector<8x128xf32>
    %610 = vector.extract_strided_slice %608 {offsets = [0, 0], sizes = [8, 128], strides = [1, 1]} : vector<8x512xf32> to vector<8x128xf32>
    %cst_307 = arith.constant 5.000000e-01 : f32
    %611 = vector.broadcast %cst_307 : f32 to vector<8x128xf32>
    %612 = arith.mulf %611, %610 : vector<8x128xf32>
    %613 = math.tanh %612 : vector<8x128xf32>
    %cst_308 = arith.constant 5.000000e-01 : f32
    %614 = vector.broadcast %cst_308 : f32 to vector<8x128xf32>
    %615 = arith.mulf %614, %613 : vector<8x128xf32>
    %cst_309 = arith.constant 5.000000e-01 : f32
    %616 = vector.broadcast %cst_309 : f32 to vector<8x128xf32>
    %617 = arith.addf %615, %616 : vector<8x128xf32>
    %618 = vector.extract_strided_slice %608 {offsets = [0, 128], sizes = [8, 128], strides = [1, 1]} : vector<8x512xf32> to vector<8x128xf32>
    %cst_310 = arith.constant 5.000000e-01 : f32
    %619 = vector.broadcast %cst_310 : f32 to vector<8x128xf32>
    %620 = arith.mulf %619, %618 : vector<8x128xf32>
    %621 = math.tanh %620 : vector<8x128xf32>
    %cst_311 = arith.constant 5.000000e-01 : f32
    %622 = vector.broadcast %cst_311 : f32 to vector<8x128xf32>
    %623 = arith.mulf %622, %621 : vector<8x128xf32>
    %cst_312 = arith.constant 5.000000e-01 : f32
    %624 = vector.broadcast %cst_312 : f32 to vector<8x128xf32>
    %625 = arith.addf %623, %624 : vector<8x128xf32>
    %626 = vector.extract_strided_slice %608 {offsets = [0, 256], sizes = [8, 128], strides = [1, 1]} : vector<8x512xf32> to vector<8x128xf32>
    %627 = math.tanh %626 : vector<8x128xf32>
    %628 = vector.extract_strided_slice %608 {offsets = [0, 384], sizes = [8, 128], strides = [1, 1]} : vector<8x512xf32> to vector<8x128xf32>
    %cst_313 = arith.constant 5.000000e-01 : f32
    %629 = vector.broadcast %cst_313 : f32 to vector<8x128xf32>
    %630 = arith.mulf %629, %628 : vector<8x128xf32>
    %631 = math.tanh %630 : vector<8x128xf32>
    %cst_314 = arith.constant 5.000000e-01 : f32
    %632 = vector.broadcast %cst_314 : f32 to vector<8x128xf32>
    %633 = arith.mulf %632, %631 : vector<8x128xf32>
    %cst_315 = arith.constant 5.000000e-01 : f32
    %634 = vector.broadcast %cst_315 : f32 to vector<8x128xf32>
    %635 = arith.addf %633, %634 : vector<8x128xf32>
    %636 = arith.mulf %625, %609 : vector<8x128xf32>
    %637 = arith.mulf %617, %627 : vector<8x128xf32>
    %638 = arith.addf %636, %637 : vector<8x128xf32>
    %639 = math.tanh %638 : vector<8x128xf32>
    %640 = arith.mulf %635, %639 : vector<8x128xf32>
    %c0_316 = arith.constant 0 : index
    %c0_317 = arith.constant 0 : index
    %641 = vector.load %arg8[%c0_316, %c0_317] : memref<8x128xf32, #tpu.memory_space<vmem>>, vector<8x128xf32>
    tpu.vector_store %arg8[%c0_316, %c0_317], %640 {strides = array<i32>} : memref<8x128xf32, #tpu.memory_space<vmem>>, vector<8x128xf32>,
    %c0_318 = arith.constant 0 : index
    %c0_319 = arith.constant 0 : index
    %642 = vector.load %arg9[%c0_318, %c0_319] : memref<8x128xf32, #tpu.memory_space<vmem>>, vector<8x128xf32>
    tpu.vector_store %arg9[%c0_318, %c0_319], %638 {strides = array<i32>} : memref<8x128xf32, #tpu.memory_space<vmem>>, vector<8x128xf32>,
    %c8_i32 = arith.constant 8 : i32
    %c0_320 = arith.constant 0 : index
    %c0_321 = arith.constant 0 : index
    %643 = vector.load %arg8[%c0_320, %c0_321] : memref<8x128xf32, #tpu.memory_space<vmem>>, vector<8x128xf32>
    %c0_322 = arith.constant 0 : index
    %c0_323 = arith.constant 0 : index
    %644 = vector.load %arg5[%c0_322, %c0_323] : memref<8x128xf32, #tpu.memory_space<vmem>>, vector<8x128xf32>
    tpu.vector_store %arg5[%c0_322, %c0_323], %643 {strides = array<i32>} : memref<8x128xf32, #tpu.memory_space<vmem>>, vector<8x128xf32>,
    return
  }
  func.func @transform_0(%arg0: i32) -> (i32, i32, i32) {
    %c0_i32 = arith.constant 0 : i32
    %c0_i32_0 = arith.constant 0 : i32
    %c0_i32_1 = arith.constant 0 : i32
    return %c0_i32, %arg0, %c0_i32_0 : i32, i32, i32
  }
  func.func @transform_1(%arg0: i32) -> (i32, i32) {
    %c0_i32 = arith.constant 0 : i32
    %c0_i32_0 = arith.constant 0 : i32
    %c0_i32_1 = arith.constant 0 : i32
    return %c0_i32, %c0_i32_0 : i32, i32
  }
  func.func @transform_2(%arg0: i32) -> (i32, i32) {
    %c0_i32 = arith.constant 0 : i32
    %c0_i32_0 = arith.constant 0 : i32
    %c0_i32_1 = arith.constant 0 : i32
    return %c0_i32, %c0_i32_0 : i32, i32
  }
  func.func @transform_3(%arg0: i32) -> (i32, i32) {
    %c0_i32 = arith.constant 0 : i32
    %c0_i32_0 = arith.constant 0 : i32
    %c0_i32_1 = arith.constant 0 : i32
    return %c0_i32, %c0_i32_0 : i32, i32
  }
  func.func @transform_4(%arg0: i32) -> (i32, i32) {
    %c0_i32 = arith.constant 0 : i32
    %c0_i32_0 = arith.constant 0 : i32
    return %arg0, %c0_i32 : i32, i32
  }
}

</mosaic_0001>

<bundles_post_ra>
// kernel: encoder_forward.1
= control target key start
LH: loop header
LB: loop body
LE: loop exit
PB: predicated region body
PF: predicated region fallthrough
CT: control target
= control target key end

     0   :  { %s8949_s1 = inlined_call_operand.vmem [shape: f32[128,512], index: 1, kind: input, shape index: {}]   ;;  %s8950_s2 = inlined_call_operand.vmem [shape: f32[256,512], index: 2, kind: input, shape index: {}]   ;;  %s8951_s0 = inlined_call_operand.vmem [shape: f32[8,8,512], index: 0, kind: input, shape index: {}]   ;;  %s8952_s3 = inlined_call_operand.vmem [shape: f32[1,512], index: 3, kind: input, shape index: {}]   ;;  %s8953_s4 = inlined_call_operand.vmem [shape: f32[8,128], index: 4, kind: output, shape index: {}]  }
   0x1   :  { %v3366_v0 = vld [vmem:[%s8949_s1 + $0x1e0] sm:$0xff]  ;;  %v3371_v1 = vld [vmem:[%s8949_s1 + $0x1e8] sm:$0xff]  ;;  %v3376_v2 = vld [vmem:[%s8949_s1 + $0x1f0] sm:$0xff] }
   0x2   :  { %9457 = vst [vmem:[#allocation6_spill] sm:$0xff] %v3366_v0  ;;  %219 = vmatpush.msra.mxu0 %v3366_v0  ;;  %239 = vmatpush.msra.mxu1 %v3371_v1  ;;  %v3383_v3 = vld [vmem:[%s8949_s1 + $0x1c0] sm:$0xff]  ;;  %v3388_v4 = vld [vmem:[%s8949_s1 + $0x1c8] sm:$0xff]  ;;  %v3393_v5 = vld [vmem:[%s8949_s1 + $0x1d0] sm:$0xff] }
   0x3   :  { %9458 = vst [vmem:[#allocation7_spill] sm:$0xff] %v3376_v2  ;;  %259 = vmatpush.msra.mxu2 %v3376_v2  ;;  %v3399_v6 = vld [vmem:[%s8949_s1 + $0x1a0] sm:$0xff]  ;;  %v3404_v7 = vld [vmem:[%s8949_s1 + $0x1a8] sm:$0xff]  ;;  %v3411_v8 = vld [vmem:[%s8949_s1 + $0x1b0] sm:$0xff] }
   0x4   :  { %9459 = vst [vmem:[#allocation8_spill] sm:$0xff] %v3383_v3  ;;  %220 = vmatpush.msra.mxu0 %v3383_v3  ;;  %240 = vmatpush.msra.mxu1 %v3388_v4  ;;  %v3416_v9 = vld [vmem:[%s8949_s1 + $0x1f8] sm:$0xff]  ;;  %v3423_v10 = vld [vmem:[%s8949_s1 + $0x180] sm:$0xff]  ;;  %v3428_v11 = vld [vmem:[%s8949_s1 + $0x188] sm:$0xff] }
   0x5   :  { %9460 = vst [vmem:[#allocation9_spill] sm:$0xff] %v3393_v5  ;;  %260 = vmatpush.msra.mxu2 %v3393_v5  ;;  %279 = vmatpush.msra.mxu3 %v3416_v9  ;;  %v3433_v12 = vld [vmem:[%s8949_s1 + $0x1d8] sm:$0xff]  ;;  %v3440_v13 = vld [vmem:[%s8949_s1 + $0x190] sm:$0xff]  ;;  %v3452_v15 = vld [vmem:[%s8949_s1 + $0x160] sm:$0xff] }
   0x6   :  { %9461 = vst [vmem:[#allocation10_spill] sm:$0xff] %v3399_v6  ;;  %221 = vmatpush.msra.mxu0 %v3399_v6  ;;  %241 = vmatpush.msra.mxu1 %v3404_v7  ;;  %v3445_v14 = vld [vmem:[%s8949_s1 + $0x1b8] sm:$0xff]  ;;  %v3457_v16 = vld [vmem:[%s8949_s1 + $0x168] sm:$0xff]  ;;  %v3464_v17 = vld [vmem:[%s8949_s1 + $0x170] sm:$0xff] }
   0x7   :  { %9462 = vst [vmem:[#allocation11_spill] sm:$0xff] %v3411_v8  ;;  %261 = vmatpush.msra.mxu2 %v3411_v8  ;;  %280 = vmatpush.msra.mxu3 %v3433_v12  ;;  %v3469_v18 = vld [vmem:[%s8949_s1 + $0x198] sm:$0xff]  ;;  %v3476_v19 = vld [vmem:[%s8949_s1 + $0x140] sm:$0xff]  ;;  %v3481_v20 = vld [vmem:[%s8949_s1 + $0x148] sm:$0xff] }
   0x8   :  { %9463 = vst [vmem:[#allocation12_spill] sm:$0xff] %v3423_v10  ;;  %222 = vmatpush.msra.mxu0 %v3423_v10  ;;  %242 = vmatpush.msra.mxu1 %v3428_v11  ;;  %v3488_v21 = vld [vmem:[%s8949_s1 + $0x150] sm:$0xff]  ;;  %v3493_v22 = vld [vmem:[%s8949_s1 + $0x178] sm:$0xff]  ;;  %v3500_v23 = vld [vmem:[%s8949_s1 + $0x120] sm:$0xff] }
   0x9   :  { %9464 = vst [vmem:[#allocation13_spill] sm:$0xff] %v3440_v13  ;;  %262 = vmatpush.msra.mxu2 %v3440_v13  ;;  %281 = vmatpush.msra.mxu3 %v3445_v14  ;;  %v3505_v24 = vld [vmem:[%s8949_s1 + $0x128] sm:$0xff]  ;;  %v3512_v25 = vld [vmem:[%s8949_s1 + $0x130] sm:$0xff]  ;;  %v3517_v26 = vld [vmem:[%s8949_s1 + $0x158] sm:$0xff] }
   0xa   :  { %9465 = vst [vmem:[#allocation14_spill] sm:$0xff] %v3452_v15  ;;  %223 = vmatpush.msra.mxu0 %v3452_v15  ;;  %243 = vmatpush.msra.mxu1 %v3457_v16  ;;  %v3524_v27 = vld [vmem:[%s8949_s1 + $0x100] sm:$0xff]  ;;  %v3529_v28 = vld [vmem:[%s8949_s1 + $0x108] sm:$0xff]  ;;  %v3536_v29 = vld [vmem:[%s8949_s1 + $0x110] sm:$0xff] }
   0xb   :  { %9466 = vst [vmem:[#allocation15_spill] sm:$0xff] %v3464_v17  ;;  %263 = vmatpush.msra.mxu2 %v3464_v17  ;;  %282 = vmatpush.msra.mxu3 %v3469_v18  ;;  %v3541_v30 = vld [vmem:[%s8949_s1 + $0x138] sm:$0xff]  ;;  %v3548_v31 = vld [vmem:[%s8949_s1 + $0xe0] sm:$0xff]  ;;  %v3553_v32 = vld [vmem:[%s8949_s1 + $0xe8] sm:$0xff] }
   0xc   :  { %9467 = vst [vmem:[#allocation16_spill] sm:$0xff] %v3476_v19  ;;  %224 = vmatpush.msra.mxu0 %v3476_v19  ;;  %244 = vmatpush.msra.mxu1 %v3481_v20  ;;  %v3560_v33 = vld [vmem:[%s8949_s1 + $0xf0] sm:$0xff]  ;;  %v3565_v34 = vld [vmem:[%s8949_s1 + $0x118] sm:$0xff]  ;;  %v3572_v35 = vld [vmem:[%s8949_s1 + $0xc0] sm:$0xff] }
   0xd   :  { %9468 = vst [vmem:[#allocation17_spill] sm:$0xff] %v3488_v21  ;;  %264 = vmatpush.msra.mxu2 %v3488_v21  ;;  %283 = vmatpush.msra.mxu3 %v3493_v22  ;;  %v3577_v36 = vld [vmem:[%s8949_s1 + $0xc8] sm:$0xff]  ;;  %v3584_v37 = vld [vmem:[%s8949_s1 + $0xd0] sm:$0xff]  ;;  %v3589_v38 = vld [vmem:[%s8949_s1 + $0xf8] sm:$0xff] }
   0xe   :  { %9469 = vst [vmem:[#allocation18_spill] sm:$0xff] %v3500_v23  ;;  %225 = vmatpush.msra.mxu0 %v3500_v23  ;;  %245 = vmatpush.msra.mxu1 %v3505_v24  ;;  %v3596_v39 = vld [vmem:[%s8949_s1 + $0xa0] sm:$0xff]  ;;  %v3601_v40 = vld [vmem:[%s8949_s1 + $0xa8] sm:$0xff]  ;;  %v3608_v41 = vld [vmem:[%s8949_s1 + $0xb0] sm:$0xff] }
   0xf   :  { %9470 = vst [vmem:[#allocation19_spill] sm:$0xff] %v3512_v25  ;;  %265 = vmatpush.msra.mxu2 %v3512_v25  ;;  %284 = vmatpush.msra.mxu3 %v3517_v26  ;;  %v3613_v42 = vld [vmem:[%s8949_s1 + $0xd8] sm:$0xff]  ;;  %v3620_v43 = vld [vmem:[%s8949_s1 + $0x80] sm:$0xff]  ;;  %v3625_v44 = vld [vmem:[%s8949_s1 + $0x88] sm:$0xff] }
  0x10   :  { %9471 = vst [vmem:[#allocation20_spill] sm:$0xff] %v3524_v27  ;;  %226 = vmatpush.msra.mxu0 %v3524_v27  ;;  %246 = vmatpush.msra.mxu1 %v3529_v28  ;;  %v3632_v45 = vld [vmem:[%s8949_s1 + $0x90] sm:$0xff]  ;;  %v3637_v46 = vld [vmem:[%s8949_s1 + $0xb8] sm:$0xff]  ;;  %v3644_v47 = vld [vmem:[%s8949_s1 + $0x60] sm:$0xff] }
  0x11   :  { %9472 = vst [vmem:[#allocation21_spill] sm:$0xff] %v3536_v29  ;;  %266 = vmatpush.msra.mxu2 %v3536_v29  ;;  %285 = vmatpush.msra.mxu3 %v3541_v30  ;;  %v3649_v48 = vld [vmem:[%s8949_s1 + $0x68] sm:$0xff]  ;;  %v3656_v49 = vld [vmem:[%s8949_s1 + $0x70] sm:$0xff]  ;;  %v3661_v50 = vld [vmem:[%s8949_s1 + $0x98] sm:$0xff] }
  0x12   :  { %9473 = vst [vmem:[#allocation22_spill] sm:$0xff] %v3548_v31  ;;  %227 = vmatpush.msra.mxu0 %v3548_v31  ;;  %247 = vmatpush.msra.mxu1 %v3553_v32  ;;  %v3668_v51 = vld [vmem:[%s8949_s1 + $0x40] sm:$0xff]  ;;  %v3673_v52 = vld [vmem:[%s8949_s1 + $0x48] sm:$0xff]  ;;  %v3680_v53 = vld [vmem:[%s8949_s1 + $0x50] sm:$0xff] }
  0x13   :  { %9474 = vst [vmem:[#allocation23_spill] sm:$0xff] %v3560_v33  ;;  %267 = vmatpush.msra.mxu2 %v3560_v33  ;;  %286 = vmatpush.msra.mxu3 %v3565_v34  ;;  %v3685_v54 = vld [vmem:[%s8949_s1 + $0x78] sm:$0xff]  ;;  %v3692_v55 = vld [vmem:[%s8949_s1 + $0x20] sm:$0xff]  ;;  %v3697_v56 = vld [vmem:[%s8949_s1 + $0x28] sm:$0xff] }
  0x14   :  { %9475 = vst [vmem:[#allocation24_spill] sm:$0xff] %v3572_v35  ;;  %228 = vmatpush.msra.mxu0 %v3572_v35  ;;  %248 = vmatpush.msra.mxu1 %v3577_v36  ;;  %v3704_v57 = vld [vmem:[%s8949_s1 + $0x30] sm:$0xff]  ;;  %v3709_v58 = vld [vmem:[%s8949_s1 + $0x58] sm:$0xff]  ;;  %v3716_v59 = vld [vmem:[%s8949_s1] sm:$0xff] }
  0x15   :  { %9476 = vst [vmem:[#allocation25_spill] sm:$0xff] %v3584_v37  ;;  %268 = vmatpush.msra.mxu2 %v3584_v37  ;;  %287 = vmatpush.msra.mxu3 %v3589_v38  ;;  %v3721_v60 = vld [vmem:[%s8949_s1 + $0x8] sm:$0xff]  ;;  %v3728_v61 = vld [vmem:[%s8949_s1 + $0x10] sm:$0xff]  ;;  %v3737_v62 = vld [vmem:[%s8949_s1 + $0x38] sm:$0xff] }
  0x16   :  { %9477 = vst [vmem:[#allocation26_spill] sm:$0xff] %v3596_v39  ;;  %229 = vmatpush.msra.mxu0 %v3596_v39  ;;  %249 = vmatpush.msra.mxu1 %v3601_v40  ;;  %v3742_v63 = vld [vmem:[%s8950_s2 + $0x3e0] sm:$0xff]  ;;  %v3809_v39 = vld [vmem:[%s8950_s2 + $0x3a8] sm:$0xff] }
  0x17   :  { %9478 = vst [vmem:[#allocation27_spill] sm:$0xff] %v3608_v41  ;;  %269 = vmatpush.msra.mxu2 %v3608_v41  ;;  %288 = vmatpush.msra.mxu3 %v3613_v42  ;;  %v3804_v41 = vld [vmem:[%s8950_s2 + $0x1c8] sm:$0xff]  ;;  %v3821_v37 = vld [vmem:[%s8950_s2 + $0x1a0] sm:$0xff] }
  0x18   :  { %9479 = vst [vmem:[#allocation28_spill] sm:$0xff] %v3620_v43  ;;  %230 = vmatpush.msra.mxu0 %v3620_v43  ;;  %250 = vmatpush.msra.mxu1 %v3625_v44  ;;  %v3797_v43 = vld [vmem:[%s8950_s2 + $0x1c0] sm:$0xff]  ;;  %v3828_v35 = vld [vmem:[%s8950_s2 + $0x1a8] sm:$0xff] }
  0x19   :  { %9480 = vst [vmem:[#allocation29_spill] sm:$0xff] %v3632_v45  ;;  %270 = vmatpush.msra.mxu2 %v3632_v45  ;;  %289 = vmatpush.msra.mxu3 %v3637_v46  ;;  %v3791_v45 = vld [vmem:[%s8950_s2 + $0x380] sm:$0xff]  ;;  %v3852_v31 = vld [vmem:[%s8950_s2 + $0x188] sm:$0xff] }
  0x1a   :  { %9481 = vst [vmem:[#allocation30_spill] sm:$0xff] %v3644_v47  ;;  %231 = vmatpush.msra.mxu0 %v3644_v47  ;;  %251 = vmatpush.msra.mxu1 %v3649_v48  ;;  %v3786_v47 = vld [vmem:[%s8950_s2 + $0x3c8] sm:$0xff]  ;;  %v3845_v33 = vld [vmem:[%s8950_s2 + $0x180] sm:$0xff] }
  0x1b   :  { %9482 = vst [vmem:[#allocation31_spill] sm:$0xff] %v3656_v49  ;;  %271 = vmatpush.msra.mxu2 %v3656_v49  ;;  %290 = vmatpush.msra.mxu3 %v3661_v50  ;;  %v9491_v49 = vmov 0.0   ;;  %v3869_v29 = vld [vmem:[%s8950_s2 + $0x160] sm:$0xff]  ;;  %v3876_v27 = vld [vmem:[%s8950_s2 + $0x168] sm:$0xff] }
  0x1c   :  { %9483 = vst [vmem:[#allocation32_spill] sm:$0xff] %v3668_v51  ;;  %232 = vmatpush.msra.mxu0 %v3668_v51  ;;  %252 = vmatpush.msra.mxu1 %v3673_v52  ;;  %v3780_v51 = vld [vmem:[%s8950_s2 + $0x1e8] sm:$0xff]  ;;  %v3893_v25 = vld [vmem:[%s8950_s2 + $0x140] sm:$0xff] }
  0x1d   :  { %9484 = vst [vmem:[#allocation33_spill] sm:$0xff] %v3680_v53  ;;  %272 = vmatpush.msra.mxu2 %v3680_v53  ;;  %291 = vmatpush.msra.mxu3 %v3685_v54  ;;  %v3775_v53 = vld [vmem:[%s8950_s2 + $0x1e0] sm:$0xff]  ;;  %v3900_v23 = vld [vmem:[%s8950_s2 + $0x148] sm:$0xff] }
  0x1e   :  { %9485 = vst [vmem:[#allocation34_spill] sm:$0xff] %v3692_v55  ;;  %233 = vmatpush.msra.mxu0 %v3692_v55  ;;  %253 = vmatpush.msra.mxu1 %v3697_v56  ;;  %v8958_v55 = vmov 0.0   ;;  %v3917_v21 = vld [vmem:[%s8950_s2 + $0x120] sm:$0xff]  ;;  %v3924_v19 = vld [vmem:[%s8950_s2 + $0x128] sm:$0xff] }
  0x1f   :  { %9486 = vst [vmem:[#allocation35_spill] sm:$0xff] %v3704_v57  ;;  %273 = vmatpush.msra.mxu2 %v3704_v57  ;;  %292 = vmatpush.msra.mxu3 %v3709_v58  ;;  %v3756_v57 = vld [vmem:[%s8950_s2 + $0x3c0] sm:$0xff]  ;;  %v3948_v15 = vld [vmem:[%s8950_s2 + $0x108] sm:$0xff] }
  0x20   :  { %9487 = vst [vmem:[#allocation36_spill] sm:$0xff] %v3716_v59  ;;  %234 = vmatpush.msra.mxu0 %v3716_v59  ;;  %254 = vmatpush.msra.mxu1 %v3721_v60  ;;  %v3751_v59 = vld [vmem:[%s8949_s1 + $0x18] sm:$0xff]  ;;  %v3941_v17 = vld [vmem:[%s8950_s2 + $0x100] sm:$0xff]  ;;  %v3972_v10 = vld [vmem:[%s8950_s2 + $0xe8] sm:$0xff] }
  0x21   :  { %9488 = vst [vmem:[#allocation37_spill] sm:$0xff] %v3728_v61  ;;  %274 = vmatpush.msra.mxu2 %v3728_v61  ;;  %235 = vmatmul.f32.vlgmr.msra.gmra.mxu0 %v8958_v55  ;;  %v3763_v61 = vld [vmem:[%s8950_s2 + $0x3e8] sm:$0xff]  ;;  %v3965_v13 = vld [vmem:[%s8950_s2 + $0xe0] sm:$0xff] }
  0x22   :  { %255 = vmatmul.f32.vlgmr.msra.gmra.mxu1 %v8958_v55  ;;  %275 = vmatmul.f32.vlgmr.msra.gmra.mxu2 %v8958_v55  ;;  %v3768_v55 = vld [vmem:[%s8950_s2 + $0x3a0] sm:$0xff]  ;;  %9489 = vst [vmem:[#allocation38_spill] sm:$0xff] %v3775_v53  ;;  %v3996_v6 = vld [vmem:[%s8950_s2 + $0xc8] sm:$0xff] }
  0x23   :  { %293 = vmatpush.msra.mxu3 %v3737_v62  ;;  %354 = vmatpush.msrb.mxu1 %v3742_v63  ;;  %9490 = vst [vmem:[#allocation39_spill] sm:$0xff] %v3780_v51  ;;  %v3989_v8 = vld [vmem:[%s8950_s2 + $0xc0] sm:$0xff]  ;;  %v4020_v3 = vld [vmem:[%s8950_s2 + $0xa8] sm:$0xff] }
  0x24   :  { %334 = vmatpush.msrb.mxu0 %v3775_v53  ;;  %9492 = vst [vmem:[#allocation40_spill] sm:$0xff] %v3797_v43  ;;  %v3814_v53 = vld [vmem:[%s8950_s2 + $0x360] sm:$0xff]  ;;  %374 = vmatpush.msrb.mxu2 %v3780_v51  ;;  %v3833_v51 = vld [vmem:[%s8950_s2 + $0x388] sm:$0xff] }
  0x25   :  { %294 = vmatpush.msra.mxu3 %v3751_v59  ;;  %355 = vmatpush.msrb.mxu1 %v3756_v57  ;;  %9493 = vst [vmem:[#allocation41_spill] sm:$0xff] %v3804_v41  ;;  %v4013_v5 = vld [vmem:[%s8950_s2 + $0xa0] sm:$0xff]  ;;  %v4044_v0 = vld [vmem:[%s8950_s2 + $0x88] sm:$0xff] }
  0x26   :  { %295 = vmatmul.f32.vlgmr.msra.gmra.mxu3 %v9491_v49  ;;  %335 = vmatpush.msrb.mxu0 %v3797_v43  ;;  %9494 = vst [vmem:[#allocation42_spill] sm:$0xff] %v3821_v37  ;;  %v3838_v43 = vld [vmem:[%s8950_s2 + $0x340] sm:$0xff] }
  0x27   :  { %394 = vmatpush.msrb.mxu3 %v3763_v61  ;;  %356 = vmatpush.msrb.mxu1 %v3768_v55  ;;  %9495 = vst [vmem:[#allocation43_spill] sm:$0xff] %v3828_v35  ;;  %v4037_v2 = vld [vmem:[%s8950_s2 + $0x80] sm:$0xff] }
  0x28   :  { %375 = vmatpush.msrb.mxu2 %v3804_v41  ;;  %336 = vmatpush.msrb.mxu0 %v3821_v37  ;;  %9496 = vst [vmem:[#allocation44_spill] sm:$0xff] %v3845_v33  ;;  %v3857_v41 = vld [vmem:[%s8950_s2 + $0x368] sm:$0xff]  ;;  %v3862_v37 = vld [vmem:[%s8950_s2 + $0x320] sm:$0xff] }
  0x29   :  { %395 = vmatpush.msrb.mxu3 %v3786_v47  ;;  %357 = vmatpush.msrb.mxu1 %v3791_v45  ;;  %9497 = vst [vmem:[#allocation45_spill] sm:$0xff] %v3852_v31 }
  0x2a   :  { %376 = vmatpush.msrb.mxu2 %v3828_v35  ;;  %337 = vmatpush.msrb.mxu0 %v3845_v33  ;;  %9498 = vst [vmem:[#allocation46_spill] sm:$0xff] %v3869_v29  ;;  %v3881_v35 = vld [vmem:[%s8950_s2 + $0x348] sm:$0xff]  ;;  %v3886_v33 = vld [vmem:[%s8950_s2 + $0x300] sm:$0xff] }
  0x2b   :  { %396 = vmatpush.msrb.mxu3 %v3809_v39  ;;  %358 = vmatpush.msrb.mxu1 %v3814_v53  ;;  %9499 = vst [vmem:[#allocation47_spill] sm:$0xff] %v3876_v27 }
  0x2c   :  { %377 = vmatpush.msrb.mxu2 %v3852_v31  ;;  %338 = vmatpush.msrb.mxu0 %v3869_v29  ;;  %9500 = vst [vmem:[#allocation48_spill] sm:$0xff] %v3893_v25  ;;  %v3905_v31 = vld [vmem:[%s8950_s2 + $0x328] sm:$0xff]  ;;  %v3910_v29 = vld [vmem:[%s8950_s2 + $0x2e0] sm:$0xff] }
  0x2d   :  { %397 = vmatpush.msrb.mxu3 %v3833_v51  ;;  %359 = vmatpush.msrb.mxu1 %v3838_v43  ;;  %9501 = vst [vmem:[#allocation49_spill] sm:$0xff] %v3900_v23 }
  0x2e   :  { %378 = vmatpush.msrb.mxu2 %v3876_v27  ;;  %339 = vmatpush.msrb.mxu0 %v3893_v25  ;;  %9502 = vst [vmem:[#allocation50_spill] sm:$0xff] %v3917_v21  ;;  %v3929_v27 = vld [vmem:[%s8950_s2 + $0x308] sm:$0xff]  ;;  %v3934_v25 = vld [vmem:[%s8950_s2 + $0x2c0] sm:$0xff] }
  0x2f   :  { %398 = vmatpush.msrb.mxu3 %v3857_v41  ;;  %360 = vmatpush.msrb.mxu1 %v3862_v37  ;;  %9503 = vst [vmem:[#allocation51_spill] sm:$0xff] %v3924_v19 }
  0x30   :  { %379 = vmatpush.msrb.mxu2 %v3900_v23  ;;  %340 = vmatpush.msrb.mxu0 %v3917_v21  ;;  %9504 = vst [vmem:[#allocation52_spill] sm:$0xff] %v3941_v17  ;;  %v3953_v23 = vld [vmem:[%s8950_s2 + $0x2e8] sm:$0xff]  ;;  %v3958_v21 = vld [vmem:[%s8950_s2 + $0x2a0] sm:$0xff] }
  0x31   :  { %399 = vmatpush.msrb.mxu3 %v3881_v35  ;;  %361 = vmatpush.msrb.mxu1 %v3886_v33  ;;  %9505 = vst [vmem:[#allocation53_spill] sm:$0xff] %v3948_v15 }
  0x32   :  { %380 = vmatpush.msrb.mxu2 %v3924_v19  ;;  %341 = vmatpush.msrb.mxu0 %v3941_v17  ;;  %9506 = vst [vmem:[#allocation54_spill] sm:$0xff] %v3965_v13  ;;  %v3977_v19 = vld [vmem:[%s8950_s2 + $0x2c8] sm:$0xff]  ;;  %v3982_v17 = vld [vmem:[%s8950_s2 + $0x280] sm:$0xff] }
  0x33   :  { %400 = vmatpush.msrb.mxu3 %v3905_v31  ;;  %362 = vmatpush.msrb.mxu1 %v3910_v29  ;;  %9507 = vst [vmem:[#allocation55_spill] sm:$0xff] %v3972_v10 }
  0x34   :  { %9508 = vst [vmem:[#allocation56_spill] sm:$0xff] %v3982_v17  ;;  %381 = vmatpush.msrb.mxu2 %v3948_v15  ;;  %342 = vmatpush.msrb.mxu0 %v3965_v13  ;;  %v4001_v15 = vld [vmem:[%s8950_s2 + $0x2a8] sm:$0xff]  ;;  %v4006_v13 = vld [vmem:[%s8950_s2 + $0x260] sm:$0xff] }
  0x35   :  { %401 = vmatpush.msrb.mxu3 %v3929_v27  ;;  %363 = vmatpush.msrb.mxu1 %v3934_v25  ;;  %9509 = vst [vmem:[#allocation57_spill] sm:$0xff] %v3989_v8 }
  0x36   :  { %9510 = vst [vmem:[#allocation58_spill] sm:$0xff] %v3996_v6  ;;  %382 = vmatpush.msrb.mxu2 %v3972_v10  ;;  %343 = vmatpush.msrb.mxu0 %v3989_v8  ;;  %v4025_v10 = vld [vmem:[%s8950_s2 + $0x288] sm:$0xff]  ;;  %v4030_v8 = vld [vmem:[%s8950_s2 + $0x240] sm:$0xff] }
  0x37   :  { %402 = vmatpush.msrb.mxu3 %v3953_v23  ;;  %364 = vmatpush.msrb.mxu1 %v3958_v21  ;;  %9511 = vst [vmem:[#allocation59_spill] sm:$0xff] %v4001_v15 }
  0x38   :  { %9512 = vst [vmem:[#allocation60_spill] sm:$0xff] %v4006_v13  ;;  %383 = vmatpush.msrb.mxu2 %v3996_v6  ;;  %344 = vmatpush.msrb.mxu0 %v4013_v5  ;;  %v4049_v6 = vld [vmem:[%s8950_s2 + $0x268] sm:$0xff] }
  0x39   :  { %9513 = vst [vmem:[#allocation61_spill] sm:$0xff] %v4013_v5  ;;  %403 = vmatpush.msrb.mxu3 %v3977_v19  ;;  %365 = vmatpush.msrb.mxu1 %v3982_v17  ;;  %v4054_v5 = vld [vmem:[%s8950_s2 + $0x220] sm:$0xff]  ;;  %v4144_v17 = vld [vmem:[%s8950_s2 + $0x3b0] sm:$0xff] }
  0x3a   :  { %9514 = vst [vmem:[#allocation62_spill] sm:$0xff] %v4020_v3  ;;  %384 = vmatpush.msrb.mxu2 %v4020_v3  ;;  %345 = vmatpush.msrb.mxu0 %v4037_v2  ;;  %v4073_v3 = vld [vmem:[%s8950_s2 + $0x248] sm:$0xff] }
  0x3b   :  { %9515 = vst [vmem:[#allocation63_spill] sm:$0xff] %v4025_v10  ;;  %404 = vmatpush.msrb.mxu3 %v4001_v15  ;;  %366 = vmatpush.msrb.mxu1 %v4006_v13  ;;  %v4061_v13 = vld [vmem:[%s8950_s2 + $0x60] sm:$0xff]  ;;  %v4068_v15 = vld [vmem:[%s8950_s2 + $0x68] sm:$0xff] }
  0x3c   :  { %9516 = vst [vmem:[#allocation64_spill] sm:$0xff] %v4030_v8  ;;  %385 = vmatpush.msrb.mxu2 %v4044_v0  ;;  %346 = vmatpush.msrb.mxu0 %v4061_v13 }
  0x3d   :  { %9517 = vst [vmem:[#allocation65_spill] sm:$0xff] %v4037_v2  ;;  %405 = vmatpush.msrb.mxu3 %v4025_v10  ;;  %367 = vmatpush.msrb.mxu1 %v4030_v8  ;;  %v4078_v2 = vld [vmem:[%s8950_s2 + $0x200] sm:$0xff]  ;;  %v4092_v10 = vld [vmem:[%s8950_s2 + $0x3f0] sm:$0xff] }
  0x3e   :  { %9518 = vst [vmem:[#allocation66_spill] sm:$0xff] %v4044_v0  ;;  %v4085_v8 = vld [vmem:[%s8950_s2 + $0x40] sm:$0xff]  ;;  %v4097_v0 = vld [vmem:[%s8950_s2 + $0x48] sm:$0xff]  ;;  %386 = vmatpush.msrb.mxu2 %v4068_v15 }
  0x3f   :  { %9519 = vst [vmem:[#allocation67_spill] sm:$0xff] %v4049_v6  ;;  %406 = vmatpush.msrb.mxu3 %v4049_v6  ;;  %368 = vmatpush.msrb.mxu1 %v4054_v5  ;;  %v4116_v6 = vld [vmem:[%s8950_s2 + $0x3d0] sm:$0xff] }
  0x40   :  { %9520 = vst [vmem:[#allocation68_spill] sm:$0xff] %v4054_v5  ;;  %347 = vmatpush.msrb.mxu0 %v4085_v8  ;;  %v4109_v5 = vld [vmem:[%s8950_s2 + $0x20] sm:$0xff]  ;;  %387 = vmatpush.msrb.mxu2 %v4097_v0 }
  0x41   :  { %9521 = vst [vmem:[#allocation69_spill] sm:$0xff] %v4061_v13  ;;  %v4102_v13 = vld [vmem:[%s8950_s2 + $0x228] sm:$0xff]  ;;  %407 = vmatpush.msrb.mxu3 %v4073_v3  ;;  %369 = vmatpush.msrb.mxu1 %v4078_v2 }
  0x42   :  { %9522 = vst [vmem:[#allocation70_spill] sm:$0xff] %v4068_v15  ;;  %v4121_v15 = vld [vmem:[%s8950_s2 + $0x28] sm:$0xff]  ;;  %348 = vmatpush.msrb.mxu0 %v4109_v5  ;;  %370 = vmatmul.f32.vlgmr.msrb.gmra.mxu1 %v9491_v49 }
  0x43   :  { %9523 = vst [vmem:[#allocation71_spill] sm:$0xff] %v4073_v3  ;;  %434 = vmatpush.msra.mxu1 %v4092_v10  ;;  %408 = vmatpush.msrb.mxu3 %v4102_v13  ;;  %v4139_v3 = vld [vmem:[%s8950_s2 + $0x3f8] sm:$0xff] }
  0x44   :  { %9524 = vst [vmem:[#allocation72_spill] sm:$0xff] %v4078_v2  ;;  %v4133_v2 = vld [vmem:[%s8950_s2] sm:$0xff]  ;;  %388 = vmatpush.msrb.mxu2 %v4121_v15 }
  0x45   :  { %9525 = vst [vmem:[#allocation73_spill] sm:$0xff] %v4085_v8  ;;  %v4126_v8 = vld [vmem:[%s8950_s2 + $0x208] sm:$0xff]  ;;  %435 = vmatpush.msra.mxu1 %v4116_v6  ;;  %349 = vmatpush.msrb.mxu0 %v4133_v2 }
  0x46   :  { %9526 = vst [vmem:[#allocation74_spill] sm:$0xff] %v4092_v10  ;;  %409 = vmatpush.msrb.mxu3 %v4126_v8  ;;  %v4158_v10 = vld [vmem:[%s8950_s2 + $0x3d8] sm:$0xff] }
  0x47   :  { %9527 = vst [vmem:[#allocation75_spill] sm:$0xff] %v4097_v0  ;;  %v4152_v0 = vld [vmem:[%s8950_s2 + $0x8] sm:$0xff]  ;;  %436 = vmatpush.msra.mxu1 %v4144_v17  ;;  %410 = vmatmul.f32.vlgmr.msrb.gmra.mxu3 %v9491_v49 }
  0x48   :  { %9528 = vst [vmem:[#allocation76_spill] sm:$0xff] %v4109_v5  ;;  %v4163_v5 = vld [vmem:[%s8950_s2 + $0x390] sm:$0xff]  ;;  %474 = vmatpush.msra.mxu3 %v4139_v3  ;;  %389 = vmatpush.msrb.mxu2 %v4152_v0 }
  0x49   :  { %9529 = vst [vmem:[#allocation77_spill] sm:$0xff] %v4116_v6  ;;  %v4176_v6 = vld [vmem:[%s8950_s2 + $0x3b8] sm:$0xff]  ;;  %437 = vmatpush.msra.mxu1 %v4163_v5 }
  0x4a   :  { %9530 = vst [vmem:[#allocation78_spill] sm:$0xff] %v4121_v15  ;;  %v4171_v15 = vld [vmem:[%s8950_s2 + $0x1f0] sm:$0xff]  ;;  %475 = vmatpush.msra.mxu3 %v4158_v10 }
  0x4b   :  { %9531 = vst [vmem:[#allocation79_spill] sm:$0xff] %v4126_v8  ;;  %v4181_v8 = vld [vmem:[%s8950_s2 + $0x370] sm:$0xff]  ;;  %414 = vmatpush.msra.mxu0 %v4171_v15 }
  0x4c   :  { %9532 = vst [vmem:[#allocation80_spill] sm:$0xff] %v4133_v2  ;;  %v4190_v2 = vld [vmem:[%s8950_s2 + $0x1f8] sm:$0xff]  ;;  %476 = vmatpush.msra.mxu3 %v4176_v6  ;;  %438 = vmatpush.msra.mxu1 %v4181_v8 }
  0x4d   :  { %9533 = vst [vmem:[#allocation81_spill] sm:$0xff] %v4144_v17  ;;  %v4195_v17 = vld [vmem:[%s8950_s2 + $0x398] sm:$0xff]  ;;  %454 = vmatpush.msra.mxu2 %v4190_v2 }
  0x4e   :  { %9534 = vst [vmem:[#allocation82_spill] sm:$0xff] %v4152_v0  ;;  %v4200_v0 = vld [vmem:[%s8950_s2 + $0x350] sm:$0xff]  ;;  %477 = vmatpush.msra.mxu3 %v4195_v17 }
  0x4f   :  { %9535 = vst [vmem:[#allocation83_spill] sm:$0xff] %v4158_v10  ;;  %v4214_v10 = vld [vmem:[%s8950_s2 + $0x330] sm:$0xff]  ;;  %439 = vmatpush.msra.mxu1 %v4200_v0 }
  0x50   :  { %9536 = vst [vmem:[#allocation84_spill] sm:$0xff] %v4163_v5  ;;  %v4209_v5 = vld [vmem:[%s8950_s2 + $0x378] sm:$0xff] }
  0x51   :  { %9537 = vst [vmem:[#allocation85_spill] sm:$0xff] %v4171_v15  ;;  %v4222_v15 = vld [vmem:[%s8950_s2 + $0x358] sm:$0xff]  ;;  %478 = vmatpush.msra.mxu3 %v4209_v5  ;;  %440 = vmatpush.msra.mxu1 %v4214_v10 }
  0x52   :  { %9538 = vst [vmem:[#allocation86_spill] sm:$0xff] %v4181_v8  ;;  %v4227_v8 = vld [vmem:[%s8950_s2 + $0x310] sm:$0xff] }
  0x53   :  { %9539 = vst [vmem:[#allocation87_spill] sm:$0xff] %v4190_v2  ;;  %v4234_v2 = vld [vmem:[%s8950_s2 + $0x338] sm:$0xff]  ;;  %479 = vmatpush.msra.mxu3 %v4222_v15  ;;  %441 = vmatpush.msra.mxu1 %v4227_v8 }
  0x54   :  { %9540 = vst [vmem:[#allocation88_spill] sm:$0xff] %v4200_v0  ;;  %v4239_v0 = vld [vmem:[%s8950_s2 + $0x2f0] sm:$0xff] }
  0x55   :  { %9541 = vst [vmem:[#allocation89_spill] sm:$0xff] %v4209_v5  ;;  %v4246_v5 = vld [vmem:[%s8950_s2 + $0x318] sm:$0xff]  ;;  %480 = vmatpush.msra.mxu3 %v4234_v2  ;;  %442 = vmatpush.msra.mxu1 %v4239_v0 }
  0x56   :  { %9542 = vst [vmem:[#allocation90_spill] sm:$0xff] %v4214_v10  ;;  %v4251_v10 = vld [vmem:[%s8950_s2 + $0x2d0] sm:$0xff] }
  0x57   :  { %9543 = vst [vmem:[#allocation91_spill] sm:$0xff] %v4222_v15  ;;  %v4258_v15 = vld [vmem:[%s8950_s2 + $0x2f8] sm:$0xff]  ;;  %481 = vmatpush.msra.mxu3 %v4246_v5  ;;  %443 = vmatpush.msra.mxu1 %v4251_v10 }
  0x58   :  { %9544 = vst [vmem:[#allocation92_spill] sm:$0xff] %v4227_v8  ;;  %v4263_v8 = vld [vmem:[%s8950_s2 + $0x2b0] sm:$0xff] }
  0x59   :  { %9545 = vst [vmem:[#allocation93_spill] sm:$0xff] %v4234_v2  ;;  %v4270_v2 = vld [vmem:[%s8950_s2 + $0x2d8] sm:$0xff]  ;;  %482 = vmatpush.msra.mxu3 %v4258_v15  ;;  %444 = vmatpush.msra.mxu1 %v4263_v8 }
  0x5a   :  { %9546 = vst [vmem:[#allocation94_spill] sm:$0xff] %v4239_v0  ;;  %v4275_v0 = vld [vmem:[%s8950_s2 + $0x290] sm:$0xff] }
  0x5b   :  { %9547 = vst [vmem:[#allocation95_spill] sm:$0xff] %v4246_v5  ;;  %v4282_v5 = vld [vmem:[%s8950_s2 + $0x2b8] sm:$0xff]  ;;  %483 = vmatpush.msra.mxu3 %v4270_v2  ;;  %445 = vmatpush.msra.mxu1 %v4275_v0 }
  0x5c   :  { %9548 = vst [vmem:[#allocation96_spill] sm:$0xff] %v4251_v10  ;;  %v4287_v10 = vld [vmem:[%s8950_s2 + $0x270] sm:$0xff] }
  0x5d   :  { %9549 = vst [vmem:[#allocation97_spill] sm:$0xff] %v4258_v15  ;;  %v4294_v15 = vld [vmem:[%s8950_s2 + $0x298] sm:$0xff]  ;;  %484 = vmatpush.msra.mxu3 %v4282_v5  ;;  %446 = vmatpush.msra.mxu1 %v4287_v10 }
  0x5e   :  { %9550 = vst [vmem:[#allocation98_spill] sm:$0xff] %v4263_v8  ;;  %v4299_v8 = vld [vmem:[%s8950_s2 + $0x250] sm:$0xff] }
  0x5f   :  { %9551 = vst [vmem:[#allocation99_spill] sm:$0xff] %v4270_v2  ;;  %v4306_v2 = vld [vmem:[%s8950_s2 + $0x278] sm:$0xff]  ;;  %485 = vmatpush.msra.mxu3 %v4294_v15  ;;  %447 = vmatpush.msra.mxu1 %v4299_v8 }
  0x60   :  { %9552 = vst [vmem:[#allocation100_spill] sm:$0xff] %v4275_v0  ;;  %v4311_v0 = vld [vmem:[%s8950_s2 + $0x230] sm:$0xff] }
  0x61   :  { %9553 = vst [vmem:[#allocation101_spill] sm:$0xff] %v4282_v5  ;;  %v4318_v5 = vld [vmem:[%s8950_s2 + $0x258] sm:$0xff]  ;;  %486 = vmatpush.msra.mxu3 %v4306_v2  ;;  %448 = vmatpush.msra.mxu1 %v4311_v0 }
  0x62   :  { %9554 = vst [vmem:[#allocation102_spill] sm:$0xff] %v4287_v10  ;;  %v4323_v10 = vld [vmem:[%s8950_s2 + $0x210] sm:$0xff] }
  0x63   :  { %9555 = vst [vmem:[#allocation103_spill] sm:$0xff] %v4294_v15  ;;  %v4330_v15 = vld [vmem:[%s8950_s2 + $0x238] sm:$0xff]  ;;  %487 = vmatpush.msra.mxu3 %v4318_v5  ;;  %449 = vmatpush.msra.mxu1 %v4323_v10 }
  0x64   :  { %9556 = vst [vmem:[#allocation104_spill] sm:$0xff] %v4299_v8  ;;  %v4337_v8 = vld [vmem:[%s8950_s2 + $0x218] sm:$0xff]  ;;  %450 = vmatmul.f32.vlgmr.msra.gmra.mxu1 %v9491_v49 }
  0x65   :  { %541 = vmatpush.msrb.mxu1 %v3371_v1  ;;  %488 = vmatpush.msra.mxu3 %v4330_v15  ;;  %v4374_v1 = vld [vmem:[%s8950_s2 + $0x1d0] sm:$0xff] }
  0x66   :  { %415 = vmatpush.msra.mxu0 %v4374_v1 }
  0x67   :  { %542 = vmatpush.msrb.mxu1 %v3388_v4  ;;  %489 = vmatpush.msra.mxu3 %v4337_v8  ;;  %v4379_v4 = vld [vmem:[%s8950_s2 + $0x1d8] sm:$0xff] }
  0x68   :  { %490 = vmatmul.f32.vlgmr.msra.gmra.mxu3 %v9491_v49  ;;  %455 = vmatpush.msra.mxu2 %v4379_v4  ;;  %v9563_v49 = vld [vmem:[#allocation68_spill] sm:$0xff] }
  0x69   :  { %581 = vmatpush.msrb.mxu3 %v3416_v9  ;;  %543 = vmatpush.msrb.mxu1 %v3404_v7  ;;  %v4386_v7 = vld [vmem:[%s8950_s2 + $0x1b0] sm:$0xff]  ;;  %v4391_v9 = vld [vmem:[%s8950_s2 + $0x1b8] sm:$0xff] }
  0x6a   :  { %416 = vmatpush.msra.mxu0 %v4386_v7  ;;  %456 = vmatpush.msra.mxu2 %v4391_v9 }
  0x6b   :  { %582 = vmatpush.msrb.mxu3 %v3433_v12  ;;  %544 = vmatpush.msrb.mxu1 %v3428_v11  ;;  %v4400_v11 = vld [vmem:[%s8950_s2 + $0x190] sm:$0xff]  ;;  %v4405_v12 = vld [vmem:[%s8950_s2 + $0x198] sm:$0xff] }
  0x6c   :  { %417 = vmatpush.msra.mxu0 %v4400_v11  ;;  %457 = vmatpush.msra.mxu2 %v4405_v12 }
  0x6d   :  { %583 = vmatpush.msrb.mxu3 %v3445_v14  ;;  %545 = vmatpush.msrb.mxu1 %v3457_v16  ;;  %v4414_v14 = vld [vmem:[%s8950_s2 + $0x170] sm:$0xff]  ;;  %v4419_v16 = vld [vmem:[%s8950_s2 + $0x178] sm:$0xff] }
  0x6e   :  { %418 = vmatpush.msra.mxu0 %v4414_v14  ;;  %458 = vmatpush.msra.mxu2 %v4419_v16 }
  0x6f   :  { %584 = vmatpush.msrb.mxu3 %v3469_v18  ;;  %546 = vmatpush.msrb.mxu1 %v3481_v20  ;;  %v4428_v18 = vld [vmem:[%s8950_s2 + $0x150] sm:$0xff]  ;;  %v4433_v20 = vld [vmem:[%s8950_s2 + $0x158] sm:$0xff] }
  0x70   :  { %419 = vmatpush.msra.mxu0 %v4428_v18  ;;  %459 = vmatpush.msra.mxu2 %v4433_v20 }
  0x71   :  { %585 = vmatpush.msrb.mxu3 %v3493_v22  ;;  %547 = vmatpush.msrb.mxu1 %v3505_v24  ;;  %v4442_v22 = vld [vmem:[%s8950_s2 + $0x130] sm:$0xff]  ;;  %v4447_v24 = vld [vmem:[%s8950_s2 + $0x138] sm:$0xff] }
  0x72   :  { %420 = vmatpush.msra.mxu0 %v4442_v22  ;;  %460 = vmatpush.msra.mxu2 %v4447_v24 }
  0x73   :  { %586 = vmatpush.msrb.mxu3 %v3517_v26  ;;  %548 = vmatpush.msrb.mxu1 %v3529_v28  ;;  %v4456_v26 = vld [vmem:[%s8950_s2 + $0x110] sm:$0xff]  ;;  %v4461_v28 = vld [vmem:[%s8950_s2 + $0x118] sm:$0xff] }
  0x74   :  { %421 = vmatpush.msra.mxu0 %v4456_v26  ;;  %461 = vmatpush.msra.mxu2 %v4461_v28 }
  0x75   :  { %587 = vmatpush.msrb.mxu3 %v3541_v30  ;;  %549 = vmatpush.msrb.mxu1 %v3553_v32  ;;  %v4470_v30 = vld [vmem:[%s8950_s2 + $0xf0] sm:$0xff]  ;;  %v4475_v32 = vld [vmem:[%s8950_s2 + $0xf8] sm:$0xff] }
  0x76   :  { %422 = vmatpush.msra.mxu0 %v4470_v30  ;;  %462 = vmatpush.msra.mxu2 %v4475_v32 }
  0x77   :  { %588 = vmatpush.msrb.mxu3 %v3565_v34  ;;  %550 = vmatpush.msrb.mxu1 %v3577_v36  ;;  %v4484_v34 = vld [vmem:[%s8950_s2 + $0xd0] sm:$0xff]  ;;  %v4489_v36 = vld [vmem:[%s8950_s2 + $0xd8] sm:$0xff] }
  0x78   :  { %423 = vmatpush.msra.mxu0 %v4484_v34  ;;  %463 = vmatpush.msra.mxu2 %v4489_v36 }
  0x79   :  { %589 = vmatpush.msrb.mxu3 %v3589_v38  ;;  %551 = vmatpush.msrb.mxu1 %v3601_v40  ;;  %v4498_v38 = vld [vmem:[%s8950_s2 + $0xb0] sm:$0xff]  ;;  %v4517_v40 = vld [vmem:[%s8950_s2 + $0x98] sm:$0xff] }
  0x7a   :  { %424 = vmatpush.msra.mxu0 %v4498_v38 }
  0x7b   :  { %590 = vmatpush.msrb.mxu3 %v3613_v42  ;;  %552 = vmatpush.msrb.mxu1 %v3625_v44  ;;  %v9558_v42 = vld [vmem:[#allocation59_spill] sm:$0xff] }
  0x7c   :  { %v9560_v44 = vld [vmem:[#allocation63_spill] sm:$0xff] }
  0x7d   :  { %591 = vmatpush.msrb.mxu3 %v3637_v46  ;;  %553 = vmatpush.msrb.mxu1 %v3649_v48  ;;  %v215_v46 = vld [vmem:[%s8951_s0 + $0x8] sm:$0xff] }
  0x7e   :  { %v9562_v48 = vld [vmem:[#allocation67_spill] sm:$0xff] }
  0x7f   :  { %592 = vmatpush.msrb.mxu3 %v3661_v50  ;;  %554 = vmatpush.msrb.mxu1 %v3673_v52 }
  0x81   :  { %593 = vmatpush.msrb.mxu3 %v3685_v54  ;;  %555 = vmatpush.msrb.mxu1 %v3697_v56  ;;  %v9565_v54 = vld [vmem:[#allocation72_spill] sm:$0xff] }
  0x83   :  { %594 = vmatpush.msrb.mxu3 %v3709_v58  ;;  %556 = vmatpush.msrb.mxu1 %v3721_v60  ;;  %v9566_v58 = vld [vmem:[#allocation79_spill] sm:$0xff] }
  0x85   :  { %595 = vmatpush.msrb.mxu3 %v3737_v62  ;;  %647 = vmatpush.msra.mxu1 %v3742_v63 }
  0x87   :  { %596 = vmatpush.msrb.mxu3 %v3751_v59  ;;  %648 = vmatpush.msra.mxu1 %v3756_v57  ;;  %v216_v57 = vld [vmem:[%s8951_s0 + $0x10] sm:$0xff] }
  0x89   :  { %687 = vmatpush.msra.mxu3 %v3763_v61  ;;  %649 = vmatpush.msra.mxu1 %v3768_v55  ;;  %v217_v61 = vld [vmem:[%s8951_s0 + $0x18] sm:$0xff] }
  0x8b   :  { %688 = vmatpush.msra.mxu3 %v3786_v47  ;;  %650 = vmatpush.msra.mxu1 %v3791_v45  ;;  %v9561_v45 = vld [vmem:[#allocation64_spill] sm:$0xff] }
  0x8d   :  { %689 = vmatpush.msra.mxu3 %v3809_v39  ;;  %651 = vmatpush.msra.mxu1 %v3814_v53  ;;  %v4503_v39 = vld [vmem:[%s8950_s2 + $0xb8] sm:$0xff]  ;;  %v9564_v53 = vld [vmem:[#allocation71_spill] sm:$0xff] }
  0x8e   :  { %464 = vmatpush.msra.mxu2 %v4503_v39 }
  0x8f   :  { %690 = vmatpush.msra.mxu3 %v3833_v51  ;;  %652 = vmatpush.msra.mxu1 %v3838_v43  ;;  %v9559_v43 = vld [vmem:[#allocation60_spill] sm:$0xff] }
  0x90   :  { %465 = vmatpush.msra.mxu2 %v4517_v40 }
  0x91   :  { %691 = vmatpush.msra.mxu3 %v3857_v41  ;;  %653 = vmatpush.msra.mxu1 %v3862_v37  ;;  %v4512_v37 = vld [vmem:[%s8950_s2 + $0x90] sm:$0xff] }
  0x92   :  { %425 = vmatpush.msra.mxu0 %v4512_v37  ;;  %v9557_v41 = vld [vmem:[#allocation56_spill] sm:$0xff] }
  0x93   :  { %692 = vmatpush.msra.mxu3 %v3881_v35  ;;  %654 = vmatpush.msra.mxu1 %v3886_v33  ;;  %v4526_v33 = vld [vmem:[%s8950_s2 + $0x70] sm:$0xff]  ;;  %v4531_v35 = vld [vmem:[%s8950_s2 + $0x78] sm:$0xff] }
  0x94   :  { %426 = vmatpush.msra.mxu0 %v4526_v33  ;;  %466 = vmatpush.msra.mxu2 %v4531_v35 }
  0x95   :  { %693 = vmatpush.msra.mxu3 %v3905_v31  ;;  %655 = vmatpush.msra.mxu1 %v3910_v29  ;;  %v4540_v29 = vld [vmem:[%s8950_s2 + $0x50] sm:$0xff]  ;;  %v4545_v31 = vld [vmem:[%s8950_s2 + $0x58] sm:$0xff] }
  0x96   :  { %427 = vmatpush.msra.mxu0 %v4540_v29  ;;  %467 = vmatpush.msra.mxu2 %v4545_v31 }
  0x97   :  { %694 = vmatpush.msra.mxu3 %v3929_v27  ;;  %656 = vmatpush.msra.mxu1 %v3934_v25  ;;  %v4554_v25 = vld [vmem:[%s8950_s2 + $0x30] sm:$0xff]  ;;  %v4559_v27 = vld [vmem:[%s8950_s2 + $0x38] sm:$0xff] }
  0x98   :  { %428 = vmatpush.msra.mxu0 %v4554_v25  ;;  %468 = vmatpush.msra.mxu2 %v4559_v27 }
  0x99   :  { %695 = vmatpush.msra.mxu3 %v3953_v23  ;;  %657 = vmatpush.msra.mxu1 %v3958_v21  ;;  %v4568_v21 = vld [vmem:[%s8950_s2 + $0x10] sm:$0xff]  ;;  %v4573_v23 = vld [vmem:[%s8950_s2 + $0x18] sm:$0xff] }
  0x9a   :  { %429 = vmatpush.msra.mxu0 %v4568_v21  ;;  %469 = vmatpush.msra.mxu2 %v4573_v23 }
  0x9b   :  { %696 = vmatpush.msra.mxu3 %v3977_v19  ;;  %658 = vmatpush.msra.mxu1 %v9557_v41  ;;  %v214_v19 = vld [vmem:[%s8951_s0] sm:$0xff] }
  0x9d   :  { %697 = vmatpush.msra.mxu3 %v9558_v42  ;;  %659 = vmatpush.msra.mxu1 %v9559_v43 }
  0x9e   :  { %v236_v47 = vpop.f32.mrf.mxu0 }
  0x9f   :  { %698 = vmatpush.msra.mxu3 %v9560_v44  ;;  %660 = vmatpush.msra.mxu1 %v9561_v45  ;;  %v299_v50 = vadd.f32 %v236_v47, %v214_v19  ;;  %v256_v51 = vpop.f32.mrf.mxu1 }
  0xa0   :  { %v300_v52 = vadd.f32 %v256_v51, %v215_v46 }
  0xa1   :  { %699 = vmatpush.msra.mxu3 %v9562_v48  ;;  %661 = vmatpush.msra.mxu1 %v9563_v49  ;;  %v304_v55 = vmul.f32 0.5, %v299_v50 }
  0xa2   :  { %v308_v56 = vmul.f32 0.5, %v300_v52 }
  0xa3   :  { %700 = vmatpush.msra.mxu3 %v9564_v53  ;;  %662 = vmatpush.msra.mxu1 %v9565_v54  ;;  %2601 = vtanh.f32 %v304_v55  ;;  %v9567_v55 = vld [vmem:[#allocation6_spill] sm:$0xff] }
  0xa4   :  { %2603 = vtanh.f32 %v308_v56  ;;  %v9568_v56 = vld [vmem:[#allocation7_spill] sm:$0xff] }
  0xa5   :  { %701 = vmatpush.msra.mxu3 %v4102_v13  ;;  %v276_v59 = vpop.f32.mrf.mxu2 }
  0xa6   :  { %v301_v60 = vadd.f32 %v276_v59, %v216_v57  ;;  %v9569_v57 = vld [vmem:[#allocation8_spill] sm:$0xff]  ;;  %v9571_v59 = vld [vmem:[#allocation9_spill] sm:$0xff] }
  0xa7   :  { %702 = vmatpush.msra.mxu3 %v9566_v58  ;;  %v9570_v58 = vld [vmem:[#allocation74_spill] sm:$0xff] }
  0xa8   :  { %2605 = vtanh.f32 %v301_v60  ;;  %v9572_v60 = vld [vmem:[#allocation10_spill] sm:$0xff] }
  0xa9   :  { %v2602_v62 = vpop.eup %2601  ;;  %v296_v63 = vpop.f32.mrf.mxu3 }
  0xaa   :  { %v2604_v41 = vpop.eup %2603  ;;  %v306_v42 = vmul.f32 0.5, %v2602_v62  ;;  %v302_v13 = vadd.f32 %v296_v63, %v217_v61  ;;  %v9573_v61 = vld [vmem:[#allocation77_spill] sm:$0xff]  ;;  %v9574_v62 = vld [vmem:[#allocation11_spill] sm:$0xff] }
  0xab   :  { %v310_v43 = vmul.f32 0.5, %v2604_v41  ;;  %v9575_v63 = vld [vmem:[#allocation83_spill] sm:$0xff]  ;;  %v9576_v41 = vld [vmem:[#allocation12_spill] sm:$0xff] }
  0xac   :  { %v307_v19 = vadd.f32 0.5, %v306_v42  ;;  %v313_v44 = vmul.f32 0.5, %v302_v13  ;;  %v9577_v42 = vld [vmem:[#allocation81_spill] sm:$0xff] }
  0xad   :  { %v311_v45 = vadd.f32 0.5, %v310_v43  ;;  %v9578_v13 = vld [vmem:[#allocation13_spill] sm:$0xff]  ;;  %v9579_v43 = vld [vmem:[#allocation14_spill] sm:$0xff] }
  0xae   :  { %v2606_v46 = vpop.eup %2605  ;;  %2607 = vtanh.f32 %v313_v44  ;;  %v9582_v44 = vld [vmem:[#allocation84_spill] sm:$0xff] }
  0xaf   :  { %v317_v47 = vmul.f32 0.0, %v311_v45  ;;  %v318_v48 = vmul.f32 %v2606_v46, %v307_v19  ;;  %v9581_v19 = vld [vmem:[#allocation16_spill] sm:$0xff]  ;;  %v9583_v45 = vld [vmem:[#allocation17_spill] sm:$0xff]  ;;  %v9584_v46 = vld [vmem:[#allocation18_spill] sm:$0xff] }
  0xb1   :  { %v4599_v49 = vadd.f32 %v318_v48, %v317_v47  ;;  %v9585_v47 = vld [vmem:[#allocation86_spill] sm:$0xff]  ;;  %v9586_v48 = vld [vmem:[#allocation19_spill] sm:$0xff] }
  0xb3   :  { %2609 = vtanh.f32 %v4599_v49 }
  0xb4   :  { %v2608_v50 = vpop.eup %2607 }
  0xb5   :  { %v315_v51 = vmul.f32 0.5, %v2608_v50  ;;  %v9587_v50 = vld [vmem:[#allocation89_spill] sm:$0xff] }
  0xb7   :  { %v316_v52 = vadd.f32 0.5, %v315_v51  ;;  %v9588_v51 = vld [vmem:[#allocation20_spill] sm:$0xff] }
  0xb9   :  { %v2610_v53 = vpop.eup %2609 }
  0xba   :  { %v4602_v54 = vmul.f32 %v2610_v53, %v316_v52  ;;  %v9589_v52 = vld [vmem:[#allocation88_spill] sm:$0xff]  ;;  %v9591_v53 = vld [vmem:[#allocation91_spill] sm:$0xff] }
  0xbc   :  { %350 = vmatmul.f32.vlgmr.msrb.gmra.mxu0 %v4602_v54  ;;  %390 = vmatmul.f32.vlgmr.msrb.gmra.mxu2 %v4602_v54 }
  0xbd   :  { %521 = vmatpush.msrb.mxu0 %v9567_v55  ;;  %557 = vmatmul.f32.vlgmr.msrb.gmra.mxu1 %v4602_v54  ;;  %v9592_v55 = vld [vmem:[#allocation22_spill] sm:$0xff] }
  0xbe   :  { %561 = vmatpush.msrb.mxu2 %v9568_v56  ;;  %597 = vmatmul.f32.vlgmr.msrb.gmra.mxu3 %v4602_v54  ;;  %v9593_v56 = vld [vmem:[#allocation90_spill] sm:$0xff] }
  0xbf   :  { %522 = vmatpush.msrb.mxu0 %v9569_v57  ;;  %727 = vmatpush.msrb.mxu1 %v9570_v58  ;;  %v9595_v57 = vld [vmem:[#allocation93_spill] sm:$0xff]  ;;  %v9596_v58 = vld [vmem:[#allocation24_spill] sm:$0xff] }
  0xc0   :  { %562 = vmatpush.msrb.mxu2 %v9571_v59  ;;  %767 = vmatpush.msrb.mxu3 %v4139_v3  ;;  %v9580_v3 = vld [vmem:[#allocation15_spill] sm:$0xff]  ;;  %v9597_v59 = vld [vmem:[#allocation92_spill] sm:$0xff] }
  0xc1   :  { %523 = vmatpush.msrb.mxu0 %v9572_v60  ;;  %728 = vmatpush.msrb.mxu1 %v9573_v61  ;;  %v9598_v60 = vld [vmem:[#allocation25_spill] sm:$0xff]  ;;  %v9599_v61 = vld [vmem:[#allocation95_spill] sm:$0xff] }
  0xc2   :  { %563 = vmatpush.msrb.mxu2 %v9574_v62  ;;  %768 = vmatpush.msrb.mxu3 %v9575_v63  ;;  %v9600_v62 = vld [vmem:[#allocation26_spill] sm:$0xff] }
  0xc3   :  { %524 = vmatpush.msrb.mxu0 %v9576_v41  ;;  %729 = vmatpush.msrb.mxu1 %v9577_v42  ;;  %v9601_v63 = vld [vmem:[#allocation94_spill] sm:$0xff]  ;;  %v9602_v41 = vld [vmem:[#allocation27_spill] sm:$0xff]  ;;  %v9603_v42 = vld [vmem:[#allocation97_spill] sm:$0xff] }
  0xc4   :  { %564 = vmatpush.msrb.mxu2 %v9578_v13  ;;  %430 = vmatmul.f32.vlgmr.msra.gmra.mxu0 %v4602_v54  ;;  %v9604_v13 = vld [vmem:[#allocation28_spill] sm:$0xff] }
  0xc5   :  { %470 = vmatmul.f32.vlgmr.msra.gmra.mxu2 %v4602_v54  ;;  %525 = vmatpush.msrb.mxu0 %v9579_v43  ;;  %v9605_v43 = vld [vmem:[#allocation96_spill] sm:$0xff] }
  0xc6   :  { %565 = vmatpush.msrb.mxu2 %v9580_v3  ;;  %769 = vmatpush.msrb.mxu3 %v4176_v6  ;;  %v9590_v6 = vld [vmem:[#allocation21_spill] sm:$0xff] }
  0xc7   :  { %526 = vmatpush.msrb.mxu0 %v9581_v19  ;;  %730 = vmatpush.msrb.mxu1 %v9582_v44  ;;  %v9606_v3 = vld [vmem:[#allocation29_spill] sm:$0xff]  ;;  %v9607_v19 = vld [vmem:[#allocation99_spill] sm:$0xff]  ;;  %v9608_v44 = vld [vmem:[#allocation30_spill] sm:$0xff] }
  0xc8   :  { %566 = vmatpush.msrb.mxu2 %v9583_v45  ;;  %770 = vmatpush.msrb.mxu3 %v4195_v17  ;;  %v9594_v17 = vld [vmem:[#allocation23_spill] sm:$0xff]  ;;  %v9609_v45 = vld [vmem:[#allocation98_spill] sm:$0xff] }
  0xc9   :  { %527 = vmatpush.msrb.mxu0 %v9584_v46  ;;  %731 = vmatpush.msrb.mxu1 %v9585_v47  ;;  %v9610_v46 = vld [vmem:[#allocation31_spill] sm:$0xff]  ;;  %v9611_v47 = vld [vmem:[#allocation101_spill] sm:$0xff] }
  0xca   :  { %567 = vmatpush.msrb.mxu2 %v9586_v48  ;;  %771 = vmatpush.msrb.mxu3 %v9587_v50  ;;  %v9612_v48 = vld [vmem:[#allocation32_spill] sm:$0xff] }
  0xcb   :  { %528 = vmatpush.msrb.mxu0 %v9588_v51  ;;  %732 = vmatpush.msrb.mxu1 %v9589_v52  ;;  %v9613_v50 = vld [vmem:[#allocation100_spill] sm:$0xff]  ;;  %v9614_v51 = vld [vmem:[#allocation33_spill] sm:$0xff]  ;;  %v9615_v52 = vld [vmem:[#allocation103_spill] sm:$0xff] }
  0xcc   :  { %568 = vmatpush.msrb.mxu2 %v9590_v6  ;;  %772 = vmatpush.msrb.mxu3 %v9591_v53  ;;  %v9616_v6 = vld [vmem:[#allocation34_spill] sm:$0xff] }
  0xcd   :  { %529 = vmatpush.msrb.mxu0 %v9592_v55  ;;  %733 = vmatpush.msrb.mxu1 %v9593_v56  ;;  %v9617_v53 = vld [vmem:[#allocation102_spill] sm:$0xff]  ;;  %v9618_v55 = vld [vmem:[#allocation35_spill] sm:$0xff]  ;;  %v9619_v56 = vld [vmem:[#allocation36_spill] sm:$0xff] }
  0xce   :  { %569 = vmatpush.msrb.mxu2 %v9594_v17  ;;  %773 = vmatpush.msrb.mxu3 %v9595_v57  ;;  %v9620_v17 = vld [vmem:[#allocation104_spill] sm:$0xff]  ;;  %v9621_v57 = vld [vmem:[#allocation37_spill] sm:$0xff] }
  0xcf   :  { %530 = vmatpush.msrb.mxu0 %v9596_v58  ;;  %734 = vmatpush.msrb.mxu1 %v9597_v59  ;;  %v9622_v58 = vld [vmem:[#allocation38_spill] sm:$0xff]  ;;  %v9623_v59 = vld [vmem:[#allocation39_spill] sm:$0xff] }
  0xd0   :  { %570 = vmatpush.msrb.mxu2 %v9598_v60  ;;  %774 = vmatpush.msrb.mxu3 %v9599_v61  ;;  %v9624_v60 = vld [vmem:[#allocation40_spill] sm:$0xff]  ;;  %v9626_v61 = vld [vmem:[#allocation42_spill] sm:$0xff] }
  0xd1   :  { %531 = vmatpush.msrb.mxu0 %v9600_v62  ;;  %735 = vmatpush.msrb.mxu1 %v9601_v63  ;;  %v9627_v62 = vld [vmem:[#allocation43_spill] sm:$0xff]  ;;  %v9629_v63 = vld [vmem:[#allocation45_spill] sm:$0xff] }
  0xd2   :  { %571 = vmatpush.msrb.mxu2 %v9602_v41  ;;  %775 = vmatpush.msrb.mxu3 %v9603_v42  ;;  %v9631_v41 = vld [vmem:[#allocation47_spill] sm:$0xff]  ;;  %v9633_v42 = vld [vmem:[#allocation49_spill] sm:$0xff] }
  0xd3   :  { %532 = vmatpush.msrb.mxu0 %v9604_v13  ;;  %736 = vmatpush.msrb.mxu1 %v9605_v43  ;;  %v9635_v13 = vld [vmem:[#allocation51_spill] sm:$0xff]  ;;  %v9637_v43 = vld [vmem:[#allocation53_spill] sm:$0xff] }
  0xd4   :  { %572 = vmatpush.msrb.mxu2 %v9606_v3  ;;  %776 = vmatpush.msrb.mxu3 %v9607_v19  ;;  %v9639_v3 = vld [vmem:[#allocation55_spill] sm:$0xff]  ;;  %v9640_v19 = vld [vmem:[#allocation57_spill] sm:$0xff] }
  0xd5   :  { %533 = vmatpush.msrb.mxu0 %v9608_v44  ;;  %737 = vmatpush.msrb.mxu1 %v9609_v45  ;;  %v9641_v44 = vld [vmem:[#allocation58_spill] sm:$0xff]  ;;  %v9642_v45 = vld [vmem:[#allocation61_spill] sm:$0xff] }
  0xd6   :  { %573 = vmatpush.msrb.mxu2 %v9610_v46  ;;  %777 = vmatpush.msrb.mxu3 %v9611_v47  ;;  %v9643_v46 = vld [vmem:[#allocation62_spill] sm:$0xff]  ;;  %v9644_v47 = vld [vmem:[#allocation65_spill] sm:$0xff] }
  0xd7   :  { %534 = vmatpush.msrb.mxu0 %v9612_v48  ;;  %738 = vmatpush.msrb.mxu1 %v9613_v50  ;;  %v9645_v48 = vld [vmem:[#allocation66_spill] sm:$0xff]  ;;  %v9646_v50 = vld [vmem:[#allocation69_spill] sm:$0xff] }
  0xd8   :  { %574 = vmatpush.msrb.mxu2 %v9614_v51  ;;  %778 = vmatpush.msrb.mxu3 %v9615_v52  ;;  %v9647_v51 = vld [vmem:[#allocation70_spill] sm:$0xff]  ;;  %v9648_v52 = vld [vmem:[#allocation73_spill] sm:$0xff] }
  0xd9   :  { %535 = vmatpush.msrb.mxu0 %v9616_v6  ;;  %739 = vmatpush.msrb.mxu1 %v9617_v53  ;;  %v9649_v6 = vld [vmem:[#allocation75_spill] sm:$0xff]  ;;  %v9650_v53 = vld [vmem:[#allocation76_spill] sm:$0xff] }
  0xda   :  { %575 = vmatpush.msrb.mxu2 %v9618_v55  ;;  %779 = vmatpush.msrb.mxu3 %v4306_v2  ;;  %v9625_v2 = vld [vmem:[#allocation41_spill] sm:$0xff]  ;;  %v9651_v55 = vld [vmem:[#allocation78_spill] sm:$0xff] }
  0xdb   :  { %536 = vmatpush.msrb.mxu0 %v9619_v56  ;;  %740 = vmatpush.msrb.mxu1 %v9620_v17  ;;  %v9652_v56 = vld [vmem:[#allocation80_spill] sm:$0xff]  ;;  %v9653_v17 = vld [vmem:[#allocation82_spill] sm:$0xff] }
  0xdc   :  { %576 = vmatpush.msrb.mxu2 %v9621_v57  ;;  %537 = vmatmul.f32.vlgmr.msrb.gmra.mxu0 %v4602_v54  ;;  %v9654_v57 = vld [vmem:[#allocation85_spill] sm:$0xff] }
  0xdd   :  { %577 = vmatmul.f32.vlgmr.msrb.gmra.mxu2 %v4602_v54  ;;  %627 = vmatpush.msra.mxu0 %v9622_v58  ;;  %v9628_v54 = vld [vmem:[#allocation44_spill] sm:$0xff]  ;;  %v9655_v58 = vld [vmem:[#allocation87_spill] sm:$0xff] }
  0xde   :  { %667 = vmatpush.msra.mxu2 %v9623_v59  ;;  %780 = vmatpush.msrb.mxu3 %v4318_v5  ;;  %v9630_v5 = vld [vmem:[#allocation46_spill] sm:$0xff] }
  0xdf   :  { %628 = vmatpush.msra.mxu0 %v9624_v60  ;;  %741 = vmatpush.msrb.mxu1 %v4311_v0  ;;  %v9632_v0 = vld [vmem:[#allocation48_spill] sm:$0xff] }
  0xe0   :  { %668 = vmatpush.msra.mxu2 %v9625_v2  ;;  %781 = vmatpush.msrb.mxu3 %v4330_v15  ;;  %v9634_v15 = vld [vmem:[#allocation50_spill] sm:$0xff]  ;;  %v411_v2 = vpop.f32.mrf.mxu3 }
  0xe1   :  { %629 = vmatpush.msra.mxu0 %v9626_v61  ;;  %742 = vmatpush.msrb.mxu1 %v4323_v10  ;;  %v9636_v10 = vld [vmem:[#allocation52_spill] sm:$0xff] }
  0xe2   :  { %669 = vmatpush.msra.mxu2 %v9627_v62  ;;  %782 = vmatpush.msrb.mxu3 %v4337_v8  ;;  %v9638_v8 = vld [vmem:[#allocation54_spill] sm:$0xff] }
  0xe3   :  { %630 = vmatpush.msra.mxu0 %v9628_v54 }
  0xe4   :  { %670 = vmatpush.msra.mxu2 %v9629_v63 }
  0xe5   :  { %631 = vmatpush.msra.mxu0 %v9630_v5 }
  0xe6   :  { %671 = vmatpush.msra.mxu2 %v9631_v41 }
  0xe7   :  { %632 = vmatpush.msra.mxu0 %v9632_v0 }
  0xe8   :  { %672 = vmatpush.msra.mxu2 %v9633_v42 }
  0xe9   :  { %633 = vmatpush.msra.mxu0 %v9634_v15 }
  0xea   :  { %673 = vmatpush.msra.mxu2 %v9635_v13 }
  0xeb   :  { %634 = vmatpush.msra.mxu0 %v9636_v10 }
  0xec   :  { %674 = vmatpush.msra.mxu2 %v9637_v43  ;;  %v491_v43 = vpop.f32.mrf.mxu3 }
  0xed   :  { %635 = vmatpush.msra.mxu0 %v9638_v8 }
  0xee   :  { %675 = vmatpush.msra.mxu2 %v9639_v3 }
  0xef   :  { %636 = vmatpush.msra.mxu0 %v9640_v19 }
  0xf0   :  { %676 = vmatpush.msra.mxu2 %v9641_v44 }
  0xf1   :  { %637 = vmatpush.msra.mxu0 %v9642_v45 }
  0xf2   :  { %677 = vmatpush.msra.mxu2 %v9643_v46 }
  0xf3   :  { %638 = vmatpush.msra.mxu0 %v9644_v47  ;;  %v2573_v47 = vld [vmem:[%s8951_s0 + $0x28] sm:$0xff] }
  0xf4   :  { %678 = vmatpush.msra.mxu2 %v9645_v48 }
  0xf5   :  { %639 = vmatpush.msra.mxu0 %v9646_v50 }
  0xf6   :  { %679 = vmatpush.msra.mxu2 %v9647_v51 }
  0xf7   :  { %640 = vmatpush.msra.mxu0 %v9648_v52 }
  0xf8   :  { %680 = vmatpush.msra.mxu2 %v9649_v6 }
  0xf9   :  { %641 = vmatpush.msra.mxu0 %v9650_v53 }
  0xfa   :  { %681 = vmatpush.msra.mxu2 %v9651_v55 }
  0xfb   :  { %642 = vmatpush.msra.mxu0 %v9652_v56 }
  0xfc   :  { %682 = vmatpush.msra.mxu2 %v9653_v17 }
  0xfd   :  { %707 = vmatpush.msrb.mxu0 %v9654_v57 }
  0xfe   :  { %747 = vmatpush.msrb.mxu2 %v9655_v58  ;;  %v2572_v58 = vld [vmem:[%s8951_s0 + $0x20] sm:$0xff] }
  0xff   :  { %708 = vmatpush.msrb.mxu0 %v4374_v1  ;;  %v213_v1 = vld [vmem:[%s8952_s3] sm:$0xf] }
 0x100   :  { %748 = vmatpush.msrb.mxu2 %v4379_v4  ;;  %v4743_v4 = vperm.slane %v213_v1, 0  ;;  %v4748_v59 = vperm.slane %v213_v1, 2  ;;  %v4752_v42 = vperm.slane %v213_v1, 3 }
 0x101   :  { %709 = vmatpush.msrb.mxu0 %v4386_v7  ;;  %v371_v7 = vpop.f32.mrf.mxu1 }
 0x102   :  { %749 = vmatpush.msrb.mxu2 %v4391_v9 }
 0x103   :  { %710 = vmatpush.msrb.mxu0 %v4400_v11 }
 0x104   :  { %750 = vmatpush.msrb.mxu2 %v4405_v12 }
 0x105   :  { %711 = vmatpush.msrb.mxu0 %v4414_v14  ;;  %v4746_v14 = vperm.slane %v213_v1, 1 }
 0x106   :  { %751 = vmatpush.msrb.mxu2 %v4419_v16 }
 0x107   :  { %712 = vmatpush.msrb.mxu0 %v4428_v18 }
 0x108   :  { %752 = vmatpush.msrb.mxu2 %v4433_v20 }
 0x109   :  { %713 = vmatpush.msrb.mxu0 %v4442_v22  ;;  %v451_v5 = vpop.f32.mrf.mxu1 }
 0x10a   :  { %753 = vmatpush.msrb.mxu2 %v4447_v24 }
 0x10b   :  { %714 = vmatpush.msrb.mxu0 %v4456_v26 }
 0x10c   :  { %754 = vmatpush.msrb.mxu2 %v4461_v28 }
 0x10d   :  { %715 = vmatpush.msrb.mxu0 %v4470_v30 }
 0x10e   :  { %755 = vmatpush.msrb.mxu2 %v4475_v32 }
 0x10f   :  { %716 = vmatpush.msrb.mxu0 %v4484_v34 }
 0x110   :  { %756 = vmatpush.msrb.mxu2 %v4489_v36 }
 0x111   :  { %717 = vmatpush.msrb.mxu0 %v4498_v38 }
 0x112   :  { %757 = vmatpush.msrb.mxu2 %v4503_v39 }
 0x113   :  { %718 = vmatpush.msrb.mxu0 %v4512_v37 }
 0x114   :  { %758 = vmatpush.msrb.mxu2 %v4517_v40 }
 0x115   :  { %719 = vmatpush.msrb.mxu0 %v4526_v33 }
 0x116   :  { %759 = vmatpush.msrb.mxu2 %v4531_v35 }
 0x117   :  { %720 = vmatpush.msrb.mxu0 %v4540_v29 }
 0x118   :  { %760 = vmatpush.msrb.mxu2 %v4545_v31 }
 0x119   :  { %721 = vmatpush.msrb.mxu0 %v4554_v25 }
 0x11a   :  { %761 = vmatpush.msrb.mxu2 %v4559_v27 }
 0x11b   :  { %722 = vmatpush.msrb.mxu0 %v4568_v21 }
 0x11c   :  { %762 = vmatpush.msrb.mxu2 %v4573_v23 }
 0x139   :  { %v351_v9 = vpop.f32.mrf.mxu0 }
 0x13a   :  { %v352_v11 = vadd.f32 %v351_v9, %v4743_v4  ;;  %v558_v48 = vpop.f32.mrf.mxu1 }
 0x13b   :  { %v602_v52 = vadd.f32 %v2573_v47, %v558_v48 }
 0x13c   :  { %v372_v12 = vadd.f32 %v371_v7, %v352_v11 }
 0x13d   :  { %v610_v17 = vmul.f32 0.5, %v602_v52 }
 0x13e   :  { %v495_v16 = vmul.f32 0.5, %v372_v12  ;;  %v2575_v12 = vld [vmem:[%s8951_s0 + $0x38] sm:$0xff] }
 0x13f   :  { %v391_v60 = vpop.f32.mrf.mxu2 }
 0x140   :  { %v392_v61 = vadd.f32 %v391_v60, %v4746_v14  ;;  %2611 = vtanh.f32 %v495_v16 }
 0x141   :  { %v431_v62 = vpop.f32.mrf.mxu0  ;;  %v598_v16 = vpop.f32.mrf.mxu3 }
 0x142   :  { %v412_v54 = vadd.f32 %v411_v2, %v392_v61  ;;  %v432_v63 = vadd.f32 %v431_v62, %v4748_v59  ;;  %v604_v61 = vadd.f32 %v2575_v12, %v598_v16  ;;  %v2574_v62 = vld [vmem:[%s8951_s0 + $0x30] sm:$0xff]  ;;  %v4873_v12 = vld [vmem:[%s8949_s1 + $0xe8] sm:$0xff]  ;;  %v4879_v16 = vld [vmem:[%s8949_s1 + $0xf8] sm:$0xff] }
 0x144   :  { %v499_v41 = vmul.f32 0.5, %v412_v54  ;;  %v452_v0 = vadd.f32 %v451_v5, %v432_v63  ;;  %v4773_v63 = vld [vmem:[%s8949_s1 + $0x1e8] sm:$0xff]  ;;  %v4779_v5 = vld [vmem:[%s8949_s1 + $0x1f8] sm:$0xff] }
 0x146   :  { %2613 = vtanh.f32 %v499_v41  ;;  %v2612_v15 = vpop.eup %2611 }
 0x147   :  { %2615 = vtanh.f32 %v452_v0  ;;  %v497_v8 = vmul.f32 0.5, %v2612_v15  ;;  %v4785_v15 = vld [vmem:[%s8949_s1 + $0x1c8] sm:$0xff] }
 0x148   :  { %v471_v13 = vpop.f32.mrf.mxu2 }
 0x149   :  { %v472_v10 = vadd.f32 %v471_v13, %v4752_v42  ;;  %v498_v50 = vadd.f32 0.5, %v497_v8  ;;  %v4791_v13 = vld [vmem:[%s8949_s1 + $0x1d8] sm:$0xff]  ;;  %v4797_v8 = vld [vmem:[%s8949_s1 + $0x1a8] sm:$0xff] }
 0x14b   :  { %v492_v3 = vadd.f32 %v491_v43, %v472_v10  ;;  %v615_v43 = vmul.f32 0.5, %v604_v61 }
 0x14c   :  { %v2614_v19 = vpop.eup %2613 }
 0x14d   :  { %v501_v44 = vmul.f32 0.5, %v2614_v19  ;;  %v504_v45 = vmul.f32 0.5, %v492_v3  ;;  %v2616_v46 = vpop.eup %2615  ;;  %v4803_v3 = vld [vmem:[%s8949_s1 + $0x1b8] sm:$0xff] }
 0x14e   :  { %v509_v53 = vmul.f32 %v2616_v46, %v498_v50  ;;  %v4815_v46 = vld [vmem:[%s8949_s1 + $0x198] sm:$0xff]  ;;  %v4821_v50 = vld [vmem:[%s8949_s1 + $0x168] sm:$0xff] }
 0x14f   :  { %v502_v51 = vadd.f32 0.5, %v501_v44  ;;  %2617 = vtanh.f32 %v504_v45  ;;  %v4809_v45 = vld [vmem:[%s8949_s1 + $0x188] sm:$0xff] }
 0x151   :  { %v508_v6 = vmul.f32 0.0, %v502_v51  ;;  %v4827_v51 = vld [vmem:[%s8949_s1 + $0x178] sm:$0xff] }
 0x153   :  { %v4758_v55 = vadd.f32 %v509_v53, %v508_v6  ;;  %v4833_v6 = vld [vmem:[%s8949_s1 + $0x148] sm:$0xff]  ;;  %v4839_v53 = vld [vmem:[%s8949_s1 + $0x158] sm:$0xff] }
 0x155   :  { %v2618_v56 = vpop.eup %2617  ;;  %2619 = vtanh.f32 %v4758_v55 }
 0x156   :  { %v506_v57 = vmul.f32 0.5, %v2618_v56  ;;  %2621 = vtanh.f32 %v610_v17 }
 0x158   :  { %v507_v7 = vadd.f32 0.5, %v506_v57  ;;  %v4846_v57 = vld [vmem:[%s8949_s1 + $0x128] sm:$0xff] }
 0x159   :  { %v538_v1 = vpop.f32.mrf.mxu0 }
 0x15a   :  { %v601_v9 = vadd.f32 %v2572_v58, %v538_v1  ;;  %v4852_v58 = vld [vmem:[%s8949_s1 + $0x138] sm:$0xff] }
 0x15b   :  { %v2620_v11 = vpop.eup %2619 }
 0x15c   :  { %v606_v60 = vmul.f32 0.5, %v601_v9  ;;  %v512_v2 = vmul.f32 %v2620_v11, %v507_v7  ;;  %v2622_v54 = vpop.eup %2621  ;;  %v4866_v9 = vld [vmem:[%s8949_s1 + $0x118] sm:$0xff] }
 0x15d   :  { %v612_v10 = vmul.f32 0.5, %v2622_v54  ;;  %v4903_v54 = vld [vmem:[%s8949_s1 + $0xb8] sm:$0xff] }
 0x15e   :  { %2623 = vtanh.f32 %v606_v60  ;;  %663 = vmatmul.f32.vlgmr.msra.gmra.mxu1 %v512_v2  ;;  %703 = vmatmul.f32.vlgmr.msra.gmra.mxu3 %v512_v2  ;;  %v4885_v60 = vld [vmem:[%s8949_s1 + $0xc8] sm:$0xff] }
 0x15f   :  { %834 = vmatpush.msra.mxu1 %v4773_v63  ;;  %874 = vmatpush.msra.mxu3 %v4779_v5  ;;  %v613_v47 = vadd.f32 0.5, %v612_v10  ;;  %v4911_v10 = vld [vmem:[%s8949_s1 + $0x88] sm:$0xff] }
 0x160   :  { %v578_v41 = vpop.f32.mrf.mxu2 }
 0x161   :  { %v603_v0 = vadd.f32 %v2574_v62, %v578_v41  ;;  %835 = vmatpush.msra.mxu1 %v4785_v15  ;;  %875 = vmatpush.msra.mxu3 %v4791_v13  ;;  %v619_v56 = vmul.f32 %v613_v47, %v4599_v49  ;;  %v4860_v49 = vld [vmem:[%s8949_s1 + $0x108] sm:$0xff] }
 0x162   :  { %v4897_v62 = vld [vmem:[%s8949_s1 + $0xa8] sm:$0xff] }
 0x163   :  { %2625 = vtanh.f32 %v603_v0  ;;  %836 = vmatpush.msra.mxu1 %v4797_v8  ;;  %876 = vmatpush.msra.mxu3 %v4803_v3  ;;  %v4937_v47 = vld [vmem:[%s8949_s1 + $0x68] sm:$0xff] }
 0x164   :  { %v2624_v19 = vpop.eup %2623  ;;  %2627 = vtanh.f32 %v615_v43  ;;  %v4917_v43 = vld [vmem:[%s8949_s1 + $0x98] sm:$0xff] }
 0x165   :  { %v608_v44 = vmul.f32 0.5, %v2624_v19  ;;  %837 = vmatpush.msra.mxu1 %v4809_v45  ;;  %877 = vmatpush.msra.mxu3 %v4815_v46  ;;  %v4925_v19 = vld [vmem:[%s8949_s1 + $0x1e0] sm:$0xff] }
 0x166   :  { %743 = vmatmul.f32.vlgmr.msrb.gmra.mxu1 %v512_v2  ;;  %783 = vmatmul.f32.vlgmr.msrb.gmra.mxu3 %v512_v2  ;;  %v4891_v2 = vld [vmem:[%s8949_s1 + $0xd8] sm:$0xff] }
 0x167   :  { %v609_v48 = vadd.f32 0.5, %v608_v44  ;;  %838 = vmatpush.msra.mxu1 %v4821_v50  ;;  %878 = vmatpush.msra.mxu3 %v4827_v51  ;;  %v4931_v44 = vld [vmem:[%s8949_s1 + $0x1f0] sm:$0xff] }
 0x169   :  { %v2626_v52 = vpop.eup %2625  ;;  %839 = vmatpush.msra.mxu1 %v4833_v6  ;;  %879 = vmatpush.msra.mxu3 %v4839_v53 }
 0x16a   :  { %v620_v17 = vmul.f32 %v2626_v52, %v609_v48  ;;  %v2628_v1 = vpop.eup %2627  ;;  %v4943_v48 = vld [vmem:[%s8949_s1 + $0x78] sm:$0xff]  ;;  %v4949_v52 = vld [vmem:[%s8949_s1 + $0x1c0] sm:$0xff] }
 0x16b   :  { %840 = vmatpush.msra.mxu1 %v4846_v57  ;;  %880 = vmatpush.msra.mxu3 %v4852_v58  ;;  %v617_v11 = vmul.f32 0.5, %v2628_v1  ;;  %v4967_v1 = vld [vmem:[%s8949_s1 + $0x58] sm:$0xff] }
 0x16c   :  { %v4855_v7 = vadd.f32 %v620_v17, %v619_v56  ;;  %v4955_v56 = vld [vmem:[%s8949_s1 + $0x1d0] sm:$0xff]  ;;  %v4961_v17 = vld [vmem:[%s8949_s1 + $0x48] sm:$0xff] }
 0x16d   :  { %841 = vmatpush.msra.mxu1 %v4860_v49  ;;  %881 = vmatpush.msra.mxu3 %v4866_v9  ;;  %v618_v61 = vadd.f32 0.5, %v617_v11  ;;  %9656 = vst [vmem:[#allocation56_spill] sm:$0xff] %v4955_v56  ;;  %v4973_v11 = vld [vmem:[%s8949_s1 + $0x1a0] sm:$0xff] }
 0x16e   :  { %2629 = vtanh.f32 %v4855_v7  ;;  %9657 = vst [vmem:[#allocation59_spill] sm:$0xff] %v4973_v11 }
 0x16f   :  { %842 = vmatpush.msra.mxu1 %v4873_v12  ;;  %882 = vmatpush.msra.mxu3 %v4879_v16 }
 0x171   :  { %843 = vmatpush.msra.mxu1 %v4885_v60  ;;  %883 = vmatpush.msra.mxu3 %v4891_v2 }
 0x173   :  { %844 = vmatpush.msra.mxu1 %v4897_v62  ;;  %884 = vmatpush.msra.mxu3 %v4903_v54 }
 0x174   :  { %v2630_v41 = vpop.eup %2629 }
 0x175   :  { %v4906_v0 = vmul.f32 %v2630_v41, %v618_v61  ;;  %845 = vmatpush.msra.mxu1 %v4911_v10  ;;  %885 = vmatpush.msra.mxu3 %v4917_v43  ;;  %v4979_v61 = vld [vmem:[%s8949_s1 + $0x1b0] sm:$0xff]  ;;  %v4985_v41 = vld [vmem:[%s8949_s1 + $0x28] sm:$0xff] }
 0x176   :  { %9658 = vst [vmem:[#allocation60_spill] sm:$0xff] %v4979_v61 }
 0x177   :  { %643 = vmatmul.f32.vlgmr.msra.gmra.mxu0 %v4906_v0  ;;  %683 = vmatmul.f32.vlgmr.msra.gmra.mxu2 %v4906_v0  ;;  %9659 = vst [vmem:[#allocation63_spill] sm:$0xff] %v4985_v41 }
 0x178   :  { %814 = vmatpush.msra.mxu0 %v4925_v19  ;;  %854 = vmatpush.msra.mxu2 %v4931_v44 }
 0x179   :  { %846 = vmatpush.msra.mxu1 %v4937_v47  ;;  %886 = vmatpush.msra.mxu3 %v4943_v48 }
 0x17a   :  { %815 = vmatpush.msra.mxu0 %v4949_v52  ;;  %855 = vmatpush.msra.mxu2 %v4955_v56  ;;  %v4991_v56 = vld [vmem:[%s8949_s1 + $0x38] sm:$0xff] }
 0x17b   :  { %847 = vmatpush.msra.mxu1 %v4961_v17  ;;  %887 = vmatpush.msra.mxu3 %v4967_v1  ;;  %9660 = vst [vmem:[#allocation64_spill] sm:$0xff] %v4991_v56 }
 0x17c   :  { %816 = vmatpush.msra.mxu0 %v4973_v11  ;;  %856 = vmatpush.msra.mxu2 %v4979_v61  ;;  %v4997_v11 = vld [vmem:[%s8949_s1 + $0x180] sm:$0xff]  ;;  %v5003_v61 = vld [vmem:[%s8949_s1 + $0x190] sm:$0xff] }
 0x17d   :  { %848 = vmatpush.msra.mxu1 %v4985_v41  ;;  %888 = vmatpush.msra.mxu3 %v4991_v56  ;;  %9661 = vst [vmem:[#allocation67_spill] sm:$0xff] %v4997_v11  ;;  %v5009_v41 = vld [vmem:[%s8949_s1 + $0x8] sm:$0xff]  ;;  %v5015_v56 = vld [vmem:[%s8949_s1 + $0x18] sm:$0xff] }
 0x17e   :  { %817 = vmatpush.msra.mxu0 %v4997_v11  ;;  %9662 = vst [vmem:[#allocation68_spill] sm:$0xff] %v5003_v61  ;;  %857 = vmatpush.msra.mxu2 %v5003_v61  ;;  %v5023_v61 = vld [vmem:[%s8949_s1 + $0x160] sm:$0xff]  ;;  %v5030_v11 = vld [vmem:[%s8949_s1 + $0x170] sm:$0xff] }
 0x17f   :  { %9663 = vst [vmem:[#allocation71_spill] sm:$0xff] %v5009_v41  ;;  %849 = vmatpush.msra.mxu1 %v5009_v41  ;;  %889 = vmatpush.msra.mxu3 %v5015_v56  ;;  %v5055_v41 = vld [vmem:[%s8950_s2 + $0x3e8] sm:$0xff] }
 0x180   :  { %9664 = vst [vmem:[#allocation72_spill] sm:$0xff] %v5015_v56  ;;  %723 = vmatmul.f32.vlgmr.msrb.gmra.mxu0 %v4906_v0  ;;  %763 = vmatmul.f32.vlgmr.msrb.gmra.mxu2 %v4906_v0  ;;  %v5037_v56 = vld [vmem:[%s8949_s1 + $0x140] sm:$0xff] }
 0x181   :  { %9665 = vst [vmem:[#allocation79_spill] sm:$0xff] %v5023_v61  ;;  %818 = vmatpush.msra.mxu0 %v5023_v61  ;;  %850 = vmatmul.f32.vlgmr.msra.gmra.mxu1 %v4906_v0  ;;  %v5043_v61 = vld [vmem:[%s8950_s2 + $0x3e0] sm:$0xff] }
 0x182   :  { %9666 = vst [vmem:[#allocation6_spill] sm:$0xff] %v5030_v11  ;;  %858 = vmatpush.msra.mxu2 %v5030_v11  ;;  %890 = vmatmul.f32.vlgmr.msra.gmra.mxu3 %v4906_v0  ;;  %v5049_v11 = vld [vmem:[%s8949_s1 + $0x150] sm:$0xff] }
 0x183   :  { %9667 = vst [vmem:[#allocation7_spill] sm:$0xff] %v5037_v56  ;;  %819 = vmatpush.msra.mxu0 %v5037_v56  ;;  %940 = vmatpush.msrb.mxu1 %v5043_v61  ;;  %v5061_v56 = vld [vmem:[%s8949_s1 + $0x120] sm:$0xff] }
 0x184   :  { %9668 = vst [vmem:[#allocation8_spill] sm:$0xff] %v5043_v61  ;;  %859 = vmatpush.msra.mxu2 %v5049_v11  ;;  %980 = vmatpush.msrb.mxu3 %v5055_v41  ;;  %v5067_v61 = vld [vmem:[%s8950_s2 + $0x3c0] sm:$0xff] }
 0x185   :  { %9669 = vst [vmem:[#allocation74_spill] sm:$0xff] %v5049_v11  ;;  %820 = vmatpush.msra.mxu0 %v5061_v56  ;;  %941 = vmatpush.msrb.mxu1 %v5067_v61  ;;  %v5073_v11 = vld [vmem:[%s8949_s1 + $0x130] sm:$0xff] }
 0x186   :  { %9670 = vst [vmem:[#allocation9_spill] sm:$0xff] %v5055_v41  ;;  %860 = vmatpush.msra.mxu2 %v5073_v11  ;;  %v5079_v41 = vld [vmem:[%s8950_s2 + $0x3c8] sm:$0xff] }
 0x187   :  { %9671 = vst [vmem:[#allocation10_spill] sm:$0xff] %v5061_v56  ;;  %981 = vmatpush.msrb.mxu3 %v5079_v41  ;;  %v5085_v56 = vld [vmem:[%s8949_s1 + $0x100] sm:$0xff] }
 0x188   :  { %9672 = vst [vmem:[#allocation77_spill] sm:$0xff] %v5067_v61  ;;  %821 = vmatpush.msra.mxu0 %v5085_v56  ;;  %v5091_v61 = vld [vmem:[%s8950_s2 + $0x3a0] sm:$0xff] }
 0x189   :  { %9673 = vst [vmem:[#allocation11_spill] sm:$0xff] %v5073_v11  ;;  %942 = vmatpush.msrb.mxu1 %v5091_v61  ;;  %v5097_v11 = vld [vmem:[%s8949_s1 + $0x110] sm:$0xff] }
 0x18a   :  { %9674 = vst [vmem:[#allocation83_spill] sm:$0xff] %v5079_v41  ;;  %861 = vmatpush.msra.mxu2 %v5097_v11  ;;  %v5103_v41 = vld [vmem:[%s8950_s2 + $0x3a8] sm:$0xff] }
 0x18b   :  { %9675 = vst [vmem:[#allocation12_spill] sm:$0xff] %v5085_v56  ;;  %982 = vmatpush.msrb.mxu3 %v5103_v41  ;;  %v5109_v56 = vld [vmem:[%s8949_s1 + $0xe0] sm:$0xff] }
 0x18c   :  { %9676 = vst [vmem:[#allocation81_spill] sm:$0xff] %v5091_v61  ;;  %822 = vmatpush.msra.mxu0 %v5109_v56  ;;  %v5115_v61 = vld [vmem:[%s8950_s2 + $0x380] sm:$0xff] }
 0x18d   :  { %9677 = vst [vmem:[#allocation13_spill] sm:$0xff] %v5097_v11  ;;  %943 = vmatpush.msrb.mxu1 %v5115_v61  ;;  %v5121_v11 = vld [vmem:[%s8949_s1 + $0xf0] sm:$0xff] }
 0x18e   :  { %9678 = vst [vmem:[#allocation14_spill] sm:$0xff] %v5103_v41  ;;  %862 = vmatpush.msra.mxu2 %v5121_v11  ;;  %v5127_v41 = vld [vmem:[%s8950_s2 + $0x388] sm:$0xff] }
 0x18f   :  { %9679 = vst [vmem:[#allocation15_spill] sm:$0xff] %v5109_v56  ;;  %983 = vmatpush.msrb.mxu3 %v5127_v41  ;;  %v5133_v56 = vld [vmem:[%s8949_s1 + $0xc0] sm:$0xff] }
 0x190   :  { %9680 = vst [vmem:[#allocation16_spill] sm:$0xff] %v5115_v61  ;;  %823 = vmatpush.msra.mxu0 %v5133_v56  ;;  %v5139_v61 = vld [vmem:[%s8950_s2 + $0x360] sm:$0xff] }
 0x191   :  { %9681 = vst [vmem:[#allocation84_spill] sm:$0xff] %v5121_v11  ;;  %944 = vmatpush.msrb.mxu1 %v5139_v61  ;;  %v5145_v11 = vld [vmem:[%s8949_s1 + $0xd0] sm:$0xff] }
 0x192   :  { %9682 = vst [vmem:[#allocation17_spill] sm:$0xff] %v5127_v41  ;;  %863 = vmatpush.msra.mxu2 %v5145_v11  ;;  %v5151_v41 = vld [vmem:[%s8950_s2 + $0x368] sm:$0xff] }
 0x193   :  { %9683 = vst [vmem:[#allocation18_spill] sm:$0xff] %v5133_v56  ;;  %984 = vmatpush.msrb.mxu3 %v5151_v41  ;;  %v5157_v56 = vld [vmem:[%s8949_s1 + $0xa0] sm:$0xff] }
 0x194   :  { %9684 = vst [vmem:[#allocation86_spill] sm:$0xff] %v5139_v61  ;;  %824 = vmatpush.msra.mxu0 %v5157_v56  ;;  %v5163_v61 = vld [vmem:[%s8950_s2 + $0x340] sm:$0xff] }
 0x195   :  { %9685 = vst [vmem:[#allocation19_spill] sm:$0xff] %v5145_v11  ;;  %945 = vmatpush.msrb.mxu1 %v5163_v61  ;;  %v5169_v11 = vld [vmem:[%s8949_s1 + $0xb0] sm:$0xff] }
 0x196   :  { %9686 = vst [vmem:[#allocation89_spill] sm:$0xff] %v5151_v41  ;;  %864 = vmatpush.msra.mxu2 %v5169_v11  ;;  %v5175_v41 = vld [vmem:[%s8950_s2 + $0x348] sm:$0xff] }
 0x197   :  { %9687 = vst [vmem:[#allocation20_spill] sm:$0xff] %v5157_v56  ;;  %985 = vmatpush.msrb.mxu3 %v5175_v41  ;;  %v5181_v56 = vld [vmem:[%s8949_s1 + $0x80] sm:$0xff] }
 0x198   :  { %9688 = vst [vmem:[#allocation88_spill] sm:$0xff] %v5163_v61  ;;  %825 = vmatpush.msra.mxu0 %v5181_v56  ;;  %v5187_v61 = vld [vmem:[%s8950_s2 + $0x320] sm:$0xff] }
 0x199   :  { %9689 = vst [vmem:[#allocation21_spill] sm:$0xff] %v5169_v11  ;;  %946 = vmatpush.msrb.mxu1 %v5187_v61  ;;  %v5193_v11 = vld [vmem:[%s8949_s1 + $0x90] sm:$0xff] }
 0x19a   :  { %9690 = vst [vmem:[#allocation91_spill] sm:$0xff] %v5175_v41  ;;  %865 = vmatpush.msra.mxu2 %v5193_v11  ;;  %v5199_v41 = vld [vmem:[%s8950_s2 + $0x328] sm:$0xff] }
 0x19b   :  { %9691 = vst [vmem:[#allocation22_spill] sm:$0xff] %v5181_v56  ;;  %986 = vmatpush.msrb.mxu3 %v5199_v41  ;;  %v5205_v56 = vld [vmem:[%s8949_s1 + $0x60] sm:$0xff] }
 0x19c   :  { %9692 = vst [vmem:[#allocation90_spill] sm:$0xff] %v5187_v61  ;;  %826 = vmatpush.msra.mxu0 %v5205_v56  ;;  %v5211_v61 = vld [vmem:[%s8950_s2 + $0x300] sm:$0xff] }
 0x19d   :  { %9693 = vst [vmem:[#allocation23_spill] sm:$0xff] %v5193_v11  ;;  %947 = vmatpush.msrb.mxu1 %v5211_v61  ;;  %v5217_v11 = vld [vmem:[%s8949_s1 + $0x70] sm:$0xff] }
 0x19e   :  { %9694 = vst [vmem:[#allocation93_spill] sm:$0xff] %v5199_v41  ;;  %866 = vmatpush.msra.mxu2 %v5217_v11  ;;  %v5223_v41 = vld [vmem:[%s8950_s2 + $0x308] sm:$0xff] }
 0x19f   :  { %9695 = vst [vmem:[#allocation24_spill] sm:$0xff] %v5205_v56  ;;  %987 = vmatpush.msrb.mxu3 %v5223_v41  ;;  %v5229_v56 = vld [vmem:[%s8949_s1 + $0x40] sm:$0xff] }
 0x1a0   :  { %9696 = vst [vmem:[#allocation92_spill] sm:$0xff] %v5211_v61  ;;  %827 = vmatpush.msra.mxu0 %v5229_v56  ;;  %v5235_v61 = vld [vmem:[%s8950_s2 + $0x2e0] sm:$0xff] }
 0x1a1   :  { %9697 = vst [vmem:[#allocation25_spill] sm:$0xff] %v5217_v11  ;;  %948 = vmatpush.msrb.mxu1 %v5235_v61  ;;  %v5241_v11 = vld [vmem:[%s8949_s1 + $0x50] sm:$0xff] }
 0x1a2   :  { %9698 = vst [vmem:[#allocation95_spill] sm:$0xff] %v5223_v41  ;;  %867 = vmatpush.msra.mxu2 %v5241_v11  ;;  %v5247_v41 = vld [vmem:[%s8950_s2 + $0x2e8] sm:$0xff] }
 0x1a3   :  { %9699 = vst [vmem:[#allocation26_spill] sm:$0xff] %v5229_v56  ;;  %988 = vmatpush.msrb.mxu3 %v5247_v41  ;;  %v5253_v56 = vld [vmem:[%s8949_s1 + $0x20] sm:$0xff] }
 0x1a4   :  { %9700 = vst [vmem:[#allocation94_spill] sm:$0xff] %v5235_v61  ;;  %828 = vmatpush.msra.mxu0 %v5253_v56  ;;  %v5259_v61 = vld [vmem:[%s8950_s2 + $0x2c0] sm:$0xff] }
 0x1a5   :  { %9701 = vst [vmem:[#allocation27_spill] sm:$0xff] %v5241_v11  ;;  %949 = vmatpush.msrb.mxu1 %v5259_v61  ;;  %v5265_v11 = vld [vmem:[%s8949_s1 + $0x30] sm:$0xff] }
 0x1a6   :  { %9702 = vst [vmem:[#allocation97_spill] sm:$0xff] %v5247_v41  ;;  %868 = vmatpush.msra.mxu2 %v5265_v11  ;;  %v5271_v41 = vld [vmem:[%s8950_s2 + $0x2c8] sm:$0xff] }
 0x1a7   :  { %9703 = vst [vmem:[#allocation28_spill] sm:$0xff] %v5253_v56  ;;  %989 = vmatpush.msrb.mxu3 %v5271_v41  ;;  %v5277_v56 = vld [vmem:[%s8949_s1] sm:$0xff] }
 0x1a8   :  { %9704 = vst [vmem:[#allocation96_spill] sm:$0xff] %v5259_v61  ;;  %829 = vmatpush.msra.mxu0 %v5277_v56  ;;  %v5283_v61 = vld [vmem:[%s8950_s2 + $0x2a0] sm:$0xff] }
 0x1a9   :  { %9705 = vst [vmem:[#allocation29_spill] sm:$0xff] %v5265_v11  ;;  %950 = vmatpush.msrb.mxu1 %v5283_v61  ;;  %v5289_v11 = vld [vmem:[%s8949_s1 + $0x10] sm:$0xff]  ;;  %830 = vmatmul.f32.vlgmr.msra.gmra.mxu0 %v4906_v0 }
 0x1aa   :  { %9706 = vst [vmem:[#allocation99_spill] sm:$0xff] %v5277_v56  ;;  %869 = vmatpush.msra.mxu2 %v5289_v11  ;;  %v5297_v56 = vld [vmem:[%s8950_s2 + $0x2a8] sm:$0xff] }
 0x1ab   :  { %9707 = vst [vmem:[#allocation30_spill] sm:$0xff] %v5283_v61  ;;  %870 = vmatmul.f32.vlgmr.msra.gmra.mxu2 %v4906_v0  ;;  %990 = vmatpush.msrb.mxu3 %v5297_v56  ;;  %v5303_v61 = vld [vmem:[%s8950_s2 + $0x280] sm:$0xff]  ;;  %v5315_v0 = vld [vmem:[%s8950_s2 + $0x288] sm:$0xff] }
 0x1ac   :  { %9708 = vst [vmem:[#allocation98_spill] sm:$0xff] %v5289_v11  ;;  %951 = vmatpush.msrb.mxu1 %v5303_v61  ;;  %v5309_v11 = vld [vmem:[%s8950_s2 + $0x1e0] sm:$0xff] }
 0x1ad   :  { %9709 = vst [vmem:[#allocation31_spill] sm:$0xff] %v5297_v56  ;;  %920 = vmatpush.msrb.mxu0 %v5309_v11  ;;  %991 = vmatpush.msrb.mxu3 %v5315_v0  ;;  %v5321_v56 = vld [vmem:[%s8950_s2 + $0x1e8] sm:$0xff] }
 0x1ae   :  { %9710 = vst [vmem:[#allocation101_spill] sm:$0xff] %v5303_v61  ;;  %960 = vmatpush.msrb.mxu2 %v5321_v56  ;;  %v5327_v61 = vld [vmem:[%s8950_s2 + $0x260] sm:$0xff] }
 0x1af   :  { %9711 = vst [vmem:[#allocation32_spill] sm:$0xff] %v5309_v11  ;;  %952 = vmatpush.msrb.mxu1 %v5327_v61  ;;  %v5333_v11 = vld [vmem:[%s8950_s2 + $0x1c0] sm:$0xff] }
 0x1b0   :  { %9712 = vst [vmem:[#allocation100_spill] sm:$0xff] %v5315_v0  ;;  %921 = vmatpush.msrb.mxu0 %v5333_v11  ;;  %v5339_v0 = vld [vmem:[%s8950_s2 + $0x268] sm:$0xff] }
 0x1b1   :  { %9713 = vst [vmem:[#allocation33_spill] sm:$0xff] %v5321_v56  ;;  %992 = vmatpush.msrb.mxu3 %v5339_v0  ;;  %v5345_v56 = vld [vmem:[%s8950_s2 + $0x1c8] sm:$0xff] }
 0x1b2   :  { %9714 = vst [vmem:[#allocation103_spill] sm:$0xff] %v5327_v61  ;;  %961 = vmatpush.msrb.mxu2 %v5345_v56  ;;  %v5351_v61 = vld [vmem:[%s8950_s2 + $0x240] sm:$0xff] }
 0x1b3   :  { %9715 = vst [vmem:[#allocation34_spill] sm:$0xff] %v5333_v11  ;;  %953 = vmatpush.msrb.mxu1 %v5351_v61  ;;  %v5357_v11 = vld [vmem:[%s8950_s2 + $0x1a0] sm:$0xff] }
 0x1b4   :  { %9716 = vst [vmem:[#allocation102_spill] sm:$0xff] %v5339_v0  ;;  %922 = vmatpush.msrb.mxu0 %v5357_v11  ;;  %v5363_v0 = vld [vmem:[%s8950_s2 + $0x248] sm:$0xff] }
 0x1b5   :  { %9717 = vst [vmem:[#allocation35_spill] sm:$0xff] %v5345_v56  ;;  %993 = vmatpush.msrb.mxu3 %v5363_v0  ;;  %v5369_v56 = vld [vmem:[%s8950_s2 + $0x1a8] sm:$0xff] }
 0x1b6   :  { %9718 = vst [vmem:[#allocation36_spill] sm:$0xff] %v5351_v61  ;;  %962 = vmatpush.msrb.mxu2 %v5369_v56  ;;  %v5375_v61 = vld [vmem:[%s8950_s2 + $0x220] sm:$0xff] }
 0x1b7   :  { %9719 = vst [vmem:[#allocation104_spill] sm:$0xff] %v5357_v11  ;;  %954 = vmatpush.msrb.mxu1 %v5375_v61  ;;  %v5381_v11 = vld [vmem:[%s8950_s2 + $0x180] sm:$0xff] }
 0x1b8   :  { %9720 = vst [vmem:[#allocation37_spill] sm:$0xff] %v5363_v0  ;;  %923 = vmatpush.msrb.mxu0 %v5381_v11  ;;  %v5387_v0 = vld [vmem:[%s8950_s2 + $0x228] sm:$0xff] }
 0x1b9   :  { %9721 = vst [vmem:[#allocation38_spill] sm:$0xff] %v5369_v56  ;;  %994 = vmatpush.msrb.mxu3 %v5387_v0  ;;  %v5393_v56 = vld [vmem:[%s8950_s2 + $0x188] sm:$0xff] }
 0x1ba   :  { %9722 = vst [vmem:[#allocation39_spill] sm:$0xff] %v5375_v61  ;;  %963 = vmatpush.msrb.mxu2 %v5393_v56  ;;  %v5399_v61 = vld [vmem:[%s8950_s2 + $0x200] sm:$0xff] }
 0x1bb   :  { %9723 = vst [vmem:[#allocation40_spill] sm:$0xff] %v5381_v11  ;;  %955 = vmatpush.msrb.mxu1 %v5399_v61  ;;  %v5405_v11 = vld [vmem:[%s8950_s2 + $0x160] sm:$0xff] }
 0x1bc   :  { %9724 = vst [vmem:[#allocation41_spill] sm:$0xff] %v5387_v0  ;;  %924 = vmatpush.msrb.mxu0 %v5405_v11  ;;  %v5411_v0 = vld [vmem:[%s8950_s2 + $0x208] sm:$0xff] }
 0x1bd   :  { %9725 = vst [vmem:[#allocation42_spill] sm:$0xff] %v5393_v56  ;;  %995 = vmatpush.msrb.mxu3 %v5411_v0  ;;  %v5417_v56 = vld [vmem:[%s8950_s2 + $0x168] sm:$0xff] }
 0x1be   :  { %9726 = vst [vmem:[#allocation43_spill] sm:$0xff] %v5399_v61  ;;  %964 = vmatpush.msrb.mxu2 %v5417_v56  ;;  %v5423_v61 = vld [vmem:[%s8950_s2 + $0x3f0] sm:$0xff] }
 0x1bf   :  { %9727 = vst [vmem:[#allocation44_spill] sm:$0xff] %v5405_v11  ;;  %1020 = vmatpush.msra.mxu1 %v5423_v61  ;;  %v5429_v11 = vld [vmem:[%s8950_s2 + $0x3f8] sm:$0xff] }
 0x1c0   :  { %9728 = vst [vmem:[#allocation45_spill] sm:$0xff] %v5411_v0  ;;  %1060 = vmatpush.msra.mxu3 %v5429_v11  ;;  %v5435_v0 = vld [vmem:[%s8950_s2 + $0x140] sm:$0xff] }
 0x1c1   :  { %9729 = vst [vmem:[#allocation46_spill] sm:$0xff] %v5417_v56  ;;  %925 = vmatpush.msrb.mxu0 %v5435_v0  ;;  %v5441_v56 = vld [vmem:[%s8950_s2 + $0x148] sm:$0xff] }
 0x1c2   :  { %9730 = vst [vmem:[#allocation47_spill] sm:$0xff] %v5423_v61  ;;  %965 = vmatpush.msrb.mxu2 %v5441_v56  ;;  %v5447_v61 = vld [vmem:[%s8950_s2 + $0x3d0] sm:$0xff] }
 0x1c3   :  { %9731 = vst [vmem:[#allocation48_spill] sm:$0xff] %v5429_v11  ;;  %1021 = vmatpush.msra.mxu1 %v5447_v61  ;;  %v5453_v11 = vld [vmem:[%s8950_s2 + $0x3d8] sm:$0xff] }
 0x1c4   :  { %9732 = vst [vmem:[#allocation49_spill] sm:$0xff] %v5435_v0  ;;  %1061 = vmatpush.msra.mxu3 %v5453_v11  ;;  %v5459_v0 = vld [vmem:[%s8950_s2 + $0x120] sm:$0xff] }
 0x1c5   :  { %9733 = vst [vmem:[#allocation50_spill] sm:$0xff] %v5441_v56  ;;  %926 = vmatpush.msrb.mxu0 %v5459_v0  ;;  %v5465_v56 = vld [vmem:[%s8950_s2 + $0x128] sm:$0xff] }
 0x1c6   :  { %9734 = vst [vmem:[#allocation51_spill] sm:$0xff] %v5447_v61  ;;  %966 = vmatpush.msrb.mxu2 %v5465_v56  ;;  %v5471_v61 = vld [vmem:[%s8950_s2 + $0x3b0] sm:$0xff] }
 0x1c7   :  { %9735 = vst [vmem:[#allocation52_spill] sm:$0xff] %v5453_v11  ;;  %1022 = vmatpush.msra.mxu1 %v5471_v61  ;;  %v5477_v11 = vld [vmem:[%s8950_s2 + $0x3b8] sm:$0xff] }
 0x1c8   :  { %9736 = vst [vmem:[#allocation53_spill] sm:$0xff] %v5459_v0  ;;  %1062 = vmatpush.msra.mxu3 %v5477_v11  ;;  %v5483_v0 = vld [vmem:[%s8950_s2 + $0x100] sm:$0xff] }
 0x1c9   :  { %9737 = vst [vmem:[#allocation54_spill] sm:$0xff] %v5465_v56  ;;  %927 = vmatpush.msrb.mxu0 %v5483_v0  ;;  %v5489_v56 = vld [vmem:[%s8950_s2 + $0x108] sm:$0xff] }
 0x1ca   :  { %9738 = vst [vmem:[#allocation55_spill] sm:$0xff] %v5471_v61  ;;  %967 = vmatpush.msrb.mxu2 %v5489_v56  ;;  %v5495_v61 = vld [vmem:[%s8950_s2 + $0x390] sm:$0xff] }
 0x1cb   :  { %9739 = vst [vmem:[#allocation57_spill] sm:$0xff] %v5477_v11  ;;  %1023 = vmatpush.msra.mxu1 %v5495_v61  ;;  %v5501_v11 = vld [vmem:[%s8950_s2 + $0x398] sm:$0xff] }
 0x1cc   :  { %9740 = vst [vmem:[#allocation58_spill] sm:$0xff] %v5483_v0  ;;  %1063 = vmatpush.msra.mxu3 %v5501_v11  ;;  %v5507_v0 = vld [vmem:[%s8950_s2 + $0xe0] sm:$0xff] }
 0x1cd   :  { %9741 = vst [vmem:[#allocation61_spill] sm:$0xff] %v5489_v56  ;;  %928 = vmatpush.msrb.mxu0 %v5507_v0  ;;  %v5513_v56 = vld [vmem:[%s8950_s2 + $0xe8] sm:$0xff] }
 0x1ce   :  { %9742 = vst [vmem:[#allocation62_spill] sm:$0xff] %v5495_v61  ;;  %968 = vmatpush.msrb.mxu2 %v5513_v56  ;;  %v5519_v61 = vld [vmem:[%s8950_s2 + $0x370] sm:$0xff] }
 0x1cf   :  { %9743 = vst [vmem:[#allocation65_spill] sm:$0xff] %v5501_v11  ;;  %1024 = vmatpush.msra.mxu1 %v5519_v61  ;;  %v5525_v11 = vld [vmem:[%s8950_s2 + $0x378] sm:$0xff] }
 0x1d0   :  { %9744 = vst [vmem:[#allocation66_spill] sm:$0xff] %v5507_v0  ;;  %1064 = vmatpush.msra.mxu3 %v5525_v11  ;;  %v5531_v0 = vld [vmem:[%s8950_s2 + $0xc0] sm:$0xff] }
 0x1d1   :  { %9745 = vst [vmem:[#allocation69_spill] sm:$0xff] %v5513_v56  ;;  %929 = vmatpush.msrb.mxu0 %v5531_v0  ;;  %v5537_v56 = vld [vmem:[%s8950_s2 + $0xc8] sm:$0xff] }
 0x1d2   :  { %9746 = vst [vmem:[#allocation70_spill] sm:$0xff] %v5519_v61  ;;  %969 = vmatpush.msrb.mxu2 %v5537_v56  ;;  %v5543_v61 = vld [vmem:[%s8950_s2 + $0x350] sm:$0xff] }
 0x1d3   :  { %9747 = vst [vmem:[#allocation73_spill] sm:$0xff] %v5525_v11  ;;  %1025 = vmatpush.msra.mxu1 %v5543_v61  ;;  %v5549_v11 = vld [vmem:[%s8950_s2 + $0x358] sm:$0xff] }
 0x1d4   :  { %9748 = vst [vmem:[#allocation75_spill] sm:$0xff] %v5531_v0  ;;  %1065 = vmatpush.msra.mxu3 %v5549_v11  ;;  %v5555_v0 = vld [vmem:[%s8950_s2 + $0xa0] sm:$0xff] }
 0x1d5   :  { %9749 = vst [vmem:[#allocation76_spill] sm:$0xff] %v5537_v56  ;;  %930 = vmatpush.msrb.mxu0 %v5555_v0  ;;  %v5561_v56 = vld [vmem:[%s8950_s2 + $0xa8] sm:$0xff] }
 0x1d6   :  { %9750 = vst [vmem:[#allocation78_spill] sm:$0xff] %v5543_v61  ;;  %970 = vmatpush.msrb.mxu2 %v5561_v56  ;;  %v5567_v61 = vld [vmem:[%s8950_s2 + $0x330] sm:$0xff] }
 0x1d7   :  { %9751 = vst [vmem:[#allocation80_spill] sm:$0xff] %v5549_v11  ;;  %1026 = vmatpush.msra.mxu1 %v5567_v61  ;;  %v5573_v11 = vld [vmem:[%s8950_s2 + $0x338] sm:$0xff] }
 0x1d8   :  { %9752 = vst [vmem:[#allocation82_spill] sm:$0xff] %v5555_v0  ;;  %1066 = vmatpush.msra.mxu3 %v5573_v11  ;;  %v5579_v0 = vld [vmem:[%s8950_s2 + $0x80] sm:$0xff] }
 0x1d9   :  { %9753 = vst [vmem:[#allocation85_spill] sm:$0xff] %v5561_v56  ;;  %931 = vmatpush.msrb.mxu0 %v5579_v0  ;;  %v5585_v56 = vld [vmem:[%s8950_s2 + $0x88] sm:$0xff] }
 0x1da   :  { %9754 = vst [vmem:[#allocation87_spill] sm:$0xff] %v5567_v61  ;;  %971 = vmatpush.msrb.mxu2 %v5585_v56  ;;  %v5591_v61 = vld [vmem:[%s8950_s2 + $0x310] sm:$0xff] }
 0x1db   :  { %9755 = vst [vmem:[#allocation105_spill] sm:$0xff] %v5573_v11  ;;  %1027 = vmatpush.msra.mxu1 %v5591_v61  ;;  %v5597_v11 = vld [vmem:[%s8950_s2 + $0x318] sm:$0xff] }
 0x1dc   :  { %9756 = vst [vmem:[#allocation106_spill] sm:$0xff] %v5579_v0  ;;  %1067 = vmatpush.msra.mxu3 %v5597_v11  ;;  %v5603_v0 = vld [vmem:[%s8950_s2 + $0x60] sm:$0xff] }
 0x1dd   :  { %9757 = vst [vmem:[#allocation107_spill] sm:$0xff] %v5585_v56  ;;  %932 = vmatpush.msrb.mxu0 %v5603_v0  ;;  %v5609_v56 = vld [vmem:[%s8950_s2 + $0x68] sm:$0xff] }
 0x1de   :  { %9758 = vst [vmem:[#allocation108_spill] sm:$0xff] %v5591_v61  ;;  %972 = vmatpush.msrb.mxu2 %v5609_v56  ;;  %v5615_v61 = vld [vmem:[%s8950_s2 + $0x2f0] sm:$0xff] }
 0x1df   :  { %9759 = vst [vmem:[#allocation109_spill] sm:$0xff] %v5597_v11  ;;  %1028 = vmatpush.msra.mxu1 %v5615_v61  ;;  %v5621_v11 = vld [vmem:[%s8950_s2 + $0x2f8] sm:$0xff] }
 0x1e0   :  { %9760 = vst [vmem:[#allocation110_spill] sm:$0xff] %v5603_v0  ;;  %1068 = vmatpush.msra.mxu3 %v5621_v11  ;;  %v5627_v0 = vld [vmem:[%s8950_s2 + $0x40] sm:$0xff] }
 0x1e1   :  { %9761 = vst [vmem:[#allocation111_spill] sm:$0xff] %v5609_v56  ;;  %933 = vmatpush.msrb.mxu0 %v5627_v0  ;;  %v5633_v56 = vld [vmem:[%s8950_s2 + $0x48] sm:$0xff] }
 0x1e2   :  { %9762 = vst [vmem:[#allocation112_spill] sm:$0xff] %v5615_v61  ;;  %973 = vmatpush.msrb.mxu2 %v5633_v56  ;;  %v5639_v61 = vld [vmem:[%s8950_s2 + $0x2d0] sm:$0xff] }
 0x1e3   :  { %9763 = vst [vmem:[#allocation113_spill] sm:$0xff] %v5621_v11  ;;  %1029 = vmatpush.msra.mxu1 %v5639_v61  ;;  %v5645_v11 = vld [vmem:[%s8950_s2 + $0x2d8] sm:$0xff] }
 0x1e4   :  { %9764 = vst [vmem:[#allocation114_spill] sm:$0xff] %v5627_v0  ;;  %1069 = vmatpush.msra.mxu3 %v5645_v11  ;;  %v5651_v0 = vld [vmem:[%s8950_s2 + $0x20] sm:$0xff] }
 0x1e5   :  { %9765 = vst [vmem:[#allocation115_spill] sm:$0xff] %v5633_v56  ;;  %934 = vmatpush.msrb.mxu0 %v5651_v0  ;;  %v5657_v56 = vld [vmem:[%s8950_s2 + $0x28] sm:$0xff] }
 0x1e6   :  { %9766 = vst [vmem:[#allocation116_spill] sm:$0xff] %v5639_v61  ;;  %974 = vmatpush.msrb.mxu2 %v5657_v56  ;;  %v5663_v61 = vld [vmem:[%s8950_s2 + $0x2b0] sm:$0xff] }
 0x1e7   :  { %9767 = vst [vmem:[#allocation117_spill] sm:$0xff] %v5645_v11  ;;  %1030 = vmatpush.msra.mxu1 %v5663_v61  ;;  %v5669_v11 = vld [vmem:[%s8950_s2 + $0x2b8] sm:$0xff] }
 0x1e8   :  { %9768 = vst [vmem:[#allocation118_spill] sm:$0xff] %v5651_v0  ;;  %1070 = vmatpush.msra.mxu3 %v5669_v11  ;;  %v5675_v0 = vld [vmem:[%s8950_s2] sm:$0xff] }
 0x1e9   :  { %9769 = vst [vmem:[#allocation119_spill] sm:$0xff] %v5657_v56  ;;  %935 = vmatpush.msrb.mxu0 %v5675_v0  ;;  %v5681_v56 = vld [vmem:[%s8950_s2 + $0x8] sm:$0xff] }
 0x1ea   :  { %9770 = vst [vmem:[#allocation120_spill] sm:$0xff] %v5663_v61  ;;  %975 = vmatpush.msrb.mxu2 %v5681_v56  ;;  %v5687_v61 = vld [vmem:[%s8950_s2 + $0x290] sm:$0xff] }
 0x1eb   :  { %9771 = vst [vmem:[#allocation121_spill] sm:$0xff] %v5669_v11  ;;  %1031 = vmatpush.msra.mxu1 %v5687_v61  ;;  %v5693_v11 = vld [vmem:[%s8950_s2 + $0x298] sm:$0xff] }
 0x1ec   :  { %9772 = vst [vmem:[#allocation122_spill] sm:$0xff] %v5675_v0  ;;  %1071 = vmatpush.msra.mxu3 %v5693_v11  ;;  %v5699_v0 = vld [vmem:[%s8950_s2 + $0x1f0] sm:$0xff] }
 0x1ed   :  { %9773 = vst [vmem:[#allocation123_spill] sm:$0xff] %v5681_v56  ;;  %1000 = vmatpush.msra.mxu0 %v5699_v0  ;;  %v5705_v56 = vld [vmem:[%s8950_s2 + $0x1f8] sm:$0xff] }
 0x1ee   :  { %9774 = vst [vmem:[#allocation124_spill] sm:$0xff] %v5687_v61  ;;  %1040 = vmatpush.msra.mxu2 %v5705_v56  ;;  %v5711_v61 = vld [vmem:[%s8950_s2 + $0x270] sm:$0xff] }
 0x1ef   :  { %9775 = vst [vmem:[#allocation125_spill] sm:$0xff] %v5693_v11  ;;  %1032 = vmatpush.msra.mxu1 %v5711_v61  ;;  %v5717_v11 = vld [vmem:[%s8950_s2 + $0x278] sm:$0xff] }
 0x1f0   :  { %9776 = vst [vmem:[#allocation126_spill] sm:$0xff] %v5699_v0  ;;  %1072 = vmatpush.msra.mxu3 %v5717_v11  ;;  %v5723_v0 = vld [vmem:[%s8950_s2 + $0x1d0] sm:$0xff] }
 0x1f1   :  { %9777 = vst [vmem:[#allocation127_spill] sm:$0xff] %v5705_v56  ;;  %1001 = vmatpush.msra.mxu0 %v5723_v0  ;;  %v5729_v56 = vld [vmem:[%s8950_s2 + $0x1d8] sm:$0xff] }
 0x1f2   :  { %9778 = vst [vmem:[#allocation128_spill] sm:$0xff] %v5711_v61  ;;  %1041 = vmatpush.msra.mxu2 %v5729_v56  ;;  %v5735_v61 = vld [vmem:[%s8950_s2 + $0x250] sm:$0xff] }
 0x1f3   :  { %9779 = vst [vmem:[#allocation129_spill] sm:$0xff] %v5717_v11  ;;  %1033 = vmatpush.msra.mxu1 %v5735_v61  ;;  %v5741_v11 = vld [vmem:[%s8950_s2 + $0x258] sm:$0xff] }
 0x1f4   :  { %9780 = vst [vmem:[#allocation130_spill] sm:$0xff] %v5723_v0  ;;  %1073 = vmatpush.msra.mxu3 %v5741_v11  ;;  %v5747_v0 = vld [vmem:[%s8950_s2 + $0x1b0] sm:$0xff] }
 0x1f5   :  { %9781 = vst [vmem:[#allocation131_spill] sm:$0xff] %v5729_v56  ;;  %1002 = vmatpush.msra.mxu0 %v5747_v0  ;;  %v5753_v56 = vld [vmem:[%s8950_s2 + $0x1b8] sm:$0xff] }
 0x1f6   :  { %9782 = vst [vmem:[#allocation132_spill] sm:$0xff] %v5735_v61  ;;  %1042 = vmatpush.msra.mxu2 %v5753_v56  ;;  %v5759_v61 = vld [vmem:[%s8950_s2 + $0x230] sm:$0xff] }
 0x1f7   :  { %9783 = vst [vmem:[#allocation133_spill] sm:$0xff] %v5741_v11  ;;  %1034 = vmatpush.msra.mxu1 %v5759_v61  ;;  %v5765_v11 = vld [vmem:[%s8950_s2 + $0x238] sm:$0xff] }
 0x1f8   :  { %9784 = vst [vmem:[#allocation134_spill] sm:$0xff] %v5747_v0  ;;  %1074 = vmatpush.msra.mxu3 %v5765_v11  ;;  %v5771_v0 = vld [vmem:[%s8950_s2 + $0x190] sm:$0xff] }
 0x1f9   :  { %9785 = vst [vmem:[#allocation135_spill] sm:$0xff] %v5753_v56  ;;  %1003 = vmatpush.msra.mxu0 %v5771_v0  ;;  %v5777_v56 = vld [vmem:[%s8950_s2 + $0x198] sm:$0xff] }
 0x1fa   :  { %9786 = vst [vmem:[#allocation136_spill] sm:$0xff] %v5759_v61  ;;  %1043 = vmatpush.msra.mxu2 %v5777_v56  ;;  %v5783_v61 = vld [vmem:[%s8950_s2 + $0x210] sm:$0xff] }
 0x1fb   :  { %9787 = vst [vmem:[#allocation137_spill] sm:$0xff] %v5765_v11  ;;  %1035 = vmatpush.msra.mxu1 %v5783_v61  ;;  %v5789_v11 = vld [vmem:[%s8950_s2 + $0x218] sm:$0xff] }
 0x1fc   :  { %9788 = vst [vmem:[#allocation138_spill] sm:$0xff] %v5771_v0  ;;  %1075 = vmatpush.msra.mxu3 %v5789_v11  ;;  %v5795_v0 = vld [vmem:[%s8950_s2 + $0x170] sm:$0xff] }
 0x1fd   :  { %9789 = vst [vmem:[#allocation139_spill] sm:$0xff] %v5777_v56  ;;  %1004 = vmatpush.msra.mxu0 %v5795_v0  ;;  %v5801_v56 = vld [vmem:[%s8950_s2 + $0x178] sm:$0xff] }
 0x1fe   :  { %1044 = vmatpush.msra.mxu2 %v5801_v56 }
 0x1ff   :  { %1005 = vmatpush.msra.mxu0 %v4428_v18  ;;  %v644_v18 = vpop.f32.mrf.mxu0 }
 0x200   :  { %1045 = vmatpush.msra.mxu2 %v4433_v20  ;;  %v664_v20 = vpop.f32.mrf.mxu1 }
 0x201   :  { %1006 = vmatpush.msra.mxu0 %v4442_v22  ;;  %v645_v22 = vadd.f32 %v644_v18, %v4743_v4 }
 0x202   :  { %1046 = vmatpush.msra.mxu2 %v4447_v24 }
 0x203   :  { %1007 = vmatpush.msra.mxu0 %v4456_v26  ;;  %v665_v24 = vadd.f32 %v664_v20, %v645_v22 }
 0x204   :  { %1047 = vmatpush.msra.mxu2 %v4461_v28  ;;  %v684_v28 = vpop.f32.mrf.mxu2 }
 0x205   :  { %1008 = vmatpush.msra.mxu0 %v4470_v30  ;;  %v788_v26 = vmul.f32 0.5, %v665_v24  ;;  %v704_v30 = vpop.f32.mrf.mxu3 }
 0x206   :  { %1048 = vmatpush.msra.mxu2 %v4475_v32  ;;  %v685_v32 = vadd.f32 %v684_v28, %v4746_v14 }
 0x207   :  { %1009 = vmatpush.msra.mxu0 %v4484_v34  ;;  %2631 = vtanh.f32 %v788_v26  ;;  %v2577_v26 = vld [vmem:[%s8951_s0 + $0x48] sm:$0xff] }
 0x208   :  { %1049 = vmatpush.msra.mxu2 %v4489_v36  ;;  %v705_v34 = vadd.f32 %v704_v30, %v685_v32  ;;  %v724_v36 = vpop.f32.mrf.mxu0 }
 0x209   :  { %1010 = vmatpush.msra.mxu0 %v4498_v38  ;;  %v725_v38 = vadd.f32 %v724_v36, %v4748_v59 }
 0x20a   :  { %1050 = vmatpush.msra.mxu2 %v4503_v39  ;;  %v744_v39 = vpop.f32.mrf.mxu1 }
 0x20b   :  { %1011 = vmatpush.msra.mxu0 %v4512_v37  ;;  %v792_v37 = vmul.f32 0.5, %v705_v34 }
 0x20c   :  { %1051 = vmatpush.msra.mxu2 %v4517_v40  ;;  %v745_v40 = vadd.f32 %v744_v39, %v725_v38 }
 0x20d   :  { %1012 = vmatpush.msra.mxu0 %v4526_v33  ;;  %2633 = vtanh.f32 %v792_v37  ;;  %v2632_v33 = vpop.eup %2631 }
 0x20e   :  { %1052 = vmatpush.msra.mxu2 %v4531_v35  ;;  %2635 = vtanh.f32 %v745_v40  ;;  %v764_v35 = vpop.f32.mrf.mxu2  ;;  %v2576_v40 = vld [vmem:[%s8951_s0 + $0x40] sm:$0xff] }
 0x20f   :  { %1013 = vmatpush.msra.mxu0 %v4540_v29  ;;  %v765_v29 = vadd.f32 %v764_v35, %v4752_v42 }
 0x210   :  { %1053 = vmatpush.msra.mxu2 %v4545_v31  ;;  %v784_v31 = vpop.f32.mrf.mxu3 }
 0x211   :  { %1014 = vmatpush.msra.mxu0 %v4554_v25  ;;  %v790_v25 = vmul.f32 0.5, %v2632_v33 }
 0x212   :  { %1054 = vmatpush.msra.mxu2 %v4559_v27  ;;  %v785_v27 = vadd.f32 %v784_v31, %v765_v29  ;;  %v851_v28 = vpop.f32.mrf.mxu1 }
 0x213   :  { %1015 = vmatpush.msra.mxu0 %v4568_v21  ;;  %v2634_v21 = vpop.eup %2633  ;;  %v791_v22 = vadd.f32 0.5, %v790_v25  ;;  %v895_v34 = vadd.f32 %v2577_v26, %v851_v28 }
 0x214   :  { %1055 = vmatpush.msra.mxu2 %v4573_v23  ;;  %v794_v23 = vmul.f32 0.5, %v2634_v21  ;;  %v797_v18 = vmul.f32 0.5, %v785_v27  ;;  %v2636_v20 = vpop.eup %2635 }
 0x215   :  { %v802_v32 = vmul.f32 %v2636_v20, %v791_v22  ;;  %v903_v39 = vmul.f32 0.5, %v895_v34  ;;  %v9811_v34 = vld [vmem:[#allocation13_spill] sm:$0xff] }
 0x216   :  { %v795_v24 = vadd.f32 0.5, %v794_v23  ;;  %2637 = vtanh.f32 %v797_v18  ;;  %v2578_v18 = vld [vmem:[%s8951_s0 + $0x50] sm:$0xff] }
 0x218   :  { %v801_v30 = vmul.f32 %v795_v24, %v4758_v55  ;;  %v2579_v55 = vld [vmem:[%s8951_s0 + $0x58] sm:$0xff]  ;;  %v891_v25 = vpop.f32.mrf.mxu3 }
 0x219   :  { %v897_v23 = vadd.f32 %v2579_v55, %v891_v25  ;;  %v9820_v55 = vld [vmem:[#allocation89_spill] sm:$0xff]  ;;  %v9821_v25 = vld [vmem:[#allocation20_spill] sm:$0xff] }
 0x21a   :  { %v5834_v36 = vadd.f32 %v802_v32, %v801_v30  ;;  %v9810_v32 = vld [vmem:[#allocation81_spill] sm:$0xff] }
 0x21b   :  { %v908_v28 = vmul.f32 0.5, %v897_v23  ;;  %v9824_v23 = vld [vmem:[#allocation91_spill] sm:$0xff] }
 0x21c   :  { %v2638_v38 = vpop.eup %2637  ;;  %2639 = vtanh.f32 %v5834_v36 }
 0x21d   :  { %v799_v37 = vmul.f32 0.5, %v2638_v38  ;;  %2641 = vtanh.f32 %v903_v39  ;;  %v9812_v38 = vld [vmem:[#allocation14_spill] sm:$0xff]  ;;  %v9813_v39 = vld [vmem:[#allocation15_spill] sm:$0xff] }
 0x21f   :  { %v800_v33 = vadd.f32 0.5, %v799_v37  ;;  %v9814_v37 = vld [vmem:[#allocation16_spill] sm:$0xff] }
 0x222   :  { %v2640_v29 = vpop.eup %2639 }
 0x223   :  { %v805_v27 = vmul.f32 %v2640_v29, %v800_v33  ;;  %v2642_v20 = vpop.eup %2641  ;;  %v9816_v33 = vld [vmem:[#allocation17_spill] sm:$0xff]  ;;  %v9818_v29 = vld [vmem:[#allocation86_spill] sm:$0xff] }
 0x224   :  { %v905_v26 = vmul.f32 0.5, %v2642_v20  ;;  %v9826_v20 = vld [vmem:[#allocation90_spill] sm:$0xff] }
 0x225   :  { %956 = vmatmul.f32.vlgmr.msrb.gmra.mxu1 %v805_v27  ;;  %996 = vmatmul.f32.vlgmr.msrb.gmra.mxu3 %v805_v27 }
 0x226   :  { %v831_v35 = vpop.f32.mrf.mxu0  ;;  %1127 = vmatpush.msrb.mxu1 %v4773_v63  ;;  %1167 = vmatpush.msrb.mxu3 %v4779_v5  ;;  %v906_v5 = vadd.f32 0.5, %v905_v26  ;;  %v9829_v26 = vld [vmem:[#allocation24_spill] sm:$0xff] }
 0x227   :  { %v894_v31 = vadd.f32 %v2576_v40, %v831_v35  ;;  %v9815_v40 = vld [vmem:[#allocation84_spill] sm:$0xff]  ;;  %v9817_v35 = vld [vmem:[#allocation18_spill] sm:$0xff] }
 0x228   :  { %1128 = vmatpush.msrb.mxu1 %v4785_v15  ;;  %1168 = vmatpush.msrb.mxu3 %v4791_v13 }
 0x229   :  { %v899_v21 = vmul.f32 0.5, %v894_v31  ;;  %v9819_v31 = vld [vmem:[#allocation19_spill] sm:$0xff] }
 0x22a   :  { %1129 = vmatpush.msrb.mxu1 %v4797_v8  ;;  %1169 = vmatpush.msrb.mxu3 %v4803_v3  ;;  %v912_v8 = vmul.f32 %v906_v5, %v4855_v7  ;;  %v9792_v7 = vld [vmem:[#allocation64_spill] sm:$0xff]  ;;  %v9833_v5 = vld [vmem:[#allocation26_spill] sm:$0xff] }
 0x22b   :  { %2643 = vtanh.f32 %v899_v21  ;;  %v9823_v21 = vld [vmem:[#allocation21_spill] sm:$0xff] }
 0x22c   :  { %1130 = vmatpush.msrb.mxu1 %v4809_v45  ;;  %1170 = vmatpush.msrb.mxu3 %v4815_v46 }
 0x22d   :  { %1036 = vmatmul.f32.vlgmr.msra.gmra.mxu1 %v805_v27  ;;  %1076 = vmatmul.f32.vlgmr.msra.gmra.mxu3 %v805_v27  ;;  %v9822_v27 = vld [vmem:[#allocation88_spill] sm:$0xff] }
 0x22e   :  { %v871_v22 = vpop.f32.mrf.mxu2  ;;  %1131 = vmatpush.msrb.mxu1 %v4821_v50  ;;  %1171 = vmatpush.msrb.mxu3 %v4827_v51 }
 0x22f   :  { %v896_v24 = vadd.f32 %v2578_v18, %v871_v22  ;;  %v9825_v18 = vld [vmem:[#allocation22_spill] sm:$0xff]  ;;  %v9827_v22 = vld [vmem:[#allocation23_spill] sm:$0xff] }
 0x230   :  { %1132 = vmatpush.msrb.mxu1 %v4833_v6  ;;  %1172 = vmatpush.msrb.mxu3 %v4839_v53 }
 0x231   :  { %2645 = vtanh.f32 %v896_v24  ;;  %v2644_v30 = vpop.eup %2643  ;;  %v9828_v24 = vld [vmem:[#allocation93_spill] sm:$0xff] }
 0x232   :  { %v901_v63 = vmul.f32 0.5, %v2644_v30  ;;  %2647 = vtanh.f32 %v908_v28  ;;  %1133 = vmatpush.msrb.mxu1 %v4846_v57  ;;  %1173 = vmatpush.msrb.mxu3 %v4852_v58  ;;  %v9790_v57 = vld [vmem:[#allocation56_spill] sm:$0xff]  ;;  %v9791_v58 = vld [vmem:[#allocation63_spill] sm:$0xff]  ;;  %v9831_v30 = vld [vmem:[#allocation25_spill] sm:$0xff] }
 0x233   :  { %v9830_v28 = vld [vmem:[#allocation92_spill] sm:$0xff] }
 0x234   :  { %v902_v15 = vadd.f32 0.5, %v901_v63  ;;  %1134 = vmatpush.msrb.mxu1 %v4860_v49  ;;  %1174 = vmatpush.msrb.mxu3 %v4866_v9  ;;  %v9793_v49 = vld [vmem:[#allocation59_spill] sm:$0xff]  ;;  %v9794_v9 = vld [vmem:[#allocation60_spill] sm:$0xff] }
 0x235   :  { %v9832_v63 = vld [vmem:[#allocation95_spill] sm:$0xff] }
 0x236   :  { %1135 = vmatpush.msrb.mxu1 %v4873_v12  ;;  %1175 = vmatpush.msrb.mxu3 %v4879_v16  ;;  %v9795_v12 = vld [vmem:[#allocation71_spill] sm:$0xff]  ;;  %v9796_v16 = vld [vmem:[#allocation72_spill] sm:$0xff] }
 0x237   :  { %v2646_v13 = vpop.eup %2645 }
 0x238   :  { %v913_v3 = vmul.f32 %v2646_v13, %v902_v15  ;;  %v2648_v45 = vpop.eup %2647  ;;  %1136 = vmatpush.msrb.mxu1 %v4885_v60  ;;  %1176 = vmatpush.msrb.mxu3 %v4891_v2  ;;  %v9797_v60 = vld [vmem:[#allocation67_spill] sm:$0xff]  ;;  %v9798_v2 = vld [vmem:[#allocation68_spill] sm:$0xff]  ;;  %v9834_v15 = vld [vmem:[#allocation94_spill] sm:$0xff] }
 0x239   :  { %v910_v50 = vmul.f32 0.5, %v2648_v45  ;;  %v9835_v13 = vld [vmem:[#allocation27_spill] sm:$0xff]  ;;  %v9838_v45 = vld [vmem:[#allocation96_spill] sm:$0xff] }
 0x23a   :  { %v5861_v46 = vadd.f32 %v913_v3, %v912_v8  ;;  %1137 = vmatpush.msrb.mxu1 %v4897_v62  ;;  %1177 = vmatpush.msrb.mxu3 %v4903_v54  ;;  %v9799_v62 = vld [vmem:[#allocation79_spill] sm:$0xff]  ;;  %v9800_v54 = vld [vmem:[#allocation6_spill] sm:$0xff]  ;;  %v9836_v8 = vld [vmem:[#allocation97_spill] sm:$0xff] }
 0x23b   :  { %v911_v51 = vadd.f32 0.5, %v910_v50  ;;  %v9837_v3 = vld [vmem:[#allocation28_spill] sm:$0xff]  ;;  %v9839_v50 = vld [vmem:[#allocation29_spill] sm:$0xff] }
 0x23c   :  { %2649 = vtanh.f32 %v5861_v46  ;;  %1138 = vmatpush.msrb.mxu1 %v4911_v10  ;;  %1178 = vmatpush.msrb.mxu3 %v4917_v43  ;;  %v9801_v10 = vld [vmem:[#allocation7_spill] sm:$0xff]  ;;  %v9802_v43 = vld [vmem:[#allocation8_spill] sm:$0xff] }
 0x23e   :  { %1139 = vmatpush.msrb.mxu1 %v4937_v47  ;;  %1179 = vmatpush.msrb.mxu3 %v4943_v48  ;;  %v9805_v47 = vld [vmem:[#allocation10_spill] sm:$0xff]  ;;  %v9806_v48 = vld [vmem:[#allocation77_spill] sm:$0xff] }
 0x240   :  { %1140 = vmatpush.msrb.mxu1 %v4961_v17  ;;  %1180 = vmatpush.msrb.mxu3 %v4967_v1  ;;  %v9808_v17 = vld [vmem:[#allocation83_spill] sm:$0xff]  ;;  %v9809_v1 = vld [vmem:[#allocation12_spill] sm:$0xff] }
 0x242   :  { %v2650_v6 = vpop.eup %2649  ;;  %1141 = vmatpush.msrb.mxu1 %v9791_v58  ;;  %1181 = vmatpush.msrb.mxu3 %v9792_v7  ;;  %v9843_v58 = vld [vmem:[#allocation31_spill] sm:$0xff]  ;;  %v9844_v7 = vld [vmem:[#allocation101_spill] sm:$0xff] }
 0x243   :  { %v5874_v53 = vmul.f32 %v2650_v6, %v911_v51  ;;  %v9840_v51 = vld [vmem:[#allocation99_spill] sm:$0xff]  ;;  %v9841_v6 = vld [vmem:[#allocation30_spill] sm:$0xff] }
 0x244   :  { %1142 = vmatpush.msrb.mxu1 %v9795_v12  ;;  %1182 = vmatpush.msrb.mxu3 %v9796_v16  ;;  %v9847_v12 = vld [vmem:[#allocation33_spill] sm:$0xff]  ;;  %v9849_v16 = vld [vmem:[#allocation34_spill] sm:$0xff] }
 0x245   :  { %936 = vmatmul.f32.vlgmr.msrb.gmra.mxu0 %v5874_v53  ;;  %976 = vmatmul.f32.vlgmr.msrb.gmra.mxu2 %v5874_v53 }
 0x246   :  { %1107 = vmatpush.msrb.mxu0 %v4925_v19  ;;  %1147 = vmatpush.msrb.mxu2 %v4931_v44  ;;  %v9803_v19 = vld [vmem:[#allocation74_spill] sm:$0xff]  ;;  %v9804_v44 = vld [vmem:[#allocation9_spill] sm:$0xff] }
 0x247   :  { %1143 = vmatmul.f32.vlgmr.msrb.gmra.mxu1 %v5874_v53  ;;  %1183 = vmatmul.f32.vlgmr.msrb.gmra.mxu3 %v5874_v53 }
 0x248   :  { %1108 = vmatpush.msrb.mxu0 %v4949_v52  ;;  %1148 = vmatpush.msrb.mxu2 %v9790_v57  ;;  %v9807_v52 = vld [vmem:[#allocation11_spill] sm:$0xff]  ;;  %v9842_v57 = vld [vmem:[#allocation98_spill] sm:$0xff] }
 0x249   :  { %1233 = vmatpush.msra.mxu1 %v9802_v43  ;;  %1273 = vmatpush.msra.mxu3 %v9804_v44  ;;  %v9856_v43 = vld [vmem:[#allocation39_spill] sm:$0xff]  ;;  %v9858_v44 = vld [vmem:[#allocation41_spill] sm:$0xff] }
 0x24a   :  { %1109 = vmatpush.msrb.mxu0 %v9793_v49  ;;  %1149 = vmatpush.msrb.mxu2 %v9794_v9  ;;  %v9845_v49 = vld [vmem:[#allocation32_spill] sm:$0xff] }
 0x24b   :  { %1234 = vmatpush.msra.mxu1 %v9806_v48  ;;  %1274 = vmatpush.msra.mxu3 %v9808_v17  ;;  %v9846_v9 = vld [vmem:[#allocation100_spill] sm:$0xff]  ;;  %v9860_v48 = vld [vmem:[#allocation43_spill] sm:$0xff]  ;;  %v9862_v17 = vld [vmem:[#allocation45_spill] sm:$0xff] }
 0x24c   :  { %1110 = vmatpush.msrb.mxu0 %v9797_v60  ;;  %1150 = vmatpush.msrb.mxu2 %v9798_v2  ;;  %v9850_v60 = vld [vmem:[#allocation102_spill] sm:$0xff]  ;;  %v9851_v2 = vld [vmem:[#allocation35_spill] sm:$0xff] }
 0x24d   :  { %1016 = vmatmul.f32.vlgmr.msra.gmra.mxu0 %v5874_v53  ;;  %1056 = vmatmul.f32.vlgmr.msra.gmra.mxu2 %v5874_v53 }
 0x24e   :  { %1111 = vmatpush.msrb.mxu0 %v9799_v62  ;;  %1151 = vmatpush.msrb.mxu2 %v9800_v54  ;;  %v9852_v62 = vld [vmem:[#allocation36_spill] sm:$0xff]  ;;  %v9854_v54 = vld [vmem:[#allocation37_spill] sm:$0xff] }
 0x24f   :  { %1235 = vmatpush.msra.mxu1 %v9810_v32  ;;  %1275 = vmatpush.msra.mxu3 %v9812_v38  ;;  %v9864_v32 = vld [vmem:[#allocation47_spill] sm:$0xff]  ;;  %v9866_v38 = vld [vmem:[#allocation49_spill] sm:$0xff] }
 0x250   :  { %1112 = vmatpush.msrb.mxu0 %v9801_v10  ;;  %1152 = vmatpush.msrb.mxu2 %v9803_v19  ;;  %v9855_v10 = vld [vmem:[#allocation38_spill] sm:$0xff]  ;;  %v9857_v19 = vld [vmem:[#allocation40_spill] sm:$0xff] }
 0x251   :  { %1236 = vmatpush.msra.mxu1 %v9814_v37  ;;  %1276 = vmatpush.msra.mxu3 %v9816_v33  ;;  %v9868_v37 = vld [vmem:[#allocation51_spill] sm:$0xff]  ;;  %v9870_v33 = vld [vmem:[#allocation53_spill] sm:$0xff] }
 0x252   :  { %1113 = vmatpush.msrb.mxu0 %v9805_v47  ;;  %1153 = vmatpush.msrb.mxu2 %v9807_v52  ;;  %v9859_v47 = vld [vmem:[#allocation42_spill] sm:$0xff]  ;;  %v9861_v52 = vld [vmem:[#allocation44_spill] sm:$0xff] }
 0x253   :  { %1237 = vmatpush.msra.mxu1 %v9818_v29  ;;  %1277 = vmatpush.msra.mxu3 %v9820_v55  ;;  %v9872_v29 = vld [vmem:[#allocation55_spill] sm:$0xff]  ;;  %v9874_v55 = vld [vmem:[#allocation58_spill] sm:$0xff] }
 0x254   :  { %1114 = vmatpush.msrb.mxu0 %v9809_v1  ;;  %1154 = vmatpush.msrb.mxu2 %v9811_v34  ;;  %v9863_v1 = vld [vmem:[#allocation46_spill] sm:$0xff]  ;;  %v9865_v34 = vld [vmem:[#allocation48_spill] sm:$0xff] }
 0x255   :  { %1238 = vmatpush.msra.mxu1 %v9822_v27  ;;  %1278 = vmatpush.msra.mxu3 %v9824_v23  ;;  %v9876_v27 = vld [vmem:[#allocation62_spill] sm:$0xff] }
 0x256   :  { %1115 = vmatpush.msrb.mxu0 %v9813_v39  ;;  %1155 = vmatpush.msrb.mxu2 %v9815_v40  ;;  %v9867_v39 = vld [vmem:[#allocation50_spill] sm:$0xff]  ;;  %v9869_v40 = vld [vmem:[#allocation52_spill] sm:$0xff] }
 0x257   :  { %1239 = vmatpush.msra.mxu1 %v9826_v20  ;;  %1279 = vmatpush.msra.mxu3 %v9828_v24  ;;  %v9878_v23 = vld [vmem:[#allocation66_spill] sm:$0xff]  ;;  %v9882_v24 = vld [vmem:[#allocation75_spill] sm:$0xff] }
 0x258   :  { %1116 = vmatpush.msrb.mxu0 %v9817_v35  ;;  %1156 = vmatpush.msrb.mxu2 %v9819_v31  ;;  %v9871_v35 = vld [vmem:[#allocation54_spill] sm:$0xff]  ;;  %v9873_v31 = vld [vmem:[#allocation57_spill] sm:$0xff] }
 0x259   :  { %1240 = vmatpush.msra.mxu1 %v9830_v28  ;;  %1280 = vmatpush.msra.mxu3 %v9832_v63  ;;  %v9880_v20 = vld [vmem:[#allocation70_spill] sm:$0xff] }
 0x25a   :  { %1117 = vmatpush.msrb.mxu0 %v9821_v25  ;;  %1157 = vmatpush.msrb.mxu2 %v9823_v21  ;;  %v9875_v25 = vld [vmem:[#allocation61_spill] sm:$0xff]  ;;  %v9884_v28 = vld [vmem:[#allocation78_spill] sm:$0xff] }
 0x25b   :  { %1241 = vmatpush.msra.mxu1 %v9834_v15  ;;  %1281 = vmatpush.msra.mxu3 %v9836_v8  ;;  %v9877_v21 = vld [vmem:[#allocation65_spill] sm:$0xff]  ;;  %v9886_v63 = vld [vmem:[#allocation82_spill] sm:$0xff]  ;;  %v9888_v15 = vld [vmem:[#allocation87_spill] sm:$0xff] }
 0x25c   :  { %1118 = vmatpush.msrb.mxu0 %v9825_v18  ;;  %1158 = vmatpush.msrb.mxu2 %v9827_v22  ;;  %v9879_v18 = vld [vmem:[#allocation69_spill] sm:$0xff]  ;;  %v9890_v8 = vld [vmem:[#allocation106_spill] sm:$0xff] }
 0x25d   :  { %1242 = vmatpush.msra.mxu1 %v9838_v45  ;;  %1282 = vmatpush.msra.mxu3 %v5271_v41  ;;  %v9848_v41 = vld [vmem:[#allocation103_spill] sm:$0xff]  ;;  %v9881_v22 = vld [vmem:[#allocation73_spill] sm:$0xff]  ;;  %v9892_v45 = vld [vmem:[#allocation108_spill] sm:$0xff] }
 0x25e   :  { %1119 = vmatpush.msrb.mxu0 %v9829_v26  ;;  %1159 = vmatpush.msrb.mxu2 %v9831_v30  ;;  %v9883_v26 = vld [vmem:[#allocation76_spill] sm:$0xff] }
 0x25f   :  { %1243 = vmatpush.msra.mxu1 %v9841_v6  ;;  %1283 = vmatpush.msra.mxu3 %v9843_v58  ;;  %v9885_v30 = vld [vmem:[#allocation80_spill] sm:$0xff]  ;;  %v9895_v6 = vld [vmem:[#allocation111_spill] sm:$0xff]  ;;  %v9897_v58 = vld [vmem:[#allocation113_spill] sm:$0xff] }
 0x260   :  { %1120 = vmatpush.msrb.mxu0 %v9833_v5  ;;  %1160 = vmatpush.msrb.mxu2 %v9835_v13  ;;  %v9887_v5 = vld [vmem:[#allocation85_spill] sm:$0xff] }
 0x261   :  { %1244 = vmatpush.msra.mxu1 %v9844_v7  ;;  %1284 = vmatpush.msra.mxu3 %v9846_v9  ;;  %v9889_v13 = vld [vmem:[#allocation105_spill] sm:$0xff]  ;;  %v9898_v7 = vld [vmem:[#allocation114_spill] sm:$0xff]  ;;  %v9900_v9 = vld [vmem:[#allocation116_spill] sm:$0xff] }
 0x262   :  { %1121 = vmatpush.msrb.mxu0 %v9837_v3  ;;  %1161 = vmatpush.msrb.mxu2 %v9839_v50  ;;  %v9891_v3 = vld [vmem:[#allocation107_spill] sm:$0xff]  ;;  %v9893_v50 = vld [vmem:[#allocation109_spill] sm:$0xff] }
 0x263   :  { %1245 = vmatpush.msra.mxu1 %v9848_v41  ;;  %1285 = vmatpush.msra.mxu3 %v9850_v60  ;;  %v9902_v41 = vld [vmem:[#allocation118_spill] sm:$0xff]  ;;  %v9904_v60 = vld [vmem:[#allocation120_spill] sm:$0xff] }
 0x264   :  { %1122 = vmatpush.msrb.mxu0 %v9840_v51  ;;  %1162 = vmatpush.msrb.mxu2 %v9842_v57  ;;  %v9894_v51 = vld [vmem:[#allocation110_spill] sm:$0xff]  ;;  %v9896_v57 = vld [vmem:[#allocation112_spill] sm:$0xff] }
 0x265   :  { %1123 = vmatmul.f32.vlgmr.msrb.gmra.mxu0 %v5874_v53  ;;  %1163 = vmatmul.f32.vlgmr.msrb.gmra.mxu2 %v5874_v53  ;;  %v9853_v53 = vld [vmem:[#allocation104_spill] sm:$0xff] }
 0x266   :  { %1213 = vmatpush.msra.mxu0 %v9845_v49  ;;  %1253 = vmatpush.msra.mxu2 %v9847_v12  ;;  %v9899_v49 = vld [vmem:[#allocation115_spill] sm:$0xff]  ;;  %v9901_v12 = vld [vmem:[#allocation117_spill] sm:$0xff] }
 0x267   :  { %1246 = vmatpush.msra.mxu1 %v9852_v62  ;;  %1286 = vmatpush.msra.mxu3 %v9854_v54  ;;  %v9906_v62 = vld [vmem:[#allocation122_spill] sm:$0xff]  ;;  %v9908_v54 = vld [vmem:[#allocation124_spill] sm:$0xff] }
 0x268   :  { %1214 = vmatpush.msra.mxu0 %v9849_v16  ;;  %1254 = vmatpush.msra.mxu2 %v9851_v2  ;;  %v9903_v16 = vld [vmem:[#allocation119_spill] sm:$0xff]  ;;  %v9905_v2 = vld [vmem:[#allocation121_spill] sm:$0xff] }
 0x269   :  { %1247 = vmatpush.msra.mxu1 %v9856_v43  ;;  %1287 = vmatpush.msra.mxu3 %v9858_v44  ;;  %v9910_v43 = vld [vmem:[#allocation126_spill] sm:$0xff]  ;;  %v9912_v44 = vld [vmem:[#allocation128_spill] sm:$0xff] }
 0x26a   :  { %1215 = vmatpush.msra.mxu0 %v9853_v53  ;;  %1255 = vmatpush.msra.mxu2 %v9855_v10  ;;  %v9907_v53 = vld [vmem:[#allocation123_spill] sm:$0xff]  ;;  %v9909_v10 = vld [vmem:[#allocation125_spill] sm:$0xff] }
 0x26b   :  { %1248 = vmatpush.msra.mxu1 %v9860_v48  ;;  %1288 = vmatpush.msra.mxu3 %v9862_v17  ;;  %v9914_v48 = vld [vmem:[#allocation130_spill] sm:$0xff]  ;;  %v9916_v17 = vld [vmem:[#allocation132_spill] sm:$0xff] }
 0x26c   :  { %1216 = vmatpush.msra.mxu0 %v9857_v19  ;;  %1256 = vmatpush.msra.mxu2 %v9859_v47  ;;  %v9911_v19 = vld [vmem:[#allocation127_spill] sm:$0xff]  ;;  %v9913_v47 = vld [vmem:[#allocation129_spill] sm:$0xff] }
 0x26d   :  { %1313 = vmatpush.msrb.mxu1 %v9864_v32  ;;  %1353 = vmatpush.msrb.mxu3 %v9865_v34  ;;  %v9918_v32 = vld [vmem:[#allocation134_spill] sm:$0xff]  ;;  %v9919_v34 = vld [vmem:[#allocation135_spill] sm:$0xff] }
 0x26e   :  { %1217 = vmatpush.msra.mxu0 %v9861_v52  ;;  %1257 = vmatpush.msra.mxu2 %v9863_v1  ;;  %v9915_v52 = vld [vmem:[#allocation131_spill] sm:$0xff]  ;;  %v9917_v1 = vld [vmem:[#allocation133_spill] sm:$0xff] }
 0x26f   :  { %1314 = vmatpush.msrb.mxu1 %v9868_v37  ;;  %1354 = vmatpush.msrb.mxu3 %v9869_v40  ;;  %v9922_v37 = vld [vmem:[#allocation138_spill] sm:$0xff]  ;;  %v9923_v40 = vld [vmem:[#allocation139_spill] sm:$0xff] }
 0x270   :  { %1218 = vmatpush.msra.mxu0 %v9866_v38  ;;  %1258 = vmatpush.msra.mxu2 %v9867_v39  ;;  %v9920_v38 = vld [vmem:[#allocation136_spill] sm:$0xff]  ;;  %v9921_v39 = vld [vmem:[#allocation137_spill] sm:$0xff] }
 0x271   :  { %1315 = vmatpush.msrb.mxu1 %v9872_v29  ;;  %1355 = vmatpush.msrb.mxu3 %v9873_v31  ;;  %v6069_v29 = vld [vmem:[%s8950_s2 + $0xf0] sm:$0xff]  ;;  %v6075_v31 = vld [vmem:[%s8950_s2 + $0xf8] sm:$0xff] }
 0x272   :  { %1219 = vmatpush.msra.mxu0 %v9870_v33  ;;  %1259 = vmatpush.msra.mxu2 %v9871_v35  ;;  %v6033_v33 = vld [vmem:[%s8950_s2 + $0x150] sm:$0xff]  ;;  %v6039_v35 = vld [vmem:[%s8950_s2 + $0x158] sm:$0xff] }
 0x273   :  { %1316 = vmatpush.msrb.mxu1 %v9876_v27  ;;  %1356 = vmatpush.msrb.mxu3 %v9877_v21  ;;  %v6093_v27 = vld [vmem:[%s8950_s2 + $0xb0] sm:$0xff]  ;;  %v6099_v21 = vld [vmem:[%s8950_s2 + $0xb8] sm:$0xff] }
 0x274   :  { %1220 = vmatpush.msra.mxu0 %v9874_v55  ;;  %1260 = vmatpush.msra.mxu2 %v9875_v25  ;;  %v6081_v55 = vld [vmem:[%s8950_s2 + $0xd0] sm:$0xff]  ;;  %v6087_v25 = vld [vmem:[%s8950_s2 + $0xd8] sm:$0xff] }
 0x275   :  { %1317 = vmatpush.msrb.mxu1 %v9880_v20  ;;  %1357 = vmatpush.msrb.mxu3 %v9881_v22  ;;  %v6117_v20 = vld [vmem:[%s8950_s2 + $0x70] sm:$0xff]  ;;  %v6123_v22 = vld [vmem:[%s8950_s2 + $0x78] sm:$0xff] }
 0x276   :  { %1221 = vmatpush.msra.mxu0 %v9878_v23  ;;  %1261 = vmatpush.msra.mxu2 %v9879_v18  ;;  %v6105_v23 = vld [vmem:[%s8950_s2 + $0x90] sm:$0xff]  ;;  %v6111_v18 = vld [vmem:[%s8950_s2 + $0x98] sm:$0xff] }
 0x277   :  { %1318 = vmatpush.msrb.mxu1 %v9884_v28  ;;  %1358 = vmatpush.msrb.mxu3 %v9885_v30  ;;  %v6141_v28 = vld [vmem:[%s8950_s2 + $0x30] sm:$0xff]  ;;  %v6147_v30 = vld [vmem:[%s8950_s2 + $0x38] sm:$0xff] }
 0x278   :  { %1222 = vmatpush.msra.mxu0 %v9882_v24  ;;  %1262 = vmatpush.msra.mxu2 %v9883_v26  ;;  %v6129_v24 = vld [vmem:[%s8950_s2 + $0x50] sm:$0xff]  ;;  %v6135_v26 = vld [vmem:[%s8950_s2 + $0x58] sm:$0xff] }
 0x279   :  { %1319 = vmatpush.msrb.mxu1 %v9888_v15  ;;  %1359 = vmatpush.msrb.mxu3 %v9889_v13 }
 0x27a   :  { %1223 = vmatpush.msra.mxu0 %v9886_v63  ;;  %1263 = vmatpush.msra.mxu2 %v9887_v5  ;;  %v6153_v63 = vld [vmem:[%s8950_s2 + $0x10] sm:$0xff]  ;;  %v6159_v5 = vld [vmem:[%s8950_s2 + $0x18] sm:$0xff] }
 0x27b   :  { %1320 = vmatpush.msrb.mxu1 %v9892_v45  ;;  %1360 = vmatpush.msrb.mxu3 %v9893_v50 }
 0x27c   :  { %1224 = vmatpush.msra.mxu0 %v9890_v8  ;;  %1264 = vmatpush.msra.mxu2 %v9891_v3 }
 0x27d   :  { %1321 = vmatpush.msrb.mxu1 %v9896_v57  ;;  %1361 = vmatpush.msrb.mxu3 %v9897_v58 }
 0x27e   :  { %1225 = vmatpush.msra.mxu0 %v9894_v51  ;;  %1265 = vmatpush.msra.mxu2 %v9895_v6 }
 0x27f   :  { %1322 = vmatpush.msrb.mxu1 %v9900_v9  ;;  %1362 = vmatpush.msrb.mxu3 %v9901_v12 }
 0x280   :  { %1226 = vmatpush.msra.mxu0 %v9898_v7  ;;  %1266 = vmatpush.msra.mxu2 %v9899_v49 }
 0x281   :  { %1323 = vmatpush.msrb.mxu1 %v9904_v60  ;;  %1363 = vmatpush.msrb.mxu3 %v9905_v2 }
 0x282   :  { %1227 = vmatpush.msra.mxu0 %v9902_v41  ;;  %1267 = vmatpush.msra.mxu2 %v9903_v16 }
 0x283   :  { %1324 = vmatpush.msrb.mxu1 %v9908_v54  ;;  %1364 = vmatpush.msrb.mxu3 %v9909_v10 }
 0x284   :  { %1228 = vmatpush.msra.mxu0 %v9906_v62  ;;  %1268 = vmatpush.msra.mxu2 %v9907_v53 }
 0x285   :  { %1325 = vmatpush.msrb.mxu1 %v9912_v44  ;;  %1365 = vmatpush.msrb.mxu3 %v9913_v47  ;;  %v2581_v44 = vld [vmem:[%s8951_s0 + $0x68] sm:$0xff] }
 0x286   :  { %1293 = vmatpush.msrb.mxu0 %v9910_v43  ;;  %1333 = vmatpush.msrb.mxu2 %v9911_v19 }
 0x287   :  { %1326 = vmatpush.msrb.mxu1 %v9916_v17  ;;  %1366 = vmatpush.msrb.mxu3 %v9917_v1 }
 0x288   :  { %1294 = vmatpush.msrb.mxu0 %v9914_v48  ;;  %1334 = vmatpush.msrb.mxu2 %v9915_v52 }
 0x289   :  { %1327 = vmatpush.msrb.mxu1 %v9920_v38  ;;  %1367 = vmatpush.msrb.mxu3 %v9921_v39 }
 0x28a   :  { %1295 = vmatpush.msrb.mxu0 %v9918_v32  ;;  %1335 = vmatpush.msrb.mxu2 %v9919_v34 }
 0x28b   :  { %1328 = vmatpush.msrb.mxu1 %v5783_v61  ;;  %1368 = vmatpush.msrb.mxu3 %v5789_v11  ;;  %v6045_v11 = vld [vmem:[%s8950_s2 + $0x130] sm:$0xff] }
 0x28c   :  { %1296 = vmatpush.msrb.mxu0 %v9922_v37  ;;  %1336 = vmatpush.msrb.mxu2 %v9923_v40  ;;  %v6057_v61 = vld [vmem:[%s8950_s2 + $0x110] sm:$0xff]  ;;  %v2580_v40 = vld [vmem:[%s8951_s0 + $0x60] sm:$0xff] }
 0x28e   :  { %1297 = vmatpush.msrb.mxu0 %v5795_v0  ;;  %1337 = vmatpush.msrb.mxu2 %v5801_v56  ;;  %v6051_v56 = vld [vmem:[%s8950_s2 + $0x138] sm:$0xff] }
 0x28f   :  { %v6063_v0 = vld [vmem:[%s8950_s2 + $0x118] sm:$0xff] }
 0x290   :  { %1298 = vmatpush.msrb.mxu0 %v6033_v33  ;;  %1338 = vmatpush.msrb.mxu2 %v6039_v35 }
 0x292   :  { %1299 = vmatpush.msrb.mxu0 %v6045_v11  ;;  %1339 = vmatpush.msrb.mxu2 %v6051_v56 }
 0x294   :  { %1300 = vmatpush.msrb.mxu0 %v6057_v61  ;;  %1340 = vmatpush.msrb.mxu2 %v6063_v0 }
 0x296   :  { %1301 = vmatpush.msrb.mxu0 %v6069_v29  ;;  %1341 = vmatpush.msrb.mxu2 %v6075_v31 }
 0x298   :  { %1302 = vmatpush.msrb.mxu0 %v6081_v55  ;;  %1342 = vmatpush.msrb.mxu2 %v6087_v25 }
 0x29a   :  { %1303 = vmatpush.msrb.mxu0 %v6093_v27  ;;  %1343 = vmatpush.msrb.mxu2 %v6099_v21 }
 0x29c   :  { %1304 = vmatpush.msrb.mxu0 %v6105_v23  ;;  %1344 = vmatpush.msrb.mxu2 %v6111_v18 }
 0x29e   :  { %1305 = vmatpush.msrb.mxu0 %v6117_v20  ;;  %1345 = vmatpush.msrb.mxu2 %v6123_v22 }
 0x2a0   :  { %1306 = vmatpush.msrb.mxu0 %v6129_v24  ;;  %1346 = vmatpush.msrb.mxu2 %v6135_v26 }
 0x2a2   :  { %1307 = vmatpush.msrb.mxu0 %v6141_v28  ;;  %1347 = vmatpush.msrb.mxu2 %v6147_v30  ;;  %v957_v15 = vpop.f32.mrf.mxu1 }
 0x2a4   :  { %1308 = vmatpush.msrb.mxu0 %v6153_v63  ;;  %1348 = vmatpush.msrb.mxu2 %v6159_v5 }
 0x2a8   :  { %v997_v50 = vpop.f32.mrf.mxu3 }
 0x2aa   :  { %v1037_v49 = vpop.f32.mrf.mxu1 }
 0x2b0   :  { %v1077_v2 = vpop.f32.mrf.mxu3 }
 0x2c2   :  { %v937_v13 = vpop.f32.mrf.mxu0 }
 0x2c3   :  { %v938_v8 = vadd.f32 %v937_v13, %v4743_v4 }
 0x2c4   :  { %v1144_v47 = vpop.f32.mrf.mxu1 }
 0x2c5   :  { %v958_v3 = vadd.f32 %v957_v15, %v938_v8  ;;  %v1188_v32 = vadd.f32 %v2581_v44, %v1144_v47 }
 0x2c7   :  { %v1081_v45 = vmul.f32 0.5, %v958_v3  ;;  %v1196_v39 = vmul.f32 0.5, %v1188_v32  ;;  %v6251_v32 = vld [vmem:[%s8949_s1 + $0x158] sm:$0xff] }
 0x2c8   :  { %v977_v51 = vpop.f32.mrf.mxu2 }
 0x2c9   :  { %v978_v6 = vadd.f32 %v977_v51, %v4746_v14  ;;  %2651 = vtanh.f32 %v1081_v45 }
 0x2ca   :  { %v1017_v57 = vpop.f32.mrf.mxu0  ;;  %v1184_v45 = vpop.f32.mrf.mxu3 }
 0x2cb   :  { %v998_v58 = vadd.f32 %v997_v50, %v978_v6  ;;  %v1018_v7 = vadd.f32 %v1017_v57, %v4748_v59  ;;  %v2582_v57 = vld [vmem:[%s8951_s0 + $0x70] sm:$0xff] }
 0x2cd   :  { %v1085_v9 = vmul.f32 0.5, %v998_v58  ;;  %v1038_v12 = vadd.f32 %v1037_v49, %v1018_v7  ;;  %v6185_v7 = vld [vmem:[%s8949_s1 + $0x1e8] sm:$0xff]  ;;  %v6191_v49 = vld [vmem:[%s8949_s1 + $0x1f8] sm:$0xff] }
 0x2cf   :  { %2653 = vtanh.f32 %v1085_v9  ;;  %v2652_v16 = vpop.eup %2651 }
 0x2d0   :  { %v1057_v41 = vpop.f32.mrf.mxu2  ;;  %2655 = vtanh.f32 %v1038_v12  ;;  %v1083_v53 = vmul.f32 0.5, %v2652_v16  ;;  %v6203_v16 = vld [vmem:[%s8949_s1 + $0x1d8] sm:$0xff] }
 0x2d1   :  { %v1058_v60 = vadd.f32 %v1057_v41, %v4752_v42  ;;  %v6197_v41 = vld [vmem:[%s8949_s1 + $0x1c8] sm:$0xff] }
 0x2d2   :  { %v1084_v48 = vadd.f32 0.5, %v1083_v53  ;;  %v6215_v53 = vld [vmem:[%s8949_s1 + $0x1b8] sm:$0xff] }
 0x2d3   :  { %v1078_v62 = vadd.f32 %v1077_v2, %v1058_v60 }
 0x2d5   :  { %v2654_v54 = vpop.eup %2653  ;;  %v1090_v10 = vmul.f32 0.5, %v1078_v62  ;;  %v6209_v62 = vld [vmem:[%s8949_s1 + $0x1a8] sm:$0xff] }
 0x2d6   :  { %v1087_v43 = vmul.f32 0.5, %v2654_v54  ;;  %v2656_v19 = vpop.eup %2655 }
 0x2d7   :  { %2657 = vtanh.f32 %v1090_v10  ;;  %v1095_v1 = vmul.f32 %v2656_v19, %v1084_v48  ;;  %v6227_v19 = vld [vmem:[%s8949_s1 + $0x198] sm:$0xff]  ;;  %v6233_v48 = vld [vmem:[%s8949_s1 + $0x168] sm:$0xff] }
 0x2d8   :  { %v1088_v52 = vadd.f32 0.5, %v1087_v43  ;;  %v6221_v43 = vld [vmem:[%s8949_s1 + $0x188] sm:$0xff] }
 0x2da   :  { %v1094_v17 = vmul.f32 %v1088_v52, %v5834_v36  ;;  %v2583_v36 = vld [vmem:[%s8951_s0 + $0x78] sm:$0xff] }
 0x2db   :  { %v1190_v6 = vadd.f32 %v2583_v36, %v1184_v45  ;;  %v6239_v52 = vld [vmem:[%s8949_s1 + $0x178] sm:$0xff]  ;;  %v6285_v36 = vld [vmem:[%s8949_s1 + $0xe8] sm:$0xff] }
 0x2dc   :  { %v6170_v34 = vadd.f32 %v1095_v1, %v1094_v17  ;;  %v6245_v1 = vld [vmem:[%s8949_s1 + $0x148] sm:$0xff]  ;;  %v6291_v45 = vld [vmem:[%s8949_s1 + $0xf8] sm:$0xff] }
 0x2dd   :  { %v2658_v38 = vpop.eup %2657  ;;  %v1201_v2 = vmul.f32 0.5, %v1190_v6 }
 0x2de   :  { %2659 = vtanh.f32 %v6170_v34  ;;  %v1092_v37 = vmul.f32 0.5, %v2658_v38 }
 0x2df   :  { %2661 = vtanh.f32 %v1196_v39 }
 0x2e0   :  { %v1093_v13 = vadd.f32 0.5, %v1092_v37  ;;  %v6258_v37 = vld [vmem:[%s8949_s1 + $0x128] sm:$0xff] }
 0x2e2   :  { %v1124_v15 = vpop.f32.mrf.mxu0 }
 0x2e3   :  { %v1187_v8 = vadd.f32 %v2580_v40, %v1124_v15  ;;  %v6264_v40 = vld [vmem:[%s8949_s1 + $0x138] sm:$0xff] }
 0x2e4   :  { %v2660_v3 = vpop.eup %2659 }
 0x2e5   :  { %v1192_v50 = vmul.f32 0.5, %v1187_v8  ;;  %v1098_v51 = vmul.f32 %v2660_v3, %v1093_v13  ;;  %v2662_v58 = vpop.eup %2661  ;;  %v6278_v8 = vld [vmem:[%s8949_s1 + $0x118] sm:$0xff] }
 0x2e6   :  { %v1198_v60 = vmul.f32 0.5, %v2662_v58  ;;  %v6315_v58 = vld [vmem:[%s8949_s1 + $0xb8] sm:$0xff] }
 0x2e7   :  { %2663 = vtanh.f32 %v1192_v50  ;;  %1249 = vmatmul.f32.vlgmr.msra.gmra.mxu1 %v1098_v51  ;;  %1289 = vmatmul.f32.vlgmr.msra.gmra.mxu3 %v1098_v51  ;;  %v6297_v50 = vld [vmem:[%s8949_s1 + $0xc8] sm:$0xff] }
 0x2e8   :  { %1420 = vmatpush.msra.mxu1 %v6185_v7  ;;  %1460 = vmatpush.msra.mxu3 %v6191_v49  ;;  %v1164_v9 = vpop.f32.mrf.mxu2  ;;  %v1199_v44 = vadd.f32 0.5, %v1198_v60  ;;  %v6323_v60 = vld [vmem:[%s8949_s1 + $0x88] sm:$0xff] }
 0x2e9   :  { %v1189_v12 = vadd.f32 %v2582_v57, %v1164_v9  ;;  %v6309_v57 = vld [vmem:[%s8949_s1 + $0xa8] sm:$0xff] }
 0x2ea   :  { %1421 = vmatpush.msra.mxu1 %v6197_v41  ;;  %1461 = vmatpush.msra.mxu3 %v6203_v16  ;;  %v1205_v38 = vmul.f32 %v1199_v44, %v5861_v46  ;;  %v6272_v46 = vld [vmem:[%s8949_s1 + $0x108] sm:$0xff] }
 0x2eb   :  { %2665 = vtanh.f32 %v1189_v12  ;;  %v6349_v44 = vld [vmem:[%s8949_s1 + $0x68] sm:$0xff] }
 0x2ec   :  { %1422 = vmatpush.msra.mxu1 %v6209_v62  ;;  %1462 = vmatpush.msra.mxu3 %v6215_v53  ;;  %2667 = vtanh.f32 %v1201_v2  ;;  %v6329_v2 = vld [vmem:[%s8949_s1 + $0x98] sm:$0xff] }
 0x2ed   :  { %v2664_v54 = vpop.eup %2663 }
 0x2ee   :  { %v1194_v10 = vmul.f32 0.5, %v2664_v54  ;;  %1423 = vmatpush.msra.mxu1 %v6221_v43  ;;  %1463 = vmatpush.msra.mxu3 %v6227_v19  ;;  %v6337_v54 = vld [vmem:[%s8949_s1 + $0x1e0] sm:$0xff] }
 0x2ef   :  { %1329 = vmatmul.f32.vlgmr.msrb.gmra.mxu1 %v1098_v51  ;;  %1369 = vmatmul.f32.vlgmr.msrb.gmra.mxu3 %v1098_v51  ;;  %v6303_v51 = vld [vmem:[%s8949_s1 + $0xd8] sm:$0xff] }
 0x2f0   :  { %v1195_v47 = vadd.f32 0.5, %v1194_v10  ;;  %1424 = vmatpush.msra.mxu1 %v6233_v48  ;;  %1464 = vmatpush.msra.mxu3 %v6239_v52  ;;  %v6343_v10 = vld [vmem:[%s8949_s1 + $0x1f0] sm:$0xff] }
 0x2f1   :  { %v2666_v17 = vpop.eup %2665 }
 0x2f2   :  { %1425 = vmatpush.msra.mxu1 %v6245_v1  ;;  %1465 = vmatpush.msra.mxu3 %v6251_v32  ;;  %v1206_v39 = vmul.f32 %v2666_v17, %v1195_v47  ;;  %v2668_v15 = vpop.eup %2667  ;;  %v6355_v47 = vld [vmem:[%s8949_s1 + $0x78] sm:$0xff]  ;;  %v6361_v17 = vld [vmem:[%s8949_s1 + $0x1c0] sm:$0xff] }
 0x2f3   :  { %v1203_v3 = vmul.f32 0.5, %v2668_v15  ;;  %v6379_v15 = vld [vmem:[%s8949_s1 + $0x58] sm:$0xff] }
 0x2f4   :  { %1426 = vmatpush.msra.mxu1 %v6258_v37  ;;  %1466 = vmatpush.msra.mxu3 %v6264_v40  ;;  %v6267_v13 = vadd.f32 %v1206_v39, %v1205_v38  ;;  %v6367_v38 = vld [vmem:[%s8949_s1 + $0x1d0] sm:$0xff]  ;;  %v6373_v39 = vld [vmem:[%s8949_s1 + $0x48] sm:$0xff] }
 0x2f5   :  { %v1204_v6 = vadd.f32 0.5, %v1203_v3  ;;  %9924 = vst [vmem:[#allocation56_spill] sm:$0xff] %v6367_v38  ;;  %v6385_v3 = vld [vmem:[%s8949_s1 + $0x1a0] sm:$0xff] }
 0x2f6   :  { %1427 = vmatpush.msra.mxu1 %v6272_v46  ;;  %1467 = vmatpush.msra.mxu3 %v6278_v8  ;;  %2669 = vtanh.f32 %v6267_v13  ;;  %9925 = vst [vmem:[#allocation63_spill] sm:$0xff] %v6385_v3 }
 0x2f8   :  { %1428 = vmatpush.msra.mxu1 %v6285_v36  ;;  %1468 = vmatpush.msra.mxu3 %v6291_v45 }
 0x2fa   :  { %1429 = vmatpush.msra.mxu1 %v6297_v50  ;;  %1469 = vmatpush.msra.mxu3 %v6303_v51 }
 0x2fc   :  { %1430 = vmatpush.msra.mxu1 %v6309_v57  ;;  %1470 = vmatpush.msra.mxu3 %v6315_v58  ;;  %v2670_v9 = vpop.eup %2669 }
 0x2fd   :  { %v6318_v12 = vmul.f32 %v2670_v9, %v1204_v6  ;;  %v6391_v6 = vld [vmem:[%s8949_s1 + $0x1b0] sm:$0xff]  ;;  %v6397_v9 = vld [vmem:[%s8949_s1 + $0x28] sm:$0xff] }
 0x2fe   :  { %1431 = vmatpush.msra.mxu1 %v6323_v60  ;;  %1471 = vmatpush.msra.mxu3 %v6329_v2  ;;  %9926 = vst [vmem:[#allocation64_spill] sm:$0xff] %v6391_v6 }
 0x2ff   :  { %1229 = vmatmul.f32.vlgmr.msra.gmra.mxu0 %v6318_v12  ;;  %1269 = vmatmul.f32.vlgmr.msra.gmra.mxu2 %v6318_v12  ;;  %9927 = vst [vmem:[#allocation59_spill] sm:$0xff] %v6397_v9 }
 0x300   :  { %1400 = vmatpush.msra.mxu0 %v6337_v54  ;;  %1440 = vmatpush.msra.mxu2 %v6343_v10 }
 0x301   :  { %1432 = vmatpush.msra.mxu1 %v6349_v44  ;;  %1472 = vmatpush.msra.mxu3 %v6355_v47 }
 0x302   :  { %1401 = vmatpush.msra.mxu0 %v6361_v17  ;;  %1441 = vmatpush.msra.mxu2 %v6367_v38  ;;  %v6403_v38 = vld [vmem:[%s8949_s1 + $0x38] sm:$0xff] }
 0x303   :  { %1433 = vmatpush.msra.mxu1 %v6373_v39  ;;  %1473 = vmatpush.msra.mxu3 %v6379_v15  ;;  %9928 = vst [vmem:[#allocation60_spill] sm:$0xff] %v6403_v38 }
 0x304   :  { %1402 = vmatpush.msra.mxu0 %v6385_v3  ;;  %1442 = vmatpush.msra.mxu2 %v6391_v6  ;;  %v6409_v3 = vld [vmem:[%s8949_s1 + $0x180] sm:$0xff]  ;;  %v6415_v6 = vld [vmem:[%s8949_s1 + $0x190] sm:$0xff] }
 0x305   :  { %1434 = vmatpush.msra.mxu1 %v6397_v9  ;;  %1474 = vmatpush.msra.mxu3 %v6403_v38  ;;  %9929 = vst [vmem:[#allocation71_spill] sm:$0xff] %v6409_v3  ;;  %v6421_v9 = vld [vmem:[%s8949_s1 + $0x8] sm:$0xff]  ;;  %v6427_v38 = vld [vmem:[%s8949_s1 + $0x18] sm:$0xff] }
 0x306   :  { %1403 = vmatpush.msra.mxu0 %v6409_v3  ;;  %9930 = vst [vmem:[#allocation72_spill] sm:$0xff] %v6415_v6  ;;  %1443 = vmatpush.msra.mxu2 %v6415_v6  ;;  %v6435_v6 = vld [vmem:[%s8949_s1 + $0x160] sm:$0xff]  ;;  %v6442_v3 = vld [vmem:[%s8949_s1 + $0x170] sm:$0xff] }
 0x307   :  { %9931 = vst [vmem:[#allocation67_spill] sm:$0xff] %v6421_v9  ;;  %1435 = vmatpush.msra.mxu1 %v6421_v9  ;;  %1475 = vmatpush.msra.mxu3 %v6427_v38  ;;  %v6467_v9 = vld [vmem:[%s8950_s2 + $0x3e8] sm:$0xff] }
 0x308   :  { %9932 = vst [vmem:[#allocation68_spill] sm:$0xff] %v6427_v38  ;;  %1309 = vmatmul.f32.vlgmr.msrb.gmra.mxu0 %v6318_v12  ;;  %1349 = vmatmul.f32.vlgmr.msrb.gmra.mxu2 %v6318_v12  ;;  %v6449_v38 = vld [vmem:[%s8949_s1 + $0x140] sm:$0xff] }
 0x309   :  { %9933 = vst [vmem:[#allocation79_spill] sm:$0xff] %v6435_v6  ;;  %1404 = vmatpush.msra.mxu0 %v6435_v6  ;;  %1436 = vmatmul.f32.vlgmr.msra.gmra.mxu1 %v6318_v12  ;;  %v6455_v6 = vld [vmem:[%s8950_s2 + $0x3e0] sm:$0xff] }
 0x30a   :  { %9934 = vst [vmem:[#allocation6_spill] sm:$0xff] %v6442_v3  ;;  %1444 = vmatpush.msra.mxu2 %v6442_v3  ;;  %1476 = vmatmul.f32.vlgmr.msra.gmra.mxu3 %v6318_v12  ;;  %v6461_v3 = vld [vmem:[%s8949_s1 + $0x150] sm:$0xff] }
 0x30b   :  { %9935 = vst [vmem:[#allocation7_spill] sm:$0xff] %v6449_v38  ;;  %1405 = vmatpush.msra.mxu0 %v6449_v38  ;;  %1526 = vmatpush.msrb.mxu1 %v6455_v6  ;;  %v6473_v38 = vld [vmem:[%s8949_s1 + $0x120] sm:$0xff] }
 0x30c   :  { %9936 = vst [vmem:[#allocation8_spill] sm:$0xff] %v6455_v6  ;;  %1445 = vmatpush.msra.mxu2 %v6461_v3  ;;  %1566 = vmatpush.msrb.mxu3 %v6467_v9  ;;  %v6479_v6 = vld [vmem:[%s8950_s2 + $0x3c0] sm:$0xff] }
 0x30d   :  { %9937 = vst [vmem:[#allocation74_spill] sm:$0xff] %v6461_v3  ;;  %1406 = vmatpush.msra.mxu0 %v6473_v38  ;;  %1527 = vmatpush.msrb.mxu1 %v6479_v6  ;;  %v6485_v3 = vld [vmem:[%s8949_s1 + $0x130] sm:$0xff] }
 0x30e   :  { %9938 = vst [vmem:[#allocation9_spill] sm:$0xff] %v6467_v9  ;;  %1446 = vmatpush.msra.mxu2 %v6485_v3  ;;  %v6491_v9 = vld [vmem:[%s8950_s2 + $0x3c8] sm:$0xff] }
 0x30f   :  { %9939 = vst [vmem:[#allocation10_spill] sm:$0xff] %v6473_v38  ;;  %1567 = vmatpush.msrb.mxu3 %v6491_v9  ;;  %v6497_v38 = vld [vmem:[%s8949_s1 + $0x100] sm:$0xff] }
 0x310   :  { %9940 = vst [vmem:[#allocation77_spill] sm:$0xff] %v6479_v6  ;;  %1407 = vmatpush.msra.mxu0 %v6497_v38  ;;  %v6503_v6 = vld [vmem:[%s8950_s2 + $0x3a0] sm:$0xff] }
 0x311   :  { %9941 = vst [vmem:[#allocation11_spill] sm:$0xff] %v6485_v3  ;;  %1528 = vmatpush.msrb.mxu1 %v6503_v6  ;;  %v6509_v3 = vld [vmem:[%s8949_s1 + $0x110] sm:$0xff] }
 0x312   :  { %9942 = vst [vmem:[#allocation83_spill] sm:$0xff] %v6491_v9  ;;  %1447 = vmatpush.msra.mxu2 %v6509_v3  ;;  %v6515_v9 = vld [vmem:[%s8950_s2 + $0x3a8] sm:$0xff] }
 0x313   :  { %9943 = vst [vmem:[#allocation12_spill] sm:$0xff] %v6497_v38  ;;  %1568 = vmatpush.msrb.mxu3 %v6515_v9  ;;  %v6521_v38 = vld [vmem:[%s8949_s1 + $0xe0] sm:$0xff] }
 0x314   :  { %9944 = vst [vmem:[#allocation81_spill] sm:$0xff] %v6503_v6  ;;  %1408 = vmatpush.msra.mxu0 %v6521_v38  ;;  %v6527_v6 = vld [vmem:[%s8950_s2 + $0x380] sm:$0xff] }
 0x315   :  { %9945 = vst [vmem:[#allocation13_spill] sm:$0xff] %v6509_v3  ;;  %1529 = vmatpush.msrb.mxu1 %v6527_v6  ;;  %v6533_v3 = vld [vmem:[%s8949_s1 + $0xf0] sm:$0xff] }
 0x316   :  { %9946 = vst [vmem:[#allocation14_spill] sm:$0xff] %v6515_v9  ;;  %1448 = vmatpush.msra.mxu2 %v6533_v3  ;;  %v6539_v9 = vld [vmem:[%s8950_s2 + $0x388] sm:$0xff] }
 0x317   :  { %9947 = vst [vmem:[#allocation15_spill] sm:$0xff] %v6521_v38  ;;  %1569 = vmatpush.msrb.mxu3 %v6539_v9  ;;  %v6545_v38 = vld [vmem:[%s8949_s1 + $0xc0] sm:$0xff] }
 0x318   :  { %9948 = vst [vmem:[#allocation16_spill] sm:$0xff] %v6527_v6  ;;  %1409 = vmatpush.msra.mxu0 %v6545_v38  ;;  %v6551_v6 = vld [vmem:[%s8950_s2 + $0x360] sm:$0xff] }
 0x319   :  { %9949 = vst [vmem:[#allocation84_spill] sm:$0xff] %v6533_v3  ;;  %1530 = vmatpush.msrb.mxu1 %v6551_v6  ;;  %v6557_v3 = vld [vmem:[%s8949_s1 + $0xd0] sm:$0xff] }
 0x31a   :  { %9950 = vst [vmem:[#allocation17_spill] sm:$0xff] %v6539_v9  ;;  %1449 = vmatpush.msra.mxu2 %v6557_v3  ;;  %v6563_v9 = vld [vmem:[%s8950_s2 + $0x368] sm:$0xff] }
 0x31b   :  { %9951 = vst [vmem:[#allocation18_spill] sm:$0xff] %v6545_v38  ;;  %1570 = vmatpush.msrb.mxu3 %v6563_v9  ;;  %v6569_v38 = vld [vmem:[%s8949_s1 + $0xa0] sm:$0xff] }
 0x31c   :  { %9952 = vst [vmem:[#allocation86_spill] sm:$0xff] %v6551_v6  ;;  %1410 = vmatpush.msra.mxu0 %v6569_v38  ;;  %v6575_v6 = vld [vmem:[%s8950_s2 + $0x340] sm:$0xff] }
 0x31d   :  { %9953 = vst [vmem:[#allocation19_spill] sm:$0xff] %v6557_v3  ;;  %1531 = vmatpush.msrb.mxu1 %v6575_v6  ;;  %v6581_v3 = vld [vmem:[%s8949_s1 + $0xb0] sm:$0xff] }
 0x31e   :  { %9954 = vst [vmem:[#allocation89_spill] sm:$0xff] %v6563_v9  ;;  %1450 = vmatpush.msra.mxu2 %v6581_v3  ;;  %v6587_v9 = vld [vmem:[%s8950_s2 + $0x348] sm:$0xff] }
 0x31f   :  { %9955 = vst [vmem:[#allocation20_spill] sm:$0xff] %v6569_v38  ;;  %1571 = vmatpush.msrb.mxu3 %v6587_v9  ;;  %v6593_v38 = vld [vmem:[%s8949_s1 + $0x80] sm:$0xff] }
 0x320   :  { %9956 = vst [vmem:[#allocation88_spill] sm:$0xff] %v6575_v6  ;;  %1411 = vmatpush.msra.mxu0 %v6593_v38  ;;  %v6599_v6 = vld [vmem:[%s8950_s2 + $0x320] sm:$0xff] }
 0x321   :  { %9957 = vst [vmem:[#allocation21_spill] sm:$0xff] %v6581_v3  ;;  %1532 = vmatpush.msrb.mxu1 %v6599_v6  ;;  %v6605_v3 = vld [vmem:[%s8949_s1 + $0x90] sm:$0xff] }
 0x322   :  { %9958 = vst [vmem:[#allocation91_spill] sm:$0xff] %v6587_v9  ;;  %1451 = vmatpush.msra.mxu2 %v6605_v3  ;;  %v6611_v9 = vld [vmem:[%s8950_s2 + $0x328] sm:$0xff] }
 0x323   :  { %9959 = vst [vmem:[#allocation22_spill] sm:$0xff] %v6593_v38  ;;  %1572 = vmatpush.msrb.mxu3 %v6611_v9  ;;  %v6617_v38 = vld [vmem:[%s8949_s1 + $0x60] sm:$0xff] }
 0x324   :  { %9960 = vst [vmem:[#allocation90_spill] sm:$0xff] %v6599_v6  ;;  %1412 = vmatpush.msra.mxu0 %v6617_v38  ;;  %v6623_v6 = vld [vmem:[%s8950_s2 + $0x300] sm:$0xff] }
 0x325   :  { %9961 = vst [vmem:[#allocation23_spill] sm:$0xff] %v6605_v3  ;;  %1533 = vmatpush.msrb.mxu1 %v6623_v6  ;;  %v6629_v3 = vld [vmem:[%s8949_s1 + $0x70] sm:$0xff] }
 0x326   :  { %9962 = vst [vmem:[#allocation93_spill] sm:$0xff] %v6611_v9  ;;  %1452 = vmatpush.msra.mxu2 %v6629_v3  ;;  %v6635_v9 = vld [vmem:[%s8950_s2 + $0x308] sm:$0xff] }
 0x327   :  { %9963 = vst [vmem:[#allocation24_spill] sm:$0xff] %v6617_v38  ;;  %1573 = vmatpush.msrb.mxu3 %v6635_v9  ;;  %v6641_v38 = vld [vmem:[%s8949_s1 + $0x40] sm:$0xff] }
 0x328   :  { %9964 = vst [vmem:[#allocation92_spill] sm:$0xff] %v6623_v6  ;;  %1413 = vmatpush.msra.mxu0 %v6641_v38  ;;  %v6647_v6 = vld [vmem:[%s8950_s2 + $0x2e0] sm:$0xff] }
 0x329   :  { %9965 = vst [vmem:[#allocation25_spill] sm:$0xff] %v6629_v3  ;;  %1534 = vmatpush.msrb.mxu1 %v6647_v6  ;;  %v6653_v3 = vld [vmem:[%s8949_s1 + $0x50] sm:$0xff] }
 0x32a   :  { %9966 = vst [vmem:[#allocation95_spill] sm:$0xff] %v6635_v9  ;;  %1453 = vmatpush.msra.mxu2 %v6653_v3  ;;  %v6659_v9 = vld [vmem:[%s8950_s2 + $0x2e8] sm:$0xff] }
 0x32b   :  { %9967 = vst [vmem:[#allocation26_spill] sm:$0xff] %v6641_v38  ;;  %1574 = vmatpush.msrb.mxu3 %v6659_v9  ;;  %v6665_v38 = vld [vmem:[%s8949_s1 + $0x20] sm:$0xff] }
 0x32c   :  { %9968 = vst [vmem:[#allocation94_spill] sm:$0xff] %v6647_v6  ;;  %1414 = vmatpush.msra.mxu0 %v6665_v38  ;;  %v6671_v6 = vld [vmem:[%s8950_s2 + $0x2c0] sm:$0xff] }
 0x32d   :  { %9969 = vst [vmem:[#allocation27_spill] sm:$0xff] %v6653_v3  ;;  %1535 = vmatpush.msrb.mxu1 %v6671_v6  ;;  %v6677_v3 = vld [vmem:[%s8949_s1 + $0x30] sm:$0xff] }
 0x32e   :  { %9970 = vst [vmem:[#allocation97_spill] sm:$0xff] %v6659_v9  ;;  %1454 = vmatpush.msra.mxu2 %v6677_v3  ;;  %v6683_v9 = vld [vmem:[%s8950_s2 + $0x2c8] sm:$0xff] }
 0x32f   :  { %9971 = vst [vmem:[#allocation28_spill] sm:$0xff] %v6665_v38  ;;  %1575 = vmatpush.msrb.mxu3 %v6683_v9  ;;  %v6689_v38 = vld [vmem:[%s8949_s1] sm:$0xff] }
 0x330   :  { %9972 = vst [vmem:[#allocation96_spill] sm:$0xff] %v6671_v6  ;;  %1415 = vmatpush.msra.mxu0 %v6689_v38  ;;  %v6695_v6 = vld [vmem:[%s8950_s2 + $0x2a0] sm:$0xff] }
 0x331   :  { %9973 = vst [vmem:[#allocation29_spill] sm:$0xff] %v6677_v3  ;;  %1536 = vmatpush.msrb.mxu1 %v6695_v6  ;;  %v6701_v3 = vld [vmem:[%s8949_s1 + $0x10] sm:$0xff]  ;;  %1416 = vmatmul.f32.vlgmr.msra.gmra.mxu0 %v6318_v12 }
 0x332   :  { %9974 = vst [vmem:[#allocation99_spill] sm:$0xff] %v6689_v38  ;;  %1455 = vmatpush.msra.mxu2 %v6701_v3  ;;  %v6709_v38 = vld [vmem:[%s8950_s2 + $0x2a8] sm:$0xff] }
 0x333   :  { %9975 = vst [vmem:[#allocation30_spill] sm:$0xff] %v6695_v6  ;;  %1456 = vmatmul.f32.vlgmr.msra.gmra.mxu2 %v6318_v12  ;;  %1576 = vmatpush.msrb.mxu3 %v6709_v38  ;;  %v6715_v6 = vld [vmem:[%s8950_s2 + $0x280] sm:$0xff]  ;;  %v6727_v12 = vld [vmem:[%s8950_s2 + $0x288] sm:$0xff] }
 0x334   :  { %9976 = vst [vmem:[#allocation98_spill] sm:$0xff] %v6701_v3  ;;  %1537 = vmatpush.msrb.mxu1 %v6715_v6  ;;  %v6721_v3 = vld [vmem:[%s8950_s2 + $0x1e0] sm:$0xff] }
 0x335   :  { %9977 = vst [vmem:[#allocation31_spill] sm:$0xff] %v6709_v38  ;;  %1506 = vmatpush.msrb.mxu0 %v6721_v3  ;;  %1577 = vmatpush.msrb.mxu3 %v6727_v12  ;;  %v6733_v38 = vld [vmem:[%s8950_s2 + $0x1e8] sm:$0xff] }
 0x336   :  { %9978 = vst [vmem:[#allocation101_spill] sm:$0xff] %v6715_v6  ;;  %1546 = vmatpush.msrb.mxu2 %v6733_v38  ;;  %v6739_v6 = vld [vmem:[%s8950_s2 + $0x260] sm:$0xff] }
 0x337   :  { %9979 = vst [vmem:[#allocation32_spill] sm:$0xff] %v6721_v3  ;;  %1538 = vmatpush.msrb.mxu1 %v6739_v6  ;;  %v6745_v3 = vld [vmem:[%s8950_s2 + $0x1c0] sm:$0xff] }
 0x338   :  { %9980 = vst [vmem:[#allocation100_spill] sm:$0xff] %v6727_v12  ;;  %1507 = vmatpush.msrb.mxu0 %v6745_v3  ;;  %v6751_v12 = vld [vmem:[%s8950_s2 + $0x268] sm:$0xff] }
 0x339   :  { %9981 = vst [vmem:[#allocation33_spill] sm:$0xff] %v6733_v38  ;;  %1578 = vmatpush.msrb.mxu3 %v6751_v12  ;;  %v6757_v38 = vld [vmem:[%s8950_s2 + $0x1c8] sm:$0xff] }
 0x33a   :  { %9982 = vst [vmem:[#allocation103_spill] sm:$0xff] %v6739_v6  ;;  %1547 = vmatpush.msrb.mxu2 %v6757_v38  ;;  %v6763_v6 = vld [vmem:[%s8950_s2 + $0x240] sm:$0xff] }
 0x33b   :  { %9983 = vst [vmem:[#allocation34_spill] sm:$0xff] %v6745_v3  ;;  %1539 = vmatpush.msrb.mxu1 %v6763_v6  ;;  %v6769_v3 = vld [vmem:[%s8950_s2 + $0x1a0] sm:$0xff] }
 0x33c   :  { %9984 = vst [vmem:[#allocation102_spill] sm:$0xff] %v6751_v12  ;;  %1508 = vmatpush.msrb.mxu0 %v6769_v3  ;;  %v6775_v12 = vld [vmem:[%s8950_s2 + $0x248] sm:$0xff] }
 0x33d   :  { %9985 = vst [vmem:[#allocation35_spill] sm:$0xff] %v6757_v38  ;;  %1579 = vmatpush.msrb.mxu3 %v6775_v12  ;;  %v6781_v38 = vld [vmem:[%s8950_s2 + $0x1a8] sm:$0xff] }
 0x33e   :  { %9986 = vst [vmem:[#allocation36_spill] sm:$0xff] %v6763_v6  ;;  %1548 = vmatpush.msrb.mxu2 %v6781_v38  ;;  %v6787_v6 = vld [vmem:[%s8950_s2 + $0x220] sm:$0xff] }
 0x33f   :  { %9987 = vst [vmem:[#allocation104_spill] sm:$0xff] %v6769_v3  ;;  %1540 = vmatpush.msrb.mxu1 %v6787_v6  ;;  %v6793_v3 = vld [vmem:[%s8950_s2 + $0x180] sm:$0xff] }
 0x340   :  { %9988 = vst [vmem:[#allocation37_spill] sm:$0xff] %v6775_v12  ;;  %1509 = vmatpush.msrb.mxu0 %v6793_v3  ;;  %v6799_v12 = vld [vmem:[%s8950_s2 + $0x228] sm:$0xff] }
 0x341   :  { %9989 = vst [vmem:[#allocation38_spill] sm:$0xff] %v6781_v38  ;;  %1580 = vmatpush.msrb.mxu3 %v6799_v12  ;;  %v6805_v38 = vld [vmem:[%s8950_s2 + $0x188] sm:$0xff] }
 0x342   :  { %9990 = vst [vmem:[#allocation39_spill] sm:$0xff] %v6787_v6  ;;  %1549 = vmatpush.msrb.mxu2 %v6805_v38  ;;  %v6811_v6 = vld [vmem:[%s8950_s2 + $0x200] sm:$0xff] }
 0x343   :  { %9991 = vst [vmem:[#allocation40_spill] sm:$0xff] %v6793_v3  ;;  %1541 = vmatpush.msrb.mxu1 %v6811_v6  ;;  %v6817_v3 = vld [vmem:[%s8950_s2 + $0x160] sm:$0xff] }
 0x344   :  { %9992 = vst [vmem:[#allocation41_spill] sm:$0xff] %v6799_v12  ;;  %1510 = vmatpush.msrb.mxu0 %v6817_v3  ;;  %v6823_v12 = vld [vmem:[%s8950_s2 + $0x208] sm:$0xff] }
 0x345   :  { %9993 = vst [vmem:[#allocation42_spill] sm:$0xff] %v6805_v38  ;;  %1581 = vmatpush.msrb.mxu3 %v6823_v12  ;;  %v6829_v38 = vld [vmem:[%s8950_s2 + $0x168] sm:$0xff] }
 0x346   :  { %9994 = vst [vmem:[#allocation43_spill] sm:$0xff] %v6811_v6  ;;  %1550 = vmatpush.msrb.mxu2 %v6829_v38  ;;  %v6835_v6 = vld [vmem:[%s8950_s2 + $0x3f0] sm:$0xff] }
 0x347   :  { %9995 = vst [vmem:[#allocation44_spill] sm:$0xff] %v6817_v3  ;;  %1606 = vmatpush.msra.mxu1 %v6835_v6  ;;  %v6841_v3 = vld [vmem:[%s8950_s2 + $0x3f8] sm:$0xff] }
 0x348   :  { %9996 = vst [vmem:[#allocation45_spill] sm:$0xff] %v6823_v12  ;;  %1646 = vmatpush.msra.mxu3 %v6841_v3  ;;  %v6847_v12 = vld [vmem:[%s8950_s2 + $0x140] sm:$0xff] }
 0x349   :  { %9997 = vst [vmem:[#allocation46_spill] sm:$0xff] %v6829_v38  ;;  %1511 = vmatpush.msrb.mxu0 %v6847_v12  ;;  %v6853_v38 = vld [vmem:[%s8950_s2 + $0x148] sm:$0xff] }
 0x34a   :  { %9998 = vst [vmem:[#allocation47_spill] sm:$0xff] %v6835_v6  ;;  %1551 = vmatpush.msrb.mxu2 %v6853_v38  ;;  %v6859_v6 = vld [vmem:[%s8950_s2 + $0x3d0] sm:$0xff] }
 0x34b   :  { %9999 = vst [vmem:[#allocation48_spill] sm:$0xff] %v6841_v3  ;;  %1607 = vmatpush.msra.mxu1 %v6859_v6  ;;  %v6865_v3 = vld [vmem:[%s8950_s2 + $0x3d8] sm:$0xff] }
 0x34c   :  { %10000 = vst [vmem:[#allocation49_spill] sm:$0xff] %v6847_v12  ;;  %1647 = vmatpush.msra.mxu3 %v6865_v3  ;;  %v6871_v12 = vld [vmem:[%s8950_s2 + $0x120] sm:$0xff] }
 0x34d   :  { %10001 = vst [vmem:[#allocation50_spill] sm:$0xff] %v6853_v38  ;;  %1512 = vmatpush.msrb.mxu0 %v6871_v12  ;;  %v6877_v38 = vld [vmem:[%s8950_s2 + $0x128] sm:$0xff] }
 0x34e   :  { %10002 = vst [vmem:[#allocation51_spill] sm:$0xff] %v6859_v6  ;;  %1552 = vmatpush.msrb.mxu2 %v6877_v38  ;;  %v6883_v6 = vld [vmem:[%s8950_s2 + $0x3b0] sm:$0xff] }
 0x34f   :  { %10003 = vst [vmem:[#allocation52_spill] sm:$0xff] %v6865_v3  ;;  %1608 = vmatpush.msra.mxu1 %v6883_v6  ;;  %v6889_v3 = vld [vmem:[%s8950_s2 + $0x3b8] sm:$0xff] }
 0x350   :  { %10004 = vst [vmem:[#allocation53_spill] sm:$0xff] %v6871_v12  ;;  %1648 = vmatpush.msra.mxu3 %v6889_v3  ;;  %v6895_v12 = vld [vmem:[%s8950_s2 + $0x100] sm:$0xff] }
 0x351   :  { %10005 = vst [vmem:[#allocation54_spill] sm:$0xff] %v6877_v38  ;;  %1513 = vmatpush.msrb.mxu0 %v6895_v12  ;;  %v6901_v38 = vld [vmem:[%s8950_s2 + $0x108] sm:$0xff] }
 0x352   :  { %10006 = vst [vmem:[#allocation55_spill] sm:$0xff] %v6883_v6  ;;  %1553 = vmatpush.msrb.mxu2 %v6901_v38  ;;  %v6907_v6 = vld [vmem:[%s8950_s2 + $0x390] sm:$0xff] }
 0x353   :  { %10007 = vst [vmem:[#allocation57_spill] sm:$0xff] %v6889_v3  ;;  %1609 = vmatpush.msra.mxu1 %v6907_v6  ;;  %v6913_v3 = vld [vmem:[%s8950_s2 + $0x398] sm:$0xff] }
 0x354   :  { %10008 = vst [vmem:[#allocation58_spill] sm:$0xff] %v6895_v12  ;;  %1649 = vmatpush.msra.mxu3 %v6913_v3  ;;  %v6919_v12 = vld [vmem:[%s8950_s2 + $0xe0] sm:$0xff] }
 0x355   :  { %10009 = vst [vmem:[#allocation61_spill] sm:$0xff] %v6901_v38  ;;  %1514 = vmatpush.msrb.mxu0 %v6919_v12  ;;  %v6925_v38 = vld [vmem:[%s8950_s2 + $0xe8] sm:$0xff] }
 0x356   :  { %10010 = vst [vmem:[#allocation62_spill] sm:$0xff] %v6907_v6  ;;  %1554 = vmatpush.msrb.mxu2 %v6925_v38  ;;  %v6931_v6 = vld [vmem:[%s8950_s2 + $0x370] sm:$0xff] }
 0x357   :  { %10011 = vst [vmem:[#allocation65_spill] sm:$0xff] %v6913_v3  ;;  %1610 = vmatpush.msra.mxu1 %v6931_v6  ;;  %v6937_v3 = vld [vmem:[%s8950_s2 + $0x378] sm:$0xff] }
 0x358   :  { %10012 = vst [vmem:[#allocation66_spill] sm:$0xff] %v6919_v12  ;;  %1650 = vmatpush.msra.mxu3 %v6937_v3  ;;  %v6943_v12 = vld [vmem:[%s8950_s2 + $0xc0] sm:$0xff] }
 0x359   :  { %10013 = vst [vmem:[#allocation69_spill] sm:$0xff] %v6925_v38  ;;  %1515 = vmatpush.msrb.mxu0 %v6943_v12  ;;  %v6949_v38 = vld [vmem:[%s8950_s2 + $0xc8] sm:$0xff] }
 0x35a   :  { %10014 = vst [vmem:[#allocation70_spill] sm:$0xff] %v6931_v6  ;;  %1555 = vmatpush.msrb.mxu2 %v6949_v38  ;;  %v6955_v6 = vld [vmem:[%s8950_s2 + $0x350] sm:$0xff] }
 0x35b   :  { %10015 = vst [vmem:[#allocation73_spill] sm:$0xff] %v6937_v3  ;;  %1611 = vmatpush.msra.mxu1 %v6955_v6  ;;  %v6961_v3 = vld [vmem:[%s8950_s2 + $0x358] sm:$0xff] }
 0x35c   :  { %10016 = vst [vmem:[#allocation75_spill] sm:$0xff] %v6943_v12  ;;  %1651 = vmatpush.msra.mxu3 %v6961_v3  ;;  %v6967_v12 = vld [vmem:[%s8950_s2 + $0xa0] sm:$0xff] }
 0x35d   :  { %10017 = vst [vmem:[#allocation76_spill] sm:$0xff] %v6949_v38  ;;  %1516 = vmatpush.msrb.mxu0 %v6967_v12  ;;  %v6973_v38 = vld [vmem:[%s8950_s2 + $0xa8] sm:$0xff] }
 0x35e   :  { %10018 = vst [vmem:[#allocation78_spill] sm:$0xff] %v6955_v6  ;;  %1556 = vmatpush.msrb.mxu2 %v6973_v38  ;;  %v6979_v6 = vld [vmem:[%s8950_s2 + $0x330] sm:$0xff] }
 0x35f   :  { %10019 = vst [vmem:[#allocation80_spill] sm:$0xff] %v6961_v3  ;;  %1612 = vmatpush.msra.mxu1 %v6979_v6  ;;  %v6985_v3 = vld [vmem:[%s8950_s2 + $0x338] sm:$0xff] }
 0x360   :  { %10020 = vst [vmem:[#allocation82_spill] sm:$0xff] %v6967_v12  ;;  %1652 = vmatpush.msra.mxu3 %v6985_v3  ;;  %v6991_v12 = vld [vmem:[%s8950_s2 + $0x80] sm:$0xff] }
 0x361   :  { %10021 = vst [vmem:[#allocation85_spill] sm:$0xff] %v6973_v38  ;;  %1517 = vmatpush.msrb.mxu0 %v6991_v12  ;;  %v6997_v38 = vld [vmem:[%s8950_s2 + $0x88] sm:$0xff] }
 0x362   :  { %10022 = vst [vmem:[#allocation87_spill] sm:$0xff] %v6979_v6  ;;  %1557 = vmatpush.msrb.mxu2 %v6997_v38  ;;  %v7003_v6 = vld [vmem:[%s8950_s2 + $0x310] sm:$0xff] }
 0x363   :  { %10023 = vst [vmem:[#allocation105_spill] sm:$0xff] %v6985_v3  ;;  %1613 = vmatpush.msra.mxu1 %v7003_v6  ;;  %v7009_v3 = vld [vmem:[%s8950_s2 + $0x318] sm:$0xff] }
 0x364   :  { %10024 = vst [vmem:[#allocation106_spill] sm:$0xff] %v6991_v12  ;;  %1653 = vmatpush.msra.mxu3 %v7009_v3  ;;  %v7015_v12 = vld [vmem:[%s8950_s2 + $0x60] sm:$0xff] }
 0x365   :  { %10025 = vst [vmem:[#allocation107_spill] sm:$0xff] %v6997_v38  ;;  %1518 = vmatpush.msrb.mxu0 %v7015_v12  ;;  %v7021_v38 = vld [vmem:[%s8950_s2 + $0x68] sm:$0xff] }
 0x366   :  { %10026 = vst [vmem:[#allocation108_spill] sm:$0xff] %v7003_v6  ;;  %1558 = vmatpush.msrb.mxu2 %v7021_v38  ;;  %v7027_v6 = vld [vmem:[%s8950_s2 + $0x2f0] sm:$0xff] }
 0x367   :  { %10027 = vst [vmem:[#allocation109_spill] sm:$0xff] %v7009_v3  ;;  %1614 = vmatpush.msra.mxu1 %v7027_v6  ;;  %v7033_v3 = vld [vmem:[%s8950_s2 + $0x2f8] sm:$0xff] }
 0x368   :  { %10028 = vst [vmem:[#allocation110_spill] sm:$0xff] %v7015_v12  ;;  %1654 = vmatpush.msra.mxu3 %v7033_v3  ;;  %v7039_v12 = vld [vmem:[%s8950_s2 + $0x40] sm:$0xff] }
 0x369   :  { %10029 = vst [vmem:[#allocation111_spill] sm:$0xff] %v7021_v38  ;;  %1519 = vmatpush.msrb.mxu0 %v7039_v12  ;;  %v7045_v38 = vld [vmem:[%s8950_s2 + $0x48] sm:$0xff] }
 0x36a   :  { %10030 = vst [vmem:[#allocation112_spill] sm:$0xff] %v7027_v6  ;;  %1559 = vmatpush.msrb.mxu2 %v7045_v38  ;;  %v7051_v6 = vld [vmem:[%s8950_s2 + $0x2d0] sm:$0xff] }
 0x36b   :  { %10031 = vst [vmem:[#allocation113_spill] sm:$0xff] %v7033_v3  ;;  %1615 = vmatpush.msra.mxu1 %v7051_v6  ;;  %v7057_v3 = vld [vmem:[%s8950_s2 + $0x2d8] sm:$0xff] }
 0x36c   :  { %10032 = vst [vmem:[#allocation114_spill] sm:$0xff] %v7039_v12  ;;  %1655 = vmatpush.msra.mxu3 %v7057_v3  ;;  %v7063_v12 = vld [vmem:[%s8950_s2 + $0x20] sm:$0xff] }
 0x36d   :  { %10033 = vst [vmem:[#allocation115_spill] sm:$0xff] %v7045_v38  ;;  %1520 = vmatpush.msrb.mxu0 %v7063_v12  ;;  %v7069_v38 = vld [vmem:[%s8950_s2 + $0x28] sm:$0xff] }
 0x36e   :  { %10034 = vst [vmem:[#allocation116_spill] sm:$0xff] %v7051_v6  ;;  %1560 = vmatpush.msrb.mxu2 %v7069_v38  ;;  %v7075_v6 = vld [vmem:[%s8950_s2 + $0x2b0] sm:$0xff] }
 0x36f   :  { %10035 = vst [vmem:[#allocation117_spill] sm:$0xff] %v7057_v3  ;;  %1616 = vmatpush.msra.mxu1 %v7075_v6  ;;  %v7081_v3 = vld [vmem:[%s8950_s2 + $0x2b8] sm:$0xff] }
 0x370   :  { %10036 = vst [vmem:[#allocation118_spill] sm:$0xff] %v7063_v12  ;;  %1656 = vmatpush.msra.mxu3 %v7081_v3  ;;  %v7087_v12 = vld [vmem:[%s8950_s2] sm:$0xff] }
 0x371   :  { %10037 = vst [vmem:[#allocation119_spill] sm:$0xff] %v7069_v38  ;;  %1521 = vmatpush.msrb.mxu0 %v7087_v12  ;;  %v7093_v38 = vld [vmem:[%s8950_s2 + $0x8] sm:$0xff] }
 0x372   :  { %10038 = vst [vmem:[#allocation120_spill] sm:$0xff] %v7075_v6  ;;  %1561 = vmatpush.msrb.mxu2 %v7093_v38  ;;  %v7099_v6 = vld [vmem:[%s8950_s2 + $0x290] sm:$0xff] }
 0x373   :  { %10039 = vst [vmem:[#allocation121_spill] sm:$0xff] %v7081_v3  ;;  %1617 = vmatpush.msra.mxu1 %v7099_v6  ;;  %v7105_v3 = vld [vmem:[%s8950_s2 + $0x298] sm:$0xff] }
 0x374   :  { %10040 = vst [vmem:[#allocation122_spill] sm:$0xff] %v7087_v12  ;;  %1657 = vmatpush.msra.mxu3 %v7105_v3  ;;  %v7111_v12 = vld [vmem:[%s8950_s2 + $0x1f0] sm:$0xff] }
 0x375   :  { %10041 = vst [vmem:[#allocation123_spill] sm:$0xff] %v7093_v38  ;;  %1586 = vmatpush.msra.mxu0 %v7111_v12  ;;  %v7117_v38 = vld [vmem:[%s8950_s2 + $0x1f8] sm:$0xff] }
 0x376   :  { %10042 = vst [vmem:[#allocation124_spill] sm:$0xff] %v7099_v6  ;;  %1626 = vmatpush.msra.mxu2 %v7117_v38  ;;  %v7123_v6 = vld [vmem:[%s8950_s2 + $0x270] sm:$0xff] }
 0x377   :  { %10043 = vst [vmem:[#allocation125_spill] sm:$0xff] %v7105_v3  ;;  %1618 = vmatpush.msra.mxu1 %v7123_v6  ;;  %v7129_v3 = vld [vmem:[%s8950_s2 + $0x278] sm:$0xff] }
 0x378   :  { %10044 = vst [vmem:[#allocation126_spill] sm:$0xff] %v7111_v12  ;;  %1658 = vmatpush.msra.mxu3 %v7129_v3  ;;  %v7135_v12 = vld [vmem:[%s8950_s2 + $0x1d0] sm:$0xff] }
 0x379   :  { %10045 = vst [vmem:[#allocation127_spill] sm:$0xff] %v7117_v38  ;;  %1587 = vmatpush.msra.mxu0 %v7135_v12  ;;  %v7141_v38 = vld [vmem:[%s8950_s2 + $0x1d8] sm:$0xff] }
 0x37a   :  { %10046 = vst [vmem:[#allocation128_spill] sm:$0xff] %v7123_v6  ;;  %1627 = vmatpush.msra.mxu2 %v7141_v38  ;;  %v7147_v6 = vld [vmem:[%s8950_s2 + $0x250] sm:$0xff] }
 0x37b   :  { %10047 = vst [vmem:[#allocation129_spill] sm:$0xff] %v7129_v3  ;;  %1619 = vmatpush.msra.mxu1 %v7147_v6  ;;  %v7153_v3 = vld [vmem:[%s8950_s2 + $0x258] sm:$0xff] }
 0x37c   :  { %10048 = vst [vmem:[#allocation130_spill] sm:$0xff] %v7135_v12  ;;  %1659 = vmatpush.msra.mxu3 %v7153_v3  ;;  %v7159_v12 = vld [vmem:[%s8950_s2 + $0x1b0] sm:$0xff] }
 0x37d   :  { %10049 = vst [vmem:[#allocation131_spill] sm:$0xff] %v7141_v38  ;;  %1588 = vmatpush.msra.mxu0 %v7159_v12  ;;  %v7165_v38 = vld [vmem:[%s8950_s2 + $0x1b8] sm:$0xff] }
 0x37e   :  { %10050 = vst [vmem:[#allocation132_spill] sm:$0xff] %v7147_v6  ;;  %1628 = vmatpush.msra.mxu2 %v7165_v38  ;;  %v7171_v6 = vld [vmem:[%s8950_s2 + $0x230] sm:$0xff] }
 0x37f   :  { %10051 = vst [vmem:[#allocation133_spill] sm:$0xff] %v7153_v3  ;;  %1620 = vmatpush.msra.mxu1 %v7171_v6  ;;  %v7177_v3 = vld [vmem:[%s8950_s2 + $0x238] sm:$0xff] }
 0x380   :  { %10052 = vst [vmem:[#allocation134_spill] sm:$0xff] %v7159_v12  ;;  %1660 = vmatpush.msra.mxu3 %v7177_v3  ;;  %v7183_v12 = vld [vmem:[%s8950_s2 + $0x190] sm:$0xff] }
 0x381   :  { %10053 = vst [vmem:[#allocation135_spill] sm:$0xff] %v7165_v38  ;;  %1589 = vmatpush.msra.mxu0 %v7183_v12  ;;  %v7189_v38 = vld [vmem:[%s8950_s2 + $0x198] sm:$0xff] }
 0x382   :  { %10054 = vst [vmem:[#allocation136_spill] sm:$0xff] %v7171_v6  ;;  %1629 = vmatpush.msra.mxu2 %v7189_v38  ;;  %v7195_v6 = vld [vmem:[%s8950_s2 + $0x210] sm:$0xff] }
 0x383   :  { %10055 = vst [vmem:[#allocation137_spill] sm:$0xff] %v7177_v3  ;;  %1621 = vmatpush.msra.mxu1 %v7195_v6  ;;  %v7201_v3 = vld [vmem:[%s8950_s2 + $0x218] sm:$0xff] }
 0x384   :  { %10056 = vst [vmem:[#allocation138_spill] sm:$0xff] %v7183_v12  ;;  %1661 = vmatpush.msra.mxu3 %v7201_v3  ;;  %v7207_v12 = vld [vmem:[%s8950_s2 + $0x170] sm:$0xff] }
 0x385   :  { %10057 = vst [vmem:[#allocation139_spill] sm:$0xff] %v7189_v38  ;;  %1590 = vmatpush.msra.mxu0 %v7207_v12  ;;  %v7213_v38 = vld [vmem:[%s8950_s2 + $0x178] sm:$0xff] }
 0x386   :  { %1630 = vmatpush.msra.mxu2 %v7213_v38 }
 0x387   :  { %1591 = vmatpush.msra.mxu0 %v6033_v33  ;;  %v1230_v33 = vpop.f32.mrf.mxu0 }
 0x388   :  { %1631 = vmatpush.msra.mxu2 %v6039_v35  ;;  %v1250_v35 = vpop.f32.mrf.mxu1 }
 0x389   :  { %1592 = vmatpush.msra.mxu0 %v6045_v11  ;;  %v1231_v11 = vadd.f32 %v1230_v33, %v4743_v4 }
 0x38a   :  { %1632 = vmatpush.msra.mxu2 %v6051_v56 }
 0x38b   :  { %1593 = vmatpush.msra.mxu0 %v6057_v61  ;;  %v1251_v56 = vadd.f32 %v1250_v35, %v1231_v11 }
 0x38c   :  { %1633 = vmatpush.msra.mxu2 %v6063_v0  ;;  %v1270_v0 = vpop.f32.mrf.mxu2 }
 0x38d   :  { %1594 = vmatpush.msra.mxu0 %v6069_v29  ;;  %v1374_v61 = vmul.f32 0.5, %v1251_v56  ;;  %v1290_v29 = vpop.f32.mrf.mxu3 }
 0x38e   :  { %1634 = vmatpush.msra.mxu2 %v6075_v31  ;;  %v1271_v31 = vadd.f32 %v1270_v0, %v4746_v14 }
 0x38f   :  { %1595 = vmatpush.msra.mxu0 %v6081_v55  ;;  %2671 = vtanh.f32 %v1374_v61  ;;  %v2585_v61 = vld [vmem:[%s8951_s0 + $0x88] sm:$0xff] }
 0x390   :  { %1635 = vmatpush.msra.mxu2 %v6087_v25  ;;  %v1291_v55 = vadd.f32 %v1290_v29, %v1271_v31  ;;  %v1310_v25 = vpop.f32.mrf.mxu0 }
 0x391   :  { %1596 = vmatpush.msra.mxu0 %v6093_v27  ;;  %v1311_v27 = vadd.f32 %v1310_v25, %v4748_v59 }
 0x392   :  { %1636 = vmatpush.msra.mxu2 %v6099_v21  ;;  %v1330_v21 = vpop.f32.mrf.mxu1 }
 0x393   :  { %1597 = vmatpush.msra.mxu0 %v6105_v23  ;;  %v1378_v23 = vmul.f32 0.5, %v1291_v55 }
 0x394   :  { %1637 = vmatpush.msra.mxu2 %v6111_v18  ;;  %v1331_v18 = vadd.f32 %v1330_v21, %v1311_v27 }
 0x395   :  { %1598 = vmatpush.msra.mxu0 %v6117_v20  ;;  %2673 = vtanh.f32 %v1378_v23  ;;  %v2672_v20 = vpop.eup %2671 }
 0x396   :  { %1638 = vmatpush.msra.mxu2 %v6123_v22  ;;  %2675 = vtanh.f32 %v1331_v18  ;;  %v1350_v22 = vpop.f32.mrf.mxu2  ;;  %v2584_v18 = vld [vmem:[%s8951_s0 + $0x80] sm:$0xff] }
 0x397   :  { %1599 = vmatpush.msra.mxu0 %v6129_v24  ;;  %v1351_v24 = vadd.f32 %v1350_v22, %v4752_v42 }
 0x398   :  { %1639 = vmatpush.msra.mxu2 %v6135_v26  ;;  %v1370_v26 = vpop.f32.mrf.mxu3 }
 0x399   :  { %1600 = vmatpush.msra.mxu0 %v6141_v28  ;;  %v1376_v28 = vmul.f32 0.5, %v2672_v20 }
 0x39a   :  { %1640 = vmatpush.msra.mxu2 %v6147_v30  ;;  %v1371_v30 = vadd.f32 %v1370_v26, %v1351_v24  ;;  %v1437_v0 = vpop.f32.mrf.mxu1 }
 0x39b   :  { %1601 = vmatpush.msra.mxu0 %v6153_v63  ;;  %v2674_v63 = vpop.eup %2673  ;;  %v1377_v11 = vadd.f32 0.5, %v1376_v28  ;;  %v1481_v55 = vadd.f32 %v2585_v61, %v1437_v0 }
 0x39c   :  { %1641 = vmatpush.msra.mxu2 %v6159_v5  ;;  %v1380_v5 = vmul.f32 0.5, %v2674_v63  ;;  %v1383_v33 = vmul.f32 0.5, %v1371_v30  ;;  %v2676_v35 = vpop.eup %2675 }
 0x39d   :  { %v1388_v31 = vmul.f32 %v2676_v35, %v1377_v11  ;;  %v1489_v21 = vmul.f32 0.5, %v1481_v55  ;;  %v10079_v55 = vld [vmem:[#allocation13_spill] sm:$0xff] }
 0x39e   :  { %v1381_v56 = vadd.f32 0.5, %v1380_v5  ;;  %2677 = vtanh.f32 %v1383_v33  ;;  %v2586_v33 = vld [vmem:[%s8951_s0 + $0x90] sm:$0xff] }
 0x3a0   :  { %v1387_v29 = vmul.f32 %v1381_v56, %v6170_v34  ;;  %v2587_v34 = vld [vmem:[%s8951_s0 + $0x98] sm:$0xff]  ;;  %v1477_v28 = vpop.f32.mrf.mxu3 }
 0x3a1   :  { %v1483_v5 = vadd.f32 %v2587_v34, %v1477_v28  ;;  %v10088_v34 = vld [vmem:[#allocation89_spill] sm:$0xff]  ;;  %v10089_v28 = vld [vmem:[#allocation20_spill] sm:$0xff] }
 0x3a2   :  { %v7246_v25 = vadd.f32 %v1388_v31, %v1387_v29  ;;  %v10078_v31 = vld [vmem:[#allocation81_spill] sm:$0xff] }
 0x3a3   :  { %v1494_v0 = vmul.f32 0.5, %v1483_v5  ;;  %v10092_v5 = vld [vmem:[#allocation91_spill] sm:$0xff] }
 0x3a4   :  { %v2678_v27 = vpop.eup %2677  ;;  %2679 = vtanh.f32 %v7246_v25 }
 0x3a5   :  { %v1385_v23 = vmul.f32 0.5, %v2678_v27  ;;  %2681 = vtanh.f32 %v1489_v21  ;;  %v10080_v27 = vld [vmem:[#allocation14_spill] sm:$0xff]  ;;  %v10081_v21 = vld [vmem:[#allocation15_spill] sm:$0xff] }
 0x3a7   :  { %v1386_v20 = vadd.f32 0.5, %v1385_v23  ;;  %v10082_v23 = vld [vmem:[#allocation16_spill] sm:$0xff] }
 0x3aa   :  { %v2680_v24 = vpop.eup %2679 }
 0x3ab   :  { %v1391_v30 = vmul.f32 %v2680_v24, %v1386_v20  ;;  %v2682_v35 = vpop.eup %2681  ;;  %v10084_v20 = vld [vmem:[#allocation17_spill] sm:$0xff]  ;;  %v10086_v24 = vld [vmem:[#allocation86_spill] sm:$0xff] }
 0x3ac   :  { %v1491_v61 = vmul.f32 0.5, %v2682_v35  ;;  %v10094_v35 = vld [vmem:[#allocation90_spill] sm:$0xff] }
 0x3ad   :  { %1542 = vmatmul.f32.vlgmr.msrb.gmra.mxu1 %v1391_v30  ;;  %1582 = vmatmul.f32.vlgmr.msrb.gmra.mxu3 %v1391_v30 }
 0x3ae   :  { %v1417_v22 = vpop.f32.mrf.mxu0  ;;  %1713 = vmatpush.msrb.mxu1 %v6185_v7  ;;  %1753 = vmatpush.msrb.mxu3 %v6191_v49  ;;  %v1492_v49 = vadd.f32 0.5, %v1491_v61  ;;  %v10097_v61 = vld [vmem:[#allocation24_spill] sm:$0xff] }
 0x3af   :  { %v1480_v26 = vadd.f32 %v2584_v18, %v1417_v22  ;;  %v10083_v18 = vld [vmem:[#allocation84_spill] sm:$0xff]  ;;  %v10085_v22 = vld [vmem:[#allocation18_spill] sm:$0xff] }
 0x3b0   :  { %1714 = vmatpush.msrb.mxu1 %v6197_v41  ;;  %1754 = vmatpush.msrb.mxu3 %v6203_v16 }
 0x3b1   :  { %v1485_v63 = vmul.f32 0.5, %v1480_v26  ;;  %v10087_v26 = vld [vmem:[#allocation19_spill] sm:$0xff] }
 0x3b2   :  { %1715 = vmatpush.msrb.mxu1 %v6209_v62  ;;  %1755 = vmatpush.msrb.mxu3 %v6215_v53  ;;  %v1498_v62 = vmul.f32 %v1492_v49, %v6267_v13  ;;  %v10060_v13 = vld [vmem:[#allocation60_spill] sm:$0xff]  ;;  %v10101_v49 = vld [vmem:[#allocation26_spill] sm:$0xff] }
 0x3b3   :  { %2683 = vtanh.f32 %v1485_v63  ;;  %v10091_v63 = vld [vmem:[#allocation21_spill] sm:$0xff] }
 0x3b4   :  { %1716 = vmatpush.msrb.mxu1 %v6221_v43  ;;  %1756 = vmatpush.msrb.mxu3 %v6227_v19 }
 0x3b5   :  { %1622 = vmatmul.f32.vlgmr.msra.gmra.mxu1 %v1391_v30  ;;  %1662 = vmatmul.f32.vlgmr.msra.gmra.mxu3 %v1391_v30  ;;  %v10090_v30 = vld [vmem:[#allocation88_spill] sm:$0xff] }
 0x3b6   :  { %v1457_v11 = vpop.f32.mrf.mxu2  ;;  %1717 = vmatpush.msrb.mxu1 %v6233_v48  ;;  %1757 = vmatpush.msrb.mxu3 %v6239_v52 }
 0x3b7   :  { %v1482_v56 = vadd.f32 %v2586_v33, %v1457_v11  ;;  %v10093_v33 = vld [vmem:[#allocation22_spill] sm:$0xff]  ;;  %v10095_v11 = vld [vmem:[#allocation23_spill] sm:$0xff] }
 0x3b8   :  { %1718 = vmatpush.msrb.mxu1 %v6245_v1  ;;  %1758 = vmatpush.msrb.mxu3 %v6251_v32 }
 0x3b9   :  { %2685 = vtanh.f32 %v1482_v56  ;;  %v2684_v29 = vpop.eup %2683  ;;  %v10096_v56 = vld [vmem:[#allocation93_spill] sm:$0xff] }
 0x3ba   :  { %v1487_v7 = vmul.f32 0.5, %v2684_v29  ;;  %2687 = vtanh.f32 %v1494_v0  ;;  %1719 = vmatpush.msrb.mxu1 %v6258_v37  ;;  %1759 = vmatpush.msrb.mxu3 %v6264_v40  ;;  %v10058_v37 = vld [vmem:[#allocation56_spill] sm:$0xff]  ;;  %v10059_v40 = vld [vmem:[#allocation59_spill] sm:$0xff]  ;;  %v10099_v29 = vld [vmem:[#allocation25_spill] sm:$0xff] }
 0x3bb   :  { %v10098_v0 = vld [vmem:[#allocation92_spill] sm:$0xff] }
 0x3bc   :  { %v1488_v41 = vadd.f32 0.5, %v1487_v7  ;;  %1720 = vmatpush.msrb.mxu1 %v6272_v46  ;;  %1760 = vmatpush.msrb.mxu3 %v6278_v8  ;;  %v10061_v46 = vld [vmem:[#allocation63_spill] sm:$0xff]  ;;  %v10062_v8 = vld [vmem:[#allocation64_spill] sm:$0xff] }
 0x3bd   :  { %v10100_v7 = vld [vmem:[#allocation95_spill] sm:$0xff] }
 0x3be   :  { %1721 = vmatpush.msrb.mxu1 %v6285_v36  ;;  %1761 = vmatpush.msrb.mxu3 %v6291_v45  ;;  %v10063_v36 = vld [vmem:[#allocation67_spill] sm:$0xff]  ;;  %v10064_v45 = vld [vmem:[#allocation68_spill] sm:$0xff] }
 0x3bf   :  { %v2686_v16 = vpop.eup %2685 }
 0x3c0   :  { %v1499_v53 = vmul.f32 %v2686_v16, %v1488_v41  ;;  %v2688_v43 = vpop.eup %2687  ;;  %1722 = vmatpush.msrb.mxu1 %v6297_v50  ;;  %1762 = vmatpush.msrb.mxu3 %v6303_v51  ;;  %v10065_v50 = vld [vmem:[#allocation71_spill] sm:$0xff]  ;;  %v10066_v51 = vld [vmem:[#allocation72_spill] sm:$0xff]  ;;  %v10102_v41 = vld [vmem:[#allocation94_spill] sm:$0xff] }
 0x3c1   :  { %v1496_v48 = vmul.f32 0.5, %v2688_v43  ;;  %v10103_v16 = vld [vmem:[#allocation27_spill] sm:$0xff]  ;;  %v10106_v43 = vld [vmem:[#allocation96_spill] sm:$0xff] }
 0x3c2   :  { %v7273_v19 = vadd.f32 %v1499_v53, %v1498_v62  ;;  %1723 = vmatpush.msrb.mxu1 %v6309_v57  ;;  %1763 = vmatpush.msrb.mxu3 %v6315_v58  ;;  %v10067_v57 = vld [vmem:[#allocation79_spill] sm:$0xff]  ;;  %v10068_v58 = vld [vmem:[#allocation6_spill] sm:$0xff]  ;;  %v10104_v62 = vld [vmem:[#allocation97_spill] sm:$0xff] }
 0x3c3   :  { %v1497_v52 = vadd.f32 0.5, %v1496_v48  ;;  %v10105_v53 = vld [vmem:[#allocation28_spill] sm:$0xff]  ;;  %v10107_v48 = vld [vmem:[#allocation29_spill] sm:$0xff] }
 0x3c4   :  { %2689 = vtanh.f32 %v7273_v19  ;;  %1724 = vmatpush.msrb.mxu1 %v6323_v60  ;;  %1764 = vmatpush.msrb.mxu3 %v6329_v2  ;;  %v10069_v60 = vld [vmem:[#allocation7_spill] sm:$0xff]  ;;  %v10070_v2 = vld [vmem:[#allocation8_spill] sm:$0xff] }
 0x3c6   :  { %1725 = vmatpush.msrb.mxu1 %v6349_v44  ;;  %1765 = vmatpush.msrb.mxu3 %v6355_v47  ;;  %v10073_v44 = vld [vmem:[#allocation10_spill] sm:$0xff]  ;;  %v10074_v47 = vld [vmem:[#allocation77_spill] sm:$0xff] }
 0x3c8   :  { %1726 = vmatpush.msrb.mxu1 %v6373_v39  ;;  %1766 = vmatpush.msrb.mxu3 %v6379_v15  ;;  %v10076_v39 = vld [vmem:[#allocation83_spill] sm:$0xff]  ;;  %v10077_v15 = vld [vmem:[#allocation12_spill] sm:$0xff] }
 0x3ca   :  { %v2690_v1 = vpop.eup %2689  ;;  %1727 = vmatpush.msrb.mxu1 %v10059_v40  ;;  %1767 = vmatpush.msrb.mxu3 %v10060_v13  ;;  %v10111_v40 = vld [vmem:[#allocation31_spill] sm:$0xff]  ;;  %v10112_v13 = vld [vmem:[#allocation101_spill] sm:$0xff] }
 0x3cb   :  { %v7286_v32 = vmul.f32 %v2690_v1, %v1497_v52  ;;  %v10108_v52 = vld [vmem:[#allocation99_spill] sm:$0xff]  ;;  %v10109_v1 = vld [vmem:[#allocation30_spill] sm:$0xff] }
 0x3cc   :  { %1728 = vmatpush.msrb.mxu1 %v10063_v36  ;;  %1768 = vmatpush.msrb.mxu3 %v10064_v45  ;;  %v10115_v36 = vld [vmem:[#allocation33_spill] sm:$0xff]  ;;  %v10117_v45 = vld [vmem:[#allocation34_spill] sm:$0xff] }
 0x3cd   :  { %1522 = vmatmul.f32.vlgmr.msrb.gmra.mxu0 %v7286_v32  ;;  %1562 = vmatmul.f32.vlgmr.msrb.gmra.mxu2 %v7286_v32 }
 0x3ce   :  { %1693 = vmatpush.msrb.mxu0 %v6337_v54  ;;  %1733 = vmatpush.msrb.mxu2 %v6343_v10  ;;  %v10071_v54 = vld [vmem:[#allocation74_spill] sm:$0xff]  ;;  %v10072_v10 = vld [vmem:[#allocation9_spill] sm:$0xff] }
 0x3cf   :  { %1729 = vmatmul.f32.vlgmr.msrb.gmra.mxu1 %v7286_v32  ;;  %1769 = vmatmul.f32.vlgmr.msrb.gmra.mxu3 %v7286_v32 }
 0x3d0   :  { %1694 = vmatpush.msrb.mxu0 %v6361_v17  ;;  %1734 = vmatpush.msrb.mxu2 %v10058_v37  ;;  %v10075_v17 = vld [vmem:[#allocation11_spill] sm:$0xff]  ;;  %v10110_v37 = vld [vmem:[#allocation98_spill] sm:$0xff] }
 0x3d1   :  { %1819 = vmatpush.msra.mxu1 %v10070_v2  ;;  %1859 = vmatpush.msra.mxu3 %v10072_v10  ;;  %v10124_v2 = vld [vmem:[#allocation39_spill] sm:$0xff]  ;;  %v10126_v10 = vld [vmem:[#allocation41_spill] sm:$0xff] }
 0x3d2   :  { %1695 = vmatpush.msrb.mxu0 %v10061_v46  ;;  %1735 = vmatpush.msrb.mxu2 %v10062_v8  ;;  %v10113_v46 = vld [vmem:[#allocation32_spill] sm:$0xff] }
 0x3d3   :  { %1820 = vmatpush.msra.mxu1 %v10074_v47  ;;  %1860 = vmatpush.msra.mxu3 %v10076_v39  ;;  %v10114_v8 = vld [vmem:[#allocation100_spill] sm:$0xff]  ;;  %v10128_v47 = vld [vmem:[#allocation43_spill] sm:$0xff]  ;;  %v10130_v39 = vld [vmem:[#allocation45_spill] sm:$0xff] }
 0x3d4   :  { %1696 = vmatpush.msrb.mxu0 %v10065_v50  ;;  %1736 = vmatpush.msrb.mxu2 %v10066_v51  ;;  %v10118_v50 = vld [vmem:[#allocation102_spill] sm:$0xff]  ;;  %v10119_v51 = vld [vmem:[#allocation35_spill] sm:$0xff] }
 0x3d5   :  { %1602 = vmatmul.f32.vlgmr.msra.gmra.mxu0 %v7286_v32  ;;  %1642 = vmatmul.f32.vlgmr.msra.gmra.mxu2 %v7286_v32 }
 0x3d6   :  { %1697 = vmatpush.msrb.mxu0 %v10067_v57  ;;  %1737 = vmatpush.msrb.mxu2 %v10068_v58  ;;  %v10120_v57 = vld [vmem:[#allocation36_spill] sm:$0xff]  ;;  %v10122_v58 = vld [vmem:[#allocation37_spill] sm:$0xff] }
 0x3d7   :  { %1821 = vmatpush.msra.mxu1 %v10078_v31  ;;  %1861 = vmatpush.msra.mxu3 %v10080_v27  ;;  %v10132_v31 = vld [vmem:[#allocation47_spill] sm:$0xff]  ;;  %v10134_v27 = vld [vmem:[#allocation49_spill] sm:$0xff] }
 0x3d8   :  { %1698 = vmatpush.msrb.mxu0 %v10069_v60  ;;  %1738 = vmatpush.msrb.mxu2 %v10071_v54  ;;  %v10123_v60 = vld [vmem:[#allocation38_spill] sm:$0xff]  ;;  %v10125_v54 = vld [vmem:[#allocation40_spill] sm:$0xff] }
 0x3d9   :  { %1822 = vmatpush.msra.mxu1 %v10082_v23  ;;  %1862 = vmatpush.msra.mxu3 %v10084_v20  ;;  %v10136_v23 = vld [vmem:[#allocation51_spill] sm:$0xff]  ;;  %v10138_v20 = vld [vmem:[#allocation53_spill] sm:$0xff] }
 0x3da   :  { %1699 = vmatpush.msrb.mxu0 %v10073_v44  ;;  %1739 = vmatpush.msrb.mxu2 %v10075_v17  ;;  %v10127_v44 = vld [vmem:[#allocation42_spill] sm:$0xff]  ;;  %v10129_v17 = vld [vmem:[#allocation44_spill] sm:$0xff] }
 0x3db   :  { %1823 = vmatpush.msra.mxu1 %v10086_v24  ;;  %1863 = vmatpush.msra.mxu3 %v10088_v34  ;;  %v10140_v24 = vld [vmem:[#allocation55_spill] sm:$0xff]  ;;  %v10142_v34 = vld [vmem:[#allocation58_spill] sm:$0xff] }
 0x3dc   :  { %1700 = vmatpush.msrb.mxu0 %v10077_v15  ;;  %1740 = vmatpush.msrb.mxu2 %v10079_v55  ;;  %v10131_v15 = vld [vmem:[#allocation46_spill] sm:$0xff]  ;;  %v10133_v55 = vld [vmem:[#allocation48_spill] sm:$0xff] }
 0x3dd   :  { %1824 = vmatpush.msra.mxu1 %v10090_v30  ;;  %1864 = vmatpush.msra.mxu3 %v10092_v5  ;;  %v10144_v30 = vld [vmem:[#allocation62_spill] sm:$0xff] }
 0x3de   :  { %1701 = vmatpush.msrb.mxu0 %v10081_v21  ;;  %1741 = vmatpush.msrb.mxu2 %v10083_v18  ;;  %v10135_v21 = vld [vmem:[#allocation50_spill] sm:$0xff]  ;;  %v10137_v18 = vld [vmem:[#allocation52_spill] sm:$0xff] }
 0x3df   :  { %1825 = vmatpush.msra.mxu1 %v10094_v35  ;;  %1865 = vmatpush.msra.mxu3 %v10096_v56  ;;  %v10146_v5 = vld [vmem:[#allocation66_spill] sm:$0xff]  ;;  %v10150_v56 = vld [vmem:[#allocation75_spill] sm:$0xff] }
 0x3e0   :  { %1702 = vmatpush.msrb.mxu0 %v10085_v22  ;;  %1742 = vmatpush.msrb.mxu2 %v10087_v26  ;;  %v10139_v22 = vld [vmem:[#allocation54_spill] sm:$0xff]  ;;  %v10141_v26 = vld [vmem:[#allocation57_spill] sm:$0xff] }
 0x3e1   :  { %1826 = vmatpush.msra.mxu1 %v10098_v0  ;;  %1866 = vmatpush.msra.mxu3 %v10100_v7  ;;  %v10148_v35 = vld [vmem:[#allocation70_spill] sm:$0xff] }
 0x3e2   :  { %1703 = vmatpush.msrb.mxu0 %v10089_v28  ;;  %1743 = vmatpush.msrb.mxu2 %v10091_v63  ;;  %v10143_v28 = vld [vmem:[#allocation61_spill] sm:$0xff]  ;;  %v10152_v0 = vld [vmem:[#allocation78_spill] sm:$0xff] }
 0x3e3   :  { %1827 = vmatpush.msra.mxu1 %v10102_v41  ;;  %1867 = vmatpush.msra.mxu3 %v10104_v62  ;;  %v10145_v63 = vld [vmem:[#allocation65_spill] sm:$0xff]  ;;  %v10154_v7 = vld [vmem:[#allocation82_spill] sm:$0xff]  ;;  %v10156_v41 = vld [vmem:[#allocation87_spill] sm:$0xff] }
 0x3e4   :  { %1704 = vmatpush.msrb.mxu0 %v10093_v33  ;;  %1744 = vmatpush.msrb.mxu2 %v10095_v11  ;;  %v10147_v33 = vld [vmem:[#allocation69_spill] sm:$0xff]  ;;  %v10158_v62 = vld [vmem:[#allocation106_spill] sm:$0xff] }
 0x3e5   :  { %1828 = vmatpush.msra.mxu1 %v10106_v43  ;;  %1868 = vmatpush.msra.mxu3 %v6683_v9  ;;  %v10116_v9 = vld [vmem:[#allocation103_spill] sm:$0xff]  ;;  %v10149_v11 = vld [vmem:[#allocation73_spill] sm:$0xff]  ;;  %v10160_v43 = vld [vmem:[#allocation108_spill] sm:$0xff] }
 0x3e6   :  { %1705 = vmatpush.msrb.mxu0 %v10097_v61  ;;  %1745 = vmatpush.msrb.mxu2 %v10099_v29  ;;  %v10151_v61 = vld [vmem:[#allocation76_spill] sm:$0xff] }
 0x3e7   :  { %1829 = vmatpush.msra.mxu1 %v10109_v1  ;;  %1869 = vmatpush.msra.mxu3 %v10111_v40  ;;  %v10153_v29 = vld [vmem:[#allocation80_spill] sm:$0xff]  ;;  %v10163_v1 = vld [vmem:[#allocation111_spill] sm:$0xff]  ;;  %v10165_v40 = vld [vmem:[#allocation113_spill] sm:$0xff] }
 0x3e8   :  { %1706 = vmatpush.msrb.mxu0 %v10101_v49  ;;  %1746 = vmatpush.msrb.mxu2 %v10103_v16  ;;  %v10155_v49 = vld [vmem:[#allocation85_spill] sm:$0xff] }
 0x3e9   :  { %1830 = vmatpush.msra.mxu1 %v10112_v13  ;;  %1870 = vmatpush.msra.mxu3 %v10114_v8  ;;  %v10157_v16 = vld [vmem:[#allocation105_spill] sm:$0xff]  ;;  %v10166_v13 = vld [vmem:[#allocation114_spill] sm:$0xff]  ;;  %v10168_v8 = vld [vmem:[#allocation116_spill] sm:$0xff] }
 0x3ea   :  { %1707 = vmatpush.msrb.mxu0 %v10105_v53  ;;  %1747 = vmatpush.msrb.mxu2 %v10107_v48  ;;  %v10159_v53 = vld [vmem:[#allocation107_spill] sm:$0xff]  ;;  %v10161_v48 = vld [vmem:[#allocation109_spill] sm:$0xff] }
 0x3eb   :  { %1831 = vmatpush.msra.mxu1 %v10116_v9  ;;  %1871 = vmatpush.msra.mxu3 %v10118_v50  ;;  %v10170_v9 = vld [vmem:[#allocation118_spill] sm:$0xff]  ;;  %v10172_v50 = vld [vmem:[#allocation120_spill] sm:$0xff] }
 0x3ec   :  { %1708 = vmatpush.msrb.mxu0 %v10108_v52  ;;  %1748 = vmatpush.msrb.mxu2 %v10110_v37  ;;  %v10162_v52 = vld [vmem:[#allocation110_spill] sm:$0xff]  ;;  %v10164_v37 = vld [vmem:[#allocation112_spill] sm:$0xff] }
 0x3ed   :  { %1709 = vmatmul.f32.vlgmr.msrb.gmra.mxu0 %v7286_v32  ;;  %1749 = vmatmul.f32.vlgmr.msrb.gmra.mxu2 %v7286_v32  ;;  %v10121_v32 = vld [vmem:[#allocation104_spill] sm:$0xff] }
 0x3ee   :  { %1799 = vmatpush.msra.mxu0 %v10113_v46  ;;  %1839 = vmatpush.msra.mxu2 %v10115_v36  ;;  %v10167_v46 = vld [vmem:[#allocation115_spill] sm:$0xff]  ;;  %v10169_v36 = vld [vmem:[#allocation117_spill] sm:$0xff] }
 0x3ef   :  { %1832 = vmatpush.msra.mxu1 %v10120_v57  ;;  %1872 = vmatpush.msra.mxu3 %v10122_v58  ;;  %v10174_v57 = vld [vmem:[#allocation122_spill] sm:$0xff]  ;;  %v10176_v58 = vld [vmem:[#allocation124_spill] sm:$0xff] }
 0x3f0   :  { %1800 = vmatpush.msra.mxu0 %v10117_v45  ;;  %1840 = vmatpush.msra.mxu2 %v10119_v51  ;;  %v10171_v45 = vld [vmem:[#allocation119_spill] sm:$0xff]  ;;  %v10173_v51 = vld [vmem:[#allocation121_spill] sm:$0xff] }
 0x3f1   :  { %1833 = vmatpush.msra.mxu1 %v10124_v2  ;;  %1873 = vmatpush.msra.mxu3 %v10126_v10  ;;  %v10178_v2 = vld [vmem:[#allocation126_spill] sm:$0xff]  ;;  %v10180_v10 = vld [vmem:[#allocation128_spill] sm:$0xff] }
 0x3f2   :  { %1801 = vmatpush.msra.mxu0 %v10121_v32  ;;  %1841 = vmatpush.msra.mxu2 %v10123_v60  ;;  %v10175_v32 = vld [vmem:[#allocation123_spill] sm:$0xff]  ;;  %v10177_v60 = vld [vmem:[#allocation125_spill] sm:$0xff] }
 0x3f3   :  { %1834 = vmatpush.msra.mxu1 %v10128_v47  ;;  %1874 = vmatpush.msra.mxu3 %v10130_v39  ;;  %v10182_v47 = vld [vmem:[#allocation130_spill] sm:$0xff]  ;;  %v10184_v39 = vld [vmem:[#allocation132_spill] sm:$0xff] }
 0x3f4   :  { %1802 = vmatpush.msra.mxu0 %v10125_v54  ;;  %1842 = vmatpush.msra.mxu2 %v10127_v44  ;;  %v10179_v54 = vld [vmem:[#allocation127_spill] sm:$0xff]  ;;  %v10181_v44 = vld [vmem:[#allocation129_spill] sm:$0xff] }
 0x3f5   :  { %1899 = vmatpush.msrb.mxu1 %v10132_v31  ;;  %1939 = vmatpush.msrb.mxu3 %v10133_v55  ;;  %v10186_v31 = vld [vmem:[#allocation134_spill] sm:$0xff]  ;;  %v10187_v55 = vld [vmem:[#allocation135_spill] sm:$0xff] }
 0x3f6   :  { %1803 = vmatpush.msra.mxu0 %v10129_v17  ;;  %1843 = vmatpush.msra.mxu2 %v10131_v15  ;;  %v10183_v17 = vld [vmem:[#allocation131_spill] sm:$0xff]  ;;  %v10185_v15 = vld [vmem:[#allocation133_spill] sm:$0xff] }
 0x3f7   :  { %1900 = vmatpush.msrb.mxu1 %v10136_v23  ;;  %1940 = vmatpush.msrb.mxu3 %v10137_v18  ;;  %v10190_v23 = vld [vmem:[#allocation138_spill] sm:$0xff]  ;;  %v10191_v18 = vld [vmem:[#allocation139_spill] sm:$0xff] }
 0x3f8   :  { %1804 = vmatpush.msra.mxu0 %v10134_v27  ;;  %1844 = vmatpush.msra.mxu2 %v10135_v21  ;;  %v10188_v27 = vld [vmem:[#allocation136_spill] sm:$0xff]  ;;  %v10189_v21 = vld [vmem:[#allocation137_spill] sm:$0xff] }
 0x3f9   :  { %1901 = vmatpush.msrb.mxu1 %v10140_v24  ;;  %1941 = vmatpush.msrb.mxu3 %v10141_v26  ;;  %v7481_v24 = vld [vmem:[%s8950_s2 + $0xf0] sm:$0xff]  ;;  %v7487_v26 = vld [vmem:[%s8950_s2 + $0xf8] sm:$0xff] }
 0x3fa   :  { %1805 = vmatpush.msra.mxu0 %v10138_v20  ;;  %1845 = vmatpush.msra.mxu2 %v10139_v22  ;;  %v7445_v20 = vld [vmem:[%s8950_s2 + $0x150] sm:$0xff]  ;;  %v7451_v22 = vld [vmem:[%s8950_s2 + $0x158] sm:$0xff] }
 0x3fb   :  { %1902 = vmatpush.msrb.mxu1 %v10144_v30  ;;  %1942 = vmatpush.msrb.mxu3 %v10145_v63  ;;  %v7505_v30 = vld [vmem:[%s8950_s2 + $0xb0] sm:$0xff]  ;;  %v7511_v63 = vld [vmem:[%s8950_s2 + $0xb8] sm:$0xff] }
 0x3fc   :  { %1806 = vmatpush.msra.mxu0 %v10142_v34  ;;  %1846 = vmatpush.msra.mxu2 %v10143_v28  ;;  %v7493_v34 = vld [vmem:[%s8950_s2 + $0xd0] sm:$0xff]  ;;  %v7499_v28 = vld [vmem:[%s8950_s2 + $0xd8] sm:$0xff] }
 0x3fd   :  { %1903 = vmatpush.msrb.mxu1 %v10148_v35  ;;  %1943 = vmatpush.msrb.mxu3 %v10149_v11  ;;  %v7529_v35 = vld [vmem:[%s8950_s2 + $0x70] sm:$0xff]  ;;  %v7535_v11 = vld [vmem:[%s8950_s2 + $0x78] sm:$0xff] }
 0x3fe   :  { %1807 = vmatpush.msra.mxu0 %v10146_v5  ;;  %1847 = vmatpush.msra.mxu2 %v10147_v33  ;;  %v7517_v5 = vld [vmem:[%s8950_s2 + $0x90] sm:$0xff]  ;;  %v7523_v33 = vld [vmem:[%s8950_s2 + $0x98] sm:$0xff] }
 0x3ff   :  { %1904 = vmatpush.msrb.mxu1 %v10152_v0  ;;  %1944 = vmatpush.msrb.mxu3 %v10153_v29  ;;  %v7553_v0 = vld [vmem:[%s8950_s2 + $0x30] sm:$0xff]  ;;  %v7559_v29 = vld [vmem:[%s8950_s2 + $0x38] sm:$0xff] }
 0x400   :  { %1808 = vmatpush.msra.mxu0 %v10150_v56  ;;  %1848 = vmatpush.msra.mxu2 %v10151_v61  ;;  %v7541_v56 = vld [vmem:[%s8950_s2 + $0x50] sm:$0xff]  ;;  %v7547_v61 = vld [vmem:[%s8950_s2 + $0x58] sm:$0xff] }
 0x401   :  { %1905 = vmatpush.msrb.mxu1 %v10156_v41  ;;  %1945 = vmatpush.msrb.mxu3 %v10157_v16 }
 0x402   :  { %1809 = vmatpush.msra.mxu0 %v10154_v7  ;;  %1849 = vmatpush.msra.mxu2 %v10155_v49  ;;  %v7565_v7 = vld [vmem:[%s8950_s2 + $0x10] sm:$0xff]  ;;  %v7571_v49 = vld [vmem:[%s8950_s2 + $0x18] sm:$0xff] }
 0x403   :  { %1906 = vmatpush.msrb.mxu1 %v10160_v43  ;;  %1946 = vmatpush.msrb.mxu3 %v10161_v48 }
 0x404   :  { %1810 = vmatpush.msra.mxu0 %v10158_v62  ;;  %1850 = vmatpush.msra.mxu2 %v10159_v53 }
 0x405   :  { %1907 = vmatpush.msrb.mxu1 %v10164_v37  ;;  %1947 = vmatpush.msrb.mxu3 %v10165_v40 }
 0x406   :  { %1811 = vmatpush.msra.mxu0 %v10162_v52  ;;  %1851 = vmatpush.msra.mxu2 %v10163_v1 }
 0x407   :  { %1908 = vmatpush.msrb.mxu1 %v10168_v8  ;;  %1948 = vmatpush.msrb.mxu3 %v10169_v36 }
 0x408   :  { %1812 = vmatpush.msra.mxu0 %v10166_v13  ;;  %1852 = vmatpush.msra.mxu2 %v10167_v46 }
 0x409   :  { %1909 = vmatpush.msrb.mxu1 %v10172_v50  ;;  %1949 = vmatpush.msrb.mxu3 %v10173_v51 }
 0x40a   :  { %1813 = vmatpush.msra.mxu0 %v10170_v9  ;;  %1853 = vmatpush.msra.mxu2 %v10171_v45 }
 0x40b   :  { %1910 = vmatpush.msrb.mxu1 %v10176_v58  ;;  %1950 = vmatpush.msrb.mxu3 %v10177_v60 }
 0x40c   :  { %1814 = vmatpush.msra.mxu0 %v10174_v57  ;;  %1854 = vmatpush.msra.mxu2 %v10175_v32 }
 0x40d   :  { %1911 = vmatpush.msrb.mxu1 %v10180_v10  ;;  %1951 = vmatpush.msrb.mxu3 %v10181_v44  ;;  %v2589_v10 = vld [vmem:[%s8951_s0 + $0xa8] sm:$0xff] }
 0x40e   :  { %1879 = vmatpush.msrb.mxu0 %v10178_v2  ;;  %1919 = vmatpush.msrb.mxu2 %v10179_v54 }
 0x40f   :  { %1912 = vmatpush.msrb.mxu1 %v10184_v39  ;;  %1952 = vmatpush.msrb.mxu3 %v10185_v15 }
 0x410   :  { %1880 = vmatpush.msrb.mxu0 %v10182_v47  ;;  %1920 = vmatpush.msrb.mxu2 %v10183_v17 }
 0x411   :  { %1913 = vmatpush.msrb.mxu1 %v10188_v27  ;;  %1953 = vmatpush.msrb.mxu3 %v10189_v21 }
 0x412   :  { %1881 = vmatpush.msrb.mxu0 %v10186_v31  ;;  %1921 = vmatpush.msrb.mxu2 %v10187_v55 }
 0x413   :  { %1914 = vmatpush.msrb.mxu1 %v7195_v6  ;;  %1954 = vmatpush.msrb.mxu3 %v7201_v3  ;;  %v7457_v3 = vld [vmem:[%s8950_s2 + $0x130] sm:$0xff] }
 0x414   :  { %1882 = vmatpush.msrb.mxu0 %v10190_v23  ;;  %1922 = vmatpush.msrb.mxu2 %v10191_v18  ;;  %v7469_v6 = vld [vmem:[%s8950_s2 + $0x110] sm:$0xff]  ;;  %v2588_v18 = vld [vmem:[%s8951_s0 + $0xa0] sm:$0xff] }
 0x416   :  { %1883 = vmatpush.msrb.mxu0 %v7207_v12  ;;  %1923 = vmatpush.msrb.mxu2 %v7213_v38  ;;  %v7463_v38 = vld [vmem:[%s8950_s2 + $0x138] sm:$0xff] }
 0x417   :  { %v7475_v12 = vld [vmem:[%s8950_s2 + $0x118] sm:$0xff] }
 0x418   :  { %1884 = vmatpush.msrb.mxu0 %v7445_v20  ;;  %1924 = vmatpush.msrb.mxu2 %v7451_v22 }
 0x41a   :  { %1885 = vmatpush.msrb.mxu0 %v7457_v3  ;;  %1925 = vmatpush.msrb.mxu2 %v7463_v38 }
 0x41c   :  { %1886 = vmatpush.msrb.mxu0 %v7469_v6  ;;  %1926 = vmatpush.msrb.mxu2 %v7475_v12 }
 0x41e   :  { %1887 = vmatpush.msrb.mxu0 %v7481_v24  ;;  %1927 = vmatpush.msrb.mxu2 %v7487_v26 }
 0x420   :  { %1888 = vmatpush.msrb.mxu0 %v7493_v34  ;;  %1928 = vmatpush.msrb.mxu2 %v7499_v28 }
 0x422   :  { %1889 = vmatpush.msrb.mxu0 %v7505_v30  ;;  %1929 = vmatpush.msrb.mxu2 %v7511_v63 }
 0x424   :  { %1890 = vmatpush.msrb.mxu0 %v7517_v5  ;;  %1930 = vmatpush.msrb.mxu2 %v7523_v33 }
 0x426   :  { %1891 = vmatpush.msrb.mxu0 %v7529_v35  ;;  %1931 = vmatpush.msrb.mxu2 %v7535_v11 }
 0x428   :  { %1892 = vmatpush.msrb.mxu0 %v7541_v56  ;;  %1932 = vmatpush.msrb.mxu2 %v7547_v61 }
 0x42a   :  { %1893 = vmatpush.msrb.mxu0 %v7553_v0  ;;  %1933 = vmatpush.msrb.mxu2 %v7559_v29  ;;  %v1543_v41 = vpop.f32.mrf.mxu1 }
 0x42c   :  { %1894 = vmatpush.msrb.mxu0 %v7565_v7  ;;  %1934 = vmatpush.msrb.mxu2 %v7571_v49 }
 0x430   :  { %v1583_v48 = vpop.f32.mrf.mxu3 }
 0x432   :  { %v1623_v46 = vpop.f32.mrf.mxu1 }
 0x438   :  { %v1663_v51 = vpop.f32.mrf.mxu3 }
 0x44a   :  { %v1523_v16 = vpop.f32.mrf.mxu0 }
 0x44b   :  { %v1524_v62 = vadd.f32 %v1523_v16, %v4743_v4 }
 0x44c   :  { %v1730_v44 = vpop.f32.mrf.mxu1 }
 0x44d   :  { %v1544_v53 = vadd.f32 %v1543_v41, %v1524_v62  ;;  %v1774_v31 = vadd.f32 %v2589_v10, %v1730_v44 }
 0x44f   :  { %v1667_v43 = vmul.f32 0.5, %v1544_v53  ;;  %v1782_v21 = vmul.f32 0.5, %v1774_v31  ;;  %v7663_v31 = vld [vmem:[%s8949_s1 + $0x158] sm:$0xff] }
 0x450   :  { %v1563_v52 = vpop.f32.mrf.mxu2 }
 0x451   :  { %v1564_v1 = vadd.f32 %v1563_v52, %v4746_v14  ;;  %2691 = vtanh.f32 %v1667_v43 }
 0x452   :  { %v1603_v37 = vpop.f32.mrf.mxu0  ;;  %v1770_v43 = vpop.f32.mrf.mxu3 }
 0x453   :  { %v1584_v40 = vadd.f32 %v1583_v48, %v1564_v1  ;;  %v1604_v13 = vadd.f32 %v1603_v37, %v4748_v59  ;;  %v2590_v37 = vld [vmem:[%s8951_s0 + $0xb0] sm:$0xff] }
 0x455   :  { %v1671_v8 = vmul.f32 0.5, %v1584_v40  ;;  %v1624_v36 = vadd.f32 %v1623_v46, %v1604_v13  ;;  %v7597_v13 = vld [vmem:[%s8949_s1 + $0x1e8] sm:$0xff]  ;;  %v7603_v46 = vld [vmem:[%s8949_s1 + $0x1f8] sm:$0xff] }
 0x457   :  { %2693 = vtanh.f32 %v1671_v8  ;;  %v2692_v45 = vpop.eup %2691 }
 0x458   :  { %v1643_v9 = vpop.f32.mrf.mxu2  ;;  %2695 = vtanh.f32 %v1624_v36  ;;  %v1669_v32 = vmul.f32 0.5, %v2692_v45  ;;  %v7615_v45 = vld [vmem:[%s8949_s1 + $0x1d8] sm:$0xff] }
 0x459   :  { %v1644_v50 = vadd.f32 %v1643_v9, %v4752_v42  ;;  %v7609_v9 = vld [vmem:[%s8949_s1 + $0x1c8] sm:$0xff] }
 0x45a   :  { %v1670_v47 = vadd.f32 0.5, %v1669_v32  ;;  %v7627_v32 = vld [vmem:[%s8949_s1 + $0x1b8] sm:$0xff] }
 0x45b   :  { %v1664_v57 = vadd.f32 %v1663_v51, %v1644_v50 }
 0x45d   :  { %v2694_v58 = vpop.eup %2693  ;;  %v1676_v60 = vmul.f32 0.5, %v1664_v57  ;;  %v7621_v57 = vld [vmem:[%s8949_s1 + $0x1a8] sm:$0xff] }
 0x45e   :  { %v1673_v2 = vmul.f32 0.5, %v2694_v58  ;;  %v2696_v54 = vpop.eup %2695 }
 0x45f   :  { %2697 = vtanh.f32 %v1676_v60  ;;  %v1681_v15 = vmul.f32 %v2696_v54, %v1670_v47  ;;  %v7639_v54 = vld [vmem:[%s8949_s1 + $0x198] sm:$0xff]  ;;  %v7645_v47 = vld [vmem:[%s8949_s1 + $0x168] sm:$0xff] }
 0x460   :  { %v1674_v17 = vadd.f32 0.5, %v1673_v2  ;;  %v7633_v2 = vld [vmem:[%s8949_s1 + $0x188] sm:$0xff] }
 0x462   :  { %v1680_v39 = vmul.f32 %v1674_v17, %v7246_v25  ;;  %v2591_v25 = vld [vmem:[%s8951_s0 + $0xb8] sm:$0xff] }
 0x463   :  { %v1776_v1 = vadd.f32 %v2591_v25, %v1770_v43  ;;  %v7651_v17 = vld [vmem:[%s8949_s1 + $0x178] sm:$0xff]  ;;  %v7697_v25 = vld [vmem:[%s8949_s1 + $0xe8] sm:$0xff] }
 0x464   :  { %v7582_v55 = vadd.f32 %v1681_v15, %v1680_v39  ;;  %v7657_v15 = vld [vmem:[%s8949_s1 + $0x148] sm:$0xff]  ;;  %v7703_v43 = vld [vmem:[%s8949_s1 + $0xf8] sm:$0xff] }
 0x465   :  { %v2698_v27 = vpop.eup %2697  ;;  %v1787_v51 = vmul.f32 0.5, %v1776_v1 }
 0x466   :  { %2699 = vtanh.f32 %v7582_v55  ;;  %v1678_v23 = vmul.f32 0.5, %v2698_v27 }
 0x467   :  { %2701 = vtanh.f32 %v1782_v21 }
 0x468   :  { %v1679_v16 = vadd.f32 0.5, %v1678_v23  ;;  %v7670_v23 = vld [vmem:[%s8949_s1 + $0x128] sm:$0xff] }
 0x46a   :  { %v1710_v41 = vpop.f32.mrf.mxu0 }
 0x46b   :  { %v1773_v62 = vadd.f32 %v2588_v18, %v1710_v41  ;;  %v7676_v18 = vld [vmem:[%s8949_s1 + $0x138] sm:$0xff] }
 0x46c   :  { %v2700_v53 = vpop.eup %2699 }
 0x46d   :  { %v1778_v48 = vmul.f32 0.5, %v1773_v62  ;;  %v1684_v52 = vmul.f32 %v2700_v53, %v1679_v16  ;;  %v2702_v40 = vpop.eup %2701  ;;  %v7690_v62 = vld [vmem:[%s8949_s1 + $0x118] sm:$0xff] }
 0x46e   :  { %v1784_v50 = vmul.f32 0.5, %v2702_v40  ;;  %v7727_v40 = vld [vmem:[%s8949_s1 + $0xb8] sm:$0xff] }
 0x46f   :  { %2703 = vtanh.f32 %v1778_v48  ;;  %1835 = vmatmul.f32.vlgmr.msra.gmra.mxu1 %v1684_v52  ;;  %1875 = vmatmul.f32.vlgmr.msra.gmra.mxu3 %v1684_v52  ;;  %v7709_v48 = vld [vmem:[%s8949_s1 + $0xc8] sm:$0xff] }
 0x470   :  { %2006 = vmatpush.msra.mxu1 %v7597_v13  ;;  %2046 = vmatpush.msra.mxu3 %v7603_v46  ;;  %v1750_v8 = vpop.f32.mrf.mxu2  ;;  %v1785_v10 = vadd.f32 0.5, %v1784_v50  ;;  %v7735_v50 = vld [vmem:[%s8949_s1 + $0x88] sm:$0xff] }
 0x471   :  { %v1775_v36 = vadd.f32 %v2590_v37, %v1750_v8  ;;  %v7721_v37 = vld [vmem:[%s8949_s1 + $0xa8] sm:$0xff] }
 0x472   :  { %2007 = vmatpush.msra.mxu1 %v7609_v9  ;;  %2047 = vmatpush.msra.mxu3 %v7615_v45  ;;  %v1791_v27 = vmul.f32 %v1785_v10, %v7273_v19  ;;  %v7684_v19 = vld [vmem:[%s8949_s1 + $0x108] sm:$0xff] }
 0x473   :  { %2705 = vtanh.f32 %v1775_v36  ;;  %v7761_v10 = vld [vmem:[%s8949_s1 + $0x68] sm:$0xff] }
 0x474   :  { %2008 = vmatpush.msra.mxu1 %v7621_v57  ;;  %2048 = vmatpush.msra.mxu3 %v7627_v32  ;;  %2707 = vtanh.f32 %v1787_v51  ;;  %v7741_v51 = vld [vmem:[%s8949_s1 + $0x98] sm:$0xff] }
 0x475   :  { %v2704_v58 = vpop.eup %2703 }
 0x476   :  { %v1780_v60 = vmul.f32 0.5, %v2704_v58  ;;  %2009 = vmatpush.msra.mxu1 %v7633_v2  ;;  %2049 = vmatpush.msra.mxu3 %v7639_v54  ;;  %v7749_v58 = vld [vmem:[%s8949_s1 + $0x1e0] sm:$0xff] }
 0x477   :  { %1915 = vmatmul.f32.vlgmr.msrb.gmra.mxu1 %v1684_v52  ;;  %1955 = vmatmul.f32.vlgmr.msrb.gmra.mxu3 %v1684_v52  ;;  %v7715_v52 = vld [vmem:[%s8949_s1 + $0xd8] sm:$0xff] }
 0x478   :  { %v1781_v44 = vadd.f32 0.5, %v1780_v60  ;;  %2010 = vmatpush.msra.mxu1 %v7645_v47  ;;  %2050 = vmatpush.msra.mxu3 %v7651_v17  ;;  %v7755_v60 = vld [vmem:[%s8949_s1 + $0x1f0] sm:$0xff] }
 0x479   :  { %v2706_v39 = vpop.eup %2705 }
 0x47a   :  { %2011 = vmatpush.msra.mxu1 %v7657_v15  ;;  %2051 = vmatpush.msra.mxu3 %v7663_v31  ;;  %v1792_v21 = vmul.f32 %v2706_v39, %v1781_v44  ;;  %v2708_v41 = vpop.eup %2707  ;;  %v7767_v44 = vld [vmem:[%s8949_s1 + $0x78] sm:$0xff]  ;;  %v7773_v39 = vld [vmem:[%s8949_s1 + $0x1c0] sm:$0xff] }
 0x47b   :  { %v1789_v53 = vmul.f32 0.5, %v2708_v41  ;;  %v7791_v41 = vld [vmem:[%s8949_s1 + $0x58] sm:$0xff] }
 0x47c   :  { %2012 = vmatpush.msra.mxu1 %v7670_v23  ;;  %2052 = vmatpush.msra.mxu3 %v7676_v18  ;;  %v7679_v16 = vadd.f32 %v1792_v21, %v1791_v27  ;;  %v7779_v27 = vld [vmem:[%s8949_s1 + $0x1d0] sm:$0xff]  ;;  %v7785_v21 = vld [vmem:[%s8949_s1 + $0x48] sm:$0xff] }
 0x47d   :  { %v1790_v1 = vadd.f32 0.5, %v1789_v53  ;;  %10192 = vst [vmem:[#allocation56_spill] sm:$0xff] %v7779_v27  ;;  %v7797_v53 = vld [vmem:[%s8949_s1 + $0x1a0] sm:$0xff] }
 0x47e   :  { %2013 = vmatpush.msra.mxu1 %v7684_v19  ;;  %2053 = vmatpush.msra.mxu3 %v7690_v62  ;;  %2709 = vtanh.f32 %v7679_v16  ;;  %10193 = vst [vmem:[#allocation59_spill] sm:$0xff] %v7797_v53 }
 0x480   :  { %2014 = vmatpush.msra.mxu1 %v7697_v25  ;;  %2054 = vmatpush.msra.mxu3 %v7703_v43 }
 0x482   :  { %2015 = vmatpush.msra.mxu1 %v7709_v48  ;;  %2055 = vmatpush.msra.mxu3 %v7715_v52 }
 0x484   :  { %2016 = vmatpush.msra.mxu1 %v7721_v37  ;;  %2056 = vmatpush.msra.mxu3 %v7727_v40  ;;  %v2710_v8 = vpop.eup %2709 }
 0x485   :  { %v7730_v36 = vmul.f32 %v2710_v8, %v1790_v1  ;;  %v7803_v1 = vld [vmem:[%s8949_s1 + $0x1b0] sm:$0xff]  ;;  %v7809_v8 = vld [vmem:[%s8949_s1 + $0x28] sm:$0xff] }
 0x486   :  { %2017 = vmatpush.msra.mxu1 %v7735_v50  ;;  %2057 = vmatpush.msra.mxu3 %v7741_v51  ;;  %10194 = vst [vmem:[#allocation60_spill] sm:$0xff] %v7803_v1 }
 0x487   :  { %1815 = vmatmul.f32.vlgmr.msra.gmra.mxu0 %v7730_v36  ;;  %1855 = vmatmul.f32.vlgmr.msra.gmra.mxu2 %v7730_v36  ;;  %10195 = vst [vmem:[#allocation63_spill] sm:$0xff] %v7809_v8 }
 0x488   :  { %1986 = vmatpush.msra.mxu0 %v7749_v58  ;;  %2026 = vmatpush.msra.mxu2 %v7755_v60 }
 0x489   :  { %2018 = vmatpush.msra.mxu1 %v7761_v10  ;;  %2058 = vmatpush.msra.mxu3 %v7767_v44 }
 0x48a   :  { %1987 = vmatpush.msra.mxu0 %v7773_v39  ;;  %2027 = vmatpush.msra.mxu2 %v7779_v27  ;;  %v7815_v27 = vld [vmem:[%s8949_s1 + $0x38] sm:$0xff] }
 0x48b   :  { %2019 = vmatpush.msra.mxu1 %v7785_v21  ;;  %2059 = vmatpush.msra.mxu3 %v7791_v41  ;;  %10196 = vst [vmem:[#allocation64_spill] sm:$0xff] %v7815_v27 }
 0x48c   :  { %1988 = vmatpush.msra.mxu0 %v7797_v53  ;;  %2028 = vmatpush.msra.mxu2 %v7803_v1  ;;  %v7821_v53 = vld [vmem:[%s8949_s1 + $0x180] sm:$0xff]  ;;  %v7827_v1 = vld [vmem:[%s8949_s1 + $0x190] sm:$0xff] }
 0x48d   :  { %2020 = vmatpush.msra.mxu1 %v7809_v8  ;;  %2060 = vmatpush.msra.mxu3 %v7815_v27  ;;  %10197 = vst [vmem:[#allocation67_spill] sm:$0xff] %v7821_v53  ;;  %v7833_v8 = vld [vmem:[%s8949_s1 + $0x8] sm:$0xff]  ;;  %v7839_v27 = vld [vmem:[%s8949_s1 + $0x18] sm:$0xff] }
 0x48e   :  { %1989 = vmatpush.msra.mxu0 %v7821_v53  ;;  %10198 = vst [vmem:[#allocation68_spill] sm:$0xff] %v7827_v1  ;;  %2029 = vmatpush.msra.mxu2 %v7827_v1  ;;  %v7847_v1 = vld [vmem:[%s8949_s1 + $0x160] sm:$0xff]  ;;  %v7854_v53 = vld [vmem:[%s8949_s1 + $0x170] sm:$0xff] }
 0x48f   :  { %10199 = vst [vmem:[#allocation71_spill] sm:$0xff] %v7833_v8  ;;  %2021 = vmatpush.msra.mxu1 %v7833_v8  ;;  %2061 = vmatpush.msra.mxu3 %v7839_v27  ;;  %v7879_v8 = vld [vmem:[%s8950_s2 + $0x3e8] sm:$0xff] }
 0x490   :  { %10200 = vst [vmem:[#allocation72_spill] sm:$0xff] %v7839_v27  ;;  %1895 = vmatmul.f32.vlgmr.msrb.gmra.mxu0 %v7730_v36  ;;  %1935 = vmatmul.f32.vlgmr.msrb.gmra.mxu2 %v7730_v36  ;;  %v7861_v27 = vld [vmem:[%s8949_s1 + $0x140] sm:$0xff] }
 0x491   :  { %10201 = vst [vmem:[#allocation79_spill] sm:$0xff] %v7847_v1  ;;  %1990 = vmatpush.msra.mxu0 %v7847_v1  ;;  %2022 = vmatmul.f32.vlgmr.msra.gmra.mxu1 %v7730_v36  ;;  %v7867_v1 = vld [vmem:[%s8950_s2 + $0x3e0] sm:$0xff] }
 0x492   :  { %10202 = vst [vmem:[#allocation6_spill] sm:$0xff] %v7854_v53  ;;  %2030 = vmatpush.msra.mxu2 %v7854_v53  ;;  %2062 = vmatmul.f32.vlgmr.msra.gmra.mxu3 %v7730_v36  ;;  %v7873_v53 = vld [vmem:[%s8949_s1 + $0x150] sm:$0xff] }
 0x493   :  { %10203 = vst [vmem:[#allocation7_spill] sm:$0xff] %v7861_v27  ;;  %1991 = vmatpush.msra.mxu0 %v7861_v27  ;;  %2112 = vmatpush.msrb.mxu1 %v7867_v1  ;;  %v7885_v27 = vld [vmem:[%s8949_s1 + $0x120] sm:$0xff] }
 0x494   :  { %10204 = vst [vmem:[#allocation8_spill] sm:$0xff] %v7867_v1  ;;  %2031 = vmatpush.msra.mxu2 %v7873_v53  ;;  %2152 = vmatpush.msrb.mxu3 %v7879_v8  ;;  %v7891_v1 = vld [vmem:[%s8950_s2 + $0x3c0] sm:$0xff] }
 0x495   :  { %10205 = vst [vmem:[#allocation74_spill] sm:$0xff] %v7873_v53  ;;  %1992 = vmatpush.msra.mxu0 %v7885_v27  ;;  %2113 = vmatpush.msrb.mxu1 %v7891_v1  ;;  %v7897_v53 = vld [vmem:[%s8949_s1 + $0x130] sm:$0xff] }
 0x496   :  { %10206 = vst [vmem:[#allocation9_spill] sm:$0xff] %v7879_v8  ;;  %2032 = vmatpush.msra.mxu2 %v7897_v53  ;;  %v7903_v8 = vld [vmem:[%s8950_s2 + $0x3c8] sm:$0xff] }
 0x497   :  { %10207 = vst [vmem:[#allocation10_spill] sm:$0xff] %v7885_v27  ;;  %2153 = vmatpush.msrb.mxu3 %v7903_v8  ;;  %v7909_v27 = vld [vmem:[%s8949_s1 + $0x100] sm:$0xff] }
 0x498   :  { %10208 = vst [vmem:[#allocation77_spill] sm:$0xff] %v7891_v1  ;;  %1993 = vmatpush.msra.mxu0 %v7909_v27  ;;  %v7915_v1 = vld [vmem:[%s8950_s2 + $0x3a0] sm:$0xff] }
 0x499   :  { %10209 = vst [vmem:[#allocation11_spill] sm:$0xff] %v7897_v53  ;;  %2114 = vmatpush.msrb.mxu1 %v7915_v1  ;;  %v7921_v53 = vld [vmem:[%s8949_s1 + $0x110] sm:$0xff] }
 0x49a   :  { %10210 = vst [vmem:[#allocation83_spill] sm:$0xff] %v7903_v8  ;;  %2033 = vmatpush.msra.mxu2 %v7921_v53  ;;  %v7927_v8 = vld [vmem:[%s8950_s2 + $0x3a8] sm:$0xff] }
 0x49b   :  { %10211 = vst [vmem:[#allocation12_spill] sm:$0xff] %v7909_v27  ;;  %2154 = vmatpush.msrb.mxu3 %v7927_v8  ;;  %v7933_v27 = vld [vmem:[%s8949_s1 + $0xe0] sm:$0xff] }
 0x49c   :  { %10212 = vst [vmem:[#allocation81_spill] sm:$0xff] %v7915_v1  ;;  %1994 = vmatpush.msra.mxu0 %v7933_v27  ;;  %v7939_v1 = vld [vmem:[%s8950_s2 + $0x380] sm:$0xff] }
 0x49d   :  { %10213 = vst [vmem:[#allocation13_spill] sm:$0xff] %v7921_v53  ;;  %2115 = vmatpush.msrb.mxu1 %v7939_v1  ;;  %v7945_v53 = vld [vmem:[%s8949_s1 + $0xf0] sm:$0xff] }
 0x49e   :  { %10214 = vst [vmem:[#allocation14_spill] sm:$0xff] %v7927_v8  ;;  %2034 = vmatpush.msra.mxu2 %v7945_v53  ;;  %v7951_v8 = vld [vmem:[%s8950_s2 + $0x388] sm:$0xff] }
 0x49f   :  { %10215 = vst [vmem:[#allocation15_spill] sm:$0xff] %v7933_v27  ;;  %2155 = vmatpush.msrb.mxu3 %v7951_v8  ;;  %v7957_v27 = vld [vmem:[%s8949_s1 + $0xc0] sm:$0xff] }
 0x4a0   :  { %10216 = vst [vmem:[#allocation16_spill] sm:$0xff] %v7939_v1  ;;  %1995 = vmatpush.msra.mxu0 %v7957_v27  ;;  %v7963_v1 = vld [vmem:[%s8950_s2 + $0x360] sm:$0xff] }
 0x4a1   :  { %10217 = vst [vmem:[#allocation84_spill] sm:$0xff] %v7945_v53  ;;  %2116 = vmatpush.msrb.mxu1 %v7963_v1  ;;  %v7969_v53 = vld [vmem:[%s8949_s1 + $0xd0] sm:$0xff] }
 0x4a2   :  { %10218 = vst [vmem:[#allocation17_spill] sm:$0xff] %v7951_v8  ;;  %2035 = vmatpush.msra.mxu2 %v7969_v53  ;;  %v7975_v8 = vld [vmem:[%s8950_s2 + $0x368] sm:$0xff] }
 0x4a3   :  { %10219 = vst [vmem:[#allocation18_spill] sm:$0xff] %v7957_v27  ;;  %2156 = vmatpush.msrb.mxu3 %v7975_v8  ;;  %v7981_v27 = vld [vmem:[%s8949_s1 + $0xa0] sm:$0xff] }
 0x4a4   :  { %10220 = vst [vmem:[#allocation86_spill] sm:$0xff] %v7963_v1  ;;  %1996 = vmatpush.msra.mxu0 %v7981_v27  ;;  %v7987_v1 = vld [vmem:[%s8950_s2 + $0x340] sm:$0xff] }
 0x4a5   :  { %10221 = vst [vmem:[#allocation19_spill] sm:$0xff] %v7969_v53  ;;  %2117 = vmatpush.msrb.mxu1 %v7987_v1  ;;  %v7993_v53 = vld [vmem:[%s8949_s1 + $0xb0] sm:$0xff] }
 0x4a6   :  { %10222 = vst [vmem:[#allocation89_spill] sm:$0xff] %v7975_v8  ;;  %2036 = vmatpush.msra.mxu2 %v7993_v53  ;;  %v7999_v8 = vld [vmem:[%s8950_s2 + $0x348] sm:$0xff] }
 0x4a7   :  { %10223 = vst [vmem:[#allocation20_spill] sm:$0xff] %v7981_v27  ;;  %2157 = vmatpush.msrb.mxu3 %v7999_v8  ;;  %v8005_v27 = vld [vmem:[%s8949_s1 + $0x80] sm:$0xff] }
 0x4a8   :  { %10224 = vst [vmem:[#allocation88_spill] sm:$0xff] %v7987_v1  ;;  %1997 = vmatpush.msra.mxu0 %v8005_v27  ;;  %v8011_v1 = vld [vmem:[%s8950_s2 + $0x320] sm:$0xff] }
 0x4a9   :  { %10225 = vst [vmem:[#allocation21_spill] sm:$0xff] %v7993_v53  ;;  %2118 = vmatpush.msrb.mxu1 %v8011_v1  ;;  %v8017_v53 = vld [vmem:[%s8949_s1 + $0x90] sm:$0xff] }
 0x4aa   :  { %10226 = vst [vmem:[#allocation91_spill] sm:$0xff] %v7999_v8  ;;  %2037 = vmatpush.msra.mxu2 %v8017_v53  ;;  %v8023_v8 = vld [vmem:[%s8950_s2 + $0x328] sm:$0xff] }
 0x4ab   :  { %10227 = vst [vmem:[#allocation22_spill] sm:$0xff] %v8005_v27  ;;  %2158 = vmatpush.msrb.mxu3 %v8023_v8  ;;  %v8029_v27 = vld [vmem:[%s8949_s1 + $0x60] sm:$0xff] }
 0x4ac   :  { %10228 = vst [vmem:[#allocation90_spill] sm:$0xff] %v8011_v1  ;;  %1998 = vmatpush.msra.mxu0 %v8029_v27  ;;  %v8035_v1 = vld [vmem:[%s8950_s2 + $0x300] sm:$0xff] }
 0x4ad   :  { %10229 = vst [vmem:[#allocation23_spill] sm:$0xff] %v8017_v53  ;;  %2119 = vmatpush.msrb.mxu1 %v8035_v1  ;;  %v8041_v53 = vld [vmem:[%s8949_s1 + $0x70] sm:$0xff] }
 0x4ae   :  { %10230 = vst [vmem:[#allocation93_spill] sm:$0xff] %v8023_v8  ;;  %2038 = vmatpush.msra.mxu2 %v8041_v53  ;;  %v8047_v8 = vld [vmem:[%s8950_s2 + $0x308] sm:$0xff] }
 0x4af   :  { %10231 = vst [vmem:[#allocation24_spill] sm:$0xff] %v8029_v27  ;;  %2159 = vmatpush.msrb.mxu3 %v8047_v8  ;;  %v8053_v27 = vld [vmem:[%s8949_s1 + $0x40] sm:$0xff] }
 0x4b0   :  { %10232 = vst [vmem:[#allocation92_spill] sm:$0xff] %v8035_v1  ;;  %1999 = vmatpush.msra.mxu0 %v8053_v27  ;;  %v8059_v1 = vld [vmem:[%s8950_s2 + $0x2e0] sm:$0xff] }
 0x4b1   :  { %10233 = vst [vmem:[#allocation25_spill] sm:$0xff] %v8041_v53  ;;  %2120 = vmatpush.msrb.mxu1 %v8059_v1  ;;  %v8065_v53 = vld [vmem:[%s8949_s1 + $0x50] sm:$0xff] }
 0x4b2   :  { %10234 = vst [vmem:[#allocation95_spill] sm:$0xff] %v8047_v8  ;;  %2039 = vmatpush.msra.mxu2 %v8065_v53  ;;  %v8071_v8 = vld [vmem:[%s8950_s2 + $0x2e8] sm:$0xff] }
 0x4b3   :  { %10235 = vst [vmem:[#allocation26_spill] sm:$0xff] %v8053_v27  ;;  %2160 = vmatpush.msrb.mxu3 %v8071_v8  ;;  %v8077_v27 = vld [vmem:[%s8949_s1 + $0x20] sm:$0xff] }
 0x4b4   :  { %10236 = vst [vmem:[#allocation94_spill] sm:$0xff] %v8059_v1  ;;  %2000 = vmatpush.msra.mxu0 %v8077_v27  ;;  %v8083_v1 = vld [vmem:[%s8950_s2 + $0x2c0] sm:$0xff] }
 0x4b5   :  { %10237 = vst [vmem:[#allocation27_spill] sm:$0xff] %v8065_v53  ;;  %2121 = vmatpush.msrb.mxu1 %v8083_v1  ;;  %v8089_v53 = vld [vmem:[%s8949_s1 + $0x30] sm:$0xff] }
 0x4b6   :  { %10238 = vst [vmem:[#allocation97_spill] sm:$0xff] %v8071_v8  ;;  %2040 = vmatpush.msra.mxu2 %v8089_v53  ;;  %v8095_v8 = vld [vmem:[%s8950_s2 + $0x2c8] sm:$0xff] }
 0x4b7   :  { %10239 = vst [vmem:[#allocation28_spill] sm:$0xff] %v8077_v27  ;;  %2161 = vmatpush.msrb.mxu3 %v8095_v8  ;;  %v8101_v27 = vld [vmem:[%s8949_s1] sm:$0xff] }
 0x4b8   :  { %10240 = vst [vmem:[#allocation96_spill] sm:$0xff] %v8083_v1  ;;  %2001 = vmatpush.msra.mxu0 %v8101_v27  ;;  %v8107_v1 = vld [vmem:[%s8950_s2 + $0x2a0] sm:$0xff] }
 0x4b9   :  { %10241 = vst [vmem:[#allocation29_spill] sm:$0xff] %v8089_v53  ;;  %2122 = vmatpush.msrb.mxu1 %v8107_v1  ;;  %v8113_v53 = vld [vmem:[%s8949_s1 + $0x10] sm:$0xff]  ;;  %2002 = vmatmul.f32.vlgmr.msra.gmra.mxu0 %v7730_v36 }
 0x4ba   :  { %10242 = vst [vmem:[#allocation99_spill] sm:$0xff] %v8101_v27  ;;  %2041 = vmatpush.msra.mxu2 %v8113_v53  ;;  %v8121_v27 = vld [vmem:[%s8950_s2 + $0x2a8] sm:$0xff] }
 0x4bb   :  { %10243 = vst [vmem:[#allocation30_spill] sm:$0xff] %v8107_v1  ;;  %2042 = vmatmul.f32.vlgmr.msra.gmra.mxu2 %v7730_v36  ;;  %2162 = vmatpush.msrb.mxu3 %v8121_v27  ;;  %v8127_v1 = vld [vmem:[%s8950_s2 + $0x280] sm:$0xff]  ;;  %v8139_v36 = vld [vmem:[%s8950_s2 + $0x288] sm:$0xff] }
 0x4bc   :  { %10244 = vst [vmem:[#allocation98_spill] sm:$0xff] %v8113_v53  ;;  %2123 = vmatpush.msrb.mxu1 %v8127_v1  ;;  %v8133_v53 = vld [vmem:[%s8950_s2 + $0x1e0] sm:$0xff] }
 0x4bd   :  { %10245 = vst [vmem:[#allocation31_spill] sm:$0xff] %v8121_v27  ;;  %2092 = vmatpush.msrb.mxu0 %v8133_v53  ;;  %2163 = vmatpush.msrb.mxu3 %v8139_v36  ;;  %v8145_v27 = vld [vmem:[%s8950_s2 + $0x1e8] sm:$0xff] }
 0x4be   :  { %10246 = vst [vmem:[#allocation101_spill] sm:$0xff] %v8127_v1  ;;  %2132 = vmatpush.msrb.mxu2 %v8145_v27  ;;  %v8151_v1 = vld [vmem:[%s8950_s2 + $0x260] sm:$0xff] }
 0x4bf   :  { %10247 = vst [vmem:[#allocation32_spill] sm:$0xff] %v8133_v53  ;;  %2124 = vmatpush.msrb.mxu1 %v8151_v1  ;;  %v8157_v53 = vld [vmem:[%s8950_s2 + $0x1c0] sm:$0xff] }
 0x4c0   :  { %10248 = vst [vmem:[#allocation100_spill] sm:$0xff] %v8139_v36  ;;  %2093 = vmatpush.msrb.mxu0 %v8157_v53  ;;  %v8163_v36 = vld [vmem:[%s8950_s2 + $0x268] sm:$0xff] }
 0x4c1   :  { %10249 = vst [vmem:[#allocation33_spill] sm:$0xff] %v8145_v27  ;;  %2164 = vmatpush.msrb.mxu3 %v8163_v36  ;;  %v8169_v27 = vld [vmem:[%s8950_s2 + $0x1c8] sm:$0xff] }
 0x4c2   :  { %10250 = vst [vmem:[#allocation103_spill] sm:$0xff] %v8151_v1  ;;  %2133 = vmatpush.msrb.mxu2 %v8169_v27  ;;  %v8175_v1 = vld [vmem:[%s8950_s2 + $0x240] sm:$0xff] }
 0x4c3   :  { %10251 = vst [vmem:[#allocation34_spill] sm:$0xff] %v8157_v53  ;;  %2125 = vmatpush.msrb.mxu1 %v8175_v1  ;;  %v8181_v53 = vld [vmem:[%s8950_s2 + $0x1a0] sm:$0xff] }
 0x4c4   :  { %10252 = vst [vmem:[#allocation102_spill] sm:$0xff] %v8163_v36  ;;  %2094 = vmatpush.msrb.mxu0 %v8181_v53  ;;  %v8187_v36 = vld [vmem:[%s8950_s2 + $0x248] sm:$0xff] }
 0x4c5   :  { %10253 = vst [vmem:[#allocation35_spill] sm:$0xff] %v8169_v27  ;;  %2165 = vmatpush.msrb.mxu3 %v8187_v36  ;;  %v8193_v27 = vld [vmem:[%s8950_s2 + $0x1a8] sm:$0xff] }
 0x4c6   :  { %10254 = vst [vmem:[#allocation36_spill] sm:$0xff] %v8175_v1  ;;  %2134 = vmatpush.msrb.mxu2 %v8193_v27  ;;  %v8199_v1 = vld [vmem:[%s8950_s2 + $0x220] sm:$0xff] }
 0x4c7   :  { %10255 = vst [vmem:[#allocation104_spill] sm:$0xff] %v8181_v53  ;;  %2126 = vmatpush.msrb.mxu1 %v8199_v1  ;;  %v8205_v53 = vld [vmem:[%s8950_s2 + $0x180] sm:$0xff] }
 0x4c8   :  { %10256 = vst [vmem:[#allocation37_spill] sm:$0xff] %v8187_v36  ;;  %2095 = vmatpush.msrb.mxu0 %v8205_v53  ;;  %v8211_v36 = vld [vmem:[%s8950_s2 + $0x228] sm:$0xff] }
 0x4c9   :  { %10257 = vst [vmem:[#allocation38_spill] sm:$0xff] %v8193_v27  ;;  %2166 = vmatpush.msrb.mxu3 %v8211_v36  ;;  %v8217_v27 = vld [vmem:[%s8950_s2 + $0x188] sm:$0xff] }
 0x4ca   :  { %10258 = vst [vmem:[#allocation39_spill] sm:$0xff] %v8199_v1  ;;  %2135 = vmatpush.msrb.mxu2 %v8217_v27  ;;  %v8223_v1 = vld [vmem:[%s8950_s2 + $0x200] sm:$0xff] }
 0x4cb   :  { %10259 = vst [vmem:[#allocation40_spill] sm:$0xff] %v8205_v53  ;;  %2127 = vmatpush.msrb.mxu1 %v8223_v1  ;;  %v8229_v53 = vld [vmem:[%s8950_s2 + $0x160] sm:$0xff] }
 0x4cc   :  { %10260 = vst [vmem:[#allocation41_spill] sm:$0xff] %v8211_v36  ;;  %2096 = vmatpush.msrb.mxu0 %v8229_v53  ;;  %v8235_v36 = vld [vmem:[%s8950_s2 + $0x208] sm:$0xff] }
 0x4cd   :  { %10261 = vst [vmem:[#allocation42_spill] sm:$0xff] %v8217_v27  ;;  %2167 = vmatpush.msrb.mxu3 %v8235_v36  ;;  %v8241_v27 = vld [vmem:[%s8950_s2 + $0x168] sm:$0xff] }
 0x4ce   :  { %10262 = vst [vmem:[#allocation43_spill] sm:$0xff] %v8223_v1  ;;  %2136 = vmatpush.msrb.mxu2 %v8241_v27  ;;  %v8247_v1 = vld [vmem:[%s8950_s2 + $0x3f0] sm:$0xff] }
 0x4cf   :  { %10263 = vst [vmem:[#allocation44_spill] sm:$0xff] %v8229_v53  ;;  %2192 = vmatpush.msra.mxu1 %v8247_v1  ;;  %v8253_v53 = vld [vmem:[%s8950_s2 + $0x3f8] sm:$0xff] }
 0x4d0   :  { %10264 = vst [vmem:[#allocation45_spill] sm:$0xff] %v8235_v36  ;;  %2232 = vmatpush.msra.mxu3 %v8253_v53  ;;  %v8259_v36 = vld [vmem:[%s8950_s2 + $0x140] sm:$0xff] }
 0x4d1   :  { %10265 = vst [vmem:[#allocation46_spill] sm:$0xff] %v8241_v27  ;;  %2097 = vmatpush.msrb.mxu0 %v8259_v36  ;;  %v8265_v27 = vld [vmem:[%s8950_s2 + $0x148] sm:$0xff] }
 0x4d2   :  { %10266 = vst [vmem:[#allocation47_spill] sm:$0xff] %v8247_v1  ;;  %2137 = vmatpush.msrb.mxu2 %v8265_v27  ;;  %v8271_v1 = vld [vmem:[%s8950_s2 + $0x3d0] sm:$0xff] }
 0x4d3   :  { %10267 = vst [vmem:[#allocation48_spill] sm:$0xff] %v8253_v53  ;;  %2193 = vmatpush.msra.mxu1 %v8271_v1  ;;  %v8277_v53 = vld [vmem:[%s8950_s2 + $0x3d8] sm:$0xff] }
 0x4d4   :  { %10268 = vst [vmem:[#allocation49_spill] sm:$0xff] %v8259_v36  ;;  %2233 = vmatpush.msra.mxu3 %v8277_v53  ;;  %v8283_v36 = vld [vmem:[%s8950_s2 + $0x120] sm:$0xff] }
 0x4d5   :  { %10269 = vst [vmem:[#allocation50_spill] sm:$0xff] %v8265_v27  ;;  %2098 = vmatpush.msrb.mxu0 %v8283_v36  ;;  %v8289_v27 = vld [vmem:[%s8950_s2 + $0x128] sm:$0xff] }
 0x4d6   :  { %10270 = vst [vmem:[#allocation51_spill] sm:$0xff] %v8271_v1  ;;  %2138 = vmatpush.msrb.mxu2 %v8289_v27  ;;  %v8295_v1 = vld [vmem:[%s8950_s2 + $0x3b0] sm:$0xff] }
 0x4d7   :  { %10271 = vst [vmem:[#allocation52_spill] sm:$0xff] %v8277_v53  ;;  %2194 = vmatpush.msra.mxu1 %v8295_v1  ;;  %v8301_v53 = vld [vmem:[%s8950_s2 + $0x3b8] sm:$0xff] }
 0x4d8   :  { %10272 = vst [vmem:[#allocation53_spill] sm:$0xff] %v8283_v36  ;;  %2234 = vmatpush.msra.mxu3 %v8301_v53  ;;  %v8307_v36 = vld [vmem:[%s8950_s2 + $0x100] sm:$0xff] }
 0x4d9   :  { %10273 = vst [vmem:[#allocation54_spill] sm:$0xff] %v8289_v27  ;;  %2099 = vmatpush.msrb.mxu0 %v8307_v36  ;;  %v8313_v27 = vld [vmem:[%s8950_s2 + $0x108] sm:$0xff] }
 0x4da   :  { %10274 = vst [vmem:[#allocation55_spill] sm:$0xff] %v8295_v1  ;;  %2139 = vmatpush.msrb.mxu2 %v8313_v27  ;;  %v8319_v1 = vld [vmem:[%s8950_s2 + $0x390] sm:$0xff] }
 0x4db   :  { %10275 = vst [vmem:[#allocation57_spill] sm:$0xff] %v8301_v53  ;;  %2195 = vmatpush.msra.mxu1 %v8319_v1  ;;  %v8325_v53 = vld [vmem:[%s8950_s2 + $0x398] sm:$0xff] }
 0x4dc   :  { %10276 = vst [vmem:[#allocation58_spill] sm:$0xff] %v8307_v36  ;;  %2235 = vmatpush.msra.mxu3 %v8325_v53  ;;  %v8331_v36 = vld [vmem:[%s8950_s2 + $0xe0] sm:$0xff] }
 0x4dd   :  { %10277 = vst [vmem:[#allocation61_spill] sm:$0xff] %v8313_v27  ;;  %2100 = vmatpush.msrb.mxu0 %v8331_v36  ;;  %v8337_v27 = vld [vmem:[%s8950_s2 + $0xe8] sm:$0xff] }
 0x4de   :  { %10278 = vst [vmem:[#allocation62_spill] sm:$0xff] %v8319_v1  ;;  %2140 = vmatpush.msrb.mxu2 %v8337_v27  ;;  %v8343_v1 = vld [vmem:[%s8950_s2 + $0x370] sm:$0xff] }
 0x4df   :  { %10279 = vst [vmem:[#allocation65_spill] sm:$0xff] %v8325_v53  ;;  %2196 = vmatpush.msra.mxu1 %v8343_v1  ;;  %v8349_v53 = vld [vmem:[%s8950_s2 + $0x378] sm:$0xff] }
 0x4e0   :  { %10280 = vst [vmem:[#allocation66_spill] sm:$0xff] %v8331_v36  ;;  %2236 = vmatpush.msra.mxu3 %v8349_v53  ;;  %v8355_v36 = vld [vmem:[%s8950_s2 + $0xc0] sm:$0xff] }
 0x4e1   :  { %10281 = vst [vmem:[#allocation69_spill] sm:$0xff] %v8337_v27  ;;  %2101 = vmatpush.msrb.mxu0 %v8355_v36  ;;  %v8361_v27 = vld [vmem:[%s8950_s2 + $0xc8] sm:$0xff] }
 0x4e2   :  { %10282 = vst [vmem:[#allocation70_spill] sm:$0xff] %v8343_v1  ;;  %2141 = vmatpush.msrb.mxu2 %v8361_v27  ;;  %v8367_v1 = vld [vmem:[%s8950_s2 + $0x350] sm:$0xff] }
 0x4e3   :  { %10283 = vst [vmem:[#allocation73_spill] sm:$0xff] %v8349_v53  ;;  %2197 = vmatpush.msra.mxu1 %v8367_v1  ;;  %v8373_v53 = vld [vmem:[%s8950_s2 + $0x358] sm:$0xff] }
 0x4e4   :  { %10284 = vst [vmem:[#allocation75_spill] sm:$0xff] %v8355_v36  ;;  %2237 = vmatpush.msra.mxu3 %v8373_v53  ;;  %v8379_v36 = vld [vmem:[%s8950_s2 + $0xa0] sm:$0xff] }
 0x4e5   :  { %10285 = vst [vmem:[#allocation76_spill] sm:$0xff] %v8361_v27  ;;  %2102 = vmatpush.msrb.mxu0 %v8379_v36  ;;  %v8385_v27 = vld [vmem:[%s8950_s2 + $0xa8] sm:$0xff] }
 0x4e6   :  { %10286 = vst [vmem:[#allocation78_spill] sm:$0xff] %v8367_v1  ;;  %2142 = vmatpush.msrb.mxu2 %v8385_v27  ;;  %v8391_v1 = vld [vmem:[%s8950_s2 + $0x330] sm:$0xff] }
 0x4e7   :  { %10287 = vst [vmem:[#allocation80_spill] sm:$0xff] %v8373_v53  ;;  %2198 = vmatpush.msra.mxu1 %v8391_v1  ;;  %v8397_v53 = vld [vmem:[%s8950_s2 + $0x338] sm:$0xff] }
 0x4e8   :  { %10288 = vst [vmem:[#allocation82_spill] sm:$0xff] %v8379_v36  ;;  %2238 = vmatpush.msra.mxu3 %v8397_v53  ;;  %v8403_v36 = vld [vmem:[%s8950_s2 + $0x80] sm:$0xff] }
 0x4e9   :  { %10289 = vst [vmem:[#allocation85_spill] sm:$0xff] %v8385_v27  ;;  %2103 = vmatpush.msrb.mxu0 %v8403_v36  ;;  %v8409_v27 = vld [vmem:[%s8950_s2 + $0x88] sm:$0xff] }
 0x4ea   :  { %10290 = vst [vmem:[#allocation87_spill] sm:$0xff] %v8391_v1  ;;  %2143 = vmatpush.msrb.mxu2 %v8409_v27  ;;  %v8415_v1 = vld [vmem:[%s8950_s2 + $0x310] sm:$0xff] }
 0x4eb   :  { %10291 = vst [vmem:[#allocation105_spill] sm:$0xff] %v8397_v53  ;;  %2199 = vmatpush.msra.mxu1 %v8415_v1  ;;  %v8421_v53 = vld [vmem:[%s8950_s2 + $0x318] sm:$0xff] }
 0x4ec   :  { %10292 = vst [vmem:[#allocation106_spill] sm:$0xff] %v8403_v36  ;;  %2239 = vmatpush.msra.mxu3 %v8421_v53  ;;  %v8427_v36 = vld [vmem:[%s8950_s2 + $0x60] sm:$0xff] }
 0x4ed   :  { %10293 = vst [vmem:[#allocation107_spill] sm:$0xff] %v8409_v27  ;;  %2104 = vmatpush.msrb.mxu0 %v8427_v36  ;;  %v8433_v27 = vld [vmem:[%s8950_s2 + $0x68] sm:$0xff] }
 0x4ee   :  { %10294 = vst [vmem:[#allocation108_spill] sm:$0xff] %v8415_v1  ;;  %2144 = vmatpush.msrb.mxu2 %v8433_v27  ;;  %v8439_v1 = vld [vmem:[%s8950_s2 + $0x2f0] sm:$0xff] }
 0x4ef   :  { %10295 = vst [vmem:[#allocation109_spill] sm:$0xff] %v8421_v53  ;;  %2200 = vmatpush.msra.mxu1 %v8439_v1  ;;  %v8445_v53 = vld [vmem:[%s8950_s2 + $0x2f8] sm:$0xff] }
 0x4f0   :  { %10296 = vst [vmem:[#allocation110_spill] sm:$0xff] %v8427_v36  ;;  %2240 = vmatpush.msra.mxu3 %v8445_v53  ;;  %v8451_v36 = vld [vmem:[%s8950_s2 + $0x40] sm:$0xff] }
 0x4f1   :  { %10297 = vst [vmem:[#allocation111_spill] sm:$0xff] %v8433_v27  ;;  %2105 = vmatpush.msrb.mxu0 %v8451_v36  ;;  %v8457_v27 = vld [vmem:[%s8950_s2 + $0x48] sm:$0xff] }
 0x4f2   :  { %10298 = vst [vmem:[#allocation112_spill] sm:$0xff] %v8439_v1  ;;  %2145 = vmatpush.msrb.mxu2 %v8457_v27  ;;  %v8463_v1 = vld [vmem:[%s8950_s2 + $0x2d0] sm:$0xff] }
 0x4f3   :  { %10299 = vst [vmem:[#allocation113_spill] sm:$0xff] %v8445_v53  ;;  %2201 = vmatpush.msra.mxu1 %v8463_v1  ;;  %v8469_v53 = vld [vmem:[%s8950_s2 + $0x2d8] sm:$0xff] }
 0x4f4   :  { %10300 = vst [vmem:[#allocation114_spill] sm:$0xff] %v8451_v36  ;;  %2241 = vmatpush.msra.mxu3 %v8469_v53  ;;  %v8475_v36 = vld [vmem:[%s8950_s2 + $0x20] sm:$0xff] }
 0x4f5   :  { %10301 = vst [vmem:[#allocation115_spill] sm:$0xff] %v8457_v27  ;;  %2106 = vmatpush.msrb.mxu0 %v8475_v36  ;;  %v8481_v27 = vld [vmem:[%s8950_s2 + $0x28] sm:$0xff] }
 0x4f6   :  { %10302 = vst [vmem:[#allocation116_spill] sm:$0xff] %v8463_v1  ;;  %2146 = vmatpush.msrb.mxu2 %v8481_v27  ;;  %v8487_v1 = vld [vmem:[%s8950_s2 + $0x2b0] sm:$0xff] }
 0x4f7   :  { %10303 = vst [vmem:[#allocation117_spill] sm:$0xff] %v8469_v53  ;;  %2202 = vmatpush.msra.mxu1 %v8487_v1  ;;  %v8493_v53 = vld [vmem:[%s8950_s2 + $0x2b8] sm:$0xff] }
 0x4f8   :  { %10304 = vst [vmem:[#allocation118_spill] sm:$0xff] %v8475_v36  ;;  %2242 = vmatpush.msra.mxu3 %v8493_v53  ;;  %v8499_v36 = vld [vmem:[%s8950_s2] sm:$0xff] }
 0x4f9   :  { %10305 = vst [vmem:[#allocation119_spill] sm:$0xff] %v8481_v27  ;;  %2107 = vmatpush.msrb.mxu0 %v8499_v36  ;;  %v8505_v27 = vld [vmem:[%s8950_s2 + $0x8] sm:$0xff] }
 0x4fa   :  { %10306 = vst [vmem:[#allocation120_spill] sm:$0xff] %v8487_v1  ;;  %2147 = vmatpush.msrb.mxu2 %v8505_v27  ;;  %v8511_v1 = vld [vmem:[%s8950_s2 + $0x290] sm:$0xff] }
 0x4fb   :  { %10307 = vst [vmem:[#allocation121_spill] sm:$0xff] %v8493_v53  ;;  %2203 = vmatpush.msra.mxu1 %v8511_v1  ;;  %v8517_v53 = vld [vmem:[%s8950_s2 + $0x298] sm:$0xff] }
 0x4fc   :  { %10308 = vst [vmem:[#allocation122_spill] sm:$0xff] %v8499_v36  ;;  %2243 = vmatpush.msra.mxu3 %v8517_v53  ;;  %v8523_v36 = vld [vmem:[%s8950_s2 + $0x1f0] sm:$0xff] }
 0x4fd   :  { %10309 = vst [vmem:[#allocation123_spill] sm:$0xff] %v8505_v27  ;;  %2172 = vmatpush.msra.mxu0 %v8523_v36  ;;  %v8529_v27 = vld [vmem:[%s8950_s2 + $0x1f8] sm:$0xff] }
 0x4fe   :  { %10310 = vst [vmem:[#allocation124_spill] sm:$0xff] %v8511_v1  ;;  %2212 = vmatpush.msra.mxu2 %v8529_v27  ;;  %v8535_v1 = vld [vmem:[%s8950_s2 + $0x270] sm:$0xff] }
 0x4ff   :  { %10311 = vst [vmem:[#allocation125_spill] sm:$0xff] %v8517_v53  ;;  %2204 = vmatpush.msra.mxu1 %v8535_v1  ;;  %v8541_v53 = vld [vmem:[%s8950_s2 + $0x278] sm:$0xff] }
 0x500   :  { %10312 = vst [vmem:[#allocation126_spill] sm:$0xff] %v8523_v36  ;;  %2244 = vmatpush.msra.mxu3 %v8541_v53  ;;  %v8547_v36 = vld [vmem:[%s8950_s2 + $0x1d0] sm:$0xff] }
 0x501   :  { %10313 = vst [vmem:[#allocation127_spill] sm:$0xff] %v8529_v27  ;;  %2173 = vmatpush.msra.mxu0 %v8547_v36  ;;  %v8553_v27 = vld [vmem:[%s8950_s2 + $0x1d8] sm:$0xff] }
 0x502   :  { %10314 = vst [vmem:[#allocation128_spill] sm:$0xff] %v8535_v1  ;;  %2213 = vmatpush.msra.mxu2 %v8553_v27  ;;  %v8559_v1 = vld [vmem:[%s8950_s2 + $0x250] sm:$0xff] }
 0x503   :  { %10315 = vst [vmem:[#allocation129_spill] sm:$0xff] %v8541_v53  ;;  %2205 = vmatpush.msra.mxu1 %v8559_v1  ;;  %v8565_v53 = vld [vmem:[%s8950_s2 + $0x258] sm:$0xff] }
 0x504   :  { %10316 = vst [vmem:[#allocation130_spill] sm:$0xff] %v8547_v36  ;;  %2245 = vmatpush.msra.mxu3 %v8565_v53  ;;  %v8571_v36 = vld [vmem:[%s8950_s2 + $0x1b0] sm:$0xff] }
 0x505   :  { %10317 = vst [vmem:[#allocation131_spill] sm:$0xff] %v8553_v27  ;;  %2174 = vmatpush.msra.mxu0 %v8571_v36  ;;  %v8577_v27 = vld [vmem:[%s8950_s2 + $0x1b8] sm:$0xff] }
 0x506   :  { %10318 = vst [vmem:[#allocation132_spill] sm:$0xff] %v8559_v1  ;;  %2214 = vmatpush.msra.mxu2 %v8577_v27  ;;  %v8583_v1 = vld [vmem:[%s8950_s2 + $0x230] sm:$0xff] }
 0x507   :  { %10319 = vst [vmem:[#allocation133_spill] sm:$0xff] %v8565_v53  ;;  %2206 = vmatpush.msra.mxu1 %v8583_v1  ;;  %v8589_v53 = vld [vmem:[%s8950_s2 + $0x238] sm:$0xff] }
 0x508   :  { %10320 = vst [vmem:[#allocation134_spill] sm:$0xff] %v8571_v36  ;;  %2246 = vmatpush.msra.mxu3 %v8589_v53  ;;  %v8595_v36 = vld [vmem:[%s8950_s2 + $0x190] sm:$0xff] }
 0x509   :  { %10321 = vst [vmem:[#allocation135_spill] sm:$0xff] %v8577_v27  ;;  %2175 = vmatpush.msra.mxu0 %v8595_v36  ;;  %v8601_v27 = vld [vmem:[%s8950_s2 + $0x198] sm:$0xff] }
 0x50a   :  { %10322 = vst [vmem:[#allocation136_spill] sm:$0xff] %v8583_v1  ;;  %2215 = vmatpush.msra.mxu2 %v8601_v27  ;;  %v8607_v1 = vld [vmem:[%s8950_s2 + $0x210] sm:$0xff] }
 0x50b   :  { %10323 = vst [vmem:[#allocation137_spill] sm:$0xff] %v8589_v53  ;;  %2207 = vmatpush.msra.mxu1 %v8607_v1  ;;  %v8613_v53 = vld [vmem:[%s8950_s2 + $0x218] sm:$0xff] }
 0x50c   :  { %10324 = vst [vmem:[#allocation138_spill] sm:$0xff] %v8595_v36  ;;  %2247 = vmatpush.msra.mxu3 %v8613_v53  ;;  %v8619_v36 = vld [vmem:[%s8950_s2 + $0x170] sm:$0xff] }
 0x50d   :  { %10325 = vst [vmem:[#allocation139_spill] sm:$0xff] %v8601_v27  ;;  %2176 = vmatpush.msra.mxu0 %v8619_v36  ;;  %v8625_v27 = vld [vmem:[%s8950_s2 + $0x178] sm:$0xff] }
 0x50e   :  { %2216 = vmatpush.msra.mxu2 %v8625_v27 }
 0x50f   :  { %2177 = vmatpush.msra.mxu0 %v7445_v20  ;;  %v1816_v20 = vpop.f32.mrf.mxu0 }
 0x510   :  { %2217 = vmatpush.msra.mxu2 %v7451_v22  ;;  %v1836_v22 = vpop.f32.mrf.mxu1 }
 0x511   :  { %2178 = vmatpush.msra.mxu0 %v7457_v3  ;;  %v1817_v3 = vadd.f32 %v1816_v20, %v4743_v4 }
 0x512   :  { %2218 = vmatpush.msra.mxu2 %v7463_v38 }
 0x513   :  { %2179 = vmatpush.msra.mxu0 %v7469_v6  ;;  %v1837_v38 = vadd.f32 %v1836_v22, %v1817_v3 }
 0x514   :  { %2219 = vmatpush.msra.mxu2 %v7475_v12  ;;  %v1856_v12 = vpop.f32.mrf.mxu2 }
 0x515   :  { %2180 = vmatpush.msra.mxu0 %v7481_v24  ;;  %v1960_v6 = vmul.f32 0.5, %v1837_v38  ;;  %v1876_v24 = vpop.f32.mrf.mxu3 }
 0x516   :  { %2220 = vmatpush.msra.mxu2 %v7487_v26  ;;  %v1857_v26 = vadd.f32 %v1856_v12, %v4746_v14 }
 0x517   :  { %2181 = vmatpush.msra.mxu0 %v7493_v34  ;;  %2711 = vtanh.f32 %v1960_v6  ;;  %v2593_v6 = vld [vmem:[%s8951_s0 + $0xc8] sm:$0xff] }
 0x518   :  { %2221 = vmatpush.msra.mxu2 %v7499_v28  ;;  %v1877_v34 = vadd.f32 %v1876_v24, %v1857_v26  ;;  %v1896_v28 = vpop.f32.mrf.mxu0 }
 0x519   :  { %2182 = vmatpush.msra.mxu0 %v7505_v30  ;;  %v1897_v30 = vadd.f32 %v1896_v28, %v4748_v59 }
 0x51a   :  { %2222 = vmatpush.msra.mxu2 %v7511_v63  ;;  %v1916_v63 = vpop.f32.mrf.mxu1 }
 0x51b   :  { %2183 = vmatpush.msra.mxu0 %v7517_v5  ;;  %v1964_v5 = vmul.f32 0.5, %v1877_v34 }
 0x51c   :  { %2223 = vmatpush.msra.mxu2 %v7523_v33  ;;  %v1917_v33 = vadd.f32 %v1916_v63, %v1897_v30 }
 0x51d   :  { %2184 = vmatpush.msra.mxu0 %v7529_v35  ;;  %2713 = vtanh.f32 %v1964_v5  ;;  %v2712_v35 = vpop.eup %2711 }
 0x51e   :  { %2224 = vmatpush.msra.mxu2 %v7535_v11  ;;  %2715 = vtanh.f32 %v1917_v33  ;;  %v1936_v11 = vpop.f32.mrf.mxu2  ;;  %v2592_v33 = vld [vmem:[%s8951_s0 + $0xc0] sm:$0xff] }
 0x51f   :  { %2185 = vmatpush.msra.mxu0 %v7541_v56  ;;  %v1937_v56 = vadd.f32 %v1936_v11, %v4752_v42 }
 0x520   :  { %2225 = vmatpush.msra.mxu2 %v7547_v61  ;;  %v1956_v61 = vpop.f32.mrf.mxu3 }
 0x521   :  { %2186 = vmatpush.msra.mxu0 %v7553_v0  ;;  %v1962_v0 = vmul.f32 0.5, %v2712_v35 }
 0x522   :  { %2226 = vmatpush.msra.mxu2 %v7559_v29  ;;  %v1957_v29 = vadd.f32 %v1956_v61, %v1937_v56  ;;  %v2023_v12 = vpop.f32.mrf.mxu1 }
 0x523   :  { %2187 = vmatpush.msra.mxu0 %v7565_v7  ;;  %v2714_v7 = vpop.eup %2713  ;;  %v1963_v3 = vadd.f32 0.5, %v1962_v0  ;;  %v2067_v34 = vadd.f32 %v2593_v6, %v2023_v12 }
 0x524   :  { %2227 = vmatpush.msra.mxu2 %v7571_v49  ;;  %v1966_v49 = vmul.f32 0.5, %v2714_v7  ;;  %v1969_v20 = vmul.f32 0.5, %v1957_v29  ;;  %v2716_v22 = vpop.eup %2715 }
 0x525   :  { %v1974_v26 = vmul.f32 %v2716_v22, %v1963_v3  ;;  %v2075_v63 = vmul.f32 0.5, %v2067_v34  ;;  %v10347_v34 = vld [vmem:[#allocation13_spill] sm:$0xff] }
 0x526   :  { %v1967_v38 = vadd.f32 0.5, %v1966_v49  ;;  %2717 = vtanh.f32 %v1969_v20  ;;  %v2594_v20 = vld [vmem:[%s8951_s0 + $0xd0] sm:$0xff] }
 0x528   :  { %v1973_v24 = vmul.f32 %v1967_v38, %v7582_v55  ;;  %v2595_v55 = vld [vmem:[%s8951_s0 + $0xd8] sm:$0xff]  ;;  %v2063_v0 = vpop.f32.mrf.mxu3 }
 0x529   :  { %v2069_v49 = vadd.f32 %v2595_v55, %v2063_v0  ;;  %v10356_v55 = vld [vmem:[#allocation89_spill] sm:$0xff]  ;;  %v10357_v0 = vld [vmem:[#allocation20_spill] sm:$0xff] }
 0x52a   :  { %v8658_v28 = vadd.f32 %v1974_v26, %v1973_v24  ;;  %v10346_v26 = vld [vmem:[#allocation81_spill] sm:$0xff] }
 0x52b   :  { %v2080_v12 = vmul.f32 0.5, %v2069_v49  ;;  %v10360_v49 = vld [vmem:[#allocation91_spill] sm:$0xff] }
 0x52c   :  { %v2718_v30 = vpop.eup %2717  ;;  %2719 = vtanh.f32 %v8658_v28 }
 0x52d   :  { %v1971_v5 = vmul.f32 0.5, %v2718_v30  ;;  %2721 = vtanh.f32 %v2075_v63  ;;  %v10348_v30 = vld [vmem:[#allocation14_spill] sm:$0xff]  ;;  %v10349_v63 = vld [vmem:[#allocation15_spill] sm:$0xff] }
 0x52f   :  { %v1972_v35 = vadd.f32 0.5, %v1971_v5  ;;  %v10350_v5 = vld [vmem:[#allocation16_spill] sm:$0xff] }
 0x532   :  { %v2720_v56 = vpop.eup %2719 }
 0x533   :  { %v1977_v29 = vmul.f32 %v2720_v56, %v1972_v35  ;;  %v2722_v22 = vpop.eup %2721  ;;  %v10352_v35 = vld [vmem:[#allocation17_spill] sm:$0xff]  ;;  %v10354_v56 = vld [vmem:[#allocation86_spill] sm:$0xff] }
 0x534   :  { %v2077_v6 = vmul.f32 0.5, %v2722_v22  ;;  %v10362_v22 = vld [vmem:[#allocation90_spill] sm:$0xff] }
 0x535   :  { %2128 = vmatmul.f32.vlgmr.msrb.gmra.mxu1 %v1977_v29  ;;  %2168 = vmatmul.f32.vlgmr.msrb.gmra.mxu3 %v1977_v29 }
 0x536   :  { %v2003_v11 = vpop.f32.mrf.mxu0  ;;  %2299 = vmatpush.msrb.mxu1 %v7597_v13  ;;  %2339 = vmatpush.msrb.mxu3 %v7603_v46  ;;  %v2078_v46 = vadd.f32 0.5, %v2077_v6  ;;  %v10365_v6 = vld [vmem:[#allocation24_spill] sm:$0xff] }
 0x537   :  { %v2066_v61 = vadd.f32 %v2592_v33, %v2003_v11  ;;  %v10351_v33 = vld [vmem:[#allocation84_spill] sm:$0xff]  ;;  %v10353_v11 = vld [vmem:[#allocation18_spill] sm:$0xff] }
 0x538   :  { %2300 = vmatpush.msrb.mxu1 %v7609_v9  ;;  %2340 = vmatpush.msrb.mxu3 %v7615_v45 }
 0x539   :  { %v2071_v7 = vmul.f32 0.5, %v2066_v61  ;;  %v10355_v61 = vld [vmem:[#allocation19_spill] sm:$0xff] }
 0x53a   :  { %2301 = vmatpush.msrb.mxu1 %v7621_v57  ;;  %2341 = vmatpush.msrb.mxu3 %v7627_v32  ;;  %v2084_v57 = vmul.f32 %v2078_v46, %v7679_v16  ;;  %v10328_v16 = vld [vmem:[#allocation64_spill] sm:$0xff]  ;;  %v10369_v46 = vld [vmem:[#allocation26_spill] sm:$0xff] }
 0x53b   :  { %2723 = vtanh.f32 %v2071_v7  ;;  %v10359_v7 = vld [vmem:[#allocation21_spill] sm:$0xff] }
 0x53c   :  { %2302 = vmatpush.msrb.mxu1 %v7633_v2  ;;  %2342 = vmatpush.msrb.mxu3 %v7639_v54 }
 0x53d   :  { %2208 = vmatmul.f32.vlgmr.msra.gmra.mxu1 %v1977_v29  ;;  %2248 = vmatmul.f32.vlgmr.msra.gmra.mxu3 %v1977_v29  ;;  %v10358_v29 = vld [vmem:[#allocation88_spill] sm:$0xff] }
 0x53e   :  { %v2043_v3 = vpop.f32.mrf.mxu2  ;;  %2303 = vmatpush.msrb.mxu1 %v7645_v47  ;;  %2343 = vmatpush.msrb.mxu3 %v7651_v17 }
 0x53f   :  { %v2068_v38 = vadd.f32 %v2594_v20, %v2043_v3  ;;  %v10361_v20 = vld [vmem:[#allocation22_spill] sm:$0xff]  ;;  %v10363_v3 = vld [vmem:[#allocation23_spill] sm:$0xff] }
 0x540   :  { %2304 = vmatpush.msrb.mxu1 %v7657_v15  ;;  %2344 = vmatpush.msrb.mxu3 %v7663_v31 }
 0x541   :  { %2725 = vtanh.f32 %v2068_v38  ;;  %v2724_v24 = vpop.eup %2723  ;;  %v10364_v38 = vld [vmem:[#allocation93_spill] sm:$0xff] }
 0x542   :  { %v2073_v13 = vmul.f32 0.5, %v2724_v24  ;;  %2727 = vtanh.f32 %v2080_v12  ;;  %2305 = vmatpush.msrb.mxu1 %v7670_v23  ;;  %2345 = vmatpush.msrb.mxu3 %v7676_v18  ;;  %v10326_v23 = vld [vmem:[#allocation56_spill] sm:$0xff]  ;;  %v10327_v18 = vld [vmem:[#allocation63_spill] sm:$0xff]  ;;  %v10367_v24 = vld [vmem:[#allocation25_spill] sm:$0xff] }
 0x543   :  { %v10366_v12 = vld [vmem:[#allocation92_spill] sm:$0xff] }
 0x544   :  { %v2074_v9 = vadd.f32 0.5, %v2073_v13  ;;  %2306 = vmatpush.msrb.mxu1 %v7684_v19  ;;  %2346 = vmatpush.msrb.mxu3 %v7690_v62  ;;  %v10329_v19 = vld [vmem:[#allocation59_spill] sm:$0xff]  ;;  %v10330_v62 = vld [vmem:[#allocation60_spill] sm:$0xff] }
 0x545   :  { %v10368_v13 = vld [vmem:[#allocation95_spill] sm:$0xff] }
 0x546   :  { %2307 = vmatpush.msrb.mxu1 %v7697_v25  ;;  %2347 = vmatpush.msrb.mxu3 %v7703_v43  ;;  %v10331_v25 = vld [vmem:[#allocation71_spill] sm:$0xff]  ;;  %v10332_v43 = vld [vmem:[#allocation72_spill] sm:$0xff] }
 0x547   :  { %v2726_v45 = vpop.eup %2725 }
 0x548   :  { %v2085_v32 = vmul.f32 %v2726_v45, %v2074_v9  ;;  %v2728_v2 = vpop.eup %2727  ;;  %2308 = vmatpush.msrb.mxu1 %v7709_v48  ;;  %2348 = vmatpush.msrb.mxu3 %v7715_v52  ;;  %v10333_v48 = vld [vmem:[#allocation67_spill] sm:$0xff]  ;;  %v10334_v52 = vld [vmem:[#allocation68_spill] sm:$0xff]  ;;  %v10370_v9 = vld [vmem:[#allocation94_spill] sm:$0xff] }
 0x549   :  { %v2082_v47 = vmul.f32 0.5, %v2728_v2  ;;  %v10371_v45 = vld [vmem:[#allocation27_spill] sm:$0xff]  ;;  %v10374_v2 = vld [vmem:[#allocation96_spill] sm:$0xff] }
 0x54a   :  { %v8685_v54 = vadd.f32 %v2085_v32, %v2084_v57  ;;  %2309 = vmatpush.msrb.mxu1 %v7721_v37  ;;  %2349 = vmatpush.msrb.mxu3 %v7727_v40  ;;  %v10335_v37 = vld [vmem:[#allocation79_spill] sm:$0xff]  ;;  %v10336_v40 = vld [vmem:[#allocation6_spill] sm:$0xff]  ;;  %v10372_v57 = vld [vmem:[#allocation97_spill] sm:$0xff] }
 0x54b   :  { %v2083_v17 = vadd.f32 0.5, %v2082_v47  ;;  %v10373_v32 = vld [vmem:[#allocation28_spill] sm:$0xff]  ;;  %v10375_v47 = vld [vmem:[#allocation29_spill] sm:$0xff] }
 0x54c   :  { %2729 = vtanh.f32 %v8685_v54  ;;  %2310 = vmatpush.msrb.mxu1 %v7735_v50  ;;  %2350 = vmatpush.msrb.mxu3 %v7741_v51  ;;  %v10337_v50 = vld [vmem:[#allocation7_spill] sm:$0xff]  ;;  %v10338_v51 = vld [vmem:[#allocation8_spill] sm:$0xff] }
 0x54e   :  { %2311 = vmatpush.msrb.mxu1 %v7761_v10  ;;  %2351 = vmatpush.msrb.mxu3 %v7767_v44  ;;  %v10341_v10 = vld [vmem:[#allocation10_spill] sm:$0xff]  ;;  %v10342_v44 = vld [vmem:[#allocation77_spill] sm:$0xff] }
 0x550   :  { %2312 = vmatpush.msrb.mxu1 %v7785_v21  ;;  %2352 = vmatpush.msrb.mxu3 %v7791_v41  ;;  %v10344_v21 = vld [vmem:[#allocation83_spill] sm:$0xff]  ;;  %v10345_v41 = vld [vmem:[#allocation12_spill] sm:$0xff] }
 0x552   :  { %v2730_v15 = vpop.eup %2729  ;;  %2313 = vmatpush.msrb.mxu1 %v10327_v18  ;;  %2353 = vmatpush.msrb.mxu3 %v10328_v16  ;;  %v10379_v18 = vld [vmem:[#allocation31_spill] sm:$0xff]  ;;  %v10380_v16 = vld [vmem:[#allocation101_spill] sm:$0xff] }
 0x553   :  { %v8698_v31 = vmul.f32 %v2730_v15, %v2083_v17  ;;  %v10376_v17 = vld [vmem:[#allocation99_spill] sm:$0xff]  ;;  %v10377_v15 = vld [vmem:[#allocation30_spill] sm:$0xff] }
 0x554   :  { %2314 = vmatpush.msrb.mxu1 %v10331_v25  ;;  %2354 = vmatpush.msrb.mxu3 %v10332_v43  ;;  %v10383_v25 = vld [vmem:[#allocation33_spill] sm:$0xff]  ;;  %v10385_v43 = vld [vmem:[#allocation34_spill] sm:$0xff] }
 0x555   :  { %2108 = vmatmul.f32.vlgmr.msrb.gmra.mxu0 %v8698_v31  ;;  %2148 = vmatmul.f32.vlgmr.msrb.gmra.mxu2 %v8698_v31 }
 0x556   :  { %2279 = vmatpush.msrb.mxu0 %v7749_v58  ;;  %2319 = vmatpush.msrb.mxu2 %v7755_v60  ;;  %v10339_v58 = vld [vmem:[#allocation74_spill] sm:$0xff]  ;;  %v10340_v60 = vld [vmem:[#allocation9_spill] sm:$0xff] }
 0x557   :  { %2315 = vmatmul.f32.vlgmr.msrb.gmra.mxu1 %v8698_v31  ;;  %2355 = vmatmul.f32.vlgmr.msrb.gmra.mxu3 %v8698_v31 }
 0x558   :  { %2280 = vmatpush.msrb.mxu0 %v7773_v39  ;;  %2320 = vmatpush.msrb.mxu2 %v10326_v23  ;;  %v10343_v39 = vld [vmem:[#allocation11_spill] sm:$0xff]  ;;  %v10378_v23 = vld [vmem:[#allocation98_spill] sm:$0xff] }
 0x559   :  { %2405 = vmatpush.msra.mxu1 %v10338_v51  ;;  %2445 = vmatpush.msra.mxu3 %v10340_v60  ;;  %v10392_v51 = vld [vmem:[#allocation39_spill] sm:$0xff]  ;;  %v10394_v60 = vld [vmem:[#allocation41_spill] sm:$0xff] }
 0x55a   :  { %2281 = vmatpush.msrb.mxu0 %v10329_v19  ;;  %2321 = vmatpush.msrb.mxu2 %v10330_v62  ;;  %v10381_v19 = vld [vmem:[#allocation32_spill] sm:$0xff] }
 0x55b   :  { %2406 = vmatpush.msra.mxu1 %v10342_v44  ;;  %2446 = vmatpush.msra.mxu3 %v10344_v21  ;;  %v10382_v62 = vld [vmem:[#allocation100_spill] sm:$0xff]  ;;  %v10396_v44 = vld [vmem:[#allocation43_spill] sm:$0xff]  ;;  %v10398_v21 = vld [vmem:[#allocation45_spill] sm:$0xff] }
 0x55c   :  { %2282 = vmatpush.msrb.mxu0 %v10333_v48  ;;  %2322 = vmatpush.msrb.mxu2 %v10334_v52  ;;  %v10386_v48 = vld [vmem:[#allocation102_spill] sm:$0xff]  ;;  %v10387_v52 = vld [vmem:[#allocation35_spill] sm:$0xff] }
 0x55d   :  { %2188 = vmatmul.f32.vlgmr.msra.gmra.mxu0 %v8698_v31  ;;  %2228 = vmatmul.f32.vlgmr.msra.gmra.mxu2 %v8698_v31 }
 0x55e   :  { %2283 = vmatpush.msrb.mxu0 %v10335_v37  ;;  %2323 = vmatpush.msrb.mxu2 %v10336_v40  ;;  %v10388_v37 = vld [vmem:[#allocation36_spill] sm:$0xff]  ;;  %v10390_v40 = vld [vmem:[#allocation37_spill] sm:$0xff] }
 0x55f   :  { %2407 = vmatpush.msra.mxu1 %v10346_v26  ;;  %2447 = vmatpush.msra.mxu3 %v10348_v30  ;;  %v10400_v26 = vld [vmem:[#allocation47_spill] sm:$0xff]  ;;  %v10402_v30 = vld [vmem:[#allocation49_spill] sm:$0xff] }
 0x560   :  { %2284 = vmatpush.msrb.mxu0 %v10337_v50  ;;  %2324 = vmatpush.msrb.mxu2 %v10339_v58  ;;  %v10391_v50 = vld [vmem:[#allocation38_spill] sm:$0xff]  ;;  %v10393_v58 = vld [vmem:[#allocation40_spill] sm:$0xff] }
 0x561   :  { %2408 = vmatpush.msra.mxu1 %v10350_v5  ;;  %2448 = vmatpush.msra.mxu3 %v10352_v35  ;;  %v10404_v5 = vld [vmem:[#allocation51_spill] sm:$0xff]  ;;  %v10406_v35 = vld [vmem:[#allocation53_spill] sm:$0xff] }
 0x562   :  { %2285 = vmatpush.msrb.mxu0 %v10341_v10  ;;  %2325 = vmatpush.msrb.mxu2 %v10343_v39  ;;  %v10395_v10 = vld [vmem:[#allocation42_spill] sm:$0xff]  ;;  %v10397_v39 = vld [vmem:[#allocation44_spill] sm:$0xff] }
 0x563   :  { %2409 = vmatpush.msra.mxu1 %v10354_v56  ;;  %2449 = vmatpush.msra.mxu3 %v10356_v55  ;;  %v10408_v56 = vld [vmem:[#allocation55_spill] sm:$0xff]  ;;  %v10410_v55 = vld [vmem:[#allocation58_spill] sm:$0xff] }
 0x564   :  { %2286 = vmatpush.msrb.mxu0 %v10345_v41  ;;  %2326 = vmatpush.msrb.mxu2 %v10347_v34  ;;  %v10399_v41 = vld [vmem:[#allocation46_spill] sm:$0xff]  ;;  %v10401_v34 = vld [vmem:[#allocation48_spill] sm:$0xff] }
 0x565   :  { %2410 = vmatpush.msra.mxu1 %v10358_v29  ;;  %2450 = vmatpush.msra.mxu3 %v10360_v49  ;;  %v10412_v29 = vld [vmem:[#allocation62_spill] sm:$0xff] }
 0x566   :  { %2287 = vmatpush.msrb.mxu0 %v10349_v63  ;;  %2327 = vmatpush.msrb.mxu2 %v10351_v33  ;;  %v10403_v63 = vld [vmem:[#allocation50_spill] sm:$0xff]  ;;  %v10405_v33 = vld [vmem:[#allocation52_spill] sm:$0xff] }
 0x567   :  { %2411 = vmatpush.msra.mxu1 %v10362_v22  ;;  %2451 = vmatpush.msra.mxu3 %v10364_v38  ;;  %v10414_v49 = vld [vmem:[#allocation66_spill] sm:$0xff]  ;;  %v10418_v38 = vld [vmem:[#allocation75_spill] sm:$0xff] }
 0x568   :  { %2288 = vmatpush.msrb.mxu0 %v10353_v11  ;;  %2328 = vmatpush.msrb.mxu2 %v10355_v61  ;;  %v10407_v11 = vld [vmem:[#allocation54_spill] sm:$0xff]  ;;  %v10409_v61 = vld [vmem:[#allocation57_spill] sm:$0xff] }
 0x569   :  { %2412 = vmatpush.msra.mxu1 %v10366_v12  ;;  %2452 = vmatpush.msra.mxu3 %v10368_v13  ;;  %v10416_v22 = vld [vmem:[#allocation70_spill] sm:$0xff] }
 0x56a   :  { %2289 = vmatpush.msrb.mxu0 %v10357_v0  ;;  %2329 = vmatpush.msrb.mxu2 %v10359_v7  ;;  %v10411_v0 = vld [vmem:[#allocation61_spill] sm:$0xff]  ;;  %v10420_v12 = vld [vmem:[#allocation78_spill] sm:$0xff] }
 0x56b   :  { %2413 = vmatpush.msra.mxu1 %v10370_v9  ;;  %2453 = vmatpush.msra.mxu3 %v10372_v57  ;;  %v10413_v7 = vld [vmem:[#allocation65_spill] sm:$0xff]  ;;  %v10422_v13 = vld [vmem:[#allocation82_spill] sm:$0xff]  ;;  %v10424_v9 = vld [vmem:[#allocation87_spill] sm:$0xff] }
 0x56c   :  { %2290 = vmatpush.msrb.mxu0 %v10361_v20  ;;  %2330 = vmatpush.msrb.mxu2 %v10363_v3  ;;  %v10415_v20 = vld [vmem:[#allocation69_spill] sm:$0xff]  ;;  %v10426_v57 = vld [vmem:[#allocation106_spill] sm:$0xff] }
 0x56d   :  { %2414 = vmatpush.msra.mxu1 %v10374_v2  ;;  %2454 = vmatpush.msra.mxu3 %v8095_v8  ;;  %v10384_v8 = vld [vmem:[#allocation103_spill] sm:$0xff]  ;;  %v10417_v3 = vld [vmem:[#allocation73_spill] sm:$0xff]  ;;  %v10428_v2 = vld [vmem:[#allocation108_spill] sm:$0xff] }
 0x56e   :  { %2291 = vmatpush.msrb.mxu0 %v10365_v6  ;;  %2331 = vmatpush.msrb.mxu2 %v10367_v24  ;;  %v10419_v6 = vld [vmem:[#allocation76_spill] sm:$0xff] }
 0x56f   :  { %2415 = vmatpush.msra.mxu1 %v10377_v15  ;;  %2455 = vmatpush.msra.mxu3 %v10379_v18  ;;  %v10421_v24 = vld [vmem:[#allocation80_spill] sm:$0xff]  ;;  %v10431_v15 = vld [vmem:[#allocation111_spill] sm:$0xff]  ;;  %v10433_v18 = vld [vmem:[#allocation113_spill] sm:$0xff] }
 0x570   :  { %2292 = vmatpush.msrb.mxu0 %v10369_v46  ;;  %2332 = vmatpush.msrb.mxu2 %v10371_v45  ;;  %v10423_v46 = vld [vmem:[#allocation85_spill] sm:$0xff] }
 0x571   :  { %2416 = vmatpush.msra.mxu1 %v10380_v16  ;;  %2456 = vmatpush.msra.mxu3 %v10382_v62  ;;  %v10425_v45 = vld [vmem:[#allocation105_spill] sm:$0xff]  ;;  %v10434_v16 = vld [vmem:[#allocation114_spill] sm:$0xff]  ;;  %v10436_v62 = vld [vmem:[#allocation116_spill] sm:$0xff] }
 0x572   :  { %2293 = vmatpush.msrb.mxu0 %v10373_v32  ;;  %2333 = vmatpush.msrb.mxu2 %v10375_v47  ;;  %v10427_v32 = vld [vmem:[#allocation107_spill] sm:$0xff]  ;;  %v10429_v47 = vld [vmem:[#allocation109_spill] sm:$0xff] }
 0x573   :  { %2417 = vmatpush.msra.mxu1 %v10384_v8  ;;  %2457 = vmatpush.msra.mxu3 %v10386_v48  ;;  %v10438_v8 = vld [vmem:[#allocation118_spill] sm:$0xff]  ;;  %v10440_v48 = vld [vmem:[#allocation120_spill] sm:$0xff] }
 0x574   :  { %2294 = vmatpush.msrb.mxu0 %v10376_v17  ;;  %2334 = vmatpush.msrb.mxu2 %v10378_v23  ;;  %v10430_v17 = vld [vmem:[#allocation110_spill] sm:$0xff]  ;;  %v10432_v23 = vld [vmem:[#allocation112_spill] sm:$0xff] }
 0x575   :  { %2295 = vmatmul.f32.vlgmr.msrb.gmra.mxu0 %v8698_v31  ;;  %2335 = vmatmul.f32.vlgmr.msrb.gmra.mxu2 %v8698_v31  ;;  %v10389_v31 = vld [vmem:[#allocation104_spill] sm:$0xff] }
 0x576   :  { %2385 = vmatpush.msra.mxu0 %v10381_v19  ;;  %2425 = vmatpush.msra.mxu2 %v10383_v25  ;;  %v10435_v19 = vld [vmem:[#allocation115_spill] sm:$0xff]  ;;  %v10437_v25 = vld [vmem:[#allocation117_spill] sm:$0xff] }
 0x577   :  { %2418 = vmatpush.msra.mxu1 %v10388_v37  ;;  %2458 = vmatpush.msra.mxu3 %v10390_v40  ;;  %v10442_v37 = vld [vmem:[#allocation122_spill] sm:$0xff]  ;;  %v10444_v40 = vld [vmem:[#allocation124_spill] sm:$0xff] }
 0x578   :  { %2386 = vmatpush.msra.mxu0 %v10385_v43  ;;  %2426 = vmatpush.msra.mxu2 %v10387_v52  ;;  %v10439_v43 = vld [vmem:[#allocation119_spill] sm:$0xff]  ;;  %v10441_v52 = vld [vmem:[#allocation121_spill] sm:$0xff] }
 0x579   :  { %2419 = vmatpush.msra.mxu1 %v10392_v51  ;;  %2459 = vmatpush.msra.mxu3 %v10394_v60  ;;  %v10446_v51 = vld [vmem:[#allocation126_spill] sm:$0xff]  ;;  %v10448_v60 = vld [vmem:[#allocation128_spill] sm:$0xff] }
 0x57a   :  { %2387 = vmatpush.msra.mxu0 %v10389_v31  ;;  %2427 = vmatpush.msra.mxu2 %v10391_v50  ;;  %v10443_v31 = vld [vmem:[#allocation123_spill] sm:$0xff]  ;;  %v10445_v50 = vld [vmem:[#allocation125_spill] sm:$0xff] }
 0x57b   :  { %2420 = vmatpush.msra.mxu1 %v10396_v44  ;;  %2460 = vmatpush.msra.mxu3 %v10398_v21  ;;  %v10450_v44 = vld [vmem:[#allocation130_spill] sm:$0xff]  ;;  %v10452_v21 = vld [vmem:[#allocation132_spill] sm:$0xff] }
 0x57c   :  { %2388 = vmatpush.msra.mxu0 %v10393_v58  ;;  %2428 = vmatpush.msra.mxu2 %v10395_v10  ;;  %v10447_v58 = vld [vmem:[#allocation127_spill] sm:$0xff]  ;;  %v10449_v10 = vld [vmem:[#allocation129_spill] sm:$0xff] }
 0x57d   :  { %2485 = vmatpush.msrb.mxu1 %v10400_v26  ;;  %2525 = vmatpush.msrb.mxu3 %v10401_v34  ;;  %v10454_v26 = vld [vmem:[#allocation134_spill] sm:$0xff]  ;;  %v10455_v34 = vld [vmem:[#allocation135_spill] sm:$0xff] }
 0x57e   :  { %2389 = vmatpush.msra.mxu0 %v10397_v39  ;;  %2429 = vmatpush.msra.mxu2 %v10399_v41  ;;  %v10451_v39 = vld [vmem:[#allocation131_spill] sm:$0xff]  ;;  %v10453_v41 = vld [vmem:[#allocation133_spill] sm:$0xff] }
 0x57f   :  { %2486 = vmatpush.msrb.mxu1 %v10404_v5  ;;  %2526 = vmatpush.msrb.mxu3 %v10405_v33  ;;  %v10458_v5 = vld [vmem:[#allocation138_spill] sm:$0xff]  ;;  %v10459_v33 = vld [vmem:[#allocation139_spill] sm:$0xff] }
 0x580   :  { %2390 = vmatpush.msra.mxu0 %v10402_v30  ;;  %2430 = vmatpush.msra.mxu2 %v10403_v63  ;;  %v10456_v30 = vld [vmem:[#allocation136_spill] sm:$0xff]  ;;  %v10457_v63 = vld [vmem:[#allocation137_spill] sm:$0xff] }
 0x581   :  { %2487 = vmatpush.msrb.mxu1 %v10408_v56  ;;  %2527 = vmatpush.msrb.mxu3 %v10409_v61  ;;  %v3321_v56 = vld [vmem:[%s8950_s2 + $0xf0] sm:$0xff]  ;;  %v3322_v61 = vld [vmem:[%s8950_s2 + $0xf8] sm:$0xff] }
 0x582   :  { %2391 = vmatpush.msra.mxu0 %v10406_v35  ;;  %2431 = vmatpush.msra.mxu2 %v10407_v11  ;;  %v3315_v35 = vld [vmem:[%s8950_s2 + $0x150] sm:$0xff]  ;;  %v3316_v11 = vld [vmem:[%s8950_s2 + $0x158] sm:$0xff] }
 0x583   :  { %2488 = vmatpush.msrb.mxu1 %v10412_v29  ;;  %2528 = vmatpush.msrb.mxu3 %v10413_v7  ;;  %v3325_v29 = vld [vmem:[%s8950_s2 + $0xb0] sm:$0xff]  ;;  %v3326_v7 = vld [vmem:[%s8950_s2 + $0xb8] sm:$0xff] }
 0x584   :  { %2392 = vmatpush.msra.mxu0 %v10410_v55  ;;  %2432 = vmatpush.msra.mxu2 %v10411_v0  ;;  %v3323_v55 = vld [vmem:[%s8950_s2 + $0xd0] sm:$0xff]  ;;  %v3324_v0 = vld [vmem:[%s8950_s2 + $0xd8] sm:$0xff] }
 0x585   :  { %2489 = vmatpush.msrb.mxu1 %v10416_v22  ;;  %2529 = vmatpush.msrb.mxu3 %v10417_v3  ;;  %v3329_v22 = vld [vmem:[%s8950_s2 + $0x70] sm:$0xff]  ;;  %v3330_v3 = vld [vmem:[%s8950_s2 + $0x78] sm:$0xff] }
 0x586   :  { %2393 = vmatpush.msra.mxu0 %v10414_v49  ;;  %2433 = vmatpush.msra.mxu2 %v10415_v20  ;;  %v3327_v49 = vld [vmem:[%s8950_s2 + $0x90] sm:$0xff]  ;;  %v3328_v20 = vld [vmem:[%s8950_s2 + $0x98] sm:$0xff] }
 0x587   :  { %2490 = vmatpush.msrb.mxu1 %v10420_v12  ;;  %2530 = vmatpush.msrb.mxu3 %v10421_v24  ;;  %v3333_v12 = vld [vmem:[%s8950_s2 + $0x30] sm:$0xff]  ;;  %v3334_v24 = vld [vmem:[%s8950_s2 + $0x38] sm:$0xff] }
 0x588   :  { %2394 = vmatpush.msra.mxu0 %v10418_v38  ;;  %2434 = vmatpush.msra.mxu2 %v10419_v6  ;;  %v3331_v38 = vld [vmem:[%s8950_s2 + $0x50] sm:$0xff]  ;;  %v3332_v6 = vld [vmem:[%s8950_s2 + $0x58] sm:$0xff] }
 0x589   :  { %2491 = vmatpush.msrb.mxu1 %v10424_v9  ;;  %2531 = vmatpush.msrb.mxu3 %v10425_v45 }
 0x58a   :  { %2395 = vmatpush.msra.mxu0 %v10422_v13  ;;  %2435 = vmatpush.msra.mxu2 %v10423_v46  ;;  %v3335_v13 = vld [vmem:[%s8950_s2 + $0x10] sm:$0xff]  ;;  %v3336_v46 = vld [vmem:[%s8950_s2 + $0x18] sm:$0xff] }
 0x58b   :  { %2492 = vmatpush.msrb.mxu1 %v10428_v2  ;;  %2532 = vmatpush.msrb.mxu3 %v10429_v47 }
 0x58c   :  { %2396 = vmatpush.msra.mxu0 %v10426_v57  ;;  %2436 = vmatpush.msra.mxu2 %v10427_v32 }
 0x58d   :  { %2493 = vmatpush.msrb.mxu1 %v10432_v23  ;;  %2533 = vmatpush.msrb.mxu3 %v10433_v18 }
 0x58e   :  { %2397 = vmatpush.msra.mxu0 %v10430_v17  ;;  %2437 = vmatpush.msra.mxu2 %v10431_v15 }
 0x58f   :  { %2494 = vmatpush.msrb.mxu1 %v10436_v62  ;;  %2534 = vmatpush.msrb.mxu3 %v10437_v25 }
 0x590   :  { %2398 = vmatpush.msra.mxu0 %v10434_v16  ;;  %2438 = vmatpush.msra.mxu2 %v10435_v19 }
 0x591   :  { %2495 = vmatpush.msrb.mxu1 %v10440_v48  ;;  %2535 = vmatpush.msrb.mxu3 %v10441_v52 }
 0x592   :  { %2399 = vmatpush.msra.mxu0 %v10438_v8  ;;  %2439 = vmatpush.msra.mxu2 %v10439_v43 }
 0x593   :  { %2496 = vmatpush.msrb.mxu1 %v10444_v40  ;;  %2536 = vmatpush.msrb.mxu3 %v10445_v50 }
 0x594   :  { %2400 = vmatpush.msra.mxu0 %v10442_v37  ;;  %2440 = vmatpush.msra.mxu2 %v10443_v31 }
 0x595   :  { %2497 = vmatpush.msrb.mxu1 %v10448_v60  ;;  %2537 = vmatpush.msrb.mxu3 %v10449_v10  ;;  %v2597_v60 = vld [vmem:[%s8951_s0 + $0xe8] sm:$0xff] }
 0x596   :  { %2465 = vmatpush.msrb.mxu0 %v10446_v51  ;;  %2505 = vmatpush.msrb.mxu2 %v10447_v58 }
 0x597   :  { %2498 = vmatpush.msrb.mxu1 %v10452_v21  ;;  %2538 = vmatpush.msrb.mxu3 %v10453_v41 }
 0x598   :  { %2466 = vmatpush.msrb.mxu0 %v10450_v44  ;;  %2506 = vmatpush.msrb.mxu2 %v10451_v39 }
 0x599   :  { %2499 = vmatpush.msrb.mxu1 %v10456_v30  ;;  %2539 = vmatpush.msrb.mxu3 %v10457_v63 }
 0x59a   :  { %2467 = vmatpush.msrb.mxu0 %v10454_v26  ;;  %2507 = vmatpush.msrb.mxu2 %v10455_v34 }
 0x59b   :  { %2500 = vmatpush.msrb.mxu1 %v8607_v1  ;;  %2540 = vmatpush.msrb.mxu3 %v8613_v53  ;;  %v3317_v1 = vld [vmem:[%s8950_s2 + $0x130] sm:$0xff]  ;;  %v3318_v53 = vld [vmem:[%s8950_s2 + $0x138] sm:$0xff] }
 0x59c   :  { %2468 = vmatpush.msrb.mxu0 %v10458_v5  ;;  %2508 = vmatpush.msrb.mxu2 %v10459_v33  ;;  %v2596_v33 = vld [vmem:[%s8951_s0 + $0xe0] sm:$0xff] }
 0x59e   :  { %2469 = vmatpush.msrb.mxu0 %v8619_v36  ;;  %2509 = vmatpush.msrb.mxu2 %v8625_v27  ;;  %v3319_v27 = vld [vmem:[%s8950_s2 + $0x110] sm:$0xff]  ;;  %v3320_v36 = vld [vmem:[%s8950_s2 + $0x118] sm:$0xff] }
 0x5a0   :  { %2470 = vmatpush.msrb.mxu0 %v3315_v35  ;;  %2510 = vmatpush.msrb.mxu2 %v3316_v11 }
 0x5a2   :  { %2471 = vmatpush.msrb.mxu0 %v3317_v1  ;;  %2511 = vmatpush.msrb.mxu2 %v3318_v53 }
 0x5a4   :  { %2472 = vmatpush.msrb.mxu0 %v3319_v27  ;;  %2512 = vmatpush.msrb.mxu2 %v3320_v36 }
 0x5a6   :  { %2473 = vmatpush.msrb.mxu0 %v3321_v56  ;;  %2513 = vmatpush.msrb.mxu2 %v3322_v61 }
 0x5a8   :  { %2474 = vmatpush.msrb.mxu0 %v3323_v55  ;;  %2514 = vmatpush.msrb.mxu2 %v3324_v0  ;;  %v2598_v55 = vld [vmem:[%s8951_s0 + $0xf0] sm:$0xff] }
 0x5aa   :  { %2475 = vmatpush.msrb.mxu0 %v3325_v29  ;;  %2515 = vmatpush.msrb.mxu2 %v3326_v7 }
 0x5ac   :  { %2476 = vmatpush.msrb.mxu0 %v3327_v49  ;;  %2516 = vmatpush.msrb.mxu2 %v3328_v20 }
 0x5ae   :  { %2477 = vmatpush.msrb.mxu0 %v3329_v22  ;;  %2517 = vmatpush.msrb.mxu2 %v3330_v3 }
 0x5b0   :  { %2478 = vmatpush.msrb.mxu0 %v3331_v38  ;;  %2518 = vmatpush.msrb.mxu2 %v3332_v6 }
 0x5b2   :  { %2479 = vmatpush.msrb.mxu0 %v3333_v12  ;;  %2519 = vmatpush.msrb.mxu2 %v3334_v24  ;;  %v2129_v9 = vpop.f32.mrf.mxu1 }
 0x5b4   :  { %2480 = vmatpush.msrb.mxu0 %v3335_v13  ;;  %2520 = vmatpush.msrb.mxu2 %v3336_v46 }
 0x5b8   :  { %v2169_v47 = vpop.f32.mrf.mxu3 }
 0x5ba   :  { %v2209_v19 = vpop.f32.mrf.mxu1 }
 0x5c0   :  { %v2249_v52 = vpop.f32.mrf.mxu3 }
 0x5d2   :  { %v2109_v45 = vpop.f32.mrf.mxu0 }
 0x5d3   :  { %v2110_v57 = vadd.f32 %v2109_v45, %v4743_v4 }
 0x5d4   :  { %v2316_v10 = vpop.f32.mrf.mxu1 }
 0x5d5   :  { %v2130_v32 = vadd.f32 %v2129_v9, %v2110_v57  ;;  %v2360_v26 = vadd.f32 %v2597_v60, %v2316_v10 }
 0x5d7   :  { %v2253_v2 = vmul.f32 0.5, %v2130_v32  ;;  %v2368_v63 = vmul.f32 0.5, %v2360_v26 }
 0x5d8   :  { %v2149_v17 = vpop.f32.mrf.mxu2 }
 0x5d9   :  { %v2150_v15 = vadd.f32 %v2149_v17, %v4746_v14  ;;  %2731 = vtanh.f32 %v2253_v2 }
 0x5da   :  { %v2189_v23 = vpop.f32.mrf.mxu0  ;;  %v2356_v27 = vpop.f32.mrf.mxu3 }
 0x5db   :  { %v2170_v18 = vadd.f32 %v2169_v47, %v2150_v15  ;;  %v2190_v16 = vadd.f32 %v2189_v23, %v4748_v59 }
 0x5dd   :  { %v2257_v62 = vmul.f32 0.5, %v2170_v18  ;;  %v2210_v25 = vadd.f32 %v2209_v19, %v2190_v16 }
 0x5df   :  { %2733 = vtanh.f32 %v2257_v62  ;;  %v2732_v43 = vpop.eup %2731 }
 0x5e0   :  { %v2229_v8 = vpop.f32.mrf.mxu2  ;;  %2735 = vtanh.f32 %v2210_v25  ;;  %v2255_v31 = vmul.f32 0.5, %v2732_v43 }
 0x5e1   :  { %v2230_v48 = vadd.f32 %v2229_v8, %v4752_v42 }
 0x5e2   :  { %v2256_v44 = vadd.f32 0.5, %v2255_v31 }
 0x5e3   :  { %v2250_v37 = vadd.f32 %v2249_v52, %v2230_v48 }
 0x5e5   :  { %v2734_v40 = vpop.eup %2733  ;;  %v2262_v50 = vmul.f32 0.5, %v2250_v37 }
 0x5e6   :  { %v2259_v51 = vmul.f32 0.5, %v2734_v40  ;;  %v2736_v58 = vpop.eup %2735 }
 0x5e7   :  { %2737 = vtanh.f32 %v2262_v50  ;;  %v2267_v41 = vmul.f32 %v2736_v58, %v2256_v44 }
 0x5e8   :  { %v2260_v39 = vadd.f32 0.5, %v2259_v51 }
 0x5ea   :  { %v2266_v21 = vmul.f32 %v2260_v39, %v8658_v28  ;;  %v2599_v28 = vld [vmem:[%s8951_s0 + $0xf8] sm:$0xff] }
 0x5eb   :  { %v2362_v61 = vadd.f32 %v2599_v28, %v2356_v27 }
 0x5ec   :  { %v8928_v34 = vadd.f32 %v2267_v41, %v2266_v21 }
 0x5ed   :  { %v2738_v30 = vpop.eup %2737  ;;  %v2373_v20 = vmul.f32 0.5, %v2362_v61 }
 0x5ee   :  { %2739 = vtanh.f32 %v8928_v34  ;;  %v2264_v5 = vmul.f32 0.5, %v2738_v30 }
 0x5ef   :  { %2741 = vtanh.f32 %v2368_v63 }
 0x5f0   :  { %v2265_v11 = vadd.f32 0.5, %v2264_v5 }
 0x5f2   :  { %v2296_v35 = vpop.f32.mrf.mxu0 }
 0x5f3   :  { %v2359_v1 = vadd.f32 %v2596_v33, %v2296_v35 }
 0x5f4   :  { %v2740_v53 = vpop.eup %2739 }
 0x5f5   :  { %v2364_v36 = vmul.f32 0.5, %v2359_v1  ;;  %v2270_v56 = vmul.f32 %v2740_v53, %v2265_v11  ;;  %v2742_v0 = vpop.eup %2741 }
 0x5f6   :  { %v2370_v49 = vmul.f32 0.5, %v2742_v0 }
 0x5f7   :  { %2743 = vtanh.f32 %v2364_v36  ;;  %2421 = vmatmul.f32.vlgmr.msra.gmra.mxu1 %v2270_v56  ;;  %2461 = vmatmul.f32.vlgmr.msra.gmra.mxu3 %v2270_v56 }
 0x5f8   :  { %v2336_v29 = vpop.f32.mrf.mxu2  ;;  %v2371_v38 = vadd.f32 0.5, %v2370_v49 }
 0x5f9   :  { %v2361_v7 = vadd.f32 %v2598_v55, %v2336_v29 }
 0x5fa   :  { %v2377_v24 = vmul.f32 %v2371_v38, %v8685_v54 }
 0x5fb   :  { %2745 = vtanh.f32 %v2361_v7 }
 0x5fc   :  { %2747 = vtanh.f32 %v2373_v20 }
 0x5fd   :  { %v2744_v22 = vpop.eup %2743 }
 0x5fe   :  { %v2366_v3 = vmul.f32 0.5, %v2744_v22 }
 0x5ff   :  { %2501 = vmatmul.f32.vlgmr.msrb.gmra.mxu1 %v2270_v56  ;;  %2541 = vmatmul.f32.vlgmr.msrb.gmra.mxu3 %v2270_v56 }
 0x600   :  { %v2367_v6 = vadd.f32 0.5, %v2366_v3 }
 0x601   :  { %v2746_v12 = vpop.eup %2745 }
 0x602   :  { %v2378_v13 = vmul.f32 %v2746_v12, %v2367_v6  ;;  %v2748_v46 = vpop.eup %2747 }
 0x603   :  { %v2375_v45 = vmul.f32 0.5, %v2748_v46 }
 0x604   :  { %v2379_v9 = vadd.f32 %v2378_v13, %v2377_v24 }
 0x605   :  { %v2376_v57 = vadd.f32 0.5, %v2375_v45 }
 0x606   :  { %2749 = vtanh.f32 %v2379_v9 }
 0x60c   :  { %v2750_v32 = vpop.eup %2749 }
 0x60d   :  { %v2381_v2 = vmul.f32 %v2750_v32, %v2376_v57 }
 0x60f   :  { %2401 = vmatmul.f32.vlgmr.msra.gmra.mxu0 %v2381_v2  ;;  %2441 = vmatmul.f32.vlgmr.msra.gmra.mxu2 %v2381_v2 }
 0x617   :  { %2481 = vmatmul.f32.vlgmr.msrb.gmra.mxu0 %v2381_v2  ;;  %2521 = vmatmul.f32.vlgmr.msrb.gmra.mxu2 %v2381_v2 }
 0x674   :  { %v2422_v47 = vpop.f32.mrf.mxu1 }
 0x67a   :  { %v2462_v16 = vpop.f32.mrf.mxu3 }
 0x67c   :  { %v2502_v43 = vpop.f32.mrf.mxu1 }
 0x682   :  { %v2542_v40 = vpop.f32.mrf.mxu3 }
 0x68c   :  { %v2402_v17 = vpop.f32.mrf.mxu0 }
 0x68d   :  { %v2403_v15 = vadd.f32 %v2402_v17, %v4743_v4 }
 0x68f   :  { %v2423_v23 = vadd.f32 %v2422_v47, %v2403_v15 }
 0x691   :  { %v2546_v18 = vmul.f32 0.5, %v2423_v23 }
 0x692   :  { %v2442_v54 = vpop.f32.mrf.mxu2 }
 0x693   :  { %v2443_v19 = vadd.f32 %v2442_v54, %v4746_v14  ;;  %2751 = vtanh.f32 %v2546_v18 }
 0x694   :  { %v2482_v62 = vpop.f32.mrf.mxu0 }
 0x695   :  { %v2463_v25 = vadd.f32 %v2462_v16, %v2443_v19  ;;  %v2483_v8 = vadd.f32 %v2482_v62, %v4748_v59 }
 0x697   :  { %v2550_v48 = vmul.f32 0.5, %v2463_v25  ;;  %v2503_v52 = vadd.f32 %v2502_v43, %v2483_v8 }
 0x699   :  { %2753 = vtanh.f32 %v2550_v48  ;;  %v2752_v31 = vpop.eup %2751 }
 0x69a   :  { %v2522_v37 = vpop.f32.mrf.mxu2  ;;  %2755 = vtanh.f32 %v2503_v52  ;;  %v2548_v51 = vmul.f32 0.5, %v2752_v31 }
 0x69b   :  { %v2523_v4 = vadd.f32 %v2522_v37, %v4752_v42 }
 0x69c   :  { %v2549_v44 = vadd.f32 0.5, %v2548_v51 }
 0x69d   :  { %v2543_v50 = vadd.f32 %v2542_v40, %v2523_v4 }
 0x69f   :  { %v2754_v58 = vpop.eup %2753  ;;  %v2555_v60 = vmul.f32 0.5, %v2543_v50 }
 0x6a0   :  { %v2552_v14 = vmul.f32 0.5, %v2754_v58  ;;  %v2756_v10 = vpop.eup %2755 }
 0x6a1   :  { %2757 = vtanh.f32 %v2555_v60  ;;  %v2560_v21 = vmul.f32 %v2756_v10, %v2549_v44 }
 0x6a2   :  { %v2553_v39 = vadd.f32 0.5, %v2552_v14 }
 0x6a4   :  { %v2559_v59 = vmul.f32 %v2553_v39, %v8928_v34 }
 0x6a6   :  { %v2561_v41 = vadd.f32 %v2560_v21, %v2559_v59 }
 0x6a7   :  { %v2758_v26 = vpop.eup %2757 }
 0x6a8   :  { %2759 = vtanh.f32 %v2561_v41  ;;  %v2557_v30 = vmul.f32 0.5, %v2758_v26 }
 0x6aa   :  { %v2558_v63 = vadd.f32 0.5, %v2557_v30 }
 0x6ae   :  { %v2760_v5 = vpop.eup %2759 }
 0x6af   :  { %v2563_v42 = vmul.f32 %v2760_v5, %v2558_v63 }
 0x6b1   :  { %2567 = vst [vmem:[%s8953_s4] sm:$0xff] %v2563_v42 }

</bundles_post_ra>
